<compile_context>
chip_gen: v5e
topology: v5e:2x2
jax: 0.10.0
libtpu: 0.0.40
codegen_flags: <defaults>
</compile_context>

<pallas_src>
import functools

import jax
import jax.numpy as jnp
from jax.experimental import pallas as pl
from jax.experimental.pallas import tpu as pltpu

# Logical (PyTorch) layer widths.
# Encoder: 784 -> 512 -> 256 -> 128 -> 3   (Tanh after each)
# Decoder:   3 -> 128 -> 256 -> 512 -> 784 (Tanh, Tanh, Tanh, Sigmoid)
ENC_DIMS = [784, 512, 256, 128, 3]
DEC_DIMS = [3, 128, 256, 512, 784]

# Kernel-side (lane-padded) widths.
ENC_PAD = 128          # 3-wide bottleneck -> 128 lanes (dense vst)
DEC_PAD = 896          # 784 -> 7*128 lanes (dense vst)
_ENC_DIMS_K = [784, 512, 256, 128, ENC_PAD]
_DEC_DIMS_K = [ENC_PAD, 128, 256, 512, DEC_PAD]

_KPARAM_SHAPES = []
for _dims in (_ENC_DIMS_K, _DEC_DIMS_K):
    for _i in range(4):
        _KPARAM_SHAPES.append((_dims[_i], _dims[_i + 1]))  # weight [in, out]
        _KPARAM_SHAPES.append((1, _dims[_i + 1]))          # bias   [1, out]
_KPARAM_SHAPES = tuple(_KPARAM_SHAPES)


def _round_up(n, m):
    return ((n + m - 1) // m) * m


def _endecoder_kernel(x_ref,
                      # encoder weights/biases (bf16 / f32)
                      ew1, eb1, ew2, eb2, ew3, eb3, ew4, eb4,
                      # decoder weights/biases (bf16 / f32)
                      dw1, db1, dw2, db2, dw3, db3, dw4, db4,
                      enc_ref, dec_ref):
    bf16 = jnp.bfloat16

    def linear(h_bf16, w_ref, b_ref):
        # bf16 x bf16 -> f32 accumulation on the MXU, f32 bias add.
        y = jnp.dot(h_bf16, w_ref[...], preferred_element_type=jnp.float32)
        return y + b_ref[...]          # (1, out) broadcasts over rows

    # ---- Encoder ----
    h = jnp.tanh(linear(x_ref[...], ew1, eb1))
    h = jnp.tanh(linear(h.astype(bf16), ew2, eb2))
    h = jnp.tanh(linear(h.astype(bf16), ew3, eb3))
    enc = jnp.tanh(linear(h.astype(bf16), ew4, eb4))   # (tm, 128); lanes >= 3 are 0
    enc_ref[...] = enc.astype(enc_ref.dtype)

    # ---- Decoder ----
    h = jnp.tanh(linear(enc.astype(bf16), dw1, db1))
    h = jnp.tanh(linear(h.astype(bf16), dw2, db2))
    h = jnp.tanh(linear(h.astype(bf16), dw3, db3))
    y = linear(h.astype(bf16), dw4, db4)                # (tm, 896)
    dec_ref[...] = jax.nn.sigmoid(y).astype(dec_ref.dtype)


def init_params(key):
    """PyTorch-default-like init: U(-1/sqrt(fan_in), 1/sqrt(fan_in)).

    Returns the *logical* (unpadded, f32) parameters:
      [ew1, eb1, ..., ew4, eb4, dw1, db1, ..., dw4, db4],
    weights as [in_features, out_features], biases as [1, out_features].
    """
    params = []
    for dims in (ENC_DIMS, DEC_DIMS):
        for i in range(len(dims) - 1):
            fan_in, fan_out = dims[i], dims[i + 1]
            key, kw, kb = jax.random.split(key, 3)
            bound = 1.0 / (fan_in ** 0.5)
            w = jax.random.uniform(kw, (fan_in, fan_out), jnp.float32,
                                   -bound, bound)
            b = jax.random.uniform(kb, (1, fan_out), jnp.float32,
                                   -bound, bound)
            params += [w, b]
    return params


def prepare_params(params):
    """Zero-pad the narrow layers to lane-dense widths and cast weights to bf16."""
    ws, bs = params[0::2], params[1::2]
    pads = {3: (0, ENC_PAD - 3),      # ew4: (128, 3)   -> (128, 128)
            4: (ENC_PAD - 3, 0),      # dw1: (3, 128)   -> (128, 128)
            7: (0, DEC_PAD - 784)}    # dw4: (512, 784) -> (512, 896)
    kparams = []
    for idx, (w, b) in enumerate(zip(ws, bs)):
        pin, pout = pads.get(idx, (0, 0))
        if pin or pout:
            w = jnp.pad(w, ((0, pin), (0, pout)))
            b = jnp.pad(b, ((0, 0), (0, pout)))
        kparams.append(w.astype(jnp.bfloat16))   # MXU-native weights
        kparams.append(b.astype(jnp.float32))    # f32 bias add
    return kparams


@functools.lru_cache(maxsize=None)
def _make_forward(batch, tm, single_buffer_weights):
    """Builds a jitted pallas_call for a given (padded) batch and row tile."""

    def const_spec(shape):
        idx = lambda i, n=len(shape): (0,) * n
        if single_buffer_weights and hasattr(pl, "Buffered"):
            # Weights/biases never change across the batch grid; single-buffer
            # them to halve their VMEM footprint.
            return pl.BlockSpec(shape, idx, pipeline_mode=pl.Buffered(1))
        return pl.BlockSpec(shape, idx)

    in_specs = [pl.BlockSpec((tm, 784), lambda i: (i, 0))]
    in_specs += [const_spec(s) for s in _KPARAM_SHAPES]

    out_shapes = (jax.ShapeDtypeStruct((batch, ENC_PAD), jnp.float32),
                  jax.ShapeDtypeStruct((batch, DEC_PAD), jnp.float32))
    out_specs = (pl.BlockSpec((tm, ENC_PAD), lambda i: (i, 0)),
                 pl.BlockSpec((tm, DEC_PAD), lambda i: (i, 0)))

    fwd = pl.pallas_call(
        _endecoder_kernel,
        out_shape=out_shapes,
        grid_spec=pltpu.PrefetchScalarGridSpec(
            num_scalar_prefetch=0,
            grid=(batch // tm,),
            in_specs=in_specs,
            out_specs=out_specs,
        ),
        compiler_params=pltpu.CompilerParams(
            dimension_semantics=("parallel",),   # batch tiles shard across TCs
            vmem_limit_bytes=32 << 20,           # ~12 MB actually used at tm=256
        ),
    )
    return jax.jit(fwd)


_SINGLE_BUFFER_OK = None   # decided once at the first call


def endecoder_forward(x, kparams, tm=256):
    """x: anything reshapeable to [-1, 784]; kparams from prepare_params().

    Returns (encoder [B, 3], decoder [B, 784]) in f32, matching PyTorch.
    """
    global _SINGLE_BUFFER_OK
    x2 = x.reshape(-1, 784).astype(jnp.bfloat16)
    B = x2.shape[0]
    tm_eff = max(8, min(tm, _round_up(B, 8)))
    Bp = _round_up(B, tm_eff)
    if Bp != B:
        x2 = jnp.pad(x2, ((0, Bp - B), (0, 0)))

    if _SINGLE_BUFFER_OK is None:
        try:
            enc_p, dec_p = _make_forward(Bp, tm_eff, True)(x2, *kparams)
            jax.block_until_ready((enc_p, dec_p))
            _SINGLE_BUFFER_OK = True
        except Exception:
            # Runtime rejected single-buffered constant blocks; fall back to
            # default double buffering (weights are small enough either way).
            _SINGLE_BUFFER_OK = False
            enc_p, dec_p = _make_forward(Bp, tm_eff, False)(x2, *kparams)
    else:
        enc_p, dec_p = _make_forward(Bp, tm_eff, _SINGLE_BUFFER_OK)(x2, *kparams)

    return enc_p[:B, :3], dec_p[:B, :784]


def reference_forward(x, params):
    """Pure-JAX f32 reference matching the PyTorch forward."""
    x2 = x.reshape(-1, 784).astype(jnp.float32)
    ws, bs = params[0::2], params[1::2]
    h = x2
    for i in range(4):
        h = jnp.tanh(h @ ws[i] + bs[i])
    enc = h
    for i in range(4, 7):
        h = jnp.tanh(h @ ws[i] + bs[i])
    dec = jax.nn.sigmoid(h @ ws[7] + bs[7])
    return enc, dec


if __name__ == "__main__":
    key = jax.random.PRNGKey(0)
    kp, kx1, kx2 = jax.random.split(key, 3)
    params = init_params(kp)
    kparams = prepare_params(params)

    # Small MNIST-like input: batch=8, [8, 1, 28, 28] -> reshaped to [8, 784].
    x_small = jax.random.uniform(kx1, (8, 1, 28, 28), jnp.float32)
    enc, dec = endecoder_forward(x_small, kparams)
    jax.block_until_ready((enc, dec))
    assert enc.shape == (8, 3) and dec.shape == (8, 784)
    enc_ref, dec_ref = reference_forward(x_small, params)
    assert jnp.allclose(enc, enc_ref, atol=2e-2, rtol=2e-2), "enc mismatch (small)"
    assert jnp.allclose(dec, dec_ref, atol=2e-2, rtol=2e-2), "dec mismatch (small)"

    # Larger, non-tile-multiple batch: exercises the tm=256 tiled path
    # (grid > 1) plus the batch padding / output slicing.
    x_big = jax.random.uniform(kx2, (300, 784), jnp.float32)
    enc_b, dec_b = endecoder_forward(x_big, kparams, tm=256)
    jax.block_until_ready((enc_b, dec_b))
    assert enc_b.shape == (300, 3) and dec_b.shape == (300, 784)
    enc_bref, dec_bref = reference_forward(x_big, params)
    assert jnp.allclose(enc_b, enc_bref, atol=2e-2, rtol=2e-2), "enc mismatch (big)"
    assert jnp.allclose(dec_b, dec_bref, atol=2e-2, rtol=2e-2), "dec mismatch (big)"

    print("KERNEL_OK")
</pallas_src>

<mosaic_0001>
module attributes {stable_mosaic.version = 11 : i64} {
  func.func @_endecoder_kernel(%arg0: i32, %arg1: memref<8x784xbf16, #tpu.memory_space<vmem>>, %arg2: memref<784x512xbf16, #tpu.memory_space<vmem>>, %arg3: memref<1x512xf32, #tpu.memory_space<vmem>>, %arg4: memref<512x256xbf16, #tpu.memory_space<vmem>>, %arg5: memref<1x256xf32, #tpu.memory_space<vmem>>, %arg6: memref<256x128xbf16, #tpu.memory_space<vmem>>, %arg7: memref<1x128xf32, #tpu.memory_space<vmem>>, %arg8: memref<128x128xbf16, #tpu.memory_space<vmem>>, %arg9: memref<1x128xf32, #tpu.memory_space<vmem>>, %arg10: memref<128x128xbf16, #tpu.memory_space<vmem>>, %arg11: memref<1x128xf32, #tpu.memory_space<vmem>>, %arg12: memref<128x256xbf16, #tpu.memory_space<vmem>>, %arg13: memref<1x256xf32, #tpu.memory_space<vmem>>, %arg14: memref<256x512xbf16, #tpu.memory_space<vmem>>, %arg15: memref<1x512xf32, #tpu.memory_space<vmem>>, %arg16: memref<512x896xbf16, #tpu.memory_space<vmem>>, %arg17: memref<1x896xf32, #tpu.memory_space<vmem>>, %arg18: memref<8x128xf32, #tpu.memory_space<vmem>>, %arg19: memref<8x896xf32, #tpu.memory_space<vmem>>) attributes {dimension_semantics = [#tpu.dimension_semantics<parallel>], iteration_bounds = array<i64: 1>, scalar_prefetch = 0 : i64, scratch_operands = 0 : i64, tpu.core_type = #tpu.core_type<tc>, window_params = [{transform_indices = @transform_0, window_bounds = array<i64: 8, 784>}, {pipeline_mode = #tpu.pipeline_mode<synchronous>, transform_indices = @transform_1, window_bounds = array<i64: 784, 512>}, {pipeline_mode = #tpu.pipeline_mode<synchronous>, transform_indices = @transform_2, window_bounds = array<i64: 1, 512>}, {pipeline_mode = #tpu.pipeline_mode<synchronous>, transform_indices = @transform_3, window_bounds = array<i64: 512, 256>}, {pipeline_mode = #tpu.pipeline_mode<synchronous>, transform_indices = @transform_4, window_bounds = array<i64: 1, 256>}, {pipeline_mode = #tpu.pipeline_mode<synchronous>, transform_indices = @transform_5, window_bounds = array<i64: 256, 128>}, {pipeline_mode = #tpu.pipeline_mode<synchronous>, transform_indices = @transform_6, window_bounds = array<i64: 1, 128>}, {pipeline_mode = #tpu.pipeline_mode<synchronous>, transform_indices = @transform_7, window_bounds = array<i64: 128, 128>}, {pipeline_mode = #tpu.pipeline_mode<synchronous>, transform_indices = @transform_8, window_bounds = array<i64: 1, 128>}, {pipeline_mode = #tpu.pipeline_mode<synchronous>, transform_indices = @transform_9, window_bounds = array<i64: 128, 128>}, {pipeline_mode = #tpu.pipeline_mode<synchronous>, transform_indices = @transform_10, window_bounds = array<i64: 1, 128>}, {pipeline_mode = #tpu.pipeline_mode<synchronous>, transform_indices = @transform_11, window_bounds = array<i64: 128, 256>}, {pipeline_mode = #tpu.pipeline_mode<synchronous>, transform_indices = @transform_12, window_bounds = array<i64: 1, 256>}, {pipeline_mode = #tpu.pipeline_mode<synchronous>, transform_indices = @transform_13, window_bounds = array<i64: 256, 512>}, {pipeline_mode = #tpu.pipeline_mode<synchronous>, transform_indices = @transform_14, window_bounds = array<i64: 1, 512>}, {pipeline_mode = #tpu.pipeline_mode<synchronous>, transform_indices = @transform_15, window_bounds = array<i64: 512, 896>}, {pipeline_mode = #tpu.pipeline_mode<synchronous>, transform_indices = @transform_16, window_bounds = array<i64: 1, 896>}, {transform_indices = @transform_17, window_bounds = array<i64: 8, 128>}, {transform_indices = @transform_18, window_bounds = array<i64: 8, 896>}]} {
    %c0 = arith.constant 0 : index
    %c0_0 = arith.constant 0 : index
    %0 = vector.load %arg1[%c0, %c0_0] : memref<8x784xbf16, #tpu.memory_space<vmem>>, vector<8x784xbf16>
    %c0_1 = arith.constant 0 : index
    %c0_2 = arith.constant 0 : index
    %1 = vector.load %arg2[%c0_1, %c0_2] : memref<784x512xbf16, #tpu.memory_space<vmem>>, vector<784x512xbf16>
    %cst = arith.constant dense<0.000000e+00> : vector<8x512xf32>
    %2 = tpu.matmul %0, %1, %cst {dimension_numbers = #tpu.dot_dimension_numbers<[1], [0], [0], [1], [0, 0, 1, 1], [], []>} : vector<8x784xbf16>, vector<784x512xbf16>, vector<8x512xf32> -> vector<8x512xf32>
    %c0_3 = arith.constant 0 : index
    %c0_4 = arith.constant 0 : index
    %3 = vector.load %arg3[%c0_3, %c0_4] : memref<1x512xf32, #tpu.memory_space<vmem>>, vector<1x512xf32>
    %4 = vector.broadcast %3 : vector<1x512xf32> to vector<8x512xf32>
    %5 = arith.addf %2, %4 : vector<8x512xf32>
    %6 = math.tanh %5 : vector<8x512xf32>
    %7 = arith.truncf %6 : vector<8x512xf32> to vector<8x512xbf16>
    %c0_5 = arith.constant 0 : index
    %c0_6 = arith.constant 0 : index
    %8 = vector.load %arg4[%c0_5, %c0_6] : memref<512x256xbf16, #tpu.memory_space<vmem>>, vector<512x256xbf16>
    %cst_7 = arith.constant dense<0.000000e+00> : vector<8x256xf32>
    %9 = tpu.matmul %7, %8, %cst_7 {dimension_numbers = #tpu.dot_dimension_numbers<[1], [0], [0], [1], [0, 0, 1, 1], [], []>} : vector<8x512xbf16>, vector<512x256xbf16>, vector<8x256xf32> -> vector<8x256xf32>
    %c0_8 = arith.constant 0 : index
    %c0_9 = arith.constant 0 : index
    %10 = vector.load %arg5[%c0_8, %c0_9] : memref<1x256xf32, #tpu.memory_space<vmem>>, vector<1x256xf32>
    %11 = vector.broadcast %10 : vector<1x256xf32> to vector<8x256xf32>
    %12 = arith.addf %9, %11 : vector<8x256xf32>
    %13 = math.tanh %12 : vector<8x256xf32>
    %14 = arith.truncf %13 : vector<8x256xf32> to vector<8x256xbf16>
    %c0_10 = arith.constant 0 : index
    %c0_11 = arith.constant 0 : index
    %15 = vector.load %arg6[%c0_10, %c0_11] : memref<256x128xbf16, #tpu.memory_space<vmem>>, vector<256x128xbf16>
    %cst_12 = arith.constant dense<0.000000e+00> : vector<8x128xf32>
    %16 = tpu.matmul %14, %15, %cst_12 {dimension_numbers = #tpu.dot_dimension_numbers<[1], [0], [0], [1], [0, 0, 1, 1], [], []>} : vector<8x256xbf16>, vector<256x128xbf16>, vector<8x128xf32> -> vector<8x128xf32>
    %c0_13 = arith.constant 0 : index
    %c0_14 = arith.constant 0 : index
    %17 = vector.load %arg7[%c0_13, %c0_14] : memref<1x128xf32, #tpu.memory_space<vmem>>, vector<1x128xf32>
    %18 = vector.broadcast %17 : vector<1x128xf32> to vector<8x128xf32>
    %19 = arith.addf %16, %18 : vector<8x128xf32>
    %20 = math.tanh %19 : vector<8x128xf32>
    %21 = arith.truncf %20 : vector<8x128xf32> to vector<8x128xbf16>
    %c0_15 = arith.constant 0 : index
    %c0_16 = arith.constant 0 : index
    %22 = vector.load %arg8[%c0_15, %c0_16] : memref<128x128xbf16, #tpu.memory_space<vmem>>, vector<128x128xbf16>
    %cst_17 = arith.constant dense<0.000000e+00> : vector<8x128xf32>
    %23 = tpu.matmul %21, %22, %cst_17 {dimension_numbers = #tpu.dot_dimension_numbers<[1], [0], [0], [1], [0, 0, 1, 1], [], []>} : vector<8x128xbf16>, vector<128x128xbf16>, vector<8x128xf32> -> vector<8x128xf32>
    %c0_18 = arith.constant 0 : index
    %c0_19 = arith.constant 0 : index
    %24 = vector.load %arg9[%c0_18, %c0_19] : memref<1x128xf32, #tpu.memory_space<vmem>>, vector<1x128xf32>
    %25 = vector.broadcast %24 : vector<1x128xf32> to vector<8x128xf32>
    %26 = arith.addf %23, %25 : vector<8x128xf32>
    %27 = math.tanh %26 : vector<8x128xf32>
    %c0_20 = arith.constant 0 : index
    %c0_21 = arith.constant 0 : index
    %28 = vector.load %arg18[%c0_20, %c0_21] : memref<8x128xf32, #tpu.memory_space<vmem>>, vector<8x128xf32>
    tpu.vector_store %arg18[%c0_20, %c0_21], %27 {strides = array<i32>} : memref<8x128xf32, #tpu.memory_space<vmem>>, vector<8x128xf32>,
    %29 = arith.truncf %27 : vector<8x128xf32> to vector<8x128xbf16>
    %c0_22 = arith.constant 0 : index
    %c0_23 = arith.constant 0 : index
    %30 = vector.load %arg10[%c0_22, %c0_23] : memref<128x128xbf16, #tpu.memory_space<vmem>>, vector<128x128xbf16>
    %cst_24 = arith.constant dense<0.000000e+00> : vector<8x128xf32>
    %31 = tpu.matmul %29, %30, %cst_24 {dimension_numbers = #tpu.dot_dimension_numbers<[1], [0], [0], [1], [0, 0, 1, 1], [], []>} : vector<8x128xbf16>, vector<128x128xbf16>, vector<8x128xf32> -> vector<8x128xf32>
    %c0_25 = arith.constant 0 : index
    %c0_26 = arith.constant 0 : index
    %32 = vector.load %arg11[%c0_25, %c0_26] : memref<1x128xf32, #tpu.memory_space<vmem>>, vector<1x128xf32>
    %33 = vector.broadcast %32 : vector<1x128xf32> to vector<8x128xf32>
    %34 = arith.addf %31, %33 : vector<8x128xf32>
    %35 = math.tanh %34 : vector<8x128xf32>
    %36 = arith.truncf %35 : vector<8x128xf32> to vector<8x128xbf16>
    %c0_27 = arith.constant 0 : index
    %c0_28 = arith.constant 0 : index
    %37 = vector.load %arg12[%c0_27, %c0_28] : memref<128x256xbf16, #tpu.memory_space<vmem>>, vector<128x256xbf16>
    %cst_29 = arith.constant dense<0.000000e+00> : vector<8x256xf32>
    %38 = tpu.matmul %36, %37, %cst_29 {dimension_numbers = #tpu.dot_dimension_numbers<[1], [0], [0], [1], [0, 0, 1, 1], [], []>} : vector<8x128xbf16>, vector<128x256xbf16>, vector<8x256xf32> -> vector<8x256xf32>
    %c0_30 = arith.constant 0 : index
    %c0_31 = arith.constant 0 : index
    %39 = vector.load %arg13[%c0_30, %c0_31] : memref<1x256xf32, #tpu.memory_space<vmem>>, vector<1x256xf32>
    %40 = vector.broadcast %39 : vector<1x256xf32> to vector<8x256xf32>
    %41 = arith.addf %38, %40 : vector<8x256xf32>
    %42 = math.tanh %41 : vector<8x256xf32>
    %43 = arith.truncf %42 : vector<8x256xf32> to vector<8x256xbf16>
    %c0_32 = arith.constant 0 : index
    %c0_33 = arith.constant 0 : index
    %44 = vector.load %arg14[%c0_32, %c0_33] : memref<256x512xbf16, #tpu.memory_space<vmem>>, vector<256x512xbf16>
    %cst_34 = arith.constant dense<0.000000e+00> : vector<8x512xf32>
    %45 = tpu.matmul %43, %44, %cst_34 {dimension_numbers = #tpu.dot_dimension_numbers<[1], [0], [0], [1], [0, 0, 1, 1], [], []>} : vector<8x256xbf16>, vector<256x512xbf16>, vector<8x512xf32> -> vector<8x512xf32>
    %c0_35 = arith.constant 0 : index
    %c0_36 = arith.constant 0 : index
    %46 = vector.load %arg15[%c0_35, %c0_36] : memref<1x512xf32, #tpu.memory_space<vmem>>, vector<1x512xf32>
    %47 = vector.broadcast %46 : vector<1x512xf32> to vector<8x512xf32>
    %48 = arith.addf %45, %47 : vector<8x512xf32>
    %49 = math.tanh %48 : vector<8x512xf32>
    %50 = arith.truncf %49 : vector<8x512xf32> to vector<8x512xbf16>
    %c0_37 = arith.constant 0 : index
    %c0_38 = arith.constant 0 : index
    %51 = vector.load %arg16[%c0_37, %c0_38] : memref<512x896xbf16, #tpu.memory_space<vmem>>, vector<512x896xbf16>
    %cst_39 = arith.constant dense<0.000000e+00> : vector<8x896xf32>
    %52 = tpu.matmul %50, %51, %cst_39 {dimension_numbers = #tpu.dot_dimension_numbers<[1], [0], [0], [1], [0, 0, 1, 1], [], []>} : vector<8x512xbf16>, vector<512x896xbf16>, vector<8x896xf32> -> vector<8x896xf32>
    %c0_40 = arith.constant 0 : index
    %c0_41 = arith.constant 0 : index
    %53 = vector.load %arg17[%c0_40, %c0_41] : memref<1x896xf32, #tpu.memory_space<vmem>>, vector<1x896xf32>
    %54 = vector.broadcast %53 : vector<1x896xf32> to vector<8x896xf32>
    %55 = arith.addf %52, %54 : vector<8x896xf32>
    %56 = arith.negf %55 : vector<8x896xf32>
    %57 = math.exp %56 : vector<8x896xf32>
    %cst_42 = arith.constant 1.000000e+00 : f32
    %58 = vector.broadcast %cst_42 : f32 to vector<8x896xf32>
    %59 = arith.addf %58, %57 : vector<8x896xf32>
    %60 = arith.divf %58, %59 : vector<8x896xf32>
    %c0_43 = arith.constant 0 : index
    %c0_44 = arith.constant 0 : index
    %61 = vector.load %arg19[%c0_43, %c0_44] : memref<8x896xf32, #tpu.memory_space<vmem>>, vector<8x896xf32>
    tpu.vector_store %arg19[%c0_43, %c0_44], %60 {strides = array<i32>} : memref<8x896xf32, #tpu.memory_space<vmem>>, vector<8x896xf32>,
    return
  }
  func.func @transform_0(%arg0: i32) -> (i32, i32) {
    %c0_i32 = arith.constant 0 : i32
    %c0_i32_0 = arith.constant 0 : i32
    return %arg0, %c0_i32 : i32, i32
  }
  func.func @transform_1(%arg0: i32) -> (i32, i32) {
    %c0_i32 = arith.constant 0 : i32
    %c0_i32_0 = arith.constant 0 : i32
    %c0_i32_1 = arith.constant 0 : i32
    return %c0_i32, %c0_i32_0 : i32, i32
  }
  func.func @transform_2(%arg0: i32) -> (i32, i32) {
    %c0_i32 = arith.constant 0 : i32
    %c0_i32_0 = arith.constant 0 : i32
    %c0_i32_1 = arith.constant 0 : i32
    return %c0_i32, %c0_i32_0 : i32, i32
  }
  func.func @transform_3(%arg0: i32) -> (i32, i32) {
    %c0_i32 = arith.constant 0 : i32
    %c0_i32_0 = arith.constant 0 : i32
    %c0_i32_1 = arith.constant 0 : i32
    return %c0_i32, %c0_i32_0 : i32, i32
  }
  func.func @transform_4(%arg0: i32) -> (i32, i32) {
    %c0_i32 = arith.constant 0 : i32
    %c0_i32_0 = arith.constant 0 : i32
    %c0_i32_1 = arith.constant 0 : i32
    return %c0_i32, %c0_i32_0 : i32, i32
  }
  func.func @transform_5(%arg0: i32) -> (i32, i32) {
    %c0_i32 = arith.constant 0 : i32
    %c0_i32_0 = arith.constant 0 : i32
    %c0_i32_1 = arith.constant 0 : i32
    return %c0_i32, %c0_i32_0 : i32, i32
  }
  func.func @transform_6(%arg0: i32) -> (i32, i32) {
    %c0_i32 = arith.constant 0 : i32
    %c0_i32_0 = arith.constant 0 : i32
    %c0_i32_1 = arith.constant 0 : i32
    return %c0_i32, %c0_i32_0 : i32, i32
  }
  func.func @transform_7(%arg0: i32) -> (i32, i32) {
    %c0_i32 = arith.constant 0 : i32
    %c0_i32_0 = arith.constant 0 : i32
    %c0_i32_1 = arith.constant 0 : i32
    return %c0_i32, %c0_i32_0 : i32, i32
  }
  func.func @transform_8(%arg0: i32) -> (i32, i32) {
    %c0_i32 = arith.constant 0 : i32
    %c0_i32_0 = arith.constant 0 : i32
    %c0_i32_1 = arith.constant 0 : i32
    return %c0_i32, %c0_i32_0 : i32, i32
  }
  func.func @transform_9(%arg0: i32) -> (i32, i32) {
    %c0_i32 = arith.constant 0 : i32
    %c0_i32_0 = arith.constant 0 : i32
    %c0_i32_1 = arith.constant 0 : i32
    return %c0_i32, %c0_i32_0 : i32, i32
  }
  func.func @transform_10(%arg0: i32) -> (i32, i32) {
    %c0_i32 = arith.constant 0 : i32
    %c0_i32_0 = arith.constant 0 : i32
    %c0_i32_1 = arith.constant 0 : i32
    return %c0_i32, %c0_i32_0 : i32, i32
  }
  func.func @transform_11(%arg0: i32) -> (i32, i32) {
    %c0_i32 = arith.constant 0 : i32
    %c0_i32_0 = arith.constant 0 : i32
    %c0_i32_1 = arith.constant 0 : i32
    return %c0_i32, %c0_i32_0 : i32, i32
  }
  func.func @transform_12(%arg0: i32) -> (i32, i32) {
    %c0_i32 = arith.constant 0 : i32
    %c0_i32_0 = arith.constant 0 : i32
    %c0_i32_1 = arith.constant 0 : i32
    return %c0_i32, %c0_i32_0 : i32, i32
  }
  func.func @transform_13(%arg0: i32) -> (i32, i32) {
    %c0_i32 = arith.constant 0 : i32
    %c0_i32_0 = arith.constant 0 : i32
    %c0_i32_1 = arith.constant 0 : i32
    return %c0_i32, %c0_i32_0 : i32, i32
  }
  func.func @transform_14(%arg0: i32) -> (i32, i32) {
    %c0_i32 = arith.constant 0 : i32
    %c0_i32_0 = arith.constant 0 : i32
    %c0_i32_1 = arith.constant 0 : i32
    return %c0_i32, %c0_i32_0 : i32, i32
  }
  func.func @transform_15(%arg0: i32) -> (i32, i32) {
    %c0_i32 = arith.constant 0 : i32
    %c0_i32_0 = arith.constant 0 : i32
    %c0_i32_1 = arith.constant 0 : i32
    return %c0_i32, %c0_i32_0 : i32, i32
  }
  func.func @transform_16(%arg0: i32) -> (i32, i32) {
    %c0_i32 = arith.constant 0 : i32
    %c0_i32_0 = arith.constant 0 : i32
    %c0_i32_1 = arith.constant 0 : i32
    return %c0_i32, %c0_i32_0 : i32, i32
  }
  func.func @transform_17(%arg0: i32) -> (i32, i32) {
    %c0_i32 = arith.constant 0 : i32
    %c0_i32_0 = arith.constant 0 : i32
    return %arg0, %c0_i32 : i32, i32
  }
  func.func @transform_18(%arg0: i32) -> (i32, i32) {
    %c0_i32 = arith.constant 0 : i32
    %c0_i32_0 = arith.constant 0 : i32
    return %arg0, %c0_i32 : i32, i32
  }
}

module attributes {stable_mosaic.version = 11 : i64} {
  func.func @_endecoder_kernel(%arg0: i32, %arg1: memref<8x784xbf16, #tpu.memory_space<vmem>>, %arg2: memref<784x512xbf16, #tpu.memory_space<vmem>>, %arg3: memref<1x512xf32, #tpu.memory_space<vmem>>, %arg4: memref<512x256xbf16, #tpu.memory_space<vmem>>, %arg5: memref<1x256xf32, #tpu.memory_space<vmem>>, %arg6: memref<256x128xbf16, #tpu.memory_space<vmem>>, %arg7: memref<1x128xf32, #tpu.memory_space<vmem>>, %arg8: memref<128x128xbf16, #tpu.memory_space<vmem>>, %arg9: memref<1x128xf32, #tpu.memory_space<vmem>>, %arg10: memref<128x128xbf16, #tpu.memory_space<vmem>>, %arg11: memref<1x128xf32, #tpu.memory_space<vmem>>, %arg12: memref<128x256xbf16, #tpu.memory_space<vmem>>, %arg13: memref<1x256xf32, #tpu.memory_space<vmem>>, %arg14: memref<256x512xbf16, #tpu.memory_space<vmem>>, %arg15: memref<1x512xf32, #tpu.memory_space<vmem>>, %arg16: memref<512x896xbf16, #tpu.memory_space<vmem>>, %arg17: memref<1x896xf32, #tpu.memory_space<vmem>>, %arg18: memref<8x128xf32, #tpu.memory_space<vmem>>, %arg19: memref<8x896xf32, #tpu.memory_space<vmem>>) attributes {dimension_semantics = [#tpu.dimension_semantics<parallel>], iteration_bounds = array<i64: 1>, scalar_prefetch = 0 : i64, scratch_operands = 0 : i64, tpu.core_type = #tpu.core_type<tc>, window_params = [{transform_indices = @transform_0, window_bounds = array<i64: 8, 784>}, {pipeline_mode = #tpu.pipeline_mode<synchronous>, transform_indices = @transform_1, window_bounds = array<i64: 784, 512>}, {pipeline_mode = #tpu.pipeline_mode<synchronous>, transform_indices = @transform_2, window_bounds = array<i64: 1, 512>}, {pipeline_mode = #tpu.pipeline_mode<synchronous>, transform_indices = @transform_3, window_bounds = array<i64: 512, 256>}, {pipeline_mode = #tpu.pipeline_mode<synchronous>, transform_indices = @transform_4, window_bounds = array<i64: 1, 256>}, {pipeline_mode = #tpu.pipeline_mode<synchronous>, transform_indices = @transform_5, window_bounds = array<i64: 256, 128>}, {pipeline_mode = #tpu.pipeline_mode<synchronous>, transform_indices = @transform_6, window_bounds = array<i64: 1, 128>}, {pipeline_mode = #tpu.pipeline_mode<synchronous>, transform_indices = @transform_7, window_bounds = array<i64: 128, 128>}, {pipeline_mode = #tpu.pipeline_mode<synchronous>, transform_indices = @transform_8, window_bounds = array<i64: 1, 128>}, {pipeline_mode = #tpu.pipeline_mode<synchronous>, transform_indices = @transform_9, window_bounds = array<i64: 128, 128>}, {pipeline_mode = #tpu.pipeline_mode<synchronous>, transform_indices = @transform_10, window_bounds = array<i64: 1, 128>}, {pipeline_mode = #tpu.pipeline_mode<synchronous>, transform_indices = @transform_11, window_bounds = array<i64: 128, 256>}, {pipeline_mode = #tpu.pipeline_mode<synchronous>, transform_indices = @transform_12, window_bounds = array<i64: 1, 256>}, {pipeline_mode = #tpu.pipeline_mode<synchronous>, transform_indices = @transform_13, window_bounds = array<i64: 256, 512>}, {pipeline_mode = #tpu.pipeline_mode<synchronous>, transform_indices = @transform_14, window_bounds = array<i64: 1, 512>}, {pipeline_mode = #tpu.pipeline_mode<synchronous>, transform_indices = @transform_15, window_bounds = array<i64: 512, 896>}, {pipeline_mode = #tpu.pipeline_mode<synchronous>, transform_indices = @transform_16, window_bounds = array<i64: 1, 896>}, {transform_indices = @transform_17, window_bounds = array<i64: 8, 128>}, {transform_indices = @transform_18, window_bounds = array<i64: 8, 896>}]} {
    %c0 = arith.constant 0 : index
    %c0_0 = arith.constant 0 : index
    %0 = vector.load %arg1[%c0, %c0_0] : memref<8x784xbf16, #tpu.memory_space<vmem>>, vector<8x784xbf16>
    %c0_1 = arith.constant 0 : index
    %c0_2 = arith.constant 0 : index
    %1 = vector.load %arg2[%c0_1, %c0_2] : memref<784x512xbf16, #tpu.memory_space<vmem>>, vector<784x512xbf16>
    %cst = arith.constant dense<0.000000e+00> : vector<8x512xf32>
    %2 = tpu.matmul %0, %1, %cst {dimension_numbers = #tpu.dot_dimension_numbers<[1], [0], [0], [1], [0, 0, 1, 1], [], []>} : vector<8x784xbf16>, vector<784x512xbf16>, vector<8x512xf32> -> vector<8x512xf32>
    %c0_3 = arith.constant 0 : index
    %c0_4 = arith.constant 0 : index
    %3 = vector.load %arg3[%c0_3, %c0_4] : memref<1x512xf32, #tpu.memory_space<vmem>>, vector<1x512xf32>
    %4 = vector.broadcast %3 : vector<1x512xf32> to vector<8x512xf32>
    %5 = arith.addf %2, %4 : vector<8x512xf32>
    %6 = math.tanh %5 : vector<8x512xf32>
    %7 = arith.truncf %6 : vector<8x512xf32> to vector<8x512xbf16>
    %c0_5 = arith.constant 0 : index
    %c0_6 = arith.constant 0 : index
    %8 = vector.load %arg4[%c0_5, %c0_6] : memref<512x256xbf16, #tpu.memory_space<vmem>>, vector<512x256xbf16>
    %cst_7 = arith.constant dense<0.000000e+00> : vector<8x256xf32>
    %9 = tpu.matmul %7, %8, %cst_7 {dimension_numbers = #tpu.dot_dimension_numbers<[1], [0], [0], [1], [0, 0, 1, 1], [], []>} : vector<8x512xbf16>, vector<512x256xbf16>, vector<8x256xf32> -> vector<8x256xf32>
    %c0_8 = arith.constant 0 : index
    %c0_9 = arith.constant 0 : index
    %10 = vector.load %arg5[%c0_8, %c0_9] : memref<1x256xf32, #tpu.memory_space<vmem>>, vector<1x256xf32>
    %11 = vector.broadcast %10 : vector<1x256xf32> to vector<8x256xf32>
    %12 = arith.addf %9, %11 : vector<8x256xf32>
    %13 = math.tanh %12 : vector<8x256xf32>
    %14 = arith.truncf %13 : vector<8x256xf32> to vector<8x256xbf16>
    %c0_10 = arith.constant 0 : index
    %c0_11 = arith.constant 0 : index
    %15 = vector.load %arg6[%c0_10, %c0_11] : memref<256x128xbf16, #tpu.memory_space<vmem>>, vector<256x128xbf16>
    %cst_12 = arith.constant dense<0.000000e+00> : vector<8x128xf32>
    %16 = tpu.matmul %14, %15, %cst_12 {dimension_numbers = #tpu.dot_dimension_numbers<[1], [0], [0], [1], [0, 0, 1, 1], [], []>} : vector<8x256xbf16>, vector<256x128xbf16>, vector<8x128xf32> -> vector<8x128xf32>
    %c0_13 = arith.constant 0 : index
    %c0_14 = arith.constant 0 : index
    %17 = vector.load %arg7[%c0_13, %c0_14] : memref<1x128xf32, #tpu.memory_space<vmem>>, vector<1x128xf32>
    %18 = vector.broadcast %17 : vector<1x128xf32> to vector<8x128xf32>
    %19 = arith.addf %16, %18 : vector<8x128xf32>
    %20 = math.tanh %19 : vector<8x128xf32>
    %21 = arith.truncf %20 : vector<8x128xf32> to vector<8x128xbf16>
    %c0_15 = arith.constant 0 : index
    %c0_16 = arith.constant 0 : index
    %22 = vector.load %arg8[%c0_15, %c0_16] : memref<128x128xbf16, #tpu.memory_space<vmem>>, vector<128x128xbf16>
    %cst_17 = arith.constant dense<0.000000e+00> : vector<8x128xf32>
    %23 = tpu.matmul %21, %22, %cst_17 {dimension_numbers = #tpu.dot_dimension_numbers<[1], [0], [0], [1], [0, 0, 1, 1], [], []>} : vector<8x128xbf16>, vector<128x128xbf16>, vector<8x128xf32> -> vector<8x128xf32>
    %c0_18 = arith.constant 0 : index
    %c0_19 = arith.constant 0 : index
    %24 = vector.load %arg9[%c0_18, %c0_19] : memref<1x128xf32, #tpu.memory_space<vmem>>, vector<1x128xf32>
    %25 = vector.broadcast %24 : vector<1x128xf32> to vector<8x128xf32>
    %26 = arith.addf %23, %25 : vector<8x128xf32>
    %27 = math.tanh %26 : vector<8x128xf32>
    %c0_20 = arith.constant 0 : index
    %c0_21 = arith.constant 0 : index
    %28 = vector.load %arg18[%c0_20, %c0_21] : memref<8x128xf32, #tpu.memory_space<vmem>>, vector<8x128xf32>
    tpu.vector_store %arg18[%c0_20, %c0_21], %27 {strides = array<i32>} : memref<8x128xf32, #tpu.memory_space<vmem>>, vector<8x128xf32>,
    %29 = arith.truncf %27 : vector<8x128xf32> to vector<8x128xbf16>
    %c0_22 = arith.constant 0 : index
    %c0_23 = arith.constant 0 : index
    %30 = vector.load %arg10[%c0_22, %c0_23] : memref<128x128xbf16, #tpu.memory_space<vmem>>, vector<128x128xbf16>
    %cst_24 = arith.constant dense<0.000000e+00> : vector<8x128xf32>
    %31 = tpu.matmul %29, %30, %cst_24 {dimension_numbers = #tpu.dot_dimension_numbers<[1], [0], [0], [1], [0, 0, 1, 1], [], []>} : vector<8x128xbf16>, vector<128x128xbf16>, vector<8x128xf32> -> vector<8x128xf32>
    %c0_25 = arith.constant 0 : index
    %c0_26 = arith.constant 0 : index
    %32 = vector.load %arg11[%c0_25, %c0_26] : memref<1x128xf32, #tpu.memory_space<vmem>>, vector<1x128xf32>
    %33 = vector.broadcast %32 : vector<1x128xf32> to vector<8x128xf32>
    %34 = arith.addf %31, %33 : vector<8x128xf32>
    %35 = math.tanh %34 : vector<8x128xf32>
    %36 = arith.truncf %35 : vector<8x128xf32> to vector<8x128xbf16>
    %c0_27 = arith.constant 0 : index
    %c0_28 = arith.constant 0 : index
    %37 = vector.load %arg12[%c0_27, %c0_28] : memref<128x256xbf16, #tpu.memory_space<vmem>>, vector<128x256xbf16>
    %cst_29 = arith.constant dense<0.000000e+00> : vector<8x256xf32>
    %38 = tpu.matmul %36, %37, %cst_29 {dimension_numbers = #tpu.dot_dimension_numbers<[1], [0], [0], [1], [0, 0, 1, 1], [], []>} : vector<8x128xbf16>, vector<128x256xbf16>, vector<8x256xf32> -> vector<8x256xf32>
    %c0_30 = arith.constant 0 : index
    %c0_31 = arith.constant 0 : index
    %39 = vector.load %arg13[%c0_30, %c0_31] : memref<1x256xf32, #tpu.memory_space<vmem>>, vector<1x256xf32>
    %40 = vector.broadcast %39 : vector<1x256xf32> to vector<8x256xf32>
    %41 = arith.addf %38, %40 : vector<8x256xf32>
    %42 = math.tanh %41 : vector<8x256xf32>
    %43 = arith.truncf %42 : vector<8x256xf32> to vector<8x256xbf16>
    %c0_32 = arith.constant 0 : index
    %c0_33 = arith.constant 0 : index
    %44 = vector.load %arg14[%c0_32, %c0_33] : memref<256x512xbf16, #tpu.memory_space<vmem>>, vector<256x512xbf16>
    %cst_34 = arith.constant dense<0.000000e+00> : vector<8x512xf32>
    %45 = tpu.matmul %43, %44, %cst_34 {dimension_numbers = #tpu.dot_dimension_numbers<[1], [0], [0], [1], [0, 0, 1, 1], [], []>} : vector<8x256xbf16>, vector<256x512xbf16>, vector<8x512xf32> -> vector<8x512xf32>
    %c0_35 = arith.constant 0 : index
    %c0_36 = arith.constant 0 : index
    %46 = vector.load %arg15[%c0_35, %c0_36] : memref<1x512xf32, #tpu.memory_space<vmem>>, vector<1x512xf32>
    %47 = vector.broadcast %46 : vector<1x512xf32> to vector<8x512xf32>
    %48 = arith.addf %45, %47 : vector<8x512xf32>
    %49 = math.tanh %48 : vector<8x512xf32>
    %50 = arith.truncf %49 : vector<8x512xf32> to vector<8x512xbf16>
    %c0_37 = arith.constant 0 : index
    %c0_38 = arith.constant 0 : index
    %51 = vector.load %arg16[%c0_37, %c0_38] : memref<512x896xbf16, #tpu.memory_space<vmem>>, vector<512x896xbf16>
    %cst_39 = arith.constant dense<0.000000e+00> : vector<8x896xf32>
    %52 = tpu.matmul %50, %51, %cst_39 {dimension_numbers = #tpu.dot_dimension_numbers<[1], [0], [0], [1], [0, 0, 1, 1], [], []>} : vector<8x512xbf16>, vector<512x896xbf16>, vector<8x896xf32> -> vector<8x896xf32>
    %c0_40 = arith.constant 0 : index
    %c0_41 = arith.constant 0 : index
    %53 = vector.load %arg17[%c0_40, %c0_41] : memref<1x896xf32, #tpu.memory_space<vmem>>, vector<1x896xf32>
    %54 = vector.broadcast %53 : vector<1x896xf32> to vector<8x896xf32>
    %55 = arith.addf %52, %54 : vector<8x896xf32>
    %56 = arith.negf %55 : vector<8x896xf32>
    %57 = math.exp %56 : vector<8x896xf32>
    %cst_42 = arith.constant 1.000000e+00 : f32
    %58 = vector.broadcast %cst_42 : f32 to vector<8x896xf32>
    %59 = arith.addf %58, %57 : vector<8x896xf32>
    %60 = arith.divf %58, %59 : vector<8x896xf32>
    %c0_43 = arith.constant 0 : index
    %c0_44 = arith.constant 0 : index
    %61 = vector.load %arg19[%c0_43, %c0_44] : memref<8x896xf32, #tpu.memory_space<vmem>>, vector<8x896xf32>
    tpu.vector_store %arg19[%c0_43, %c0_44], %60 {strides = array<i32>} : memref<8x896xf32, #tpu.memory_space<vmem>>, vector<8x896xf32>,
    return
  }
  func.func @transform_0(%arg0: i32) -> (i32, i32) {
    %c0_i32 = arith.constant 0 : i32
    %c0_i32_0 = arith.constant 0 : i32
    return %arg0, %c0_i32 : i32, i32
  }
  func.func @transform_1(%arg0: i32) -> (i32, i32) {
    %c0_i32 = arith.constant 0 : i32
    %c0_i32_0 = arith.constant 0 : i32
    %c0_i32_1 = arith.constant 0 : i32
    return %c0_i32, %c0_i32_0 : i32, i32
  }
  func.func @transform_2(%arg0: i32) -> (i32, i32) {
    %c0_i32 = arith.constant 0 : i32
    %c0_i32_0 = arith.constant 0 : i32
    %c0_i32_1 = arith.constant 0 : i32
    return %c0_i32, %c0_i32_0 : i32, i32
  }
  func.func @transform_3(%arg0: i32) -> (i32, i32) {
    %c0_i32 = arith.constant 0 : i32
    %c0_i32_0 = arith.constant 0 : i32
    %c0_i32_1 = arith.constant 0 : i32
    return %c0_i32, %c0_i32_0 : i32, i32
  }
  func.func @transform_4(%arg0: i32) -> (i32, i32) {
    %c0_i32 = arith.constant 0 : i32
    %c0_i32_0 = arith.constant 0 : i32
    %c0_i32_1 = arith.constant 0 : i32
    return %c0_i32, %c0_i32_0 : i32, i32
  }
  func.func @transform_5(%arg0: i32) -> (i32, i32) {
    %c0_i32 = arith.constant 0 : i32
    %c0_i32_0 = arith.constant 0 : i32
    %c0_i32_1 = arith.constant 0 : i32
    return %c0_i32, %c0_i32_0 : i32, i32
  }
  func.func @transform_6(%arg0: i32) -> (i32, i32) {
    %c0_i32 = arith.constant 0 : i32
    %c0_i32_0 = arith.constant 0 : i32
    %c0_i32_1 = arith.constant 0 : i32
    return %c0_i32, %c0_i32_0 : i32, i32
  }
  func.func @transform_7(%arg0: i32) -> (i32, i32) {
    %c0_i32 = arith.constant 0 : i32
    %c0_i32_0 = arith.constant 0 : i32
    %c0_i32_1 = arith.constant 0 : i32
    return %c0_i32, %c0_i32_0 : i32, i32
  }
  func.func @transform_8(%arg0: i32) -> (i32, i32) {
    %c0_i32 = arith.constant 0 : i32
    %c0_i32_0 = arith.constant 0 : i32
    %c0_i32_1 = arith.constant 0 : i32
    return %c0_i32, %c0_i32_0 : i32, i32
  }
  func.func @transform_9(%arg0: i32) -> (i32, i32) {
    %c0_i32 = arith.constant 0 : i32
    %c0_i32_0 = arith.constant 0 : i32
    %c0_i32_1 = arith.constant 0 : i32
    return %c0_i32, %c0_i32_0 : i32, i32
  }
  func.func @transform_10(%arg0: i32) -> (i32, i32) {
    %c0_i32 = arith.constant 0 : i32
    %c0_i32_0 = arith.constant 0 : i32
    %c0_i32_1 = arith.constant 0 : i32
    return %c0_i32, %c0_i32_0 : i32, i32
  }
  func.func @transform_11(%arg0: i32) -> (i32, i32) {
    %c0_i32 = arith.constant 0 : i32
    %c0_i32_0 = arith.constant 0 : i32
    %c0_i32_1 = arith.constant 0 : i32
    return %c0_i32, %c0_i32_0 : i32, i32
  }
  func.func @transform_12(%arg0: i32) -> (i32, i32) {
    %c0_i32 = arith.constant 0 : i32
    %c0_i32_0 = arith.constant 0 : i32
    %c0_i32_1 = arith.constant 0 : i32
    return %c0_i32, %c0_i32_0 : i32, i32
  }
  func.func @transform_13(%arg0: i32) -> (i32, i32) {
    %c0_i32 = arith.constant 0 : i32
    %c0_i32_0 = arith.constant 0 : i32
    %c0_i32_1 = arith.constant 0 : i32
    return %c0_i32, %c0_i32_0 : i32, i32
  }
  func.func @transform_14(%arg0: i32) -> (i32, i32) {
    %c0_i32 = arith.constant 0 : i32
    %c0_i32_0 = arith.constant 0 : i32
    %c0_i32_1 = arith.constant 0 : i32
    return %c0_i32, %c0_i32_0 : i32, i32
  }
  func.func @transform_15(%arg0: i32) -> (i32, i32) {
    %c0_i32 = arith.constant 0 : i32
    %c0_i32_0 = arith.constant 0 : i32
    %c0_i32_1 = arith.constant 0 : i32
    return %c0_i32, %c0_i32_0 : i32, i32
  }
  func.func @transform_16(%arg0: i32) -> (i32, i32) {
    %c0_i32 = arith.constant 0 : i32
    %c0_i32_0 = arith.constant 0 : i32
    %c0_i32_1 = arith.constant 0 : i32
    return %c0_i32, %c0_i32_0 : i32, i32
  }
  func.func @transform_17(%arg0: i32) -> (i32, i32) {
    %c0_i32 = arith.constant 0 : i32
    %c0_i32_0 = arith.constant 0 : i32
    return %arg0, %c0_i32 : i32, i32
  }
  func.func @transform_18(%arg0: i32) -> (i32, i32) {
    %c0_i32 = arith.constant 0 : i32
    %c0_i32_0 = arith.constant 0 : i32
    return %arg0, %c0_i32 : i32, i32
  }
}

</mosaic_0001>

<bundles_post_ra>
// kernel: tpu_custom_call.1
= control target key start
LH: loop header
LB: loop body
LE: loop exit
PB: predicated region body
PF: predicated region fallthrough
CT: control target
= control target key end

     0   :  { %s9041_s0 = inlined_call_operand.hbm [shape: bf16[8,784], index: 0, kind: input, shape index: {}]   ;;  %s9042_s1 = inlined_call_operand.hbm [shape: bf16[784,512], index: 1, kind: input, shape index: {}]   ;;  %s9043_s2 = inlined_call_operand.hbm [shape: f32[1,512], index: 2, kind: input, shape index: {}]   ;;  %s9044_s3 = inlined_call_operand.hbm [shape: bf16[512,256], index: 3, kind: input, shape index: {}]   ;;  %s9045_s4 = inlined_call_operand.vmem [shape: f32[1,256], index: 4, kind: input, shape index: {}]   ;;  %s9046_s5 = inlined_call_operand.hbm [shape: bf16[256,128], index: 5, kind: input, shape index: {}]   ;;  %s9047_s6 = inlined_call_operand.vmem [shape: f32[1,128], index: 6, kind: input, shape index: {}]   ;;  %s9048_s7 = inlined_call_operand.hbm [shape: bf16[128,128], index: 7, kind: input, shape index: {}]   ;;  %s9049_s8 = inlined_call_operand.hbm [shape: f32[1,128], index: 8, kind: input, shape index: {}]   ;;  %s9050_s9 = inlined_call_operand.hbm [shape: bf16[128,128], index: 9, kind: input, shape index: {}]   ;;  %s9051_s10 = inlined_call_operand.hbm [shape: f32[1,128], index: 10, kind: input, shape index: {}]   ;;  %s9052_s11 = inlined_call_operand.hbm [shape: bf16[128,256], index: 11, kind: input, shape index: {}]   ;;  %s9053_s12 = inlined_call_operand.hbm [shape: f32[1,256], index: 12, kind: input, shape index: {}]   ;;  %s9054_s13 = inlined_call_operand.hbm [shape: bf16[256,512], index: 13, kind: input, shape index: {}]   ;;  %s9055_s14 = inlined_call_operand.vmem [shape: f32[1,512], index: 14, kind: input, shape index: {}]   ;;  %s9056_s15 = inlined_call_operand.hbm [shape: bf16[512,896], index: 15, kind: input, shape index: {}]   ;;  %s9057_s16 = inlined_call_operand.vmem [shape: f32[1,896], index: 16, kind: input, shape index: {}]   ;;  %s9058_s17 = inlined_call_operand.hbm [shape: f32[8,128], index: 17, kind: output, shape index: {0}]   ;;  %s9059_s18 = inlined_call_operand.hbm [shape: f32[8,896], index: 18, kind: output, shape index: {1}]  }
   0x1   :  { %9060 = sst [smem:[#allocation35_spill]] %s9041_s0 }
   0x2   :  { %9061 = sst [smem:[#allocation36_spill]] %s9042_s1 }
   0x3   :  { %9062 = sst [smem:[#allocation37_spill]] %s9043_s2 }
   0x4   :  { %9063 = sst [smem:[#allocation38_spill]] %s9059_s18 }
   0x5   :  { %24 = vsyncpa [#allocation3], 0 }
   0x6   :  { %25 = vsyncpa [#allocation6], 0 }
   0x7   :  { %26 = vsyncpa [#allocation9], 0 }
   0x8   :  { %27 = vsyncpa [#allocation12], 0 }
   0x9   :  { %28 = vsyncpa [#allocation15], 0 }
   0xa   :  { %29 = vsyncpa [#allocation18], 0 }
   0xb   :  { %30 = vsyncpa [#allocation21], 0 }
   0xc   :  { %31 = vsyncpa [#allocation4], 0  ;;  %s9064_s29 = sld [smem:[#allocation36_spill]] }
  0x12   :  { %s48_s30 = sshll.u32 %s9064_s29, 4  ;;  %s49_s30 = int_to_ptr.hbm [resolvable:$true] %s48_s30 }
  0x13   :  { %32 = vsyncpa [#allocation25], 0  ;;  %s8726_s0 = smov [#allocation5]   ;;  %s72_s21 = sshll.u32 %s9044_s3, 4  ;;  %s73_s21 = int_to_ptr.hbm [resolvable:$true] %s72_s21 }
  0x14   :  { %s50_s19 = sshll.u32 %s8726_s0, 4  ;;  %s8727_s22 = smov 256   ;;  %s51_s19 = int_to_ptr.vmem [resolvable:$true] %s50_s19 }
  0x15   :  { %s8728_s2 = smov 16   ;;  %s8729_s23 = smov [#allocation8]  }
  0x16   :  { %56 = dma.hbm_to_vmem [thread:$0]  %s49_s30, 25088, %s51_s19, [#allocation6], %s8727_s22, %s8727_s22, %s8728_s2  }
  0x17   :  { %s74_s24 = sshll.u32 %s8729_s23, 4  ;;  %s8730_s25 = smov 128   ;;  %s75_s24 = int_to_ptr.vmem [resolvable:$true] %s74_s24 }
  0x18   :  { %s8731_s26 = smov 8   ;;  %s102_s29 = sshll.u32 %s9048_s7, 4  ;;  %s103_s29 = int_to_ptr.hbm [resolvable:$true] %s102_s29 }
  0x19   :  { %80 = dma.hbm_to_vmem [thread:$0]  %s73_s21, 8192, %s75_s24, [#allocation9], %s8730_s25, %s8730_s25, %s8731_s26  }
  0x1a   :  { %s8732_s0 = smov [#allocation11]   ;;  %s126_s18 = sshll.u32 %s9050_s9, 4  ;;  %s127_s18 = int_to_ptr.hbm [resolvable:$true] %s126_s18 }
  0x1b   :  { %s104_s3 = sshll.u32 %s8732_s0, 4  ;;  %s8733_s30 = smov 64   ;;  %s105_s3 = int_to_ptr.vmem [resolvable:$true] %s104_s3 }
  0x1c   :  { %s8734_s19 = smov 4   ;;  %s8735_s21 = smov [#allocation14]  }
  0x1d   :  { %110 = dma.hbm_to_vmem [thread:$0]  %s103_s29, 1024, %s105_s3, [#allocation12], %s8733_s30, %s8733_s30, %s8734_s19  }
  0x1e   :  { %s128_s23 = sshll.u32 %s8735_s21, 4  ;;  %s150_s7 = sshll.u32 %s9052_s11, 4  ;;  %s129_s23 = int_to_ptr.vmem [resolvable:$true] %s128_s23  ;;  %s151_s7 = int_to_ptr.hbm [resolvable:$true] %s150_s7 }
  0x1f   :  { %134 = dma.hbm_to_vmem [thread:$0]  %s127_s18, 1024, %s129_s23, [#allocation15], %s8733_s30, %s8733_s30, %s8734_s19  }
  0x20   :  { %s174_s0 = sshll.u32 %s9054_s13, 4  ;;  %s8736_s1 = smov [#allocation17]   ;;  %s175_s0 = int_to_ptr.hbm [resolvable:$true] %s174_s0 }
  0x21   :  { %s152_s20 = sshll.u32 %s8736_s1, 4  ;;  %s8737_s29 = smov [#allocation20]   ;;  %s153_s20 = int_to_ptr.vmem [resolvable:$true] %s152_s20 }
  0x22   :  { %158 = dma.hbm_to_vmem [thread:$0]  %s151_s7, 2048, %s153_s20, [#allocation18], %s8730_s25, %s8730_s25, %s8731_s26  }
  0x23   :  { %s176_s3 = sshll.u32 %s8737_s29, 4  ;;  %s9065_s11 = sld [smem:[#allocation35_spill]]  ;;  %s177_s3 = int_to_ptr.vmem [resolvable:$true] %s176_s3 }
  0x24   :  { %182 = dma.hbm_to_vmem [thread:$0]  %s175_s0, 8192, %s177_s3, [#allocation21], %s8727_s22, %s8727_s22, %s8728_s2  }
  0x25   :  { %s9066_s13 = sld [smem:[#allocation37_spill]]  ;;  %s8738_s28 = smov [#allocation2]  }
  0x26   :  { %s40_s1 = sshll.u32 %s8738_s28, 4  ;;  %s8739_s25 = smov [#allocation7]   ;;  %s41_s1 = int_to_ptr.vmem [resolvable:$true] %s40_s1 }
  0x27   :  { %s64_s26 = sshll.u32 %s8739_s25, 4  ;;  %s87_s29 = sshll.u32 %s9046_s5, 4  ;;  %s65_s26 = int_to_ptr.vmem [resolvable:$true] %s64_s26  ;;  %s88_s29 = int_to_ptr.hbm [resolvable:$true] %s87_s29 }
  0x28   :  { %s116_s2 = sshll.u32 %s9049_s8, 4  ;;  %s8740_s0 = smov [#allocation10]   ;;  %s117_s2 = int_to_ptr.hbm [resolvable:$true] %s116_s2 }
  0x29   :  { %s38_s27 = sshll.u32 %s9065_s11, 4  ;;  %s89_s3 = sshll.u32 %s8740_s0, 4  ;;  %s39_s27 = int_to_ptr.hbm [resolvable:$true] %s38_s27  ;;  %s90_s3 = int_to_ptr.vmem [resolvable:$true] %s89_s3 }
  0x2a   :  { %43 = dma.hbm_to_vmem [thread:$0]  %s39_s27, 448, %s41_s1, [#allocation3]  }
  0x2b   :  { %s62_s9 = sshll.u32 %s9066_s13, 4  ;;  %s8741_s24 = smov [#allocation13]   ;;  %s63_s9 = int_to_ptr.hbm [resolvable:$true] %s62_s9 }
  0x2c   :  { %67 = dma.hbm_to_vmem [thread:$0]  %s63_s9, 64, %s65_s26, [#allocation6]  }
  0x2d   :  { %95 = dma.hbm_to_vmem [thread:$0]  %s88_s29, 2048, %s90_s3, [#allocation9], %s8733_s30, %s8733_s30, %s8734_s19  }
  0x2e   :  { %s118_s11 = sshll.u32 %s8741_s24, 4  ;;  %s140_s5 = sshll.u32 %s9051_s10, 4  ;;  %s119_s11 = int_to_ptr.vmem [resolvable:$true] %s118_s11  ;;  %s141_s5 = int_to_ptr.hbm [resolvable:$true] %s140_s5 }
  0x2f   :  { %121 = dma.hbm_to_vmem [thread:$0]  %s117_s2, 16, %s119_s11, [#allocation12]  }
  0x30   :  { %s164_s8 = sshll.u32 %s9053_s12, 4  ;;  %s8742_s9 = smov [#allocation16]   ;;  %s165_s8 = int_to_ptr.hbm [resolvable:$true] %s164_s8 }
  0x31   :  { %s142_s28 = sshll.u32 %s8742_s9, 4  ;;  %s8743_s1 = smov [#allocation19]   ;;  %s143_s28 = int_to_ptr.vmem [resolvable:$true] %s142_s28 }
  0x32   :  { %145 = dma.hbm_to_vmem [thread:$0]  %s141_s5, 16, %s143_s28, [#allocation15]  }
  0x33   :  { %s166_s30 = sshll.u32 %s8743_s1, 4  ;;  %s189_s26 = sshll.u32 %s9056_s15, 4  ;;  %s167_s30 = int_to_ptr.vmem [resolvable:$true] %s166_s30  ;;  %s190_s26 = int_to_ptr.hbm [resolvable:$true] %s189_s26 }
  0x34   :  { %169 = dma.hbm_to_vmem [thread:$0]  %s165_s8, 32, %s167_s30, [#allocation18]  }
  0x35   :  { %s8744_s10 = smov [#allocation22]   ;;  %s8745_s20 = smov 448  }
  0x36   :  { %s191_s7 = sshll.u32 %s8744_s10, 4  ;;  %s8746_s29 = smov 28   ;;  %s192_s7 = int_to_ptr.vmem [resolvable:$true] %s191_s7 }
  0x37   :  { %197 = dma.hbm_to_vmem [thread:$0]  %s190_s26, 28672, %s192_s7, [#allocation21], %s8745_s20, %s8745_s20, %s8746_s29  }
  0x38   :  { %8708 = dma.done.wait [#allocation3], 448  }
  0x39   :  { %8709 = vsyncadd [#allocation3], 4294966848 }
  0x3a   :  { %8710 = dma.done.wait [#allocation6], 25152  }
  0x3b   :  { %8711 = vsyncadd [#allocation6], 4294942144 }
  0x3c   :  { %8712 = dma.done.wait [#allocation9], 10240  }
  0x3d   :  { %8713 = vsyncadd [#allocation9], 4294957056 }
  0x3e   :  { %8714 = dma.done.wait [#allocation12], 1040  }
  0x3f   :  { %8715 = vsyncadd [#allocation12], 4294966256 }
  0x40   :  { %8716 = dma.done.wait [#allocation15], 1040  }
  0x41   :  { %8717 = vsyncadd [#allocation15], 4294966256 }
  0x42   :  { %8718 = dma.done.wait [#allocation18], 2080  }
  0x43   :  { %8719 = vsyncadd [#allocation18], 4294965216 }
  0x44   :  { %8720 = dma.done.wait [#allocation21], 36864  }
  0x45   :  { %8721 = vsyncadd [#allocation21], 4294930432  ;;  %v5387_v0 = vld [vmem:[#allocation5 + $0xe0] sm:$0xf]  ;;  %v7698_v1 = vld [vmem:[#allocation5 + $0xec] sm:$0xf0] }
  0x46   :  { %v5515_v2 = vld [vmem:[#allocation5 + $0x1e0] sm:$0xf]  ;;  %v5388_v3 = vor.u32 %v7698_v1, %v5387_v0  ;;  %v7730_v4 = vld [vmem:[#allocation5 + $0x1ec] sm:$0xf0]  ;;  %vm1467_vm0 = vcmask 130048   ;;  %s5241_s11 = sshll.u32 %s9058_s17, 4  ;;  %s5242_s11 = int_to_ptr.hbm [resolvable:$true] %s5241_s11 }
  0x47   :  { %v5643_v5 = vld [vmem:[#allocation5 + $0x2e0] sm:$0xf]  ;;  %v7762_v6 = vld [vmem:[#allocation5 + $0x2ec] sm:$0xf0]  ;;  %v5516_v7 = vor.u32 %v7730_v4, %v5515_v2  ;;  %s8748_s17 = smov [#allocation24]   ;;  %s9067_s23 = sld [smem:[#allocation38_spill]] }
  0x48   :  { %v5644_v8 = vor.u32 %v7762_v6, %v5643_v5  ;;  %v5771_v9 = vld [vmem:[#allocation5 + $0x3e0] sm:$0xf]  ;;  %v7794_v10 = vld [vmem:[#allocation5 + $0x3ec] sm:$0xf0]  ;;  %1471 = vmatpush.bf16.msra.mxu0 %v5388_v3  ;;  %s5250_s27 = sshll.u32 %s8748_s17, 4  ;;  %s5251_s27 = int_to_ptr.vmem [resolvable:$true] %s5250_s27 }
  0x49   :  { %v5371_v11 = vld [vmem:[#allocation5 + $0xc0] sm:$0xf]  ;;  %v5772_v12 = vor.u32 %v7794_v10, %v5771_v9  ;;  %v7694_v13 = vld [vmem:[#allocation5 + $0xcc] sm:$0xf0]  ;;  %1484 = vmatpush.bf16.msra.mxu1 %v5516_v7 }
  0x4a   :  { %v5499_v14 = vld [vmem:[#allocation5 + $0x1c0] sm:$0xf]  ;;  %v7726_v15 = vld [vmem:[#allocation5 + $0x1cc] sm:$0xf0]  ;;  %1497 = vmatpush.bf16.msra.mxu2 %v5644_v8  ;;  %v5372_v16 = vor.u32 %v7694_v13, %v5371_v11 }
  0x4b   :  { %v5500_v17 = vor.u32 %v7726_v15, %v5499_v14  ;;  %v5627_v18 = vld [vmem:[#allocation5 + $0x2c0] sm:$0xf]  ;;  %v7758_v19 = vld [vmem:[#allocation5 + $0x2cc] sm:$0xf0]  ;;  %1510 = vmatpush.bf16.msra.mxu3 %v5772_v12 }
  0x4c   :  { %v5755_v20 = vld [vmem:[#allocation5 + $0x3c0] sm:$0xf]  ;;  %v5628_v21 = vor.u32 %v7758_v19, %v5627_v18  ;;  %v7790_v22 = vld [vmem:[#allocation5 + $0x3cc] sm:$0xf0]  ;;  %1472 = vmatpush.bf16.msra.mxu0 %v5372_v16 }
  0x4d   :  { %v5355_v23 = vld [vmem:[#allocation5 + $0xa0] sm:$0xf]  ;;  %v7690_v24 = vld [vmem:[#allocation5 + $0xac] sm:$0xf0]  ;;  %v5756_v25 = vor.u32 %v7790_v22, %v5755_v20  ;;  %1485 = vmatpush.bf16.msra.mxu1 %v5500_v17  ;;  %s5252_s13 = sshll.u32 %s9067_s23, 4  ;;  %s5253_s13 = int_to_ptr.hbm [resolvable:$true] %s5252_s13 }
  0x4e   :  { %v5483_v26 = vld [vmem:[#allocation5 + $0x1a0] sm:$0xf]  ;;  %v7722_v27 = vld [vmem:[#allocation5 + $0x1ac] sm:$0xf0]  ;;  %v5356_v29 = vor.u32 %v7690_v24, %v5355_v23  ;;  %1498 = vmatpush.bf16.msra.mxu2 %v5628_v21 }
  0x4f   :  { %v5611_v28 = vld [vmem:[#allocation5 + $0x2a0] sm:$0xf]  ;;  %v7754_v30 = vld [vmem:[#allocation5 + $0x2ac] sm:$0xf0]  ;;  %v5484_v33 = vor.u32 %v7722_v27, %v5483_v26  ;;  %1511 = vmatpush.bf16.msra.mxu3 %v5756_v25 }
  0x50   :  { %v5739_v31 = vld [vmem:[#allocation5 + $0x3a0] sm:$0xf]  ;;  %v7786_v32 = vld [vmem:[#allocation5 + $0x3ac] sm:$0xf0]  ;;  %v5612_v34 = vor.u32 %v7754_v30, %v5611_v28  ;;  %1473 = vmatpush.bf16.msra.mxu0 %v5356_v29 }
  0x51   :  { %v5339_v35 = vld [vmem:[#allocation5 + $0x80] sm:$0xf]  ;;  %v7686_v36 = vld [vmem:[#allocation5 + $0x8c] sm:$0xf0]  ;;  %v5740_v38 = vor.u32 %v7786_v32, %v5739_v31  ;;  %1486 = vmatpush.bf16.msra.mxu1 %v5484_v33 }
  0x52   :  { %v5467_v37 = vld [vmem:[#allocation5 + $0x180] sm:$0xf]  ;;  %v7718_v39 = vld [vmem:[#allocation5 + $0x18c] sm:$0xf0]  ;;  %v5340_v44 = vor.u32 %v7686_v36, %v5339_v35  ;;  %1499 = vmatpush.bf16.msra.mxu2 %v5612_v34  ;;  %v7696_v34 = vld [vmem:[#allocation5 + $0xe4] sm:$0xf] }
  0x53   :  { %v5595_v40 = vld [vmem:[#allocation5 + $0x280] sm:$0xf]  ;;  %v7750_v41 = vld [vmem:[#allocation5 + $0x28c] sm:$0xf0]  ;;  %v5468_v45 = vor.u32 %v7718_v39, %v5467_v37  ;;  %1512 = vmatpush.bf16.msra.mxu3 %v5740_v38  ;;  %v5389_v35 = vld [vmem:[#allocation5 + $0xf0] sm:$0xf0] }
  0x54   :  { %v5723_v42 = vld [vmem:[#allocation5 + $0x380] sm:$0xf]  ;;  %v7782_v43 = vld [vmem:[#allocation5 + $0x38c] sm:$0xf0]  ;;  %v5596_v46 = vor.u32 %v7750_v41, %v5595_v40  ;;  %1474 = vmatpush.bf16.msra.mxu0 %v5340_v44  ;;  %v253_v37 = vld [vmem:[#allocation2] sm:$0xff] }
  0x55   :  { %v5323_v47 = vld [vmem:[#allocation5 + $0x60] sm:$0xf]  ;;  %v7682_v48 = vld [vmem:[#allocation5 + $0x6c] sm:$0xf0]  ;;  %v5724_v50 = vor.u32 %v7782_v43, %v5723_v42  ;;  %1487 = vmatpush.bf16.msra.mxu1 %v5468_v45  ;;  %v467_v41 = vunpack.c.l.b16 %v253_v37 }
  0x56   :  { %v5451_v49 = vld [vmem:[#allocation5 + $0x160] sm:$0xf]  ;;  %v7714_v51 = vld [vmem:[#allocation5 + $0x16c] sm:$0xf0]  ;;  %v5324_v56 = vor.u32 %v7682_v48, %v5323_v47  ;;  %1500 = vmatpush.bf16.msra.mxu2 %v5596_v46  ;;  %v7728_v46 = vld [vmem:[#allocation5 + $0x1e4] sm:$0xf] }
  0x57   :  { %v5579_v52 = vld [vmem:[#allocation5 + $0x260] sm:$0xf]  ;;  %v7746_v53 = vld [vmem:[#allocation5 + $0x26c] sm:$0xf0]  ;;  %v5452_v57 = vor.u32 %v7714_v51, %v5451_v49  ;;  %1513 = vmatpush.bf16.msra.mxu3 %v5724_v50  ;;  %v5517_v47 = vld [vmem:[#allocation5 + $0x1f0] sm:$0xf0]  ;;  %v5392_v49 = vor.u32 %v7696_v34, %v5389_v35 }
  0x58   :  { %v5707_v54 = vld [vmem:[#allocation5 + $0x360] sm:$0xf]  ;;  %v7778_v55 = vld [vmem:[#allocation5 + $0x36c] sm:$0xf0]  ;;  %v5580_v58 = vor.u32 %v7746_v53, %v5579_v52  ;;  %1475 = vmatpush.bf16.msra.mxu0 %v5324_v56  ;;  %v5373_v56 = vld [vmem:[#allocation5 + $0xd0] sm:$0xf0] }
  0x59   :  { %v5307_v59 = vld [vmem:[#allocation5 + $0x40] sm:$0xf]  ;;  %v7678_v60 = vld [vmem:[#allocation5 + $0x4c] sm:$0xf0]  ;;  %v5708_v62 = vor.u32 %v7778_v55, %v5707_v54  ;;  %1488 = vmatpush.bf16.msra.mxu1 %v5452_v57  ;;  %v7692_v55 = vld [vmem:[#allocation5 + $0xc4] sm:$0xf]  ;;  %v8900_v57 = vpack.c.b16 %v467_v41, %v467_v41 }
  0x5a   :  { %v5435_v61 = vld [vmem:[#allocation5 + $0x140] sm:$0xf]  ;;  %v7710_v63 = vld [vmem:[#allocation5 + $0x14c] sm:$0xf0]  ;;  %v5308_v4 = vor.u32 %v7678_v60, %v5307_v59  ;;  %1501 = vmatpush.bf16.msra.mxu2 %v5580_v58  ;;  %v468_v58 = vunpack.c.h.b16 %v253_v37  ;;  %v5325_v34 = vld [vmem:[#allocation5 + $0x70] sm:$0xf0] }
  0x5b   :  { %v5563_v0 = vld [vmem:[#allocation5 + $0x240] sm:$0xf]  ;;  %v7742_v1 = vld [vmem:[#allocation5 + $0x24c] sm:$0xf0]  ;;  %v5436_v5 = vor.u32 %v7710_v63, %v5435_v61  ;;  %1514 = vmatpush.bf16.msra.mxu3 %v5708_v62  ;;  %v5520_v61 = vor.u32 %v7728_v46, %v5517_v47  ;;  %v7724_v63 = vld [vmem:[#allocation5 + $0x1c4] sm:$0xf] }
  0x5c   :  { %v5691_v2 = vld [vmem:[#allocation5 + $0x340] sm:$0xf]  ;;  %v7774_v3 = vld [vmem:[#allocation5 + $0x34c] sm:$0xf0]  ;;  %v5564_v6 = vor.u32 %v7742_v1, %v5563_v0  ;;  %1476 = vmatpush.bf16.msra.mxu0 %v5308_v4  ;;  %v5501_v0 = vld [vmem:[#allocation5 + $0x1d0] sm:$0xf0] }
  0x5d   :  { %v5291_v7 = vld [vmem:[#allocation5 + $0x20] sm:$0xf]  ;;  %v7674_v8 = vld [vmem:[#allocation5 + $0x2c] sm:$0xf0]  ;;  %v5692_v10 = vor.u32 %v7774_v3, %v5691_v2  ;;  %1489 = vmatpush.bf16.msra.mxu1 %v5436_v5  ;;  %v5376_v2 = vor.u32 %v7692_v55, %v5373_v56  ;;  %v7676_v46 = vld [vmem:[#allocation5 + $0x44] sm:$0xf] }
  0x5e   :  { %v5419_v9 = vld [vmem:[#allocation5 + $0x120] sm:$0xf]  ;;  %v7706_v11 = vld [vmem:[#allocation5 + $0x12c] sm:$0xf0]  ;;  %v5292_v17 = vor.u32 %v7674_v8, %v5291_v7  ;;  %1502 = vmatpush.bf16.msra.mxu2 %v5564_v6  ;;  %v8906_v6 = vpack.c.b16 %v468_v58, %v468_v58  ;;  %v7688_v8 = vld [vmem:[#allocation5 + $0xa4] sm:$0xf] }
  0x5f   :  { %v5547_v12 = vld [vmem:[#allocation5 + $0x220] sm:$0xf]  ;;  %v7738_v13 = vld [vmem:[#allocation5 + $0x22c] sm:$0xf0]  ;;  %v5420_v21 = vor.u32 %v7706_v11, %v5419_v9  ;;  %1515 = vmatpush.bf16.msra.mxu3 %v5692_v10  ;;  %v5357_v9 = vld [vmem:[#allocation5 + $0xb0] sm:$0xf0]  ;;  %v5504_v10 = vor.u32 %v7724_v63, %v5501_v0 }
  0x60   :  { %v5675_v14 = vld [vmem:[#allocation5 + $0x320] sm:$0xf]  ;;  %v7770_v15 = vld [vmem:[#allocation5 + $0x32c] sm:$0xf0]  ;;  %v5548_v22 = vor.u32 %v7738_v13, %v5547_v12  ;;  %1477 = vmatpush.bf16.msra.mxu0 %v5292_v17  ;;  %v7720_v12 = vld [vmem:[#allocation5 + $0x1a4] sm:$0xf] }
  0x61   :  { %v5275_v16 = vld [vmem:[#allocation5] sm:$0xf]  ;;  %v7670_v18 = vld [vmem:[#allocation5 + $0xc] sm:$0xf0]  ;;  %v5676_v26 = vor.u32 %v7770_v15, %v5675_v14  ;;  %1490 = vmatpush.bf16.msra.mxu1 %v5420_v21  ;;  %v5485_v13 = vld [vmem:[#allocation5 + $0x1b0] sm:$0xf0]  ;;  %v5360_v15 = vor.u32 %v7688_v8, %v5357_v9 }
  0x62   :  { %v5403_v19 = vld [vmem:[#allocation5 + $0x100] sm:$0xf]  ;;  %v7702_v20 = vld [vmem:[#allocation5 + $0x10c] sm:$0xf0]  ;;  %v5276_v33 = vor.u32 %v7670_v18, %v5275_v16  ;;  %1503 = vmatpush.bf16.msra.mxu2 %v5548_v22  ;;  %v5341_v21 = vld [vmem:[#allocation5 + $0x90] sm:$0xf0] }
  0x63   :  { %v5531_v23 = vld [vmem:[#allocation5 + $0x200] sm:$0xf]  ;;  %v7734_v24 = vld [vmem:[#allocation5 + $0x20c] sm:$0xf0]  ;;  %v5404_v38 = vor.u32 %v7702_v20, %v5403_v19  ;;  %1516 = vmatpush.bf16.msra.mxu3 %v5676_v26  ;;  %v7684_v20 = vld [vmem:[#allocation5 + $0x84] sm:$0xf] }
  0x64   :  { %v254_v25 = vld [vmem:[#allocation2 + $0x8] sm:$0xff]  ;;  %v5659_v27 = vld [vmem:[#allocation5 + $0x300] sm:$0xf]  ;;  %v5532_v39 = vor.u32 %v7734_v24, %v5531_v23  ;;  %1478 = vmatpush.bf16.msra.mxu0 %v5276_v33  ;;  %v256_v22 = vld [vmem:[#allocation2 + $0x18] sm:$0xf]  ;;  %v5488_v23 = vor.u32 %v7720_v12, %v5485_v13 }
  0x65   :  { %v7766_v28 = vld [vmem:[#allocation5 + $0x30c] sm:$0xf0]  ;;  %v5899_v29 = vld [vmem:[#allocation5 + $0x4e0] sm:$0xf]  ;;  %v469_v36 = vunpack.c.l.b16 %v254_v25  ;;  %v470_v42 = vunpack.c.h.b16 %v254_v25  ;;  %1491 = vmatpush.bf16.msra.mxu1 %v5404_v38  ;;  %v7716_v25 = vld [vmem:[#allocation5 + $0x184] sm:$0xf]  ;;  %v473_v35 = vunpack.c.l.b16 %v256_v22 }
  0x66   :  { %v7826_v30 = vld [vmem:[#allocation5 + $0x4ec] sm:$0xf0]  ;;  %v6027_v31 = vld [vmem:[#allocation5 + $0x5e0] sm:$0xf]  ;;  %v5660_v43 = vor.u32 %v7766_v28, %v5659_v27  ;;  %1504 = vmatpush.bf16.msra.mxu2 %v5532_v39  ;;  %v5469_v26 = vld [vmem:[#allocation5 + $0x190] sm:$0xf0]  ;;  %v5344_v28 = vor.u32 %v7684_v20, %v5341_v21 }
  0x67   :  { %v7858_v32 = vld [vmem:[#allocation5 + $0x5ec] sm:$0xf0]  ;;  %v6043_v40 = vld [vmem:[#allocation5 + $0x600] sm:$0xf]  ;;  %v5900_v44 = vor.u32 %v7826_v30, %v5899_v29  ;;  %v8898_v53 = vpack.c.b16 %v469_v36, %v469_v36  ;;  %v8902_v60 = vpack.c.b16 %v470_v42, %v470_v42  ;;  %1479 = vmatmul.bf16.vlgmr.msra.gmra.mxu0 %v8900_v57  ;;  %v7680_v33 = vld [vmem:[#allocation5 + $0x64] sm:$0xf]  ;;  %v5472_v36 = vor.u32 %v7716_v25, %v5469_v26 }
  0x68   :  { %v7862_v45 = vld [vmem:[#allocation5 + $0x60c] sm:$0xf0]  ;;  %v6028_v48 = vor.u32 %v7858_v32, %v6027_v31  ;;  %v5883_v50 = vld [vmem:[#allocation5 + $0x4c0] sm:$0xf]  ;;  %1517 = vmatpush.bf16.msra.mxu3 %v5660_v43  ;;  %1492 = vmatmul.bf16.vlgmr.msra.gmra.mxu1 %v8906_v6  ;;  %v7712_v38 = vld [vmem:[#allocation5 + $0x164] sm:$0xf]  ;;  %v5328_v41 = vor.u32 %v7680_v33, %v5325_v34 }
  0x69   :  { %v7822_v51 = vld [vmem:[#allocation5 + $0x4cc] sm:$0xf0]  ;;  %v6011_v52 = vld [vmem:[#allocation5 + $0x5c0] sm:$0xf]  ;;  %v6044_v59 = vor.u32 %v7862_v45, %v6043_v40  ;;  %1523 = vmatpush.bf16.msrb.mxu0 %v5900_v44  ;;  %1505 = vmatmul.bf16.vlgmr.msra.gmra.mxu2 %v8898_v53  ;;  %v5453_v39 = vld [vmem:[#allocation5 + $0x170] sm:$0xf0] }
  0x6a   :  { %v7854_v54 = vld [vmem:[#allocation5 + $0x5cc] sm:$0xf0]  ;;  %v5884_v62 = vor.u32 %v7822_v51, %v5883_v50  ;;  %1536 = vmatpush.bf16.msrb.mxu1 %v6028_v48  ;;  %v5867_v3 = vld [vmem:[#allocation5 + $0x4a0] sm:$0xf]  ;;  %v5309_v47 = vld [vmem:[#allocation5 + $0x50] sm:$0xf0]  ;;  %v8910_v48 = vpack.c.b16 %v473_v35, %v473_v35 }
  0x6b   :  { %v6012_v1 = vor.u32 %v7854_v54, %v6011_v52  ;;  %v7818_v4 = vld [vmem:[#allocation5 + $0x4ac] sm:$0xf0]  ;;  %v5995_v5 = vld [vmem:[#allocation5 + $0x5a0] sm:$0xf]  ;;  %1556 = vmatpush.bf16.msrb.mxu2 %v6044_v59  ;;  %1518 = vmatmul.bf16.vlgmr.msra.gmra.mxu3 %v8902_v60  ;;  %v7708_v51 = vld [vmem:[#allocation5 + $0x144] sm:$0xf]  ;;  %v5312_v55 = vor.u32 %v7676_v46, %v5309_v47 }
  0x6c   :  { %1562 = vmatpush.bf16.msrb.mxu3 %v5392_v49  ;;  %v7850_v7 = vld [vmem:[#allocation5 + $0x5ac] sm:$0xf0]  ;;  %v5868_v11 = vor.u32 %v7818_v4, %v5867_v3  ;;  %v5851_v16 = vld [vmem:[#allocation5 + $0x480] sm:$0xf]  ;;  %v5456_v49 = vor.u32 %v7712_v38, %v5453_v39  ;;  %v5437_v52 = vld [vmem:[#allocation5 + $0x150] sm:$0xf0] }
  0x6d   :  { %1524 = vmatpush.bf16.msrb.mxu0 %v5884_v62  ;;  %v5996_v14 = vor.u32 %v7850_v7, %v5995_v5  ;;  %v7814_v17 = vld [vmem:[#allocation5 + $0x48c] sm:$0xf0]  ;;  %v5979_v18 = vld [vmem:[#allocation5 + $0x580] sm:$0xf]  ;;  %v7672_v62 = vld [vmem:[#allocation5 + $0x24] sm:$0xf] }
  0x6e   :  { %1537 = vmatpush.bf16.msrb.mxu1 %v6012_v1  ;;  %v7846_v19 = vld [vmem:[#allocation5 + $0x58c] sm:$0xf0]  ;;  %v5852_v24 = vor.u32 %v7814_v17, %v5851_v16  ;;  %v5835_v29 = vld [vmem:[#allocation5 + $0x460] sm:$0xf]  ;;  %v5293_v63 = vld [vmem:[#allocation5 + $0x30] sm:$0xf0]  ;;  %v5440_v1 = vor.u32 %v7708_v51, %v5437_v52 }
  0x6f   :  { %1575 = vmatpush.bf16.msra.mxu2 %v5520_v61  ;;  %v5980_v27 = vor.u32 %v7846_v19, %v5979_v18  ;;  %v7810_v30 = vld [vmem:[#allocation5 + $0x46c] sm:$0xf0]  ;;  %v5963_v31 = vld [vmem:[#allocation5 + $0x560] sm:$0xf]  ;;  %v7704_v0 = vld [vmem:[#allocation5 + $0x124] sm:$0xf]  ;;  %v5296_v8 = vor.u32 %v7672_v62, %v5293_v63 }
  0x70   :  { %1563 = vmatpush.bf16.msrb.mxu3 %v5376_v2  ;;  %v7842_v32 = vld [vmem:[#allocation5 + $0x56c] sm:$0xf0]  ;;  %v5836_v37 = vor.u32 %v7810_v30, %v5835_v29  ;;  %v5819_v42 = vld [vmem:[#allocation5 + $0x440] sm:$0xf]  ;;  %v5421_v3 = vld [vmem:[#allocation5 + $0x130] sm:$0xf0] }
  0x71   :  { %1525 = vmatpush.bf16.msrb.mxu0 %v5868_v11  ;;  %v5964_v40 = vor.u32 %v7842_v32, %v5963_v31  ;;  %v7806_v43 = vld [vmem:[#allocation5 + $0x44c] sm:$0xf0]  ;;  %v5947_v44 = vld [vmem:[#allocation5 + $0x540] sm:$0xf]  ;;  %v255_v5 = vld [vmem:[#allocation2 + $0x10] sm:$0xff]  ;;  %v5424_v19 = vor.u32 %v7704_v0, %v5421_v3 }
  0x72   :  { %1538 = vmatpush.bf16.msrb.mxu1 %v5996_v14  ;;  %v7838_v45 = vld [vmem:[#allocation5 + $0x54c] sm:$0xf0]  ;;  %v5820_v50 = vor.u32 %v7806_v43, %v5819_v42  ;;  %v5803_v56 = vld [vmem:[#allocation5 + $0x420] sm:$0xf]  ;;  %v7668_v12 = vld [vmem:[#allocation5 + $0x4] sm:$0xf]  ;;  %v471_v18 = vunpack.c.l.b16 %v255_v5 }
  0x73   :  { %1576 = vmatpush.bf16.msra.mxu2 %v5504_v10  ;;  %v5948_v54 = vor.u32 %v7838_v45, %v5947_v44  ;;  %v7802_v58 = vld [vmem:[#allocation5 + $0x42c] sm:$0xf0]  ;;  %v5931_v59 = vld [vmem:[#allocation5 + $0x520] sm:$0xf]  ;;  %v5277_v13 = vld [vmem:[#allocation5 + $0x10] sm:$0xf0] }
  0x74   :  { %1564 = vmatpush.bf16.msrb.mxu3 %v5360_v15  ;;  %v7834_v61 = vld [vmem:[#allocation5 + $0x52c] sm:$0xf0]  ;;  %v5804_v2 = vor.u32 %v7802_v58, %v5803_v56  ;;  %v5787_v4 = vld [vmem:[#allocation5 + $0x400] sm:$0xf]  ;;  %v7760_v14 = vld [vmem:[#allocation5 + $0x2e4] sm:$0xf]  ;;  %v5280_v25 = vor.u32 %v7668_v12, %v5277_v13  ;;  %v8914_v34 = vpack.c.b16 %v471_v18, %v471_v18 }
  0x75   :  { %1526 = vmatpush.bf16.msrb.mxu0 %v5852_v24  ;;  %v5932_v7 = vor.u32 %v7834_v61, %v5931_v59  ;;  %v7798_v9 = vld [vmem:[#allocation5 + $0x40c] sm:$0xf0]  ;;  %v5915_v10 = vld [vmem:[#allocation5 + $0x500] sm:$0xf]  ;;  %v5645_v15 = vld [vmem:[#allocation5 + $0x2f0] sm:$0xf0] }
  0x76   :  { %1539 = vmatpush.bf16.msrb.mxu1 %v5980_v27  ;;  %v7830_v11 = vld [vmem:[#allocation5 + $0x50c] sm:$0xf0]  ;;  %v7792_v16 = vld [vmem:[#allocation5 + $0x3e4] sm:$0xf]  ;;  %v5773_v17 = vld [vmem:[#allocation5 + $0x3f0] sm:$0xf0]  ;;  %v5788_v20 = vor.u32 %v7798_v9, %v5787_v4 }
  0x77   :  { %1577 = vmatpush.bf16.msra.mxu2 %v5488_v23  ;;  %v7824_v21 = vld [vmem:[#allocation5 + $0x4e4] sm:$0xf]  ;;  %v5901_v22 = vld [vmem:[#allocation5 + $0x4f0] sm:$0xf0]  ;;  %v472_v23 = vunpack.c.h.b16 %v255_v5  ;;  %v5916_v24 = vor.u32 %v7830_v11, %v5915_v10  ;;  %v5776_v29 = vor.u32 %v7792_v16, %v5773_v17 }
  0x78   :  { %1565 = vmatpush.bf16.msrb.mxu3 %v5344_v28  ;;  %v7700_v26 = vld [vmem:[#allocation5 + $0x104] sm:$0xf]  ;;  %v5405_v27 = vld [vmem:[#allocation5 + $0x110] sm:$0xf0]  ;;  %v5648_v28 = vor.u32 %v7760_v14, %v5645_v15  ;;  %v5904_v33 = vor.u32 %v7824_v21, %v5901_v22 }
  0x79   :  { %1527 = vmatpush.bf16.msrb.mxu0 %v5836_v37  ;;  %6057 = vmatmul.msk.bf16.vlgmr.msrb.gmra.mxu2 %vm1467_vm0, %v8910_v48  ;;  %v7856_v30 = vld [vmem:[#allocation5 + $0x5e4] sm:$0xf]  ;;  %v6029_v31 = vld [vmem:[#allocation5 + $0x5f0] sm:$0xf0]  ;;  %v5408_v38 = vor.u32 %v7700_v26, %v5405_v27  ;;  %v8916_v39 = vpack.c.b16 %v472_v23, %v472_v23 }
  0x7a   :  { %1540 = vmatpush.bf16.msrb.mxu1 %v5964_v40  ;;  %v7756_v32 = vld [vmem:[#allocation5 + $0x2c4] sm:$0xf]  ;;  %v5629_v35 = vld [vmem:[#allocation5 + $0x2d0] sm:$0xf0]  ;;  %v6032_v42 = vor.u32 %v7856_v30, %v6029_v31 }
  0x7b   :  { %1578 = vmatpush.bf16.msra.mxu2 %v5472_v36  ;;  %v7788_v36 = vld [vmem:[#allocation5 + $0x3c4] sm:$0xf]  ;;  %v5757_v37 = vld [vmem:[#allocation5 + $0x3d0] sm:$0xf0]  ;;  %v5632_v43 = vor.u32 %v7756_v32, %v5629_v35 }
  0x7c   :  { %1566 = vmatpush.bf16.msrb.mxu3 %v5328_v41  ;;  %v7820_v40 = vld [vmem:[#allocation5 + $0x4c4] sm:$0xf]  ;;  %v5885_v41 = vld [vmem:[#allocation5 + $0x4d0] sm:$0xf0]  ;;  %v5760_v44 = vor.u32 %v7788_v36, %v5757_v37 }
  0x7d   :  { %1528 = vmatpush.bf16.msrb.mxu0 %v5820_v50  ;;  %v7852_v45 = vld [vmem:[#allocation5 + $0x5c4] sm:$0xf]  ;;  %v6013_v46 = vld [vmem:[#allocation5 + $0x5d0] sm:$0xf0] }
  0x7e   :  { %1541 = vmatpush.bf16.msrb.mxu1 %v5948_v54  ;;  %v7752_v47 = vld [vmem:[#allocation5 + $0x2a4] sm:$0xf]  ;;  %v5613_v50 = vld [vmem:[#allocation5 + $0x2b0] sm:$0xf0]  ;;  %v6016_v56 = vor.u32 %v7852_v45, %v6013_v46 }
  0x7f   :  { %1579 = vmatpush.bf16.msra.mxu2 %v5456_v49  ;;  %v5888_v49 = vor.u32 %v7820_v40, %v5885_v41  ;;  %v7784_v51 = vld [vmem:[#allocation5 + $0x3a4] sm:$0xf]  ;;  %v5741_v52 = vld [vmem:[#allocation5 + $0x3b0] sm:$0xf0]  ;;  %v5616_v58 = vor.u32 %v7752_v47, %v5613_v50 }
  0x80   :  { %1567 = vmatpush.bf16.msrb.mxu3 %v5312_v55  ;;  %v7816_v54 = vld [vmem:[#allocation5 + $0x4a4] sm:$0xf]  ;;  %v5869_v55 = vld [vmem:[#allocation5 + $0x4b0] sm:$0xf0]  ;;  %v5744_v59 = vor.u32 %v7784_v51, %v5741_v52 }
  0x81   :  { %1529 = vmatpush.bf16.msrb.mxu0 %v5804_v2  ;;  %v7848_v61 = vld [vmem:[#allocation5 + $0x5a4] sm:$0xf]  ;;  %v5997_v62 = vld [vmem:[#allocation5 + $0x5b0] sm:$0xf0]  ;;  %v5872_v0 = vor.u32 %v7816_v54, %v5869_v55 }
  0x82   :  { %1542 = vmatpush.bf16.msrb.mxu1 %v5932_v7  ;;  %v7748_v63 = vld [vmem:[#allocation5 + $0x284] sm:$0xf]  ;;  %v5725_v3 = vld [vmem:[#allocation5 + $0x390] sm:$0xf0]  ;;  %v6000_v7 = vor.u32 %v7848_v61, %v5997_v62  ;;  %v5395_v61 = vld [vmem:[#allocation5 + $0xe8] sm:$0xf] }
  0x83   :  { %1580 = vmatpush.bf16.msra.mxu2 %v5440_v1  ;;  %v5597_v1 = vld [vmem:[#allocation5 + $0x290] sm:$0xf0]  ;;  %v7780_v2 = vld [vmem:[#allocation5 + $0x384] sm:$0xf]  ;;  %v7699_v62 = vld [vmem:[#allocation5 + $0xf4] sm:$0xf0] }
  0x84   :  { %1568 = vmatpush.bf16.msrb.mxu3 %v5296_v8  ;;  %v7812_v4 = vld [vmem:[#allocation5 + $0x484] sm:$0xf]  ;;  %v5853_v5 = vld [vmem:[#allocation5 + $0x490] sm:$0xf0]  ;;  %v5600_v8 = vor.u32 %v7748_v63, %v5597_v1  ;;  %v5728_v9 = vor.u32 %v7780_v2, %v5725_v3  ;;  %v5523_v63 = vld [vmem:[#allocation5 + $0x1e8] sm:$0xf] }
  0x85   :  { %1530 = vmatpush.bf16.msrb.mxu0 %v5788_v20  ;;  %v7844_v10 = vld [vmem:[#allocation5 + $0x584] sm:$0xf]  ;;  %v5981_v11 = vld [vmem:[#allocation5 + $0x590] sm:$0xf0]  ;;  %v5856_v13 = vor.u32 %v7812_v4, %v5853_v5  ;;  %v7731_v1 = vld [vmem:[#allocation5 + $0x1f4] sm:$0xf0] }
  0x86   :  { %1543 = vmatpush.bf16.msrb.mxu1 %v5916_v24  ;;  %v7744_v12 = vld [vmem:[#allocation5 + $0x264] sm:$0xf]  ;;  %v5581_v14 = vld [vmem:[#allocation5 + $0x270] sm:$0xf0] }
  0x87   :  { %1581 = vmatpush.bf16.msra.mxu2 %v5424_v19  ;;  %v7776_v15 = vld [vmem:[#allocation5 + $0x364] sm:$0xf]  ;;  %v5709_v16 = vld [vmem:[#allocation5 + $0x370] sm:$0xf0]  ;;  %v5984_v19 = vor.u32 %v7844_v10, %v5981_v11  ;;  %v5584_v20 = vor.u32 %v7744_v12, %v5581_v14  ;;  %v5396_v10 = vor.u32 %v7699_v62, %v5395_v61  ;;  %v5779_v11 = vld [vmem:[#allocation5 + $0x3e8] sm:$0xf]  ;;  %v5524_v14 = vor.u32 %v7731_v1, %v5523_v63 }
  0x88   :  { %1569 = vmatpush.bf16.msrb.mxu3 %v5280_v25  ;;  %1531 = vmatmul.bf16.vlgmr.msrb.gmra.mxu0 %v8914_v34  ;;  %v7808_v17 = vld [vmem:[#allocation5 + $0x464] sm:$0xf]  ;;  %v5837_v18 = vld [vmem:[#allocation5 + $0x470] sm:$0xf0]  ;;  %v5712_v21 = vor.u32 %v7776_v15, %v5709_v16  ;;  %v7795_v12 = vld [vmem:[#allocation5 + $0x3f4] sm:$0xf0] }
  0x89   :  { %1588 = vmatpush.bf16.msra.mxu0 %v5648_v28  ;;  %1544 = vmatmul.bf16.vlgmr.msrb.gmra.mxu1 %v8916_v39  ;;  %v7840_v22 = vld [vmem:[#allocation5 + $0x564] sm:$0xf]  ;;  %v5965_v23 = vld [vmem:[#allocation5 + $0x570] sm:$0xf0]  ;;  %v5840_v25 = vor.u32 %v7808_v17, %v5837_v18  ;;  %v7695_v15 = vld [vmem:[#allocation5 + $0xd4] sm:$0xf0] }
  0x8a   :  { %1601 = vmatpush.bf16.msra.mxu1 %v5776_v29  ;;  %v7740_v24 = vld [vmem:[#allocation5 + $0x244] sm:$0xf]  ;;  %v5565_v26 = vld [vmem:[#allocation5 + $0x250] sm:$0xf0]  ;;  %v5968_v31 = vor.u32 %v7840_v22, %v5965_v23  ;;  %v5651_v17 = vld [vmem:[#allocation5 + $0x2e8] sm:$0xf]  ;;  %v5780_v22 = vor.u32 %v7795_v12, %v5779_v11 }
  0x8b   :  { %1582 = vmatpush.bf16.msra.mxu2 %v5408_v38  ;;  %1570 = vmatmul.bf16.vlgmr.msrb.gmra.mxu3 %v8900_v57  ;;  %v7772_v27 = vld [vmem:[#allocation5 + $0x344] sm:$0xf]  ;;  %v5693_v28 = vld [vmem:[#allocation5 + $0x350] sm:$0xf0]  ;;  %v7763_v18 = vld [vmem:[#allocation5 + $0x2f4] sm:$0xf0] }
  0x8c   :  { %1614 = vmatpush.bf16.msra.mxu3 %v5904_v33  ;;  %v7804_v29 = vld [vmem:[#allocation5 + $0x444] sm:$0xf]  ;;  %v5821_v30 = vld [vmem:[#allocation5 + $0x450] sm:$0xf0]  ;;  %v5568_v33 = vor.u32 %v7740_v24, %v5565_v26  ;;  %v5696_v35 = vor.u32 %v7772_v27, %v5693_v28  ;;  %v5763_v24 = vld [vmem:[#allocation5 + $0x3c8] sm:$0xf]  ;;  %v5652_v27 = vor.u32 %v7763_v18, %v5651_v17 }
  0x8d   :  { %1589 = vmatpush.bf16.msra.mxu0 %v5632_v43  ;;  %v7836_v32 = vld [vmem:[#allocation5 + $0x544] sm:$0xf]  ;;  %v5949_v36 = vld [vmem:[#allocation5 + $0x550] sm:$0xf0]  ;;  %v5824_v40 = vor.u32 %v7804_v29, %v5821_v30  ;;  %v5363_v26 = vld [vmem:[#allocation5 + $0xa8] sm:$0xf] }
  0x8e   :  { %1602 = vmatpush.bf16.msra.mxu1 %v5760_v44  ;;  %1583 = vmatmul.bf16.vlgmr.msra.gmra.mxu2 %v8906_v6  ;;  %v7736_v37 = vld [vmem:[#allocation5 + $0x224] sm:$0xf]  ;;  %v5549_v38 = vld [vmem:[#allocation5 + $0x230] sm:$0xf0]  ;;  %v5952_v45 = vor.u32 %v7836_v32, %v5949_v36  ;;  %v7691_v29 = vld [vmem:[#allocation5 + $0xb4] sm:$0xf0] }
  0x8f   :  { %1627 = vmatpush.bf16.msrb.mxu2 %v6032_v42  ;;  %v7768_v41 = vld [vmem:[#allocation5 + $0x324] sm:$0xf]  ;;  %v5677_v42 = vld [vmem:[#allocation5 + $0x330] sm:$0xf0]  ;;  %v5552_v50 = vor.u32 %v7736_v37, %v5549_v38  ;;  %v5635_v30 = vld [vmem:[#allocation5 + $0x2c8] sm:$0xf]  ;;  %v5364_v36 = vor.u32 %v7691_v29, %v5363_v26 }
  0x90   :  { %1615 = vmatpush.bf16.msra.mxu3 %v5888_v49  ;;  %v7800_v43 = vld [vmem:[#allocation5 + $0x424] sm:$0xf]  ;;  %v5805_v44 = vld [vmem:[#allocation5 + $0x430] sm:$0xf0]  ;;  %v5680_v51 = vor.u32 %v7768_v41, %v5677_v42  ;;  %v5491_v32 = vld [vmem:[#allocation5 + $0x1a8] sm:$0xf] }
  0x91   :  { %1590 = vmatpush.bf16.msra.mxu0 %v5616_v58  ;;  %v7832_v46 = vld [vmem:[#allocation5 + $0x524] sm:$0xf]  ;;  %v5933_v47 = vld [vmem:[#allocation5 + $0x530] sm:$0xf0]  ;;  %v5747_v37 = vld [vmem:[#allocation5 + $0x3a8] sm:$0xf] }
  0x92   :  { %1603 = vmatpush.bf16.msra.mxu1 %v5744_v59  ;;  %v7732_v49 = vld [vmem:[#allocation5 + $0x204] sm:$0xf]  ;;  %v5533_v52 = vld [vmem:[#allocation5 + $0x210] sm:$0xf0]  ;;  %v7787_v38 = vld [vmem:[#allocation5 + $0x3b4] sm:$0xf0] }
  0x93   :  { %1628 = vmatpush.bf16.msrb.mxu2 %v6016_v56  ;;  %v7764_v54 = vld [vmem:[#allocation5 + $0x304] sm:$0xf]  ;;  %v5661_v55 = vld [vmem:[#allocation5 + $0x310] sm:$0xf0]  ;;  %v5808_v56 = vor.u32 %v7800_v43, %v5805_v44  ;;  %v5536_v4 = vor.u32 %v7732_v49, %v5533_v52  ;;  %v7687_v43 = vld [vmem:[#allocation5 + $0x94] sm:$0xf0]  ;;  %v5748_v49 = vor.u32 %v7787_v38, %v5747_v37 }
  0x94   :  { %1616 = vmatpush.bf16.msra.mxu3 %v5872_v0  ;;  %v7796_v58 = vld [vmem:[#allocation5 + $0x404] sm:$0xf]  ;;  %v5789_v59 = vld [vmem:[#allocation5 + $0x410] sm:$0xf0]  ;;  %v5936_v0 = vor.u32 %v7832_v46, %v5933_v47  ;;  %v5664_v5 = vor.u32 %v7764_v54, %v5661_v55  ;;  %v5619_v44 = vld [vmem:[#allocation5 + $0x2a8] sm:$0xf] }
  0x95   :  { %1591 = vmatpush.bf16.msra.mxu0 %v5600_v8  ;;  %v7860_v2 = vld [vmem:[#allocation5 + $0x604] sm:$0xf]  ;;  %v6045_v3 = vld [vmem:[#allocation5 + $0x610] sm:$0xf0]  ;;  %v5475_v46 = vld [vmem:[#allocation5 + $0x188] sm:$0xf] }
  0x96   :  { %1604 = vmatpush.bf16.msra.mxu1 %v5728_v9  ;;  %v5917_v8 = vld [vmem:[#allocation5 + $0x510] sm:$0xf0]  ;;  %v5792_v9 = vor.u32 %v7796_v58, %v5789_v59  ;;  %v6048_v16 = vor.u32 %v7860_v2, %v6045_v3  ;;  %v7719_v47 = vld [vmem:[#allocation5 + $0x194] sm:$0xf0]  ;;  %v5331_v54 = vld [vmem:[#allocation5 + $0x68] sm:$0xf] }
  0x97   :  { %1629 = vmatpush.bf16.msrb.mxu2 %v6000_v7  ;;  %v7828_v7 = vld [vmem:[#allocation5 + $0x504] sm:$0xf]  ;;  %v7783_v52 = vld [vmem:[#allocation5 + $0x394] sm:$0xf0]  ;;  %v5603_v59 = vld [vmem:[#allocation5 + $0x288] sm:$0xf] }
  0x98   :  { %1617 = vmatpush.bf16.msra.mxu3 %v5856_v13  ;;  %v5379_v13 = vld [vmem:[#allocation5 + $0xc8] sm:$0xf]  ;;  %v7683_v58 = vld [vmem:[#allocation5 + $0x74] sm:$0xf0] }
  0x99   :  { %1592 = vmatpush.bf16.msra.mxu0 %v5584_v20  ;;  %v5507_v20 = vld [vmem:[#allocation5 + $0x1c8] sm:$0xf]  ;;  %v5380_v23 = vor.u32 %v7695_v15, %v5379_v13  ;;  %v7751_v61 = vld [vmem:[#allocation5 + $0x294] sm:$0xf0]  ;;  %v5332_v1 = vor.u32 %v7683_v58, %v5331_v54 }
  0x9a   :  { %1605 = vmatpush.bf16.msra.mxu1 %v5712_v21  ;;  %v7727_v21 = vld [vmem:[#allocation5 + $0x1d4] sm:$0xf0]  ;;  %v5459_v62 = vld [vmem:[#allocation5 + $0x168] sm:$0xf] }
  0x9b   :  { %1630 = vmatpush.bf16.msrb.mxu2 %v5984_v19  ;;  %v5920_v19 = vor.u32 %v7828_v7, %v5917_v8  ;;  %v5508_v28 = vor.u32 %v7727_v21, %v5507_v20  ;;  %v7715_v63 = vld [vmem:[#allocation5 + $0x174] sm:$0xf0]  ;;  %v5715_v2 = vld [vmem:[#allocation5 + $0x368] sm:$0xf] }
  0x9c   :  { %1618 = vmatpush.bf16.msra.mxu3 %v5840_v25  ;;  %v7791_v25 = vld [vmem:[#allocation5 + $0x3d4] sm:$0xf0]  ;;  %v5460_v7 = vor.u32 %v7715_v63, %v5459_v62  ;;  %v5443_v11 = vld [vmem:[#allocation5 + $0x148] sm:$0xf] }
  0x9d   :  { %1593 = vmatpush.bf16.msra.mxu0 %v5568_v33  ;;  %v7723_v33 = vld [vmem:[#allocation5 + $0x1b4] sm:$0xf0]  ;;  %v5699_v15 = vld [vmem:[#allocation5 + $0x348] sm:$0xf] }
  0x9e   :  { %1606 = vmatpush.bf16.msra.mxu1 %v5696_v35  ;;  %v5764_v35 = vor.u32 %v7791_v25, %v5763_v24  ;;  %v5492_v42 = vor.u32 %v7723_v33, %v5491_v32  ;;  %v7779_v3 = vld [vmem:[#allocation5 + $0x374] sm:$0xf0]  ;;  %v5299_v17 = vld [vmem:[#allocation5 + $0x28] sm:$0xf] }
  0x9f   :  { %1631 = vmatpush.bf16.msrb.mxu2 %v5968_v31  ;;  %v7759_v31 = vld [vmem:[#allocation5 + $0x2d4] sm:$0xf0]  ;;  %v5716_v13 = vor.u32 %v7779_v3, %v5715_v2  ;;  %v5571_v21 = vld [vmem:[#allocation5 + $0x248] sm:$0xf] }
  0xa0   :  { %1619 = vmatpush.bf16.msra.mxu3 %v5824_v40  ;;  %v5347_v40 = vld [vmem:[#allocation5 + $0x88] sm:$0xf]  ;;  %v5636_v41 = vor.u32 %v7759_v31, %v5635_v30  ;;  %v7679_v8 = vld [vmem:[#allocation5 + $0x54] sm:$0xf0] }
  0xa1   :  { %1594 = vmatpush.bf16.msra.mxu0 %v5552_v50  ;;  %v5348_v50 = vor.u32 %v7687_v43, %v5347_v40  ;;  %v7711_v12 = vld [vmem:[#allocation5 + $0x154] sm:$0xf0]  ;;  %v5683_v26 = vld [vmem:[#allocation5 + $0x328] sm:$0xf] }
  0xa2   :  { %1607 = vmatpush.bf16.msra.mxu1 %v5680_v51  ;;  %v5731_v51 = vld [vmem:[#allocation5 + $0x388] sm:$0xf]  ;;  %v7675_v20 = vld [vmem:[#allocation5 + $0x34] sm:$0xf0] }
  0xa3   :  { %1632 = vmatpush.bf16.msrb.mxu2 %v5952_v45  ;;  %v7755_v45 = vld [vmem:[#allocation5 + $0x2b4] sm:$0xf0]  ;;  %v5283_v29 = vld [vmem:[#allocation5 + $0x8] sm:$0xf] }
  0xa4   :  { %1620 = vmatpush.bf16.msra.mxu3 %v5808_v56  ;;  %v5620_v55 = vor.u32 %v7755_v45, %v5619_v44  ;;  %v5476_v56 = vor.u32 %v7719_v47, %v5475_v46  ;;  %v7707_v24 = vld [vmem:[#allocation5 + $0x134] sm:$0xf0]  ;;  %v5411_v33 = vld [vmem:[#allocation5 + $0x108] sm:$0xf] }
  0xa5   :  { %1595 = vmatpush.bf16.msra.mxu0 %v5536_v4  ;;  %v5315_v4 = vld [vmem:[#allocation5 + $0x48] sm:$0xf]  ;;  %v7671_v30 = vld [vmem:[#allocation5 + $0x14] sm:$0xf0] }
  0xa6   :  { %1608 = vmatpush.bf16.msra.mxu1 %v5664_v5  ;;  %v5604_v5 = vor.u32 %v7751_v61, %v5603_v59  ;;  %v7703_v37 = vld [vmem:[#allocation5 + $0x114] sm:$0xf0]  ;;  %v5907_v38 = vld [vmem:[#allocation5 + $0x4e8] sm:$0xf]  ;;  %v5284_v45 = vor.u32 %v7671_v30, %v5283_v29  ;;  %v7685_v29 = vld [vmem:[#allocation5 + $0x8c] sm:$0xf] }
  0xa7   :  { %1633 = vmatpush.bf16.msrb.mxu2 %v5936_v0  ;;  %v5732_v0 = vor.u32 %v7783_v52, %v5731_v51  ;;  %v7827_v40 = vld [vmem:[#allocation5 + $0x4f4] sm:$0xf0]  ;;  %v5667_v44 = vld [vmem:[#allocation5 + $0x308] sm:$0xf]  ;;  %v5412_v51 = vor.u32 %v7703_v37, %v5411_v33  ;;  %v7721_v33 = vld [vmem:[#allocation5 + $0x1ac] sm:$0xf] }
  0xa8   :  { %1621 = vmatpush.bf16.msra.mxu3 %v5792_v9  ;;  %1596 = vmatmul.bf16.vlgmr.msra.gmra.mxu0 %v8898_v53  ;;  %v5587_v9 = vld [vmem:[#allocation5 + $0x268] sm:$0xf]  ;;  %v7859_v43 = vld [vmem:[#allocation5 + $0x5f4] sm:$0xf0]  ;;  %v5908_v52 = vor.u32 %v7827_v40, %v5907_v38 }
  0xa9   :  { %1647 = vmatpush.bf16.msrb.mxu0 %v6048_v16  ;;  %1609 = vmatmul.bf16.vlgmr.msra.gmra.mxu1 %v8902_v60  ;;  %v7775_v16 = vld [vmem:[#allocation5 + $0x354] sm:$0xf0]  ;;  %v5891_v54 = vld [vmem:[#allocation5 + $0x4c8] sm:$0xf] }
  0xaa   :  { %1653 = vmatpush.bf16.msrb.mxu1 %v5396_v10  ;;  %v7747_v10 = vld [vmem:[#allocation5 + $0x274] sm:$0xf0]  ;;  %v5700_v25 = vor.u32 %v7775_v16, %v5699_v15  ;;  %v6051_v61 = vld [vmem:[#allocation5 + $0x608] sm:$0xf] }
  0xab   :  { %1634 = vmatpush.bf16.msrb.mxu2 %v5920_v19  ;;  %1622 = vmatmul.bf16.vlgmr.msra.gmra.mxu3 %v8914_v34  ;;  %v5588_v18 = vor.u32 %v7747_v10, %v5587_v9  ;;  %v5444_v19 = vor.u32 %v7711_v12, %v5443_v11  ;;  %v7767_v46 = vld [vmem:[#allocation5 + $0x314] sm:$0xf0]  ;;  %v7729_v9 = vld [vmem:[#allocation5 + $0x1ec] sm:$0xf]  ;;  %v5525_v10 = vld [vmem:[#allocation5 + $0x1f8] sm:$0xf0] }
  0xac   :  { %1666 = vmatpush.bf16.msrb.mxu3 %v5524_v14  ;;  %v5316_v14 = vor.u32 %v7679_v8, %v5315_v4  ;;  %v7823_v59 = vld [vmem:[#allocation5 + $0x4d4] sm:$0xf0]  ;;  %v5668_v63 = vor.u32 %v7767_v46, %v5667_v44  ;;  %v7693_v4 = vld [vmem:[#allocation5 + $0xcc] sm:$0xf]  ;;  %v5875_v12 = vld [vmem:[#allocation5 + $0x4a8] sm:$0xf] }
  0xad   :  { %1679 = vmatpush.bf16.msra.mxu0 %v5652_v27  ;;  %v5300_v27 = vor.u32 %v7675_v20, %v5299_v17  ;;  %v7863_v62 = vld [vmem:[#allocation5 + $0x614] sm:$0xf0]  ;;  %v7689_v17 = vld [vmem:[#allocation5 + $0xac] sm:$0xf]  ;;  %v5365_v20 = vld [vmem:[#allocation5 + $0xb8] sm:$0xf0] }
  0xae   :  { %1654 = vmatpush.bf16.msrb.mxu1 %v5380_v23  ;;  %1635 = vmatmul.bf16.vlgmr.msrb.gmra.mxu2 %v8916_v39  ;;  %v5427_v23 = vld [vmem:[#allocation5 + $0x128] sm:$0xf]  ;;  %v6052_v8 = vor.u32 %v7863_v62, %v6051_v61  ;;  %v7851_v15 = vld [vmem:[#allocation5 + $0x5b4] sm:$0xf0]  ;;  %v5333_v46 = vld [vmem:[#allocation5 + $0x78] sm:$0xf0] }
  0xaf   :  { %1692 = vmatpush.bf16.msra.mxu2 %v5780_v22  ;;  %v7743_v22 = vld [vmem:[#allocation5 + $0x254] sm:$0xf0]  ;;  %v5428_v32 = vor.u32 %v7707_v24, %v5427_v23  ;;  %v5859_v24 = vld [vmem:[#allocation5 + $0x488] sm:$0xf]  ;;  %v5317_v62 = vld [vmem:[#allocation5 + $0x58] sm:$0xf0] }
  0xb0   :  { %1667 = vmatpush.bf16.msrb.mxu3 %v5508_v28  ;;  %v7771_v28 = vld [vmem:[#allocation5 + $0x334] sm:$0xf0]  ;;  %v5572_v31 = vor.u32 %v7743_v22, %v5571_v21  ;;  %v7725_v21 = vld [vmem:[#allocation5 + $0x1cc] sm:$0xf]  ;;  %v5509_v22 = vld [vmem:[#allocation5 + $0x1d8] sm:$0xf0] }
  0xb1   :  { %1680 = vmatpush.bf16.msra.mxu0 %v5636_v41  ;;  %v5684_v41 = vor.u32 %v7771_v28, %v5683_v26  ;;  %v5987_v26 = vld [vmem:[#allocation5 + $0x588] sm:$0xf]  ;;  %v5368_v28 = vor.u32 %v7689_v17, %v5365_v20  ;;  %v5512_v30 = vor.u32 %v7725_v21, %v5509_v22  ;;  %v7811_v38 = vld [vmem:[#allocation5 + $0x474] sm:$0xf0]  ;;  %v5653_v20 = vld [vmem:[#allocation5 + $0x2f8] sm:$0xf0] }
  0xb2   :  { %1655 = vmatpush.bf16.msrb.mxu1 %v5364_v36  ;;  %v7739_v36 = vld [vmem:[#allocation5 + $0x234] sm:$0xf0]  ;;  %v5843_v37 = vld [vmem:[#allocation5 + $0x468] sm:$0xf]  ;;  %v7793_v22 = vld [vmem:[#allocation5 + $0x3ec] sm:$0xf] }
  0xb3   :  { %1693 = vmatpush.bf16.msra.mxu2 %v5764_v35  ;;  %v5555_v35 = vld [vmem:[#allocation5 + $0x228] sm:$0xf] }
  0xb4   :  { %1668 = vmatpush.bf16.msrb.mxu3 %v5492_v42  ;;  %v6035_v42 = vld [vmem:[#allocation5 + $0x5e8] sm:$0xf]  ;;  %v5556_v47 = vor.u32 %v7739_v36, %v5555_v35  ;;  %v5493_v35 = vld [vmem:[#allocation5 + $0x1b8] sm:$0xf0] }
  0xb5   :  { %1681 = vmatpush.bf16.msra.mxu0 %v5620_v55  ;;  %v5539_v55 = vld [vmem:[#allocation5 + $0x208] sm:$0xf]  ;;  %v6036_v58 = vor.u32 %v7859_v43, %v6035_v42  ;;  %v7681_v43 = vld [vmem:[#allocation5 + $0x6c] sm:$0xf]  ;;  %v5496_v44 = vor.u32 %v7721_v33, %v5493_v35  ;;  %v5637_v35 = vld [vmem:[#allocation5 + $0x2d8] sm:$0xf0] }
  0xb6   :  { %1656 = vmatpush.bf16.msrb.mxu1 %v5348_v50  ;;  %v5397_v50 = vld [vmem:[#allocation5 + $0xf8] sm:$0xf0]  ;;  %v5971_v40 = vld [vmem:[#allocation5 + $0x568] sm:$0xf] }
  0xb7   :  { %1694 = vmatpush.bf16.msra.mxu2 %v5748_v49  ;;  %v7697_v49 = vld [vmem:[#allocation5 + $0xec] sm:$0xf]  ;;  %v5923_v17 = vld [vmem:[#allocation5 + $0x508] sm:$0xf] }
  0xb8   :  { %1669 = vmatpush.bf16.msrb.mxu3 %v5476_v56  ;;  %6058 = vmatmul.msk.bf16.vlgmr.msrb.gmra.mxu0 %vm1467_vm0, %v8910_v48  ;;  %v7735_v56 = vld [vmem:[#allocation5 + $0x214] sm:$0xf0]  ;;  %v5400_v2 = vor.u32 %v7697_v49, %v5397_v50  ;;  %v5477_v49 = vld [vmem:[#allocation5 + $0x198] sm:$0xf0] }
  0xb9   :  { %1682 = vmatpush.bf16.msra.mxu0 %v5604_v5  ;;  %v5540_v3 = vor.u32 %v7735_v56, %v5539_v55  ;;  %v5892_v5 = vor.u32 %v7823_v59, %v5891_v54  ;;  %v5955_v54 = vld [vmem:[#allocation5 + $0x548] sm:$0xf]  ;;  %v7839_v55 = vld [vmem:[#allocation5 + $0x554] sm:$0xf0]  ;;  %v5336_v56 = vor.u32 %v7681_v43, %v5333_v46  ;;  %v7821_v43 = vld [vmem:[#allocation5 + $0x4cc] sm:$0xf] }
  0xba   :  { %1657 = vmatpush.bf16.msrb.mxu1 %v5332_v1  ;;  %v7855_v1 = vld [vmem:[#allocation5 + $0x5d4] sm:$0xf0]  ;;  %v5893_v46 = vld [vmem:[#allocation5 + $0x4d8] sm:$0xf0] }
  0xbb   :  { %1695 = vmatpush.bf16.msra.mxu2 %v5732_v0  ;;  %v6019_v0 = vld [vmem:[#allocation5 + $0x5c8] sm:$0xf] }
  0xbc   :  { %1670 = vmatpush.bf16.msrb.mxu3 %v5460_v7  ;;  %v5381_v7 = vld [vmem:[#allocation5 + $0xd8] sm:$0xf0]  ;;  %v6020_v11 = vor.u32 %v7855_v1, %v6019_v0  ;;  %v5956_v1 = vor.u32 %v7839_v55, %v5955_v54 }
  0xbd   :  { %1683 = vmatpush.bf16.msra.mxu0 %v5588_v18  ;;  %v5384_v16 = vor.u32 %v7693_v4, %v5381_v7  ;;  %v5528_v18 = vor.u32 %v7729_v9, %v5525_v10  ;;  %v5461_v0 = vld [vmem:[#allocation5 + $0x178] sm:$0xf0]  ;;  %v5939_v4 = vld [vmem:[#allocation5 + $0x528] sm:$0xf] }
  0xbe   :  { %1658 = vmatpush.bf16.msrb.mxu1 %v5316_v14  ;;  %v6003_v14 = vld [vmem:[#allocation5 + $0x5a8] sm:$0xf]  ;;  %v5413_v54 = vld [vmem:[#allocation5 + $0x118] sm:$0xf0] }
  0xbf   :  { %1696 = vmatpush.bf16.msra.mxu2 %v5716_v13  ;;  %v7819_v13 = vld [vmem:[#allocation5 + $0x4b4] sm:$0xf0]  ;;  %v6004_v23 = vor.u32 %v7851_v15, %v6003_v14  ;;  %v5795_v15 = vld [vmem:[#allocation5 + $0x408] sm:$0xf]  ;;  %v5749_v55 = vld [vmem:[#allocation5 + $0x3b8] sm:$0xf0] }
  0xc0   :  { %1671 = vmatpush.bf16.msrb.mxu3 %v5444_v19  ;;  %v5876_v19 = vor.u32 %v7819_v13, %v5875_v12  ;;  %v7709_v12 = vld [vmem:[#allocation5 + $0x14c] sm:$0xf]  ;;  %v5445_v13 = vld [vmem:[#allocation5 + $0x158] sm:$0xf0] }
  0xc1   :  { %1684 = vmatpush.bf16.msra.mxu0 %v5572_v31 }
  0xc2   :  { %1659 = vmatpush.bf16.msrb.mxu1 %v5300_v27  ;;  %v7847_v27 = vld [vmem:[#allocation5 + $0x594] sm:$0xf0] }
  0xc3   :  { %1697 = vmatpush.bf16.msra.mxu2 %v5700_v25  ;;  %v7815_v25 = vld [vmem:[#allocation5 + $0x494] sm:$0xf0]  ;;  %v5988_v36 = vor.u32 %v7847_v27, %v5987_v26  ;;  %v7669_v26 = vld [vmem:[#allocation5 + $0xc] sm:$0xf]  ;;  %v5285_v27 = vld [vmem:[#allocation5 + $0x18] sm:$0xf0] }
  0xc4   :  { %1672 = vmatpush.bf16.msrb.mxu3 %v5428_v32  ;;  %v5860_v31 = vor.u32 %v7815_v25, %v5859_v24  ;;  %v5349_v32 = vld [vmem:[#allocation5 + $0x98] sm:$0xf0]  ;;  %v5448_v24 = vor.u32 %v7709_v12, %v5445_v13  ;;  %v7813_v12 = vld [vmem:[#allocation5 + $0x48c] sm:$0xf] }
  0xc5   :  { %1685 = vmatpush.bf16.msra.mxu0 %v5556_v47  ;;  %v5352_v42 = vor.u32 %v7685_v29, %v5349_v32  ;;  %v7717_v47 = vld [vmem:[#allocation5 + $0x18c] sm:$0xf]  ;;  %v5861_v13 = vld [vmem:[#allocation5 + $0x498] sm:$0xf0] }
  0xc6   :  { %1660 = vmatpush.bf16.msrb.mxu1 %v5284_v45  ;;  %v5844_v45 = vor.u32 %v7811_v38, %v5843_v37  ;;  %v5480_v59 = vor.u32 %v7717_v47, %v5477_v49  ;;  %v7757_v32 = vld [vmem:[#allocation5 + $0x2cc] sm:$0xf]  ;;  %v5429_v37 = vld [vmem:[#allocation5 + $0x138] sm:$0xf0]  ;;  %v5288_v38 = vor.u32 %v7669_v26, %v5285_v27 }
  0xc7   :  { %1698 = vmatpush.bf16.msra.mxu2 %v5684_v41  ;;  %v7843_v41 = vld [vmem:[#allocation5 + $0x574] sm:$0xf0]  ;;  %v7753_v47 = vld [vmem:[#allocation5 + $0x2ac] sm:$0xf]  ;;  %v5621_v49 = vld [vmem:[#allocation5 + $0x2b8] sm:$0xf0] }
  0xc8   :  { %1673 = vmatpush.bf16.msrb.mxu3 %v5412_v51  ;;  %v5972_v50 = vor.u32 %v7843_v41, %v5971_v40  ;;  %v5827_v51 = vld [vmem:[#allocation5 + $0x448] sm:$0xf]  ;;  %v7789_v40 = vld [vmem:[#allocation5 + $0x3cc] sm:$0xf]  ;;  %v5765_v41 = vld [vmem:[#allocation5 + $0x3d8] sm:$0xf0] }
  0xc9   :  { %1661 = vmatmul.bf16.vlgmr.msrb.gmra.mxu1 %v8900_v57  ;;  %1686 = vmatpush.bf16.msra.mxu0 %v5540_v3  ;;  %v7803_v3 = vld [vmem:[#allocation5 + $0x434] sm:$0xf0] }
  0xca   :  { %1705 = vmatpush.bf16.msra.mxu1 %v5908_v52  ;;  %v7807_v52 = vld [vmem:[#allocation5 + $0x454] sm:$0xf0] }
  0xcb   :  { %1699 = vmatpush.bf16.msra.mxu2 %v5668_v63  ;;  %1674 = vmatmul.bf16.vlgmr.msrb.gmra.mxu3 %v8906_v6  ;;  %v5828_v61 = vor.u32 %v7807_v52, %v5827_v51  ;;  %v7713_v63 = vld [vmem:[#allocation5 + $0x16c] sm:$0xf] }
  0xcc   :  { %1718 = vmatpush.bf16.msra.mxu3 %v6036_v58  ;;  %1687 = vmatmul.bf16.vlgmr.msra.gmra.mxu0 %v8898_v53  ;;  %v7677_v58 = vld [vmem:[#allocation5 + $0x4c] sm:$0xf]  ;;  %v5464_v9 = vor.u32 %v7713_v63, %v5461_v0  ;;  %v5877_v0 = vld [vmem:[#allocation5 + $0x4b8] sm:$0xf0] }
  0xcd   :  { %1738 = vmatpush.bf16.msrb.mxu0 %v6052_v8  ;;  %v5320_v7 = vor.u32 %v7677_v58, %v5317_v62  ;;  %v7673_v8 = vld [vmem:[#allocation5 + $0x2c] sm:$0xf]  ;;  %v6037_v58 = vld [vmem:[#allocation5 + $0x5f8] sm:$0xf0] }
  0xce   :  { %1706 = vmatpush.bf16.msra.mxu1 %v5892_v5  ;;  %1700 = vmatmul.bf16.vlgmr.msra.gmra.mxu2 %v8902_v60  ;;  %v7835_v5 = vld [vmem:[#allocation5 + $0x534] sm:$0xf0]  ;;  %v7785_v51 = vld [vmem:[#allocation5 + $0x3ac] sm:$0xf] }
  0xcf   :  { %1744 = vmatpush.bf16.msrb.mxu2 %v5400_v2  ;;  %v5811_v2 = vld [vmem:[#allocation5 + $0x428] sm:$0xf]  ;;  %v5940_v14 = vor.u32 %v7835_v5, %v5939_v4  ;;  %v7701_v52 = vld [vmem:[#allocation5 + $0x10c] sm:$0xf]  ;;  %v5605_v4 = vld [vmem:[#allocation5 + $0x298] sm:$0xf0] }
  0xd0   :  { %1719 = vmatpush.bf16.msra.mxu3 %v6020_v11  ;;  %v5812_v10 = vor.u32 %v7803_v3, %v5811_v2  ;;  %v5301_v11 = vld [vmem:[#allocation5 + $0x38] sm:$0xf0]  ;;  %v5416_v62 = vor.u32 %v7701_v52, %v5413_v54  ;;  %v7817_v63 = vld [vmem:[#allocation5 + $0x4ac] sm:$0xf] }
  0xd1   :  { %1757 = vmatpush.bf16.msra.mxu0 %v5528_v18  ;;  %v7831_v18 = vld [vmem:[#allocation5 + $0x514] sm:$0xf0]  ;;  %v5304_v21 = vor.u32 %v7673_v8, %v5301_v11  ;;  %v7749_v3 = vld [vmem:[#allocation5 + $0x28c] sm:$0xf] }
  0xd2   :  { %1707 = vmatpush.bf16.msra.mxu1 %v5876_v19  ;;  %v7761_v19 = vld [vmem:[#allocation5 + $0x2ec] sm:$0xf]  ;;  %v5608_v11 = vor.u32 %v7749_v3, %v5605_v4  ;;  %v6119_v3 = vld [vmem:[#allocation8 + $0x70] sm:$0xf] }
  0xd3   :  { %1745 = vmatpush.bf16.msrb.mxu2 %v5384_v16  ;;  %v7799_v16 = vld [vmem:[#allocation5 + $0x414] sm:$0xf0]  ;;  %v5656_v29 = vor.u32 %v7761_v19, %v5653_v20  ;;  %v7781_v5 = vld [vmem:[#allocation5 + $0x38c] sm:$0xf]  ;;  %v5717_v19 = vld [vmem:[#allocation5 + $0x378] sm:$0xf0] }
  0xd4   :  { %1720 = vmatpush.bf16.msra.mxu3 %v6004_v23  ;;  %v5781_v23 = vld [vmem:[#allocation5 + $0x3f8] sm:$0xf0]  ;;  %v5796_v25 = vor.u32 %v7799_v16, %v5795_v15  ;;  %v7853_v8 = vld [vmem:[#allocation5 + $0x5cc] sm:$0xf] }
  0xd5   :  { %1758 = vmatpush.bf16.msra.mxu0 %v5512_v30  ;;  %v7825_v30 = vld [vmem:[#allocation5 + $0x4ec] sm:$0xf]  ;;  %v5784_v33 = vor.u32 %v7793_v22, %v5781_v23  ;;  %v5864_v22 = vor.u32 %v7813_v12, %v5861_v13 }
  0xd6   :  { %1708 = vmatpush.bf16.msra.mxu1 %v5860_v31  ;;  %v5909_v31 = vld [vmem:[#allocation5 + $0x4f8] sm:$0xf0]  ;;  %v7745_v16 = vld [vmem:[#allocation5 + $0x26c] sm:$0xf] }
  0xd7   :  { %1746 = vmatpush.bf16.msrb.mxu2 %v5368_v28  ;;  %v5924_v28 = vor.u32 %v7831_v18, %v5923_v17  ;;  %v7777_v17 = vld [vmem:[#allocation5 + $0x36c] sm:$0xf] }
  0xd8   :  { %1721 = vmatpush.bf16.msra.mxu3 %v5988_v36  ;;  %v7705_v36 = vld [vmem:[#allocation5 + $0x12c] sm:$0xf]  ;;  %v5720_v26 = vor.u32 %v7777_v17, %v5717_v19  ;;  %v6053_v19 = vld [vmem:[#allocation5 + $0x618] sm:$0xf0] }
  0xd9   :  { %1759 = vmatpush.bf16.msra.mxu0 %v5496_v44  ;;  %v5640_v44 = vor.u32 %v7757_v32, %v5637_v35  ;;  %v7849_v20 = vld [vmem:[#allocation5 + $0x5ac] sm:$0xf]  ;;  %v5701_v32 = vld [vmem:[#allocation5 + $0x358] sm:$0xf0] }
  0xda   :  { %1709 = vmatpush.bf16.msra.mxu1 %v5844_v45  ;;  %v5432_v45 = vor.u32 %v7705_v36, %v5429_v37  ;;  %v5989_v35 = vld [vmem:[#allocation5 + $0x598] sm:$0xf0]  ;;  %v8942_v37 = vld [vmem:[#allocation7] sm:$0xf]  ;;  %v7837_v4 = vld [vmem:[#allocation5 + $0x54c] sm:$0xf] }
  0xdb   :  { %1747 = vmatpush.bf16.msrb.mxu2 %v5352_v42  ;;  %v5912_v42 = vor.u32 %v7825_v30, %v5909_v31  ;;  %v7773_v30 = vld [vmem:[#allocation5 + $0x34c] sm:$0xf]  ;;  %v455_v54 = vperm.slane %v8942_v37, 0 }
  0xdc   :  { %1722 = vmatpush.bf16.msra.mxu3 %v5972_v50  ;;  %6059 = vmatmul.msk.bf16.vlgmr.msrb.gmra.mxu0 %vm1467_vm0, %v8910_v48  ;;  %v5768_v50 = vor.u32 %v7789_v40, %v5765_v41  ;;  %v7805_v40 = vld [vmem:[#allocation5 + $0x44c] sm:$0xf]  ;;  %v5829_v41 = vld [vmem:[#allocation5 + $0x458] sm:$0xf0] }
  0xdd   :  { %1760 = vmatpush.bf16.msra.mxu0 %v5480_v59  ;;  %v5896_v59 = vor.u32 %v7821_v43, %v5893_v46  ;;  %v5704_v43 = vor.u32 %v7773_v30, %v5701_v32  ;;  %v5557_v46 = vld [vmem:[#allocation5 + $0x238] sm:$0xf0]  ;;  %v7861_v17 = vld [vmem:[#allocation5 + $0x60c] sm:$0xf]  ;;  %v6175_v30 = vld [vmem:[#allocation8 + $0xe0] sm:$0xf] }
  0xde   :  { %1710 = vmatpush.bf16.msra.mxu1 %v5828_v61  ;;  %v5624_v61 = vor.u32 %v7753_v47, %v5621_v49  ;;  %v7769_v47 = vld [vmem:[#allocation5 + $0x32c] sm:$0xf]  ;;  %v5685_v49 = vld [vmem:[#allocation5 + $0x338] sm:$0xf0] }
  0xdf   :  { %1748 = vmatpush.bf16.msrb.mxu2 %v5336_v56  ;;  %v7857_v56 = vld [vmem:[#allocation5 + $0x5ec] sm:$0xf] }
  0xe0   :  { %1723 = vmatpush.bf16.msra.mxu3 %v5956_v1  ;;  %v5752_v1 = vor.u32 %v7785_v51, %v5749_v55  ;;  %v6040_v2 = vor.u32 %v7857_v56, %v6037_v58  ;;  %v5973_v51 = vld [vmem:[#allocation5 + $0x578] sm:$0xf0]  ;;  %v5832_v55 = vor.u32 %v7805_v40, %v5829_v41  ;;  %v7801_v58 = vld [vmem:[#allocation5 + $0x42c] sm:$0xf]  ;;  %v6103_v40 = vld [vmem:[#allocation8 + $0x50] sm:$0xf] }
  0xe1   :  { %1761 = vmatpush.bf16.msra.mxu0 %v5464_v9  ;;  %v6021_v9 = vld [vmem:[#allocation5 + $0x5d8] sm:$0xf0]  ;;  %v7893_v32 = vld [vmem:[#allocation8 + $0xe4] sm:$0xf0] }
  0xe2   :  { %1711 = vmatpush.bf16.msra.mxu1 %v5812_v10  ;;  %v5880_v10 = vor.u32 %v7817_v63, %v5877_v0  ;;  %v6024_v15 = vor.u32 %v7853_v8, %v6021_v9  ;;  %v5541_v0 = vld [vmem:[#allocation5 + $0x218] sm:$0xf0] }
  0xe3   :  { %1749 = vmatpush.bf16.msrb.mxu2 %v5320_v7  ;;  %v5733_v7 = vld [vmem:[#allocation5 + $0x398] sm:$0xf0] }
  0xe4   :  { %1724 = vmatpush.bf16.msra.mxu3 %v5940_v14  ;;  %v5736_v14 = vor.u32 %v7781_v5, %v5733_v7  ;;  %v8937_v18 = vpop.f32.mrf.mxu0  ;;  %v5957_v5 = vld [vmem:[#allocation5 + $0x558] sm:$0xf0] }
  0xe5   :  { %1762 = vmatpush.bf16.msra.mxu0 %v5448_v24  ;;  %v7809_v24 = vld [vmem:[#allocation5 + $0x46c] sm:$0xf]  ;;  %v8940_v31 = vpop.f32.mrf.mxu1  ;;  %v7879_v9 = vld [vmem:[#allocation8 + $0x74] sm:$0xf0] }
  0xe6   :  { %1712 = vmatpush.bf16.msra.mxu1 %v5796_v25  ;;  %v5845_v25 = vld [vmem:[#allocation5 + $0x478] sm:$0xf0] }
  0xe7   :  { %1750 = vmatpush.bf16.msrb.mxu2 %v5304_v21  ;;  %v6005_v21 = vld [vmem:[#allocation5 + $0x5b8] sm:$0xf0]  ;;  %v5848_v36 = vor.u32 %v7809_v24, %v5845_v25 }
  0xe8   :  { %1725 = vmatpush.bf16.msra.mxu3 %v5924_v28  ;;  %v6008_v27 = vor.u32 %v7849_v20, %v6005_v21  ;;  %v7741_v28 = vld [vmem:[#allocation5 + $0x24c] sm:$0xf]  ;;  %v1481_v21 = vadd.f32 %v8937_v18, %v455_v54  ;;  %v5941_v24 = vld [vmem:[#allocation5 + $0x538] sm:$0xf0] }
  0xe9   :  { %1713 = vmatmul.bf16.vlgmr.msra.gmra.mxu1 %v8914_v34  ;;  %1763 = vmatpush.bf16.msra.mxu0 %v5432_v45  ;;  %v7737_v45 = vld [vmem:[#allocation5 + $0x22c] sm:$0xf]  ;;  %v7875_v41 = vld [vmem:[#allocation8 + $0x54] sm:$0xf0] }
  0xea   :  { %1770 = vmatpush.bf16.msrb.mxu1 %v5656_v29  ;;  %v5573_v29 = vld [vmem:[#allocation5 + $0x258] sm:$0xf0]  ;;  %v5560_v56 = vor.u32 %v7737_v45, %v5557_v46  ;;  %v7829_v18 = vld [vmem:[#allocation5 + $0x50c] sm:$0xf]  ;;  %v6167_v45 = vld [vmem:[#allocation8 + $0xd0] sm:$0xf] }
  0xeb   :  { %1751 = vmatpush.bf16.msrb.mxu2 %v5288_v38  ;;  %1726 = vmatmul.bf16.vlgmr.msra.gmra.mxu3 %v8916_v39  ;;  %v5576_v38 = vor.u32 %v7741_v28, %v5573_v29  ;;  %v7877_v28 = vld [vmem:[#allocation8 + $0x64] sm:$0xf0]  ;;  %v6056_v29 = vor.u32 %v7861_v17, %v6053_v19  ;;  %v7891_v46 = vld [vmem:[#allocation8 + $0xd4] sm:$0xf0]  ;;  %v6063_v19 = vld [vmem:[#allocation8] sm:$0xf] }
  0xec   :  { %1783 = vmatpush.bf16.msrb.mxu3 %v5784_v33  ;;  %v7845_v33 = vld [vmem:[#allocation5 + $0x58c] sm:$0xf]  ;;  %v1482_v52 = vpop.f32.mrf.mxu0 }
  0xed   :  { %1764 = vmatpush.bf16.msra.mxu0 %v5416_v62  ;;  %v5688_v62 = vor.u32 %v7769_v47, %v5685_v49  ;;  %v1495_v7 = vpop.f32.mrf.mxu1  ;;  %v6104_v49 = vor.u32 %v7875_v41, %v6103_v40  ;;  %v6159_v52 = vld [vmem:[#allocation8 + $0xc0] sm:$0xf]  ;;  %v7889_v54 = vld [vmem:[#allocation8 + $0xc4] sm:$0xf0]  ;;  %v6177_v40 = vld [vmem:[#allocation8 + $0xe8] sm:$0xf0] }
  0xee   :  { %1771 = vmatpush.bf16.msrb.mxu1 %v5640_v44  ;;  %1752 = vmatmul.bf16.vlgmr.msrb.gmra.mxu2 %v8900_v57  ;;  %v5589_v57 = vld [vmem:[#allocation5 + $0x278] sm:$0xf0]  ;;  %v5992_v44 = vor.u32 %v7845_v33, %v5989_v35  ;;  %v1494_v35 = vadd.f32 %v8940_v31, %v1481_v21  ;;  %v7885_v7 = vld [vmem:[#allocation8 + $0xa4] sm:$0xf0]  ;;  %v7878_v21 = vld [vmem:[#allocation8 + $0x74] sm:$0xf] }
  0xef   :  { %1796 = vmatpush.bf16.msra.mxu2 %v5912_v42  ;;  %v5592_v23 = vor.u32 %v7745_v16, %v5589_v57  ;;  %v8946_v42 = vpop.f32.mrf.mxu3  ;;  %v5960_v57 = vor.u32 %v7837_v4, %v5957_v5  ;;  %v7869_v4 = vld [vmem:[#allocation8 + $0x24] sm:$0xf0]  ;;  %v6143_v5 = vld [vmem:[#allocation8 + $0xa0] sm:$0xf]  ;;  %v456_v41 = vperm.slane %v8942_v37, 1 }
  0xf0   :  { %1784 = vmatpush.bf16.msrb.mxu3 %v5768_v50  ;;  %1765 = vmatmul.bf16.vlgmr.msra.gmra.mxu0 %v8906_v6  ;;  %v8944_v6 = vpop.f32.mrf.mxu2  ;;  %v7841_v50 = vld [vmem:[#allocation5 + $0x56c] sm:$0xf] }
  0xf1   :  { %1809 = vmatpush.bf16.msrb.mxu0 %v6040_v2  ;;  %v5976_v63 = vor.u32 %v7841_v50, %v5973_v51  ;;  %v5669_v2 = vld [vmem:[#allocation5 + $0x318] sm:$0xf0]  ;;  %v1507_v31 = vadd.f32 %v8944_v6, %v1494_v35  ;;  %v6095_v50 = vld [vmem:[#allocation8 + $0x40] sm:$0xf]  ;;  %v6168_v51 = vor.u32 %v7891_v46, %v6167_v45  ;;  %v6160_v6 = vor.u32 %v7889_v54, %v6159_v52  ;;  %v7876_v35 = vld [vmem:[#allocation8 + $0x64] sm:$0xf] }
  0xf2   :  { %1772 = vmatpush.bf16.msrb.mxu1 %v5624_v61  ;;  %v7733_v61 = vld [vmem:[#allocation5 + $0x20c] sm:$0xf]  ;;  %v7874_v45 = vld [vmem:[#allocation8 + $0x54] sm:$0xf]  ;;  %v6105_v46 = vld [vmem:[#allocation8 + $0x58] sm:$0xf0] }
  0xf3   :  { %1797 = vmatpush.bf16.msra.mxu2 %v5896_v59  ;;  %v5813_v59 = vld [vmem:[#allocation5 + $0x438] sm:$0xf0]  ;;  %v5544_v13 = vor.u32 %v7733_v61, %v5541_v0  ;;  %v6097_v52 = vld [vmem:[#allocation8 + $0x48] sm:$0xf0] }
  0xf4   :  { %1785 = vmatpush.bf16.msrb.mxu3 %v5752_v1  ;;  %v7765_v1 = vld [vmem:[#allocation5 + $0x30c] sm:$0xf]  ;;  %v5816_v8 = vor.u32 %v7801_v58, %v5813_v59  ;;  %v6087_v58 = vld [vmem:[#allocation8 + $0x30] sm:$0xf]  ;;  %v7871_v59 = vld [vmem:[#allocation8 + $0x34] sm:$0xf0] }
  0xf5   :  { %1810 = vmatpush.bf16.msrb.mxu0 %v6024_v15  ;;  %v5797_v15 = vld [vmem:[#allocation5 + $0x418] sm:$0xf0]  ;;  %v5672_v16 = vor.u32 %v7765_v1, %v5669_v2  ;;  %v6088_v2 = vor.u32 %v7871_v59, %v6087_v58 }
  0xf6   :  { %1773 = vmatpush.bf16.msrb.mxu1 %v5608_v11  ;;  %v7895_v11 = vld [vmem:[#allocation8 + $0xf4] sm:$0xf0] }
  0xf7   :  { %1798 = vmatpush.bf16.msra.mxu2 %v5880_v10  ;;  %v6183_v10 = vld [vmem:[#allocation8 + $0xf0] sm:$0xf]  ;;  %v1521_v20 = vpop.f32.mrf.mxu3  ;;  %v7887_v0 = vld [vmem:[#allocation8 + $0xb4] sm:$0xf0] }
  0xf8   :  { %1786 = vmatpush.bf16.msrb.mxu3 %v5736_v14  ;;  %v1508_v12 = vpop.f32.mrf.mxu2  ;;  %v7797_v14 = vld [vmem:[#allocation5 + $0x40c] sm:$0xf]  ;;  %v6184_v25 = vor.u32 %v7895_v11, %v6183_v10  ;;  %v6071_v10 = vld [vmem:[#allocation8 + $0x10] sm:$0xf]  ;;  %v7867_v11 = vld [vmem:[#allocation8 + $0x14] sm:$0xf0] }
  0xf9   :  { %1811 = vmatpush.bf16.msrb.mxu0 %v6008_v27  ;;  %v6111_v27 = vld [vmem:[#allocation8 + $0x60] sm:$0xf]  ;;  %v6072_v17 = vor.u32 %v7867_v11, %v6071_v10  ;;  %v7865_v20 = vld [vmem:[#allocation8 + $0x4] sm:$0xf0]  ;;  %v7911_v59 = vld [vmem:[#allocation8 + $0x174] sm:$0xf0] }
  0xfa   :  { %1774 = vmatpush.bf16.msrb.mxu1 %v5592_v23  ;;  %v7833_v23 = vld [vmem:[#allocation5 + $0x52c] sm:$0xf]  ;;  %v7868_v10 = vld [vmem:[#allocation8 + $0x24] sm:$0xf]  ;;  %v6081_v11 = vld [vmem:[#allocation8 + $0x28] sm:$0xf0] }
  0xfb   :  { %1799 = vmatpush.bf16.msra.mxu2 %v5864_v22  ;;  %v6120_v22 = vor.u32 %v7879_v9, %v6119_v3  ;;  %v5944_v33 = vor.u32 %v7833_v23, %v5941_v24  ;;  %v6079_v3 = vld [vmem:[#allocation8 + $0x20] sm:$0xf]  ;;  %v6121_v23 = vld [vmem:[#allocation8 + $0x78] sm:$0xf0] }
  0xfc   :  { %1787 = vmatpush.bf16.msrb.mxu3 %v5720_v26  ;;  %v5800_v26 = vor.u32 %v7797_v14, %v5797_v15  ;;  %v6080_v9 = vor.u32 %v7869_v4, %v6079_v3  ;;  %v6135_v15 = vld [vmem:[#allocation8 + $0x90] sm:$0xf]  ;;  %v6127_v24 = vld [vmem:[#allocation8 + $0x80] sm:$0xf]  ;;  %v7886_v3 = vld [vmem:[#allocation8 + $0xb4] sm:$0xf] }
  0xfd   :  { %1812 = vmatpush.bf16.msrb.mxu0 %v5992_v44  ;;  %v6153_v4 = vld [vmem:[#allocation8 + $0xb8] sm:$0xf0] }
  0xfe   :  { %1775 = vmatpush.bf16.msrb.mxu1 %v5576_v38  ;;  %v5925_v38 = vld [vmem:[#allocation5 + $0x518] sm:$0xf0] }
  0xff   :  { %1800 = vmatpush.bf16.msra.mxu2 %v5848_v36  ;;  %v6112_v36 = vor.u32 %v7877_v28, %v6111_v27  ;;  %v5928_v47 = vor.u32 %v7829_v18, %v5925_v38  ;;  %v6185_v27 = vld [vmem:[#allocation8 + $0xf8] sm:$0xf0]  ;;  %v6064_v28 = vor.u32 %v7865_v20, %v6063_v19  ;;  %v7892_v38 = vld [vmem:[#allocation8 + $0xe4] sm:$0xf]  ;;  %v7866_v19 = vld [vmem:[#allocation8 + $0x14] sm:$0xf] }
 0x100   :  { %1788 = vmatpush.bf16.msrb.mxu3 %v5704_v43  ;;  %v6176_v43 = vor.u32 %v7893_v32, %v6175_v30  ;;  %v1558_v44 = vpop.f32.mrf.mxu2  ;;  %v6073_v20 = vld [vmem:[#allocation8 + $0x18] sm:$0xf0] }
 0x101   :  { %1813 = vmatpush.bf16.msrb.mxu0 %v5976_v63  ;;  %v6151_v63 = vld [vmem:[#allocation8 + $0xb0] sm:$0xf] }
 0x102   :  { %1776 = vmatpush.bf16.msrb.mxu1 %v5560_v56 }
 0x103   :  { %1801 = vmatpush.bf16.msra.mxu2 %v5832_v55 }
 0x104   :  { %1789 = vmatpush.bf16.msrb.mxu3 %v5688_v62 }
 0x105   :  { %1814 = vmatpush.bf16.msrb.mxu0 %v5960_v57  ;;  %v1532_v56 = vpop.f32.mrf.mxu0 }
 0x106   :  { %1777 = vmatpush.bf16.msrb.mxu1 %v5544_v13  ;;  %v1545_v62 = vpop.f32.mrf.mxu1 }
 0x107   :  { %1802 = vmatpush.bf16.msra.mxu2 %v5816_v8 }
 0x108   :  { %1790 = vmatpush.bf16.msrb.mxu3 %v5672_v16  ;;  %v7883_v16 = vld [vmem:[#allocation8 + $0x94] sm:$0xf0] }
 0x109   :  { %1778 = vmatmul.bf16.vlgmr.msrb.gmra.mxu1 %v8898_v53  ;;  %1815 = vmatpush.bf16.msrb.mxu0 %v5944_v33  ;;  %v7873_v53 = vld [vmem:[#allocation8 + $0x44] sm:$0xf0] }
 0x10a   :  { %2246 = vmatpush.bf16.msra.mxu1 %v6184_v25  ;;  %v6096_v55 = vor.u32 %v7873_v53, %v6095_v50  ;;  %v7881_v25 = vld [vmem:[#allocation8 + $0x84] sm:$0xf0]  ;;  %v6108_v53 = vor.u32 %v7874_v45, %v6105_v46 }
 0x10b   :  { %1803 = vmatpush.bf16.msra.mxu2 %v5800_v26  ;;  %1791 = vmatmul.bf16.vlgmr.msrb.gmra.mxu3 %v8902_v60  ;;  %v1520_v60 = vadd.f32 %v8946_v42, %v1507_v31  ;;  %v6152_v42 = vor.u32 %v7887_v0, %v6151_v63  ;;  %v7894_v26 = vld [vmem:[#allocation8 + $0xf4] sm:$0xf]  ;;  %v6128_v32 = vor.u32 %v7881_v25, %v6127_v24  ;;  %v6089_v0 = vld [vmem:[#allocation8 + $0x38] sm:$0xf0] }
 0x10c   :  { %2233 = vmatpush.bf16.msra.mxu3 %v6120_v22  ;;  %v6136_v22 = vor.u32 %v7883_v16, %v6135_v15  ;;  %v7890_v31 = vld [vmem:[#allocation8 + $0xd4] sm:$0xf]  ;;  %v6137_v24 = vld [vmem:[#allocation8 + $0x98] sm:$0xf0] }
 0x10d   :  { %1816 = vmatpush.bf16.msrb.mxu0 %v5928_v47  ;;  %v1533_v61 = vadd.f32 %v1532_v56, %v1520_v60  ;;  %v1534_v12 = vpop.f32.mrf.mxu0  ;;  %v6180_v47 = vor.u32 %v7892_v38, %v6177_v40  ;;  %v7888_v60 = vld [vmem:[#allocation8 + $0xc4] sm:$0xf]  ;;  %v6247_v56 = vld [vmem:[#allocation8 + $0x170] sm:$0xf]  ;;  %v7870_v63 = vld [vmem:[#allocation8 + $0x34] sm:$0xf] }
 0x10e   :  { %1804 = vmatmul.bf16.vlgmr.msra.gmra.mxu2 %v8914_v34  ;;  %2247 = vmatpush.bf16.msra.mxu1 %v6176_v43  ;;  %v1560_v34 = vpop.f32.mrf.mxu2  ;;  %v1571_v13 = vpop.f32.mrf.mxu3  ;;  %v6156_v12 = vor.u32 %v7886_v3, %v6153_v4  ;;  %v6241_v3 = vld [vmem:[#allocation8 + $0x168] sm:$0xf0] }
 0x10f   :  { %1829 = vmatpush.bf16.msrb.mxu2 %v6056_v29  ;;  %v1546_v1 = vadd.f32 %v1545_v62, %v1533_v61  ;;  %v1547_v14 = vpop.f32.mrf.mxu1  ;;  %v6124_v29 = vor.u32 %v7878_v21, %v6121_v23  ;;  %v1572_v50 = vadd.f32 %v1571_v13, %v456_v41  ;;  %v6248_v61 = vor.u32 %v7911_v59, %v6247_v56  ;;  %v6239_v62 = vld [vmem:[#allocation8 + $0x160] sm:$0xf]  ;;  %v7909_v34 = vld [vmem:[#allocation8 + $0x164] sm:$0xf0]  ;;  %v7882_v23 = vld [vmem:[#allocation8 + $0x94] sm:$0xf] }
 0x110   :  { %2234 = vmatpush.bf16.msra.mxu3 %v6112_v36  ;;  %1817 = vmatmul.bf16.vlgmr.msrb.gmra.mxu0 %v8916_v39  ;;  %v6144_v39 = vor.u32 %v7885_v7, %v6143_v5  ;;  %v6188_v36 = vor.u32 %v7894_v26, %v6185_v27  ;;  %v6231_v7 = vld [vmem:[#allocation8 + $0x150] sm:$0xf]  ;;  %v6145_v14 = vld [vmem:[#allocation8 + $0xa8] sm:$0xf0]  ;;  %v6076_v27 = vor.u32 %v7866_v19, %v6073_v20  ;;  %v7903_v41 = vld [vmem:[#allocation8 + $0x134] sm:$0xf0] }
 0x111   :  { %v1559_v8 = vadd.f32 %v1558_v44, %v1546_v1  ;;  %v6311_v19 = vld [vmem:[#allocation8 + $0x1f0] sm:$0xf]  ;;  %v7927_v20 = vld [vmem:[#allocation8 + $0x1f4] sm:$0xf0] }
 0x112   :  { %2248 = vmatpush.bf16.msra.mxu1 %v6168_v51  ;;  %v7872_v51 = vld [vmem:[#allocation8 + $0x44] sm:$0xf] }
 0x113   :  { %8290 = vtanh.f32 %v1559_v8  ;;  %2259 = vmatpush.bf16.msra.mxu2 %v6248_v61  ;;  %v7907_v8 = vld [vmem:[#allocation8 + $0x154] sm:$0xf0]  ;;  %v7897_v61 = vld [vmem:[#allocation8 + $0x104] sm:$0xf0] }
 0x114   :  { %2235 = vmatpush.bf16.msra.mxu3 %v6104_v49  ;;  %v6169_v49 = vld [vmem:[#allocation8 + $0xd8] sm:$0xf0]  ;;  %v6232_v15 = vor.u32 %v7907_v8, %v6231_v7 }
 0x115   :  { %v6172_v54 = vor.u32 %v7890_v31, %v6169_v49  ;;  %v6207_v49 = vld [vmem:[#allocation8 + $0x120] sm:$0xf]  ;;  %v6233_v7 = vld [vmem:[#allocation8 + $0x158] sm:$0xf0] }
 0x116   :  { %2249 = vmatpush.bf16.msra.mxu1 %v6160_v6  ;;  %v1584_v57 = vpop.f32.mrf.mxu2  ;;  %v1573_v30 = vpop.f32.mrf.mxu3  ;;  %v6100_v6 = vor.u32 %v7872_v51, %v6097_v52 }
 0x117   :  { %v1585_v58 = vadd.f32 %v1584_v57, %v1572_v50  ;;  %v6084_v57 = vor.u32 %v7868_v10, %v6081_v11  ;;  %v6140_v30 = vor.u32 %v7882_v23, %v6137_v24  ;;  %v7901_v50 = vld [vmem:[#allocation8 + $0x124] sm:$0xf0]  ;;  %v7900_v23 = vld [vmem:[#allocation8 + $0x124] sm:$0xf]  ;;  %v6209_v24 = vld [vmem:[#allocation8 + $0x128] sm:$0xf0] }
 0x118   :  { %2236 = vmatpush.bf16.msra.mxu3 %v6096_v55  ;;  %v6161_v55 = vld [vmem:[#allocation8 + $0xc8] sm:$0xf0]  ;;  %v6208_v52 = vor.u32 %v7901_v50, %v6207_v49 }
 0x119   :  { %v8291_v33 = vpop.eup %8290  ;;  %v6164_v1 = vor.u32 %v7888_v60, %v6161_v55  ;;  %v6199_v60 = vld [vmem:[#allocation8 + $0x110] sm:$0xf]  ;;  %v7899_v55 = vld [vmem:[#allocation8 + $0x114] sm:$0xf0] }
 0x11a   :  { %2250 = vmatpush.bf16.msra.mxu1 %v6152_v42  ;;  %v8960_v43 = vpack.c.bf16 %v8291_v33, %v8291_v33  ;;  %v6240_v42 = vor.u32 %v7909_v34, %v6239_v62  ;;  %v6129_v33 = vld [vmem:[#allocation8 + $0x88] sm:$0xf0]  ;;  %v7910_v62 = vld [vmem:[#allocation8 + $0x174] sm:$0xf] }
 0x11c   :  { %2237 = vmatpush.bf16.msra.mxu3 %v6088_v2  ;;  %2260 = vmatpush.bf16.msra.mxu2 %v6240_v42 }
 0x11e   :  { %6060 = vmatmul.msk.bf16.vlgmr.msrb.gmra.mxu2 %vm1467_vm0, %v8910_v48  ;;  %2251 = vmatpush.bf16.msra.mxu1 %v6144_v39  ;;  %v6113_v48 = vld [vmem:[#allocation8 + $0x68] sm:$0xf0]  ;;  %v1586_v18 = vpop.f32.mrf.mxu2  ;;  %v7884_v39 = vld [vmem:[#allocation8 + $0xa4] sm:$0xf] }
 0x11f   :  { %v6116_v44 = vor.u32 %v7876_v35, %v6113_v48  ;;  %v6148_v21 = vor.u32 %v7884_v39, %v6145_v14  ;;  %v6223_v48 = vld [vmem:[#allocation8 + $0x140] sm:$0xf]  ;;  %v6215_v18 = vld [vmem:[#allocation8 + $0x130] sm:$0xf]  ;;  %v7902_v14 = vld [vmem:[#allocation8 + $0x134] sm:$0xf] }
 0x120   :  { %2238 = vmatpush.bf16.msra.mxu3 %v6080_v9  ;;  %v6092_v9 = vor.u32 %v7870_v63, %v6089_v0  ;;  %2261 = vmatpush.bf16.msra.mxu2 %v6232_v15  ;;  %v6249_v63 = vld [vmem:[#allocation8 + $0x178] sm:$0xf0] }
 0x121   :  { %v6217_v15 = vld [vmem:[#allocation8 + $0x138] sm:$0xf0] }
 0x122   :  { %2252 = vmatpush.bf16.msra.mxu1 %v6136_v22 }
 0x124   :  { %2239 = vmatpush.bf16.msra.mxu3 %v6072_v17 }
 0x125   :  { %v1597_v2 = vpop.f32.mrf.mxu0 }
 0x126   :  { %2253 = vmatpush.bf16.msra.mxu1 %v6128_v32  ;;  %v1598_v5 = vadd.f32 %v1597_v2, %v1585_v58  ;;  %v1610_v13 = vpop.f32.mrf.mxu1  ;;  %v7880_v32 = vld [vmem:[#allocation8 + $0x84] sm:$0xf]  ;;  %v6200_v58 = vor.u32 %v7899_v55, %v6199_v60 }
 0x127   :  { %v6132_v46 = vor.u32 %v7880_v32, %v6129_v33  ;;  %v7898_v32 = vld [vmem:[#allocation8 + $0x114] sm:$0xf]  ;;  %v6201_v33 = vld [vmem:[#allocation8 + $0x118] sm:$0xf0] }
 0x128   :  { %2240 = vmatpush.bf16.msra.mxu3 %v6064_v28  ;;  %v1611_v16 = vadd.f32 %v1610_v13, %v1598_v5  ;;  %v7864_v28 = vld [vmem:[#allocation8 + $0x4] sm:$0xf]  ;;  %v7906_v5 = vld [vmem:[#allocation8 + $0x154] sm:$0xf]  ;;  %v6225_v13 = vld [vmem:[#allocation8 + $0x148] sm:$0xf0] }
 0x12a   :  { %2298 = vmatpush.bf16.msrb.mxu1 %v6188_v36  ;;  %v7905_v36 = vld [vmem:[#allocation8 + $0x144] sm:$0xf0] }
 0x12b   :  { %2241 = vmatmul.bf16.vlgmr.msra.gmra.mxu3 %v8960_v43  ;;  %v6224_v40 = vor.u32 %v7905_v36, %v6223_v48  ;;  %v6204_v48 = vor.u32 %v7898_v32, %v6201_v33  ;;  %v6295_v36 = vld [vmem:[#allocation8 + $0x1d0] sm:$0xf] }
 0x12c   :  { %2285 = vmatpush.bf16.msrb.mxu3 %v6124_v29  ;;  %v6065_v29 = vld [vmem:[#allocation8 + $0x8] sm:$0xf0] }
 0x12d   :  { %v1599_v22 = vpop.f32.mrf.mxu0  ;;  %2262 = vmatpush.bf16.msra.mxu2 %v6224_v40  ;;  %v7896_v40 = vld [vmem:[#allocation8 + $0x104] sm:$0xf] }
 0x12e   :  { %2299 = vmatpush.bf16.msrb.mxu1 %v6180_v47  ;;  %v1623_v17 = vpop.f32.mrf.mxu3  ;;  %v1612_v35 = vpop.f32.mrf.mxu1  ;;  %v6216_v47 = vor.u32 %v7903_v41, %v6215_v18  ;;  %v6312_v22 = vor.u32 %v7927_v20, %v6311_v19  ;;  %v7923_v18 = vld [vmem:[#allocation8 + $0x1d4] sm:$0xf0]  ;;  %v6193_v41 = vld [vmem:[#allocation8 + $0x108] sm:$0xf0]  ;;  %v7920_v19 = vld [vmem:[#allocation8 + $0x1c4] sm:$0xf] }
 0x12f   :  { %v1624_v25 = vadd.f32 %v1623_v17, %v1611_v16  ;;  %v457_v16 = vperm.slane %v8942_v37, 2  ;;  %v6220_v17 = vor.u32 %v7902_v14, %v6217_v15  ;;  %v7922_v15 = vld [vmem:[#allocation8 + $0x1d4] sm:$0xf]  ;;  %v6289_v20 = vld [vmem:[#allocation8 + $0x1c8] sm:$0xf0] }
 0x130   :  { %2286 = vmatpush.bf16.msrb.mxu3 %v6116_v44  ;;  %v6068_v44 = vor.u32 %v7864_v28, %v6065_v29  ;;  %2272 = vmatpush.bf16.msra.mxu0 %v6312_v22  ;;  %v458_v22 = vperm.slane %v8942_v37, 3  ;;  %v6257_v37 = vld [vmem:[#allocation8 + $0x188] sm:$0xf0] }
 0x131   :  { %v1636_v26 = vpop.f32.mrf.mxu2  ;;  %2263 = vmatpush.bf16.msra.mxu2 %v6216_v47  ;;  %v7921_v47 = vld [vmem:[#allocation8 + $0x1c4] sm:$0xf0] }
 0x132   :  { %2300 = vmatpush.bf16.msrb.mxu1 %v6172_v54  ;;  %v1637_v38 = vadd.f32 %v1636_v26, %v1624_v25  ;;  %v6303_v25 = vld [vmem:[#allocation8 + $0x1e0] sm:$0xf]  ;;  %v6212_v26 = vor.u32 %v7900_v23, %v6209_v24  ;;  %v7918_v23 = vld [vmem:[#allocation8 + $0x1b4] sm:$0xf]  ;;  %v6281_v24 = vld [vmem:[#allocation8 + $0x1b8] sm:$0xf0] }
 0x134   :  { %2287 = vmatpush.bf16.msrb.mxu3 %v6108_v53 }
 0x135   :  { %v1649_v31 = vpop.f32.mrf.mxu0  ;;  %2264 = vmatpush.bf16.msra.mxu2 %v6208_v52  ;;  %v7919_v52 = vld [vmem:[#allocation8 + $0x1b4] sm:$0xf0] }
 0x136   :  { %2301 = vmatpush.bf16.msrb.mxu1 %v6164_v1  ;;  %v1625_v45 = vpop.f32.mrf.mxu3  ;;  %v1650_v53 = vadd.f32 %v1649_v31, %v1637_v38  ;;  %v6252_v1 = vor.u32 %v7910_v62, %v6249_v63  ;;  %v6296_v38 = vor.u32 %v7923_v18, %v6295_v36  ;;  %v7914_v36 = vld [vmem:[#allocation8 + $0x194] sm:$0xf]  ;;  %v6265_v18 = vld [vmem:[#allocation8 + $0x198] sm:$0xf0] }
 0x138   :  { %2288 = vmatpush.bf16.msrb.mxu3 %v6100_v6  ;;  %8292 = vtanh.f32 %v1650_v53  ;;  %v6191_v6 = vld [vmem:[#allocation8 + $0x100] sm:$0xf] }
 0x139   :  { %v1638_v51 = vpop.f32.mrf.mxu2  ;;  %2265 = vmatpush.bf16.msra.mxu2 %v6200_v58  ;;  %v6192_v34 = vor.u32 %v7897_v61, %v6191_v6  ;;  %v7917_v6 = vld [vmem:[#allocation8 + $0x1a4] sm:$0xf0] }
 0x13a   :  { %2302 = vmatpush.bf16.msrb.mxu1 %v6156_v12  ;;  %v7904_v12 = vld [vmem:[#allocation8 + $0x144] sm:$0xf]  ;;  %v6279_v51 = vld [vmem:[#allocation8 + $0x1b0] sm:$0xf] }
 0x13b   :  { %v6228_v39 = vor.u32 %v7904_v12, %v6225_v13  ;;  %v7924_v13 = vld [vmem:[#allocation8 + $0x1e4] sm:$0xf] }
 0x13c   :  { %2289 = vmatpush.bf16.msrb.mxu3 %v6092_v9  ;;  %v6236_v9 = vor.u32 %v7906_v5, %v6233_v7  ;;  %v6313_v7 = vld [vmem:[#allocation8 + $0x1f8] sm:$0xf0] }
 0x13d   :  { %v1651_v54 = vpop.f32.mrf.mxu0  ;;  %2266 = vmatpush.bf16.msra.mxu2 %v6192_v34 }
 0x13e   :  { %2303 = vmatpush.bf16.msrb.mxu1 %v6148_v21  ;;  %v8293_v56 = vpop.eup %8292  ;;  %v6280_v54 = vor.u32 %v7919_v52, %v6279_v51 }
 0x13f   :  { %v1840_v59 = vpack.c.bf16 %v8293_v56, %v8293_v56 }
 0x140   :  { %2290 = vmatpush.bf16.msrb.mxu3 %v6084_v57 }
 0x141   :  { %2254 = vmatmul.bf16.vlgmr.msra.gmra.mxu1 %v1840_v59  ;;  %2311 = vmatpush.bf16.msrb.mxu2 %v6252_v1  ;;  %v7915_v1 = vld [vmem:[#allocation8 + $0x194] sm:$0xf0] }
 0x142   :  { %2304 = vmatpush.bf16.msrb.mxu1 %v6140_v30 }
 0x144   :  { %2291 = vmatpush.bf16.msrb.mxu3 %v6076_v27  ;;  %v7925_v27 = vld [vmem:[#allocation8 + $0x1e4] sm:$0xf0] }
 0x145   :  { %v6304_v29 = vor.u32 %v7925_v27, %v6303_v25  ;;  %v6284_v25 = vor.u32 %v7918_v23, %v6281_v24  ;;  %v6273_v27 = vld [vmem:[#allocation8 + $0x1a8] sm:$0xf0]  ;;  %v7936_v23 = vld [vmem:[#allocation10 + $0x40] sm:$0xff]  ;;  %v7951_v24 = vld [vmem:[#allocation11 + $0x38] sm:$0xff] }
 0x146   :  { %2305 = vmatpush.bf16.msrb.mxu1 %v6132_v46  ;;  %v1662_v0 = vpop.f32.mrf.mxu1  ;;  %v6196_v46 = vor.u32 %v7896_v40, %v6193_v41  ;;  %v6268_v40 = vor.u32 %v7914_v36, %v6265_v18 }
 0x147   :  { %v1663_v30 = vadd.f32 %v1662_v0, %v457_v16  ;;  %2273 = vmatpush.bf16.msra.mxu0 %v6304_v29  ;;  %v6263_v0 = vld [vmem:[#allocation8 + $0x190] sm:$0xf]  ;;  %v6297_v16 = vld [vmem:[#allocation8 + $0x1d8] sm:$0xf0] }
 0x148   :  { %2292 = vmatpush.bf16.msrb.mxu3 %v6068_v44  ;;  %v6287_v44 = vld [vmem:[#allocation8 + $0x1c0] sm:$0xf] }
 0x149   :  { %v1688_v2 = vpop.f32.mrf.mxu0  ;;  %v6288_v50 = vor.u32 %v7921_v47, %v6287_v44 }
 0x14b   :  { %2293 = vmatmul.bf16.vlgmr.msrb.gmra.mxu3 %v8960_v43  ;;  %v7908_v43 = vld [vmem:[#allocation8 + $0x164] sm:$0xf]  ;;  %2274 = vmatpush.bf16.msra.mxu0 %v6296_v38 }
 0x14c   :  { %v6244_v4 = vor.u32 %v7908_v43, %v6241_v3  ;;  %v6255_v43 = vld [vmem:[#allocation8 + $0x180] sm:$0xf]  ;;  %v7913_v3 = vld [vmem:[#allocation8 + $0x184] sm:$0xf0]  ;;  %v7912_v38 = vld [vmem:[#allocation8 + $0x184] sm:$0xf] }
 0x14d   :  { %v6256_v5 = vor.u32 %v7913_v3, %v6255_v43 }
 0x14e   :  { %2312 = vmatpush.bf16.msrb.mxu2 %v6244_v4  ;;  %v1664_v42 = vpop.f32.mrf.mxu1  ;;  %v1675_v10 = vpop.f32.mrf.mxu3  ;;  %v7926_v4 = vld [vmem:[#allocation8 + $0x1f4] sm:$0xf] }
 0x14f   :  { %v1676_v35 = vadd.f32 %v1675_v10, %v1663_v30  ;;  %2275 = vmatpush.bf16.msra.mxu0 %v6288_v50 }
 0x151   :  { %v1701_v8 = vpop.f32.mrf.mxu2  ;;  %v1690_v11 = vpop.f32.mrf.mxu0  ;;  %2306 = vmatmul.bf16.vlgmr.msrb.gmra.mxu1 %v1840_v59  ;;  %v1689_v31 = vadd.f32 %v1688_v2, %v1676_v35  ;;  %v6271_v59 = vld [vmem:[#allocation8 + $0x1a0] sm:$0xf]  ;;  %v6264_v2 = vor.u32 %v7915_v1, %v6263_v0 }
 0x152   :  { %2313 = vmatpush.bf16.msrb.mxu2 %v6236_v9  ;;  %v6272_v34 = vor.u32 %v7917_v6, %v6271_v59 }
 0x153   :  { %v1702_v53 = vadd.f32 %v1701_v8, %v1689_v31  ;;  %2276 = vmatpush.bf16.msra.mxu0 %v6280_v54  ;;  %v6316_v8 = vor.u32 %v7926_v4, %v6313_v7  ;;  %v7933_v7 = vld [vmem:[#allocation10 + $0x28] sm:$0xff] }
 0x156   :  { %2314 = vmatpush.bf16.msrb.mxu2 %v6228_v39  ;;  %v1677_v21 = vpop.f32.mrf.mxu3  ;;  %v6305_v39 = vld [vmem:[#allocation8 + $0x1e8] sm:$0xf0] }
 0x157   :  { %2277 = vmatpush.bf16.msra.mxu0 %v6272_v34  ;;  %v6308_v14 = vor.u32 %v7924_v13, %v6305_v39  ;;  %v6292_v21 = vor.u32 %v7920_v19, %v6289_v20  ;;  %v7942_v13 = vld [vmem:[#allocation10 + $0x70] sm:$0xff]  ;;  %v7939_v19 = vld [vmem:[#allocation10 + $0x58] sm:$0xff] }
 0x158   :  { %v7938_v20 = vld [vmem:[#allocation10 + $0x50] sm:$0xff] }
 0x159   :  { %v1703_v57 = vpop.f32.mrf.mxu2  ;;  %v1740_v28 = vpop.f32.mrf.mxu0 }
 0x15a   :  { %2315 = vmatpush.bf16.msrb.mxu2 %v6220_v17  ;;  %v6300_v57 = vor.u32 %v7922_v15, %v6297_v16  ;;  %v7941_v15 = vld [vmem:[#allocation10 + $0x68] sm:$0xff]  ;;  %v7928_v16 = vld [vmem:[#allocation10] sm:$0xff] }
 0x15b   :  { %2278 = vmatpush.bf16.msra.mxu0 %v6264_v2 }
 0x15e   :  { %2316 = vmatpush.bf16.msrb.mxu2 %v6212_v26  ;;  %v7916_v26 = vld [vmem:[#allocation8 + $0x1a4] sm:$0xf] }
 0x15f   :  { %2279 = vmatpush.bf16.msra.mxu0 %v6256_v5  ;;  %v6276_v29 = vor.u32 %v7916_v26, %v6273_v27  ;;  %v7934_v5 = vld [vmem:[#allocation10 + $0x30] sm:$0xff] }
 0x161   :  { %v1742_v45 = vpop.f32.mrf.mxu0 }
 0x162   :  { %2317 = vmatpush.bf16.msrb.mxu2 %v6204_v48  ;;  %v6260_v45 = vor.u32 %v7912_v38, %v6257_v37  ;;  %v7948_v37 = vld [vmem:[#allocation11 + $0x20] sm:$0xff] }
 0x163   :  { %2324 = vmatpush.bf16.msrb.mxu0 %v6316_v8  ;;  %v7943_v8 = vld [vmem:[#allocation10 + $0x78] sm:$0xff] }
 0x164   :  { %2486 = vmatpush.bf16.msra.mxu1 %v7943_v8 }
 0x166   :  { %v1714_v49 = vpop.f32.mrf.mxu1  ;;  %2318 = vmatpush.bf16.msrb.mxu2 %v6196_v46 }
 0x167   :  { %v1715_v60 = vadd.f32 %v1714_v49, %v1702_v53  ;;  %2325 = vmatpush.bf16.msrb.mxu0 %v6308_v14  ;;  %v7929_v14 = vld [vmem:[#allocation10 + $0x8] sm:$0xff] }
 0x168   :  { %2487 = vmatpush.bf16.msra.mxu1 %v7942_v13  ;;  %v6489_v13 = vld [vmem:[#allocation17 + $0x58] sm:$0xf0] }
 0x16b   :  { %2326 = vmatpush.bf16.msrb.mxu0 %v6300_v57  ;;  %v7940_v57 = vld [vmem:[#allocation10 + $0x60] sm:$0xff] }
 0x16c   :  { %2488 = vmatpush.bf16.msra.mxu1 %v7941_v15  ;;  %v6479_v15 = vld [vmem:[#allocation17 + $0x40] sm:$0xf] }
 0x16d   :  { %v1766_v62 = vpop.f32.mrf.mxu0 }
 0x16e   :  { %v1727_v55 = vpop.f32.mrf.mxu3  ;;  %v1716_v58 = vpop.f32.mrf.mxu1 }
 0x16f   :  { %v1728_v56 = vadd.f32 %v1727_v55, %v1715_v60  ;;  %2327 = vmatpush.bf16.msrb.mxu0 %v6292_v21  ;;  %v1907_v58 = vld [vmem:[%s9045_s4] sm:$0x3] }
 0x170   :  { %v1909_v59 = vperm.slane %v1907_v58, 0  ;;  %v1910_v1 = vperm.slane %v1907_v58, 1  ;;  %2489 = vmatpush.bf16.msra.mxu1 %v7940_v57  ;;  %v7968_v57 = vld [vmem:[#allocation17 + $0x44] sm:$0xf] }
 0x171   :  { %v1753_v61 = vpop.f32.mrf.mxu2  ;;  %v1741_v63 = vadd.f32 %v1740_v28, %v1728_v56 }
 0x172   :  { %v1754_v30 = vadd.f32 %v1753_v61, %v458_v22  ;;  %v7937_v22 = vld [vmem:[#allocation10 + $0x48] sm:$0xff] }
 0x173   :  { %8294 = vtanh.f32 %v1741_v63  ;;  %2328 = vmatpush.bf16.msrb.mxu0 %v6284_v25  ;;  %v7950_v25 = vld [vmem:[#allocation11 + $0x30] sm:$0xff] }
 0x174   :  { %v1767_v48 = vadd.f32 %v1766_v62, %v1754_v30  ;;  %2490 = vmatpush.bf16.msra.mxu1 %v7939_v19 }
 0x175   :  { %v1768_v10 = vpop.f32.mrf.mxu0 }
 0x176   :  { %v1729_v42 = vpop.f32.mrf.mxu3 }
 0x177   :  { %2329 = vmatpush.bf16.msrb.mxu0 %v6276_v29  ;;  %v7935_v42 = vld [vmem:[#allocation10 + $0x38] sm:$0xff]  ;;  %v7949_v29 = vld [vmem:[#allocation11 + $0x28] sm:$0xff] }
 0x178   :  { %2473 = vmatpush.bf16.msra.mxu3 %v7935_v42  ;;  %2491 = vmatpush.bf16.msra.mxu1 %v7938_v20 }
 0x179   :  { %v1755_v9 = vpop.f32.mrf.mxu2  ;;  %v8295_v11 = vpop.eup %8294 }
 0x17a   :  { %v1841_v12 = vpack.c.bf16 %v8295_v11, %v8295_v11  ;;  %v7932_v9 = vld [vmem:[#allocation10 + $0x20] sm:$0xff]  ;;  %v7931_v11 = vld [vmem:[#allocation10 + $0x18] sm:$0xff] }
 0x17b   :  { %2330 = vmatpush.bf16.msrb.mxu0 %v6268_v40 }
 0x17c   :  { %2267 = vmatmul.bf16.vlgmr.msra.gmra.mxu2 %v1841_v12  ;;  %2474 = vmatpush.bf16.msra.mxu3 %v7934_v5  ;;  %v7972_v5 = vld [vmem:[#allocation17 + $0x64] sm:$0xf] }
 0x17d   :  { %2492 = vmatpush.bf16.msra.mxu1 %v7937_v22  ;;  %2569 = vmatpush.bf16.msra.mxu2 %v7951_v24  ;;  %v7967_v22 = vld [vmem:[#allocation17 + $0x34] sm:$0xf0]  ;;  %v6473_v24 = vld [vmem:[#allocation17 + $0x38] sm:$0xf0] }
 0x17f   :  { %2331 = vmatpush.bf16.msrb.mxu0 %v6260_v45  ;;  %v7945_v45 = vld [vmem:[#allocation11 + $0x8] sm:$0xff] }
 0x180   :  { %2475 = vmatpush.bf16.msra.mxu3 %v7933_v7  ;;  %v6497_v7 = vld [vmem:[#allocation17 + $0x68] sm:$0xf0] }
 0x181   :  { %2493 = vmatpush.bf16.msra.mxu1 %v7936_v23  ;;  %2570 = vmatpush.bf16.msra.mxu2 %v7950_v25  ;;  %v7966_v23 = vld [vmem:[#allocation17 + $0x34] sm:$0xf] }
 0x184   :  { %2476 = vmatpush.bf16.msra.mxu3 %v7932_v9  ;;  %v6500_v9 = vor.u32 %v7972_v5, %v6497_v7  ;;  %v6719_v5 = vld [vmem:[#allocation20 + $0x1a0] sm:$0xf]  ;;  %v8030_v7 = vld [vmem:[#allocation20 + $0x1ac] sm:$0xf0] }
 0x185   :  { %2571 = vmatpush.bf16.msra.mxu2 %v7949_v29 }
 0x186   :  { %v1779_v17 = vpop.f32.mrf.mxu1 }
 0x187   :  { %v1780_v41 = vadd.f32 %v1779_v17, %v1767_v48 }
 0x188   :  { %2477 = vmatpush.bf16.msra.mxu3 %v7931_v11  ;;  %v7971_v11 = vld [vmem:[#allocation17 + $0x54] sm:$0xf0] }
 0x189   :  { %2572 = vmatpush.bf16.msra.mxu2 %v7948_v37  ;;  %v6455_v37 = vld [vmem:[#allocation17 + $0x10] sm:$0xf] }
 0x18c   :  { %2319 = vmatmul.bf16.vlgmr.msrb.gmra.mxu2 %v1841_v12  ;;  %v7930_v12 = vld [vmem:[#allocation10 + $0x10] sm:$0xff] }
 0x18d   :  { %v1818_v35 = vpop.f32.mrf.mxu0  ;;  %2478 = vmatpush.bf16.msra.mxu3 %v7930_v12  ;;  %v7970_v12 = vld [vmem:[#allocation17 + $0x54] sm:$0xf] }
 0x18e   :  { %v1792_v28 = vpop.f32.mrf.mxu3  ;;  %v1781_v32 = vpop.f32.mrf.mxu1 }
 0x18f   :  { %v1793_v46 = vadd.f32 %v1792_v28, %v1780_v41  ;;  %v7947_v41 = vld [vmem:[#allocation11 + $0x18] sm:$0xff] }
 0x190   :  { %2573 = vmatpush.bf16.msra.mxu2 %v7947_v41  ;;  %v7963_v41 = vld [vmem:[#allocation17 + $0x14] sm:$0xf0] }
 0x191   :  { %v1805_v33 = vpop.f32.mrf.mxu2  ;;  %2479 = vmatpush.bf16.msra.mxu3 %v7929_v14  ;;  %v6492_v14 = vor.u32 %v7970_v12, %v6489_v13  ;;  %v8000_v13 = vld [vmem:[#allocation20 + $0xc4] sm:$0xf] }
 0x192   :  { %v1806_v49 = vadd.f32 %v1805_v33, %v1793_v46  ;;  %v7944_v46 = vld [vmem:[#allocation11] sm:$0xff] }
 0x194   :  { %v1819_v50 = vadd.f32 %v1818_v35, %v1806_v49  ;;  %v7957_v49 = vld [vmem:[#allocation14 + $0x28] sm:$0xff] }
 0x195   :  { %v1820_v31 = vpop.f32.mrf.mxu0  ;;  %2480 = vmatpush.bf16.msra.mxu3 %v7928_v16  ;;  %v7969_v16 = vld [vmem:[#allocation17 + $0x44] sm:$0xf0] }
 0x196   :  { %v1794_v44 = vpop.f32.mrf.mxu3  ;;  %v7958_v31 = vld [vmem:[#allocation14 + $0x30] sm:$0xff]  ;;  %v6480_v19 = vor.u32 %v7969_v16, %v6479_v15  ;;  %v6703_v16 = vld [vmem:[#allocation20 + $0x180] sm:$0xf] }
 0x197   :  { %v7946_v44 = vld [vmem:[#allocation11 + $0x10] sm:$0xff] }
 0x198   :  { %2574 = vmatpush.bf16.msra.mxu2 %v7946_v44  ;;  %v7962_v44 = vld [vmem:[#allocation17 + $0x14] sm:$0xf] }
 0x199   :  { %v1807_v47 = vpop.f32.mrf.mxu2 }
 0x19a   :  { %v7959_v47 = vld [vmem:[#allocation14 + $0x38] sm:$0xff] }
 0x19c   :  { %2575 = vmatpush.bf16.msra.mxu2 %v7945_v45  ;;  %v6456_v45 = vor.u32 %v7963_v41, %v6455_v37  ;;  %v6559_v37 = vld [vmem:[#allocation20 + $0x60] sm:$0xf] }
 0x1a0   :  { %2576 = vmatpush.bf16.msra.mxu2 %v7944_v46  ;;  %v6457_v46 = vld [vmem:[#allocation17 + $0x18] sm:$0xf0] }
 0x1a1   :  { %v1831_v53 = vpop.f32.mrf.mxu2 }
 0x1a2   :  { %v1832_v51 = vadd.f32 %v1831_v53, %v1819_v50  ;;  %v7956_v53 = vld [vmem:[#allocation14 + $0x20] sm:$0xff] }
 0x1a4   :  { %8296 = vtanh.f32 %v1832_v51  ;;  %v7955_v51 = vld [vmem:[#allocation14 + $0x18] sm:$0xff] }
 0x1a9   :  { %v1833_v52 = vpop.f32.mrf.mxu2 }
 0x1aa   :  { %v8297_v54 = vpop.eup %8296  ;;  %v8287_v52 = vld [vmem:[%s9047_s6] ss:$0 sm:$0xff] }
 0x1ab   :  { %v1842_v60 = vpack.c.bf16 %v8297_v54, %v8297_v54 }
 0x1ad   :  { %2280 = vmatmul.bf16.vlgmr.msra.gmra.mxu0 %v1842_v60 }
 0x1ae   :  { %v2242_v55 = vpop.f32.mrf.mxu3  ;;  %2653 = vmatpush.bf16.msra.mxu0 %v7959_v47  ;;  %v6460_v47 = vor.u32 %v7962_v44, %v6457_v46  ;;  %v7990_v44 = vld [vmem:[#allocation20 + $0x6c] sm:$0xf0]  ;;  %v6561_v46 = vld [vmem:[#allocation20 + $0x70] sm:$0xf0] }
 0x1af   :  { %v2243_v6 = vadd.f32 %v2242_v55, %v1909_v59 }
 0x1b2   :  { %2654 = vmatpush.bf16.msra.mxu0 %v7958_v31  ;;  %v6447_v31 = vld [vmem:[#allocation17] sm:$0xf] }
 0x1b6   :  { %v2244_v56 = vpop.f32.mrf.mxu3  ;;  %2655 = vmatpush.bf16.msra.mxu0 %v7957_v49  ;;  %v7961_v49 = vld [vmem:[#allocation17 + $0x4] sm:$0xf0] }
 0x1ba   :  { %2656 = vmatpush.bf16.msra.mxu0 %v7956_v53  ;;  %v6448_v53 = vor.u32 %v7961_v49, %v6447_v31  ;;  %v6671_v31 = vld [vmem:[#allocation20 + $0x140] sm:$0xf]  ;;  %v8018_v49 = vld [vmem:[#allocation20 + $0x14c] sm:$0xf0] }
 0x1bd   :  { %2332 = vmatmul.bf16.vlgmr.msrb.gmra.mxu0 %v1842_v60 }
 0x1be   :  { %v2255_v62 = vpop.f32.mrf.mxu1  ;;  %2657 = vmatpush.bf16.msra.mxu0 %v7955_v51  ;;  %v6449_v51 = vld [vmem:[#allocation17 + $0x8] sm:$0xf0] }
 0x1bf   :  { %v2256_v34 = vadd.f32 %v2255_v62, %v2243_v6  ;;  %v7953_v62 = vld [vmem:[#allocation14 + $0x8] sm:$0xff] }
 0x1c6   :  { %v2257_v0 = vpop.f32.mrf.mxu1 }
 0x1c7   :  { %v7975_v0 = vld [vmem:[#allocation17 + $0x74] sm:$0xf0] }
 0x1ce   :  { %v2294_v61 = vpop.f32.mrf.mxu3  ;;  %v2307_v43 = vpop.f32.mrf.mxu1 }
 0x1cf   :  { %v2295_v2 = vadd.f32 %v2294_v61, %v1910_v1  ;;  %v7954_v61 = vld [vmem:[#allocation14 + $0x10] sm:$0xff] }
 0x1d0   :  { %2658 = vmatpush.bf16.msra.mxu0 %v7954_v61  ;;  %v7974_v1 = vld [vmem:[#allocation17 + $0x74] sm:$0xf] }
 0x1d1   :  { %v2308_v3 = vadd.f32 %v2307_v43, %v2295_v2  ;;  %v6505_v43 = vld [vmem:[#allocation17 + $0x78] sm:$0xf0] }
 0x1d2   :  { %v6508_v42 = vor.u32 %v7974_v1, %v6505_v43  ;;  %v8006_v1 = vld [vmem:[#allocation20 + $0xec] sm:$0xf0]  ;;  %v6625_v43 = vld [vmem:[#allocation20 + $0xf0] sm:$0xf0] }
 0x1d4   :  { %2659 = vmatpush.bf16.msra.mxu0 %v7953_v62  ;;  %2783 = vmatpush.bf16.msrb.mxu1 %v6508_v42  ;;  %v8032_v62 = vld [vmem:[#allocation20 + $0x1c4] sm:$0xf] }
 0x1d6   :  { %v2296_v63 = vpop.f32.mrf.mxu3  ;;  %v2309_v4 = vpop.f32.mrf.mxu1 }
 0x1d7   :  { %v6503_v63 = vld [vmem:[#allocation17 + $0x70] sm:$0xf]  ;;  %v7973_v4 = vld [vmem:[#allocation17 + $0x64] sm:$0xf0] }
 0x1d8   :  { %v6504_v2 = vor.u32 %v7975_v0, %v6503_v63  ;;  %2784 = vmatpush.bf16.msrb.mxu1 %v6500_v9  ;;  %v6623_v63 = vld [vmem:[#allocation20 + $0xe0] sm:$0xf]  ;;  %v6721_v9 = vld [vmem:[#allocation20 + $0x1b0] sm:$0xf0] }
 0x1da   :  { %2770 = vmatpush.bf16.msrb.mxu3 %v6504_v2  ;;  %v8004_v2 = vld [vmem:[#allocation20 + $0xe4] sm:$0xf] }
 0x1db   :  { %v6628_v42 = vor.u32 %v8004_v2, %v6625_v43 }
 0x1dc   :  { %2785 = vmatpush.bf16.msrb.mxu1 %v6492_v14  ;;  %v6720_v14 = vor.u32 %v8030_v7, %v6719_v5  ;;  %v7980_v5 = vld [vmem:[#allocation20 + $0x24] sm:$0xf]  ;;  %v6529_v7 = vld [vmem:[#allocation20 + $0x30] sm:$0xf0] }
 0x1ff   :  { %v2268_v10 = vpop.f32.mrf.mxu2 }
 0x200   :  { %v2269_v26 = vadd.f32 %v2268_v10, %v2256_v34  ;;  %v7952_v34 = vld [vmem:[#allocation14] sm:$0xff]  ;;  %v6487_v10 = vld [vmem:[#allocation17 + $0x50] sm:$0xf] }
 0x201   :  { %2660 = vmatpush.bf16.msra.mxu0 %v7952_v34  ;;  %v6737_v34 = vld [vmem:[#allocation20 + $0x1d0] sm:$0xf0] }
 0x207   :  { %v2270_v39 = vpop.f32.mrf.mxu2 }
 0x208   :  { %v6488_v39 = vor.u32 %v7971_v11, %v6487_v10  ;;  %v6607_v10 = vld [vmem:[#allocation20 + $0xc0] sm:$0xf]  ;;  %v8002_v11 = vld [vmem:[#allocation20 + $0xcc] sm:$0xf0] }
 0x209   :  { %v6608_v12 = vor.u32 %v8002_v11, %v6607_v10  ;;  %v8010_v10 = vld [vmem:[#allocation20 + $0x10c] sm:$0xf0]  ;;  %v8008_v11 = vld [vmem:[#allocation20 + $0x104] sm:$0xf] }
 0x20f   :  { %v2320_v17 = vpop.f32.mrf.mxu2 }
 0x210   :  { %v2321_v35 = vadd.f32 %v2320_v17, %v2308_v3  ;;  %v6495_v3 = vld [vmem:[#allocation17 + $0x60] sm:$0xf]  ;;  %v6481_v17 = vld [vmem:[#allocation17 + $0x48] sm:$0xf0] }
 0x211   :  { %v6496_v8 = vor.u32 %v7973_v4, %v6495_v3  ;;  %v6484_v20 = vor.u32 %v7968_v57, %v6481_v17  ;;  %v6740_v3 = vor.u32 %v8032_v62, %v6737_v34  ;;  %v6624_v4 = vor.u32 %v8006_v1, %v6623_v63  ;;  %v8026_v57 = vld [vmem:[#allocation20 + $0x18c] sm:$0xf0]  ;;  %v6655_v62 = vld [vmem:[#allocation20 + $0x120] sm:$0xf]  ;;  %v6657_v1 = vld [vmem:[#allocation20 + $0x130] sm:$0xf0] }
 0x212   :  { %v8014_v34 = vld [vmem:[#allocation20 + $0x12c] sm:$0xf0] }
 0x213   :  { %2771 = vmatpush.bf16.msrb.mxu3 %v6496_v8  ;;  %2786 = vmatpush.bf16.msrb.mxu1 %v6484_v20  ;;  %v8028_v8 = vld [vmem:[#allocation20 + $0x1a4] sm:$0xf]  ;;  %v7998_v20 = vld [vmem:[#allocation20 + $0xac] sm:$0xf0] }
 0x214   :  { %3194 = vmatpush.bf16.msrb.mxu2 %v6624_v4  ;;  %v6724_v17 = vor.u32 %v8028_v8, %v6721_v9  ;;  %v6656_v4 = vor.u32 %v8014_v34, %v6655_v62  ;;  %v6639_v9 = vld [vmem:[#allocation20 + $0x100] sm:$0xf]  ;;  %v6713_v62 = vld [vmem:[#allocation20 + $0x198] sm:$0xf0] }
 0x217   :  { %v2322_v21 = vpop.f32.mrf.mxu2  ;;  %2772 = vmatpush.bf16.msrb.mxu3 %v6488_v39  ;;  %v6609_v39 = vld [vmem:[#allocation20 + $0xd0] sm:$0xf0] }
 0x218   :  { %v6471_v21 = vld [vmem:[#allocation17 + $0x30] sm:$0xf]  ;;  %v6612_v15 = vor.u32 %v8000_v13, %v6609_v39  ;;  %3195 = vmatpush.bf16.msrb.mxu2 %v6608_v12  ;;  %v6641_v12 = vld [vmem:[#allocation20 + $0x110] sm:$0xf0]  ;;  %v6759_v13 = vld [vmem:[#allocation20 + $0x1e8] sm:$0xf] }
 0x219   :  { %v6472_v25 = vor.u32 %v7967_v22, %v6471_v21  ;;  %v7996_v21 = vld [vmem:[#allocation20 + $0xa4] sm:$0xf]  ;;  %v8039_v39 = vld [vmem:[#allocation20 + $0x1f4] sm:$0xf0] }
 0x21a   :  { %v8024_v22 = vld [vmem:[#allocation20 + $0x184] sm:$0xf] }
 0x21b   :  { %2773 = vmatpush.bf16.msrb.mxu3 %v6480_v19  ;;  %v6591_v19 = vld [vmem:[#allocation20 + $0xa0] sm:$0xf] }
 0x21f   :  { %2774 = vmatpush.bf16.msrb.mxu3 %v6472_v25  ;;  %v6592_v25 = vor.u32 %v7998_v20, %v6591_v19 }
 0x221   :  { %3196 = vmatpush.bf16.msrb.mxu2 %v6592_v25  ;;  %v6743_v25 = vld [vmem:[#allocation20 + $0x1c8] sm:$0xf] }
 0x22a   :  { %v2281_v27 = vpop.f32.mrf.mxu0 }
 0x22b   :  { %v2282_v28 = vadd.f32 %v2281_v27, %v2269_v26  ;;  %v6476_v26 = vor.u32 %v7966_v23, %v6473_v24  ;;  %v8288_v27 = vld [vmem:[#allocation13] ss:$0 sm:$0xff]  ;;  %v6705_v23 = vld [vmem:[#allocation20 + $0x190] sm:$0xf0] }
 0x22c   :  { %v6593_v24 = vld [vmem:[#allocation20 + $0xb0] sm:$0xf0] }
 0x22d   :  { %8298 = vtanh.f32 %v2282_v28  ;;  %2787 = vmatpush.bf16.msrb.mxu1 %v6476_v26  ;;  %v6596_v26 = vor.u32 %v7996_v21, %v6593_v24  ;;  %v6644_v21 = vor.u32 %v8008_v11, %v6641_v12  ;;  %v7995_v11 = vld [vmem:[#allocation20 + $0x94] sm:$0xf0]  ;;  %v7993_v12 = vld [vmem:[#allocation20 + $0x8c] sm:$0xf] }
 0x232   :  { %v2283_v30 = vpop.f32.mrf.mxu0 }
 0x233   :  { %v8299_v32 = vpop.eup %8298 }
 0x234   :  { %v2339_v33 = vpack.c.bf16 %v8299_v32, %v8299_v32 }
 0x236   :  { %2481 = vmatmul.bf16.vlgmr.msra.gmra.mxu3 %v2339_v33 }
 0x23a   :  { %v2333_v48 = vpop.f32.mrf.mxu0 }
 0x23b   :  { %v2334_v36 = vadd.f32 %v2333_v48, %v2321_v35  ;;  %v6463_v35 = vld [vmem:[#allocation17 + $0x20] sm:$0xf]  ;;  %v7965_v48 = vld [vmem:[#allocation17 + $0x24] sm:$0xf0] }
 0x23d   :  { %8300 = vtanh.f32 %v2334_v36  ;;  %v7964_v36 = vld [vmem:[#allocation17 + $0x24] sm:$0xf] }
 0x242   :  { %v2335_v18 = vpop.f32.mrf.mxu0 }
 0x243   :  { %v8301_v38 = vpop.eup %8300  ;;  %v6464_v18 = vor.u32 %v7965_v48, %v6463_v35  ;;  %v6687_v35 = vld [vmem:[#allocation20 + $0x160] sm:$0xf]  ;;  %v8022_v48 = vld [vmem:[#allocation20 + $0x16c] sm:$0xf0] }
 0x244   :  { %v2340_v40 = vpack.c.bf16 %v8301_v38, %v8301_v38  ;;  %v6465_v38 = vld [vmem:[#allocation17 + $0x28] sm:$0xf0]  ;;  %v6688_v41 = vor.u32 %v8022_v48, %v6687_v35  ;;  %v7976_v48 = vld [vmem:[#allocation20 + $0x4] sm:$0xf] }
 0x245   :  { %2775 = vmatpush.bf16.msrb.mxu3 %v6464_v18  ;;  %v6689_v18 = vld [vmem:[#allocation20 + $0x170] sm:$0xf0] }
 0x246   :  { %2494 = vmatmul.bf16.vlgmr.msra.gmra.mxu1 %v2340_v40  ;;  %v6468_v40 = vor.u32 %v7964_v36, %v6465_v38  ;;  %v8020_v36 = vld [vmem:[#allocation20 + $0x164] sm:$0xf] }
 0x248   :  { %2788 = vmatpush.bf16.msrb.mxu1 %v6468_v40 }
 0x249   :  { %2776 = vmatpush.bf16.msrb.mxu3 %v6456_v45  ;;  %v7988_v45 = vld [vmem:[#allocation20 + $0x64] sm:$0xf] }
 0x24c   :  { %2789 = vmatpush.bf16.msrb.mxu1 %v6460_v47  ;;  %v6692_v47 = vor.u32 %v8020_v36, %v6689_v18  ;;  %v6513_v36 = vld [vmem:[#allocation20 + $0x10] sm:$0xf0]  ;;  %v6631_v18 = vld [vmem:[#allocation20 + $0xe8] sm:$0xf] }
 0x24d   :  { %2777 = vmatpush.bf16.msrb.mxu3 %v6448_v53  ;;  %v8016_v53 = vld [vmem:[#allocation20 + $0x144] sm:$0xf] }
 0x251   :  { %3220 = vmatpush.bf16.msra.mxu3 %v6628_v42  ;;  %v7982_v42 = vld [vmem:[#allocation20 + $0x2c] sm:$0xf0] }
 0x255   :  { %3221 = vmatpush.bf16.msra.mxu3 %v6612_v15  ;;  %v6532_v15 = vor.u32 %v7980_v5, %v6529_v7  ;;  %v8021_v5 = vld [vmem:[#allocation20 + $0x16c] sm:$0xf] }
 0x259   :  { %3222 = vmatpush.bf16.msra.mxu3 %v6596_v26  ;;  %v8035_v26 = vld [vmem:[#allocation20 + $0x1d4] sm:$0xf0] }
 0x2b9   :  { %v2482_v50 = vpop.f32.mrf.mxu3 }
 0x2ba   :  { %v2483_v60 = vadd.f32 %v8287_v52, %v2482_v50  ;;  %v7960_v50 = vld [vmem:[#allocation17 + $0x4] sm:$0xf] }
 0x2bb   :  { %v6452_v52 = vor.u32 %v7960_v50, %v6449_v51  ;;  %v8289_v50 = vld [vmem:[#allocation16] ss:$0 sm:$0xff]  ;;  %v6673_v51 = vld [vmem:[#allocation20 + $0x150] sm:$0xf0] }
 0x2bd   :  { %2790 = vmatpush.bf16.msrb.mxu1 %v6452_v52  ;;  %v6560_v52 = vor.u32 %v7990_v44, %v6559_v37  ;;  %v8005_v37 = vld [vmem:[#allocation20 + $0xec] sm:$0xf] }
 0x2c1   :  { %v2484_v54 = vpop.f32.mrf.mxu3 }
 0x2c2   :  { %v6751_v54 = vld [vmem:[#allocation20 + $0x1e0] sm:$0xf] }
 0x2c3   :  { %v2495_v55 = vpop.f32.mrf.mxu1 }
 0x2c4   :  { %v2496_v56 = vadd.f32 %v2495_v55, %v2483_v60  ;;  %v8038_v60 = vld [vmem:[#allocation20 + $0x1ec] sm:$0xf0]  ;;  %v8036_v55 = vld [vmem:[#allocation20 + $0x1e4] sm:$0xf] }
 0x2c6   :  { %8302 = vtanh.f32 %v2496_v56  ;;  %v6752_v56 = vor.u32 %v8038_v60, %v6751_v54  ;;  %v6564_v54 = vor.u32 %v7988_v45, %v6561_v46  ;;  %v6543_v60 = vld [vmem:[#allocation20 + $0x40] sm:$0xf]  ;;  %v6727_v46 = vld [vmem:[#allocation20 + $0x1a8] sm:$0xf] }
 0x2c8   :  { %3207 = vmatpush.bf16.msrb.mxu0 %v6752_v56  ;;  %v7986_v56 = vld [vmem:[#allocation20 + $0x4c] sm:$0xf0] }
 0x2c9   :  { %v6544_v2 = vor.u32 %v7986_v56, %v6543_v60 }
 0x2cb   :  { %v2497_v58 = vpop.f32.mrf.mxu1 }
 0x2cc   :  { %v8303_v59 = vpop.eup %8302  ;;  %v6753_v58 = vld [vmem:[#allocation20 + $0x1f0] sm:$0xf0] }
 0x2cd   :  { %v2500_v6 = vpack.c.bf16 %v8303_v59, %v8303_v59  ;;  %v6735_v59 = vld [vmem:[#allocation20 + $0x1c0] sm:$0xf]  ;;  %v6756_v61 = vor.u32 %v8036_v55, %v6753_v58  ;;  %v6672_v55 = vor.u32 %v8018_v49, %v6671_v31  ;;  %v7984_v58 = vld [vmem:[#allocation20 + $0x44] sm:$0xf]  ;;  %v8029_v31 = vld [vmem:[#allocation20 + $0x1ac] sm:$0xf] }
 0x2cf   :  { %2577 = vmatmul.bf16.vlgmr.msra.gmra.mxu2 %v2500_v6  ;;  %v8034_v6 = vld [vmem:[#allocation20 + $0x1cc] sm:$0xf0]  ;;  %3233 = vmatpush.bf16.msra.mxu1 %v6756_v61  ;;  %v6676_v61 = vor.u32 %v8016_v53, %v6673_v51  ;;  %v6615_v51 = vld [vmem:[#allocation20 + $0xc8] sm:$0xf] }
 0x2d0   :  { %v6736_v0 = vor.u32 %v8034_v6, %v6735_v59  ;;  %v6545_v59 = vld [vmem:[#allocation20 + $0x50] sm:$0xf0] }
 0x2d1   :  { %v6548_v43 = vor.u32 %v7984_v58, %v6545_v59  ;;  %v6711_v58 = vld [vmem:[#allocation20 + $0x188] sm:$0xf]  ;;  %v8027_v59 = vld [vmem:[#allocation20 + $0x194] sm:$0xf0] }
 0x2d2   :  { %3208 = vmatpush.bf16.msrb.mxu0 %v6736_v0  ;;  %v8012_v0 = vld [vmem:[#allocation20 + $0x124] sm:$0xf] }
 0x2d3   :  { %3234 = vmatpush.bf16.msra.mxu1 %v6740_v3  ;;  %v6527_v3 = vld [vmem:[#allocation20 + $0x20] sm:$0xf]  ;;  %v6660_v8 = vor.u32 %v8012_v0, %v6657_v1  ;;  %v7999_v0 = vld [vmem:[#allocation20 + $0xb4] sm:$0xf0]  ;;  %v7997_v1 = vld [vmem:[#allocation20 + $0xac] sm:$0xf] }
 0x2d6   :  { %3209 = vmatpush.bf16.msrb.mxu0 %v6720_v14  ;;  %v6528_v14 = vor.u32 %v7982_v42, %v6527_v3  ;;  %v8023_v42 = vld [vmem:[#allocation20 + $0x174] sm:$0xf0] }
 0x2d7   :  { %3235 = vmatpush.bf16.msra.mxu1 %v6724_v17  ;;  %v6761_v17 = vld [vmem:[#allocation20 + $0x1f8] sm:$0xf0] }
 0x352   :  { %v2578_v28 = vpop.f32.mrf.mxu2 }
 0x353   :  { %v2579_v29 = vadd.f32 %v8288_v27, %v2578_v28  ;;  %v6575_v27 = vld [vmem:[#allocation20 + $0x80] sm:$0xf]  ;;  %v6704_v28 = vor.u32 %v8026_v57, %v6703_v16  ;;  %v6640_v16 = vor.u32 %v8010_v10, %v6639_v9  ;;  %v8037_v57 = vld [vmem:[#allocation20 + $0x1ec] sm:$0xf]  ;;  %v6583_v10 = vld [vmem:[#allocation20 + $0x88] sm:$0xf] }
 0x354   :  { %v6764_v24 = vor.u32 %v8037_v57, %v6761_v17  ;;  %v8017_v57 = vld [vmem:[#allocation20 + $0x14c] sm:$0xf] }
 0x355   :  { %8304 = vtanh.f32 %v2579_v29  ;;  %v7994_v29 = vld [vmem:[#allocation20 + $0x8c] sm:$0xf0]  ;;  %3210 = vmatpush.bf16.msrb.mxu0 %v6704_v28  ;;  %v6744_v28 = vor.u32 %v8035_v26, %v6743_v25  ;;  %v6569_v25 = vld [vmem:[#allocation20 + $0x78] sm:$0xf0]  ;;  %v6663_v26 = vld [vmem:[#allocation20 + $0x128] sm:$0xf] }
 0x356   :  { %v6576_v38 = vor.u32 %v7994_v29, %v6575_v27  ;;  %v8033_v27 = vld [vmem:[#allocation20 + $0x1cc] sm:$0xf]  ;;  %v6745_v29 = vld [vmem:[#allocation20 + $0x1d8] sm:$0xf0] }
 0x358   :  { %3197 = vmatpush.bf16.msrb.mxu2 %v6576_v38  ;;  %v6516_v38 = vor.u32 %v7976_v48, %v6513_v36  ;;  %v7987_v48 = vld [vmem:[#allocation20 + $0x54] sm:$0xf0]  ;;  %v7985_v36 = vld [vmem:[#allocation20 + $0x4c] sm:$0xf] }
 0x359   :  { %3211 = vmatpush.bf16.msrb.mxu0 %v6688_v41  ;;  %v6633_v41 = vld [vmem:[#allocation20 + $0xf8] sm:$0xf0] }
 0x35a   :  { %v2580_v30 = vpop.f32.mrf.mxu2  ;;  %v6636_v45 = vor.u32 %v8005_v37, %v6633_v41  ;;  %v6647_v37 = vld [vmem:[#allocation20 + $0x108] sm:$0xf]  ;;  %v8011_v41 = vld [vmem:[#allocation20 + $0x114] sm:$0xf0] }
 0x35b   :  { %v8305_v32 = vpop.eup %8304  ;;  %v7992_v30 = vld [vmem:[#allocation20 + $0x84] sm:$0xf] }
 0x35c   :  { %2583 = vst [vmem:[#allocation23] sm:$0xff] %v8305_v32  ;;  %v2584_v33 = vpack.c.bf16 %v8305_v32, %v8305_v32  ;;  %v6577_v32 = vld [vmem:[#allocation20 + $0x90] sm:$0xf0]  ;;  %3198 = vmatpush.bf16.msrb.mxu2 %v6560_v52  ;;  %v8003_v52 = vld [vmem:[#allocation20 + $0xd4] sm:$0xf0] }
 0x35d   :  { %v6580_v40 = vor.u32 %v7992_v30, %v6577_v32  ;;  %3212 = vmatpush.bf16.msrb.mxu0 %v6672_v55  ;;  %v6511_v30 = vld [vmem:[#allocation20] sm:$0xf]  ;;  %v7978_v32 = vld [vmem:[#allocation20 + $0xc] sm:$0xf0]  ;;  %v6616_v60 = vor.u32 %v8003_v52, %v6615_v51  ;;  %v6617_v55 = vld [vmem:[#allocation20 + $0xd8] sm:$0xf0] }
 0x35e   :  { %2661 = vmatmul.bf16.vlgmr.msra.gmra.mxu0 %v2584_v33  ;;  %v6708_v33 = vor.u32 %v8024_v22, %v6705_v23  ;;  %v6760_v22 = vor.u32 %v8039_v39, %v6759_v13  ;;  %v6512_v35 = vor.u32 %v7978_v32, %v6511_v30  ;;  %v6584_v13 = vor.u32 %v7995_v11, %v6583_v10  ;;  %v6585_v39 = vld [vmem:[#allocation20 + $0x98] sm:$0xf0]  ;;  %v8013_v30 = vld [vmem:[#allocation20 + $0x12c] sm:$0xf] }
 0x35f   :  { %3223 = vmatpush.bf16.msra.mxu3 %v6580_v40  ;;  %v8007_v40 = vld [vmem:[#allocation20 + $0xf4] sm:$0xf0]  ;;  %v6665_v32 = vld [vmem:[#allocation20 + $0x138] sm:$0xf0]  ;;  %v8141_v10 = vld [vmem:[#allocation22 + $0x328] sm:$0xf0] }
 0x360   :  { %3236 = vmatpush.bf16.msra.mxu1 %v6708_v33  ;;  %3199 = vmatpush.bf16.msrb.mxu2 %v6544_v2  ;;  %v6748_v33 = vor.u32 %v8033_v27, %v6745_v29  ;;  %v6632_v44 = vor.u32 %v8007_v40, %v6631_v18  ;;  %v8015_v27 = vld [vmem:[#allocation20 + $0x134] sm:$0xf0]  ;;  %v6553_v18 = vld [vmem:[#allocation20 + $0x58] sm:$0xf0] }
 0x361   :  { %3213 = vmatpush.bf16.msrb.mxu0 %v6656_v4  ;;  %v6695_v4 = vld [vmem:[#allocation20 + $0x168] sm:$0xf]  ;;  %v6664_v29 = vor.u32 %v8015_v27, %v6663_v26  ;;  %v6556_v40 = vor.u32 %v7985_v36, %v6553_v18  ;;  %v8246_v27 = vld [vmem:[#allocation22 + $0x670] sm:$0xf0]  ;;  %v8127_v36 = vld [vmem:[#allocation22 + $0x2b8] sm:$0xf0] }
 0x362   :  { %v6696_v7 = vor.u32 %v8023_v42, %v6695_v4  ;;  %v7551_v18 = vld [vmem:[#allocation22 + $0x620] sm:$0xf] }
 0x363   :  { %3224 = vmatpush.bf16.msra.mxu3 %v6564_v54  ;;  %v8001_v54 = vld [vmem:[#allocation20 + $0xcc] sm:$0xf] }
 0x364   :  { %3237 = vmatpush.bf16.msra.mxu1 %v6692_v47  ;;  %3200 = vmatpush.bf16.msrb.mxu2 %v6528_v14  ;;  %v8031_v47 = vld [vmem:[#allocation20 + $0x1b4] sm:$0xf0]  ;;  %v6620_v56 = vor.u32 %v8001_v54, %v6617_v55  ;;  %v6588_v14 = vor.u32 %v7993_v12, %v6585_v39  ;;  %v2684_v54 = vld [vmem:[#allocation19] sm:$0x3]  ;;  %v6963_v12 = vld [vmem:[#allocation22 + $0x188] sm:$0xf] }
 0x365   :  { %3214 = vmatpush.bf16.msrb.mxu0 %v6640_v16  ;;  %v6728_v49 = vor.u32 %v8031_v47, %v6727_v46  ;;  %v8019_v16 = vld [vmem:[#allocation20 + $0x154] sm:$0xf0]  ;;  %v6649_v46 = vld [vmem:[#allocation20 + $0x118] sm:$0xf0]  ;;  %v6535_v47 = vld [vmem:[#allocation20 + $0x28] sm:$0xf] }
 0x366   :  { %v7979_v55 = vld [vmem:[#allocation20 + $0x14] sm:$0xf0]  ;;  %v7411_v39 = vld [vmem:[#allocation22 + $0x508] sm:$0xf] }
 0x367   :  { %3225 = vmatpush.bf16.msra.mxu3 %v6548_v43  ;;  %v6601_v43 = vld [vmem:[#allocation20 + $0xb8] sm:$0xf0] }
 0x368   :  { %3238 = vmatpush.bf16.msra.mxu1 %v6676_v61  ;;  %3201 = vmatpush.bf16.msrb.mxu2 %v6512_v35  ;;  %v6712_v61 = vor.u32 %v8027_v59, %v6711_v58  ;;  %v6604_v3 = vor.u32 %v7997_v1, %v6601_v43  ;;  %v6668_v35 = vor.u32 %v8013_v30, %v6665_v32  ;;  %v2687_v58 = vperm.slane %v2684_v54, 1  ;;  %v7187_v1 = vld [vmem:[#allocation22 + $0x348] sm:$0xf]  ;;  %v7383_v30 = vld [vmem:[#allocation22 + $0x4d0] sm:$0xf] }
 0x369   :  { %3259 = vmatpush.bf16.msra.mxu0 %v6760_v22  ;;  %v7991_v22 = vld [vmem:[#allocation20 + $0x74] sm:$0xf0]  ;;  %v8197_v32 = vld [vmem:[#allocation22 + $0x4e8] sm:$0xf0] }
 0x36b   :  { %3226 = vmatpush.bf16.msra.mxu3 %v6532_v15  ;;  %v6679_v15 = vld [vmem:[#allocation20 + $0x148] sm:$0xf] }
 0x36c   :  { %3239 = vmatpush.bf16.msra.mxu1 %v6660_v8  ;;  %3246 = vmatpush.bf16.msra.mxu2 %v6632_v44  ;;  %v6697_v8 = vld [vmem:[#allocation20 + $0x178] sm:$0xf0]  ;;  %v6680_v17 = vor.u32 %v8019_v16, %v6679_v15  ;;  %v8009_v44 = vld [vmem:[#allocation20 + $0x10c] sm:$0xf]  ;;  %v7607_v15 = vld [vmem:[#allocation22 + $0x690] sm:$0xf] }
 0x36d   :  { %3260 = vmatpush.bf16.msra.mxu0 %v6744_v28  ;;  %v6700_v9 = vor.u32 %v8021_v5, %v6697_v8  ;;  %v7635_v5 = vld [vmem:[#allocation22 + $0x6c8] sm:$0xf]  ;;  %v8253_v16 = vld [vmem:[#allocation22 + $0x6a8] sm:$0xf0] }
 0x36f   :  { %3227 = vmatpush.bf16.msra.mxu3 %v6516_v38 }
 0x370   :  { %3240 = vmatpush.bf16.msra.mxu1 %v6644_v21  ;;  %3247 = vmatpush.bf16.msra.mxu2 %v6616_v60  ;;  %v6567_v21 = vld [vmem:[#allocation20 + $0x68] sm:$0xf] }
 0x371   :  { %3261 = vmatpush.bf16.msra.mxu0 %v6728_v49  ;;  %v6652_v49 = vor.u32 %v8009_v44, %v6649_v46  ;;  %v6519_v60 = vld [vmem:[#allocation20 + $0x8] sm:$0xf]  ;;  %v8078_v44 = vld [vmem:[#allocation22 + $0x130] sm:$0xf0] }
 0x372   :  { %v6520_v59 = vor.u32 %v7979_v55, %v6519_v60  ;;  %v8190_v46 = vld [vmem:[#allocation22 + $0x4b0] sm:$0xf0]  ;;  %v7327_v60 = vld [vmem:[#allocation22 + $0x460] sm:$0xf]  ;;  %v8183_v55 = vld [vmem:[#allocation22 + $0x478] sm:$0xf0] }
 0x375   :  { %3262 = vmatpush.bf16.msra.mxu0 %v6712_v61 }
 0x379   :  { %3263 = vmatpush.bf16.msra.mxu0 %v6696_v7  ;;  %v8260_v7 = vld [vmem:[#allocation22 + $0x6e0] sm:$0xf0] }
 0x37a   :  { %v7636_v11 = vor.u32 %v8260_v7, %v7635_v5  ;;  %v8099_v5 = vld [vmem:[#allocation22 + $0x1d8] sm:$0xf0] }
 0x37d   :  { %3264 = vmatpush.bf16.msra.mxu0 %v6680_v17  ;;  %v7608_v17 = vor.u32 %v8253_v16, %v7607_v15  ;;  %v8043_v15 = vld [vmem:[#allocation22 + $0x18] sm:$0xf0]  ;;  %v8089_v16 = vld [vmem:[#allocation22 + $0x18c] sm:$0xf] }
 0x381   :  { %3265 = vmatpush.bf16.msra.mxu0 %v6664_v29  ;;  %v8085_v29 = vld [vmem:[#allocation22 + $0x168] sm:$0xf0] }
 0x3db   :  { %v2662_v6 = vpop.f32.mrf.mxu0 }
 0x3dc   :  { %v2663_v63 = vadd.f32 %v8289_v50, %v2662_v6  ;;  %v6729_v50 = vld [vmem:[#allocation20 + $0x1b8] sm:$0xf0]  ;;  %v8025_v6 = vld [vmem:[#allocation20 + $0x18c] sm:$0xf] }
 0x3dd   :  { %v6732_v53 = vor.u32 %v8029_v31, %v6729_v50  ;;  %v6716_v34 = vor.u32 %v8025_v6, %v6713_v62  ;;  %v7983_v31 = vld [vmem:[#allocation20 + $0x34] sm:$0xf0]  ;;  %v7981_v50 = vld [vmem:[#allocation20 + $0x2c] sm:$0xf]  ;;  %v6521_v6 = vld [vmem:[#allocation20 + $0x18] sm:$0xf0] }
 0x3de   :  { %8306 = vtanh.f32 %v2663_v63  ;;  %v6599_v63 = vld [vmem:[#allocation20 + $0xa8] sm:$0xf]  ;;  %v6536_v51 = vor.u32 %v7983_v31, %v6535_v47 }
 0x3df   :  { %v6600_v2 = vor.u32 %v7999_v0, %v6599_v63  ;;  %v2686_v63 = vperm.slane %v2684_v54, 0  ;;  %v8071_v54 = vld [vmem:[#allocation22 + $0xf8] sm:$0xf0] }
 0x3e1   :  { %3248 = vmatpush.bf16.msra.mxu2 %v6600_v2  ;;  %v8148_v2 = vld [vmem:[#allocation22 + $0x360] sm:$0xf0] }
 0x3e2   :  { %v7188_v42 = vor.u32 %v8148_v2, %v7187_v1  ;;  %v8106_v1 = vld [vmem:[#allocation22 + $0x210] sm:$0xf0] }
 0x3e3   :  { %v2664_v19 = vpop.f32.mrf.mxu0 }
 0x3e4   :  { %v8307_v20 = vpop.eup %8306  ;;  %v6681_v19 = vld [vmem:[#allocation20 + $0x158] sm:$0xf0] }
 0x3e5   :  { %v2667_v23 = vpack.c.bf16 %v8307_v20, %v8307_v20  ;;  %3249 = vmatpush.bf16.msra.mxu2 %v6584_v13  ;;  %v6684_v20 = vor.u32 %v8017_v57, %v6681_v19  ;;  %v8092_v13 = vld [vmem:[#allocation22 + $0x1a0] sm:$0xf0] }
 0x3e7   :  { %2778 = vmatmul.bf16.vlgmr.msrb.gmra.mxu3 %v2667_v23  ;;  %2791 = vmatmul.bf16.vlgmr.msrb.gmra.mxu1 %v2667_v23  ;;  %v7989_v23 = vld [vmem:[#allocation20 + $0x6c] sm:$0xf] }
 0x3e8   :  { %3285 = vmatpush.bf16.msrb.mxu1 %v6764_v24  ;;  %3272 = vmatpush.bf16.msrb.mxu3 %v6636_v45  ;;  %v6568_v24 = vor.u32 %v7991_v22, %v6567_v21  ;;  %v6572_v28 = vor.u32 %v7989_v23, %v6569_v25  ;;  %v6648_v45 = vor.u32 %v8011_v41, %v6647_v37  ;;  %v8134_v21 = vld [vmem:[#allocation22 + $0x2f0] sm:$0xf0]  ;;  %v7579_v22 = vld [vmem:[#allocation22 + $0x658] sm:$0xf]  ;;  %v6935_v25 = vld [vmem:[#allocation22 + $0x150] sm:$0xf] }
 0x3e9   :  { %v6907_v37 = vld [vmem:[#allocation22 + $0x118] sm:$0xf]  ;;  %v7384_v41 = vor.u32 %v8197_v32, %v7383_v30  ;;  %v7161_v30 = vld [vmem:[#allocation22 + $0x32c] sm:$0xf0] }
 0x3ea   :  { %3250 = vmatpush.bf16.msra.mxu2 %v6568_v24  ;;  %3266 = vmatpush.bf16.msra.mxu0 %v6648_v45  ;;  %v6964_v24 = vor.u32 %v8092_v13, %v6963_v12  ;;  %v7355_v45 = vld [vmem:[#allocation22 + $0x498] sm:$0xf]  ;;  %v7271_v32 = vld [vmem:[#allocation22 + $0x3f0] sm:$0xf] }
 0x3ec   :  { %3286 = vmatpush.bf16.msrb.mxu1 %v6748_v33  ;;  %3273 = vmatpush.bf16.msrb.mxu3 %v6620_v56  ;;  %v6551_v33 = vld [vmem:[#allocation20 + $0x48] sm:$0xf]  ;;  %v7977_v56 = vld [vmem:[#allocation20 + $0xc] sm:$0xf] }
 0x3ed   :  { %v6552_v38 = vor.u32 %v7987_v48, %v6551_v33  ;;  %v6524_v61 = vor.u32 %v7977_v56, %v6521_v6  ;;  %v7580_v48 = vor.u32 %v8246_v27, %v7579_v22  ;;  %v7523_v22 = vld [vmem:[#allocation22 + $0x5e8] sm:$0xf] }
 0x3ef   :  { %3251 = vmatpush.bf16.msra.mxu2 %v6552_v38  ;;  %v8239_v38 = vld [vmem:[#allocation22 + $0x638] sm:$0xf0] }
 0x3f0   :  { %3287 = vmatpush.bf16.msrb.mxu1 %v6732_v53  ;;  %3274 = vmatpush.bf16.msrb.mxu3 %v6604_v3  ;;  %v6537_v53 = vld [vmem:[#allocation20 + $0x38] sm:$0xf0]  ;;  %v7552_v31 = vor.u32 %v8239_v38, %v7551_v18 }
 0x3f1   :  { %v6540_v52 = vor.u32 %v7981_v50, %v6537_v53  ;;  %v8120_v50 = vld [vmem:[#allocation22 + $0x280] sm:$0xf0]  ;;  %v6908_v53 = vor.u32 %v8078_v44, %v6907_v37  ;;  %v6909_v37 = vld [vmem:[#allocation22 + $0x134] sm:$0xf0] }
 0x3f3   :  { %3252 = vmatpush.bf16.msra.mxu2 %v6536_v51  ;;  %v6879_v51 = vld [vmem:[#allocation22 + $0xe0] sm:$0xf] }
 0x3f4   :  { %3288 = vmatpush.bf16.msrb.mxu1 %v6716_v34  ;;  %3275 = vmatpush.bf16.msrb.mxu3 %v6588_v14  ;;  %v8204_v14 = vld [vmem:[#allocation22 + $0x520] sm:$0xf0]  ;;  %v6880_v6 = vor.u32 %v8071_v54, %v6879_v51 }
 0x3f5   :  { %v7412_v26 = vor.u32 %v8204_v14, %v7411_v39  ;;  %v6767_v14 = vld [vmem:[#allocation22] sm:$0xf]  ;;  %v8068_v51 = vld [vmem:[#allocation22 + $0xe4] sm:$0xf] }
 0x3f7   :  { %3253 = vmatpush.bf16.msra.mxu2 %v6520_v59  ;;  %v8113_v59 = vld [vmem:[#allocation22 + $0x248] sm:$0xf0] }
 0x3f8   :  { %3289 = vmatpush.bf16.msrb.mxu1 %v6700_v9  ;;  %3276 = vmatpush.bf16.msrb.mxu3 %v6572_v28  ;;  %v7159_v9 = vld [vmem:[#allocation22 + $0x310] sm:$0xf] }
 0x3f9   :  { %v7160_v57 = vor.u32 %v8141_v10, %v7159_v9  ;;  %v7189_v9 = vld [vmem:[#allocation22 + $0x364] sm:$0xf0]  ;;  %v6795_v10 = vld [vmem:[#allocation22 + $0x38] sm:$0xf] }
 0x3fc   :  { %3290 = vmatpush.bf16.msrb.mxu1 %v6684_v20  ;;  %3277 = vmatpush.bf16.msrb.mxu3 %v6556_v40  ;;  %v7131_v20 = vld [vmem:[#allocation22 + $0x2d8] sm:$0xf]  ;;  %v6936_v40 = vor.u32 %v8085_v29, %v6935_v25  ;;  %v8082_v25 = vld [vmem:[#allocation22 + $0x154] sm:$0xf] }
 0x3fd   :  { %v7132_v33 = vor.u32 %v8134_v21, %v7131_v20  ;;  %v7299_v20 = vld [vmem:[#allocation22 + $0x428] sm:$0xf]  ;;  %v8176_v21 = vld [vmem:[#allocation22 + $0x440] sm:$0xf0]  ;;  %v8138_v29 = vld [vmem:[#allocation22 + $0x314] sm:$0xf] }
 0x400   :  { %3291 = vmatpush.bf16.msrb.mxu1 %v6668_v35  ;;  %3278 = vmatpush.bf16.msrb.mxu3 %v6540_v52  ;;  %v7103_v35 = vld [vmem:[#allocation22 + $0x2a0] sm:$0xf]  ;;  %v7356_v52 = vor.u32 %v8190_v46, %v7355_v45  ;;  %v7133_v45 = vld [vmem:[#allocation22 + $0x2f4] sm:$0xf0] }
 0x401   :  { %v7104_v47 = vor.u32 %v8127_v36, %v7103_v35  ;;  %v8169_v35 = vld [vmem:[#allocation22 + $0x408] sm:$0xf0] }
 0x402   :  { %v8225_v36 = vld [vmem:[#allocation22 + $0x5c8] sm:$0xf0]  ;;  %v7272_v18 = vor.u32 %v8169_v35, %v7271_v32  ;;  %v8243_v32 = vld [vmem:[#allocation22 + $0x65c] sm:$0xf] }
 0x404   :  { %3292 = vmatpush.bf16.msrb.mxu1 %v6652_v49  ;;  %3279 = vmatpush.bf16.msrb.mxu3 %v6524_v61  ;;  %v7075_v49 = vld [vmem:[#allocation22 + $0x268] sm:$0xf]  ;;  %v7328_v61 = vor.u32 %v8183_v55, %v7327_v60  ;;  %v8124_v55 = vld [vmem:[#allocation22 + $0x2a4] sm:$0xf] }
 0x405   :  { %v7076_v56 = vor.u32 %v8120_v50, %v7075_v49  ;;  %v7467_v49 = vld [vmem:[#allocation22 + $0x578] sm:$0xf] }
 0x464   :  { %v2792_v62 = vpop.f32.mrf.mxu1 }
 0x465   :  { %v2793_v34 = vadd.f32 %v2792_v62, %v2687_v58  ;;  %v7047_v58 = vld [vmem:[#allocation22 + $0x230] sm:$0xf]  ;;  %v6851_v62 = vld [vmem:[#allocation22 + $0xa8] sm:$0xf] }
 0x467   :  { %8308 = vtanh.f32 %v2793_v34  ;;  %v8064_v34 = vld [vmem:[#allocation22 + $0xc0] sm:$0xf0] }
 0x468   :  { %v6852_v2 = vor.u32 %v8064_v34, %v6851_v62  ;;  %v8211_v34 = vld [vmem:[#allocation22 + $0x558] sm:$0xf0] }
 0x46a   :  { %v2779_v0 = vpop.f32.mrf.mxu3 }
 0x46b   :  { %v2780_v43 = vadd.f32 %v2779_v0, %v2686_v63  ;;  %v7048_v63 = vor.u32 %v8113_v59, %v7047_v58  ;;  %v7019_v0 = vld [vmem:[#allocation22 + $0x1f8] sm:$0xf]  ;;  %v7215_v59 = vld [vmem:[#allocation22 + $0x380] sm:$0xf] }
 0x46c   :  { %v2794_v3 = vpop.f32.mrf.mxu1 }
 0x46d   :  { %v8309_v4 = vpop.eup %8308  ;;  %8310 = vtanh.f32 %v2780_v43  ;;  %v6823_v43 = vld [vmem:[#allocation22 + $0x70] sm:$0xf]  ;;  %v8057_v3 = vld [vmem:[#allocation22 + $0x88] sm:$0xf0] }
 0x46e   :  { %v8972_v8 = vpack.c.bf16 %v8309_v4, %v8309_v4  ;;  %v7020_v4 = vor.u32 %v8106_v1, %v7019_v0  ;;  %v6824_v7 = vor.u32 %v8057_v3, %v6823_v43  ;;  %v6853_v0 = vld [vmem:[#allocation22 + $0xc4] sm:$0xf0]  ;;  %v8117_v43 = vld [vmem:[#allocation22 + $0x26c] sm:$0xf] }
 0x46f   :  { %v7077_v3 = vld [vmem:[#allocation22 + $0x284] sm:$0xf0] }
 0x470   :  { %3215 = vmatmul.bf16.vlgmr.msrb.gmra.mxu0 %v8972_v8  ;;  %3241 = vmatmul.bf16.vlgmr.msra.gmra.mxu1 %v8972_v8 }
 0x471   :  { %4743 = vmatpush.bf16.msrb.mxu0 %v7188_v42  ;;  %4769 = vmatpush.bf16.msra.mxu1 %v7636_v11  ;;  %v6991_v42 = vld [vmem:[#allocation22 + $0x1c0] sm:$0xf]  ;;  %v8050_v11 = vld [vmem:[#allocation22 + $0x50] sm:$0xf0] }
 0x472   :  { %v2781_v19 = vpop.f32.mrf.mxu3  ;;  %v6992_v12 = vor.u32 %v8099_v5, %v6991_v42  ;;  %v6796_v39 = vor.u32 %v8050_v11, %v6795_v10  ;;  %v8201_v42 = vld [vmem:[#allocation22 + $0x50c] sm:$0xf]  ;;  %v7413_v5 = vld [vmem:[#allocation22 + $0x524] sm:$0xf0]  ;;  %v8054_v11 = vld [vmem:[#allocation22 + $0x74] sm:$0xf] }
 0x473   :  { %v8311_v23 = vpop.eup %8310 }
 0x474   :  { %v2798_v28 = vpack.c.bf16 %v8311_v23, %v8311_v23  ;;  %v7300_v23 = vor.u32 %v8176_v21, %v7299_v20  ;;  %v7609_v20 = vld [vmem:[#allocation22 + $0x6ac] sm:$0xf0] }
 0x475   :  { %4744 = vmatpush.bf16.msrb.mxu0 %v7160_v57  ;;  %4770 = vmatpush.bf16.msra.mxu1 %v7608_v17  ;;  %v6965_v57 = vld [vmem:[#allocation22 + $0x1a4] sm:$0xf0]  ;;  %v6768_v17 = vor.u32 %v8043_v15, %v6767_v14  ;;  %v7049_v14 = vld [vmem:[#allocation22 + $0x24c] sm:$0xf0]  ;;  %v8194_v15 = vld [vmem:[#allocation22 + $0x4d4] sm:$0xf] }
 0x476   :  { %3202 = vmatmul.bf16.vlgmr.msrb.gmra.mxu2 %v2798_v28  ;;  %3228 = vmatmul.bf16.vlgmr.msra.gmra.mxu3 %v2798_v28  ;;  %v6968_v19 = vor.u32 %v8089_v16, %v6965_v57  ;;  %v7385_v16 = vld [vmem:[#allocation22 + $0x4ec] sm:$0xf0] }
 0x477   :  { %4730 = vmatpush.bf16.msrb.mxu2 %v6964_v24  ;;  %4756 = vmatpush.bf16.msra.mxu3 %v7412_v26  ;;  %v8232_v24 = vld [vmem:[#allocation22 + $0x600] sm:$0xf0]  ;;  %v6937_v26 = vld [vmem:[#allocation22 + $0x16c] sm:$0xf0] }
 0x478   :  { %v7524_v27 = vor.u32 %v8232_v24, %v7523_v22  ;;  %v8047_v22 = vld [vmem:[#allocation22 + $0x3c] sm:$0xf] }
 0x479   :  { %4745 = vmatpush.bf16.msrb.mxu0 %v7132_v33  ;;  %4771 = vmatpush.bf16.msra.mxu1 %v7580_v48  ;;  %v7164_v33 = vor.u32 %v8138_v29, %v7161_v30  ;;  %v7495_v48 = vld [vmem:[#allocation22 + $0x5b0] sm:$0xf]  ;;  %v8103_v24 = vld [vmem:[#allocation22 + $0x1fc] sm:$0xf] }
 0x47a   :  { %v7496_v38 = vor.u32 %v8225_v36, %v7495_v48  ;;  %v8040_v48 = vld [vmem:[#allocation22 + $0x4] sm:$0xf]  ;;  %v6769_v36 = vld [vmem:[#allocation22 + $0x1c] sm:$0xf0] }
 0x47b   :  { %4731 = vmatpush.bf16.msrb.mxu2 %v6936_v40  ;;  %4757 = vmatpush.bf16.msra.mxu3 %v7384_v41  ;;  %v8075_v40 = vld [vmem:[#allocation22 + $0x11c] sm:$0xf] }
 0x47c   :  { %v8131_v41 = vld [vmem:[#allocation22 + $0x2dc] sm:$0xf]  ;;  %v6912_v44 = vor.u32 %v8075_v40, %v6909_v37  ;;  %v6993_v40 = vld [vmem:[#allocation22 + $0x1dc] sm:$0xf0]  ;;  %v8180_v37 = vld [vmem:[#allocation22 + $0x464] sm:$0xf] }
 0x47d   :  { %4746 = vmatpush.bf16.msrb.mxu0 %v7104_v47  ;;  %4772 = vmatpush.bf16.msra.mxu1 %v7552_v31  ;;  %v7136_v46 = vor.u32 %v8131_v41, %v7133_v45  ;;  %v7243_v47 = vld [vmem:[#allocation22 + $0x3b8] sm:$0xf]  ;;  %v8162_v31 = vld [vmem:[#allocation22 + $0x3d0] sm:$0xf0]  ;;  %v7329_v41 = vld [vmem:[#allocation22 + $0x47c] sm:$0xf0] }
 0x47e   :  { %v7244_v50 = vor.u32 %v8162_v31, %v7243_v47  ;;  %v7332_v45 = vor.u32 %v8180_v37, %v7329_v41  ;;  %v7553_v47 = vld [vmem:[#allocation22 + $0x63c] sm:$0xf0]  ;;  %v7167_v37 = vld [vmem:[#allocation22 + $0x318] sm:$0xf]  ;;  %v8142_v41 = vld [vmem:[#allocation22 + $0x330] sm:$0xf0] }
 0x47f   :  { %4732 = vmatpush.bf16.msrb.mxu2 %v6908_v53  ;;  %4758 = vmatpush.bf16.msra.mxu3 %v7356_v52  ;;  %v8218_v53 = vld [vmem:[#allocation22 + $0x590] sm:$0xf0]  ;;  %v6881_v52 = vld [vmem:[#allocation22 + $0xfc] sm:$0xf0] }
 0x480   :  { %3267 = vmatmul.bf16.vlgmr.msra.gmra.mxu0 %v8972_v8  ;;  %3293 = vmatmul.bf16.vlgmr.msrb.gmra.mxu1 %v8972_v8  ;;  %v8145_v8 = vld [vmem:[#allocation22 + $0x34c] sm:$0xf]  ;;  %v7468_v54 = vor.u32 %v8218_v53, %v7467_v49  ;;  %v6884_v60 = vor.u32 %v8068_v51, %v6881_v52  ;;  %v7525_v52 = vld [vmem:[#allocation22 + $0x604] sm:$0xf0] }
 0x481   :  { %4747 = vmatpush.bf16.msrb.mxu0 %v7076_v56  ;;  %v7192_v13 = vor.u32 %v8145_v8, %v7189_v9  ;;  %4773 = vmatpush.bf16.msra.mxu1 %v7524_v27  ;;  %v7105_v56 = vld [vmem:[#allocation22 + $0x2bc] sm:$0xf0]  ;;  %v7416_v8 = vor.u32 %v8201_v42, %v7413_v5  ;;  %v7637_v9 = vld [vmem:[#allocation22 + $0x6e4] sm:$0xf0]  ;;  %v8187_v27 = vld [vmem:[#allocation22 + $0x49c] sm:$0xf] }
 0x482   :  { %v7108_v58 = vor.u32 %v8124_v55, %v7105_v56  ;;  %v8173_v49 = vld [vmem:[#allocation22 + $0x42c] sm:$0xf]  ;;  %v8166_v56 = vld [vmem:[#allocation22 + $0x3f4] sm:$0xf]  ;;  %v8152_v5 = vld [vmem:[#allocation22 + $0x384] sm:$0xf] }
 0x483   :  { %4733 = vmatpush.bf16.msrb.mxu2 %v6880_v6  ;;  %4759 = vmatpush.bf16.msra.mxu3 %v7328_v61  ;;  %v8155_v6 = vld [vmem:[#allocation22 + $0x398] sm:$0xf0]  ;;  %v7439_v61 = vld [vmem:[#allocation22 + $0x540] sm:$0xf]  ;;  %v8229_v51 = vld [vmem:[#allocation22 + $0x5ec] sm:$0xf] }
 0x484   :  { %v7216_v62 = vor.u32 %v8155_v6, %v7215_v59  ;;  %v7440_v1 = vor.u32 %v8211_v34, %v7439_v61  ;;  %v8222_v59 = vld [vmem:[#allocation22 + $0x5b4] sm:$0xf]  ;;  %v7497_v61 = vld [vmem:[#allocation22 + $0x5cc] sm:$0xf0]  ;;  %v8159_v34 = vld [vmem:[#allocation22 + $0x3bc] sm:$0xf] }
 0x485   :  { %4748 = vmatpush.bf16.msrb.mxu0 %v7048_v63  ;;  %4774 = vmatpush.bf16.msra.mxu1 %v7496_v38  ;;  %v8061_v63 = vld [vmem:[#allocation22 + $0xac] sm:$0xf]  ;;  %v6772_v38 = vor.u32 %v8040_v48, %v6769_v36  ;;  %v6943_v48 = vld [vmem:[#allocation22 + $0x158] sm:$0xf]  ;;  %v8086_v36 = vld [vmem:[#allocation22 + $0x170] sm:$0xf0] }
 0x486   :  { %3254 = vmatmul.bf16.vlgmr.msra.gmra.mxu2 %v2798_v28  ;;  %3280 = vmatmul.bf16.vlgmr.msrb.gmra.mxu3 %v2798_v28  ;;  %v6940_v28 = vor.u32 %v8082_v25, %v6937_v26  ;;  %v7021_v26 = vld [vmem:[#allocation22 + $0x214] sm:$0xf0] }
 0x487   :  { %4734 = vmatpush.bf16.msrb.mxu2 %v6852_v2  ;;  %4760 = vmatpush.bf16.msra.mxu3 %v7300_v23  ;;  %v6856_v2 = vor.u32 %v8061_v63, %v6853_v0  ;;  %v6797_v23 = vld [vmem:[#allocation22 + $0x54] sm:$0xf0]  ;;  %v7024_v29 = vor.u32 %v8103_v24, %v7021_v26  ;;  %v8215_v0 = vld [vmem:[#allocation22 + $0x57c] sm:$0xf]  ;;  %v8093_v24 = vld [vmem:[#allocation22 + $0x1a8] sm:$0xf0] }
 0x488   :  { %v6800_v25 = vor.u32 %v8047_v22, %v6797_v23  ;;  %v7245_v63 = vld [vmem:[#allocation22 + $0x3d4] sm:$0xf0]  ;;  %v6971_v23 = vld [vmem:[#allocation22 + $0x190] sm:$0xf]  ;;  %v8149_v26 = vld [vmem:[#allocation22 + $0x368] sm:$0xf0] }
 0x489   :  { %4749 = vmatpush.bf16.msrb.mxu0 %v7020_v4  ;;  %4775 = vmatpush.bf16.msra.mxu1 %v7468_v54  ;;  %v7080_v4 = vor.u32 %v8117_v43, %v7077_v3  ;;  %v7528_v54 = vor.u32 %v8229_v51, %v7525_v52  ;;  %v2864_v43 = vld [vmem:[%s9055_s14] sm:$0xf]  ;;  %v7139_v51 = vld [vmem:[#allocation22 + $0x2e0] sm:$0xf] }
 0x48a   :  { %v8135_v52 = vld [vmem:[#allocation22 + $0x2f8] sm:$0xf0] }
 0x48b   :  { %4735 = vmatpush.bf16.msrb.mxu2 %v6824_v7  ;;  %4761 = vmatpush.bf16.msra.mxu3 %v7272_v18  ;;  %v8257_v7 = vld [vmem:[#allocation22 + $0x6cc] sm:$0xf]  ;;  %v8096_v18 = vld [vmem:[#allocation22 + $0x1c4] sm:$0xf] }
 0x48c   :  { %v7640_v10 = vor.u32 %v8257_v7, %v7637_v9  ;;  %v7217_v7 = vld [vmem:[#allocation22 + $0x39c] sm:$0xf0]  ;;  %v2866_v9 = vperm.slane %v2864_v43, 0 }
 0x48d   :  { %4750 = vmatpush.bf16.msrb.mxu0 %v6992_v12  ;;  %4776 = vmatpush.bf16.msra.mxu1 %v7440_v1  ;;  %v6825_v12 = vld [vmem:[#allocation22 + $0x8c] sm:$0xf0]  ;;  %v7248_v1 = vor.u32 %v8159_v34, %v7245_v63 }
 0x48f   :  { %4736 = vmatpush.bf16.msrb.mxu2 %v6796_v39  ;;  %4762 = vmatpush.bf16.msra.mxu3 %v7244_v50  ;;  %v6828_v39 = vor.u32 %v8054_v11, %v6825_v12  ;;  %v7301_v50 = vld [vmem:[#allocation22 + $0x444] sm:$0xf0]  ;;  %v7220_v11 = vor.u32 %v8152_v5, %v7217_v7  ;;  %v7441_v12 = vld [vmem:[#allocation22 + $0x55c] sm:$0xf0]  ;;  %v7643_v5 = vld [vmem:[#allocation22 + $0x6d0] sm:$0xf] }
 0x490   :  { %v7304_v53 = vor.u32 %v8173_v49, %v7301_v50  ;;  %v8079_v49 = vld [vmem:[#allocation22 + $0x138] sm:$0xf0]  ;;  %v8261_v7 = vld [vmem:[#allocation22 + $0x6e8] sm:$0xf0] }
 0x491   :  { %4795 = vmatpush.bf16.msra.mxu0 %v7192_v13  ;;  %v8110_v13 = vld [vmem:[#allocation22 + $0x234] sm:$0xf]  ;;  %4821 = vmatpush.bf16.msrb.mxu1 %v7640_v10  ;;  %v2867_v10 = vperm.slane %v2864_v43, 1 }
 0x492   :  { %v7052_v57 = vor.u32 %v8110_v13, %v7049_v14 }
 0x493   :  { %4737 = vmatpush.bf16.msrb.mxu2 %v6768_v17  ;;  %4763 = vmatpush.bf16.msra.mxu3 %v7216_v62  ;;  %v7388_v17 = vor.u32 %v8194_v15, %v7385_v16  ;;  %v7500_v62 = vor.u32 %v8222_v59, %v7497_v61  ;;  %v8072_v59 = vld [vmem:[#allocation22 + $0x100] sm:$0xf0] }
 0x494   :  { %v8128_v61 = vld [vmem:[#allocation22 + $0x2c0] sm:$0xf0] }
 0x495   :  { %4796 = vmatpush.bf16.msra.mxu0 %v7164_v33  ;;  %v7581_v33 = vld [vmem:[#allocation22 + $0x674] sm:$0xf0] }
 0x496   :  { %v7584_v35 = vor.u32 %v8243_v32, %v7581_v33 }
 0x497   :  { %4782 = vmatpush.bf16.msra.mxu2 %v6968_v19  ;;  %4808 = vmatpush.bf16.msrb.mxu3 %v7416_v8  ;;  %v8250_v19 = vld [vmem:[#allocation22 + $0x694] sm:$0xf]  ;;  %v8208_v8 = vld [vmem:[#allocation22 + $0x544] sm:$0xf] }
 0x498   :  { %v7612_v21 = vor.u32 %v8250_v19, %v7609_v20  ;;  %v7444_v13 = vor.u32 %v8208_v8, %v7441_v12 }
 0x499   :  { %4797 = vmatpush.bf16.msra.mxu0 %v7136_v46  ;;  %v8236_v46 = vld [vmem:[#allocation22 + $0x624] sm:$0xf] }
 0x49a   :  { %4822 = vmatpush.bf16.msrb.mxu1 %v7612_v21  ;;  %v7556_v31 = vor.u32 %v8236_v46, %v7553_v47  ;;  %v7168_v47 = vor.u32 %v8142_v41, %v7167_v37  ;;  %v6775_v37 = vld [vmem:[#allocation22 + $0x8] sm:$0xf]  ;;  %v8044_v41 = vld [vmem:[#allocation22 + $0x20] sm:$0xf0] }
 0x49b   :  { %4783 = vmatpush.bf16.msra.mxu2 %v6940_v28  ;;  %4809 = vmatpush.bf16.msrb.mxu3 %v7388_v17  ;;  %v7357_v28 = vld [vmem:[#allocation22 + $0x4b4] sm:$0xf0] }
 0x49c   :  { %v7360_v30 = vor.u32 %v8187_v27, %v7357_v28  ;;  %v6972_v28 = vor.u32 %v8093_v24, %v6971_v23 }
 0x49d   :  { %4798 = vmatpush.bf16.msra.mxu0 %v7108_v58  ;;  %v7273_v58 = vld [vmem:[#allocation22 + $0x40c] sm:$0xf0] }
 0x49e   :  { %4823 = vmatpush.bf16.msrb.mxu1 %v7584_v35  ;;  %v7276_v6 = vor.u32 %v8166_v56, %v7273_v58  ;;  %v7140_v56 = vor.u32 %v8135_v52, %v7139_v51  ;;  %v6887_v58 = vld [vmem:[#allocation22 + $0xe8] sm:$0xf]  ;;  %v8090_v51 = vld [vmem:[#allocation22 + $0x194] sm:$0xf]  ;;  %v6973_v52 = vld [vmem:[#allocation22 + $0x1ac] sm:$0xf0] }
 0x49f   :  { %4784 = vmatpush.bf16.msra.mxu2 %v6912_v44  ;;  %4810 = vmatpush.bf16.msrb.mxu3 %v7360_v30  ;;  %v6996_v44 = vor.u32 %v8096_v18, %v6993_v40  ;;  %v2869_v40 = vperm.slane %v2864_v43, 3 }
 0x4a1   :  { %4799 = vmatpush.bf16.msra.mxu0 %v7080_v4 }
 0x4a2   :  { %4824 = vmatpush.bf16.msrb.mxu1 %v7556_v31  ;;  %v6915_v31 = vld [vmem:[#allocation22 + $0x120] sm:$0xf] }
 0x4a3   :  { %4785 = vmatpush.bf16.msra.mxu2 %v6884_v60  ;;  %4811 = vmatpush.bf16.msrb.mxu3 %v7332_v45 }
 0x4a5   :  { %4800 = vmatpush.bf16.msra.mxu0 %v7052_v57 }
 0x4a6   :  { %4825 = vmatpush.bf16.msrb.mxu1 %v7528_v54 }
 0x4a7   :  { %4786 = vmatpush.bf16.msra.mxu2 %v6856_v2  ;;  %4812 = vmatpush.bf16.msrb.mxu3 %v7304_v53  ;;  %v7469_v2 = vld [vmem:[#allocation22 + $0x594] sm:$0xf0] }
 0x4a8   :  { %v7472_v3 = vor.u32 %v8215_v0, %v7469_v2  ;;  %v8065_v2 = vld [vmem:[#allocation22 + $0xc8] sm:$0xf0] }
 0x4a9   :  { %4801 = vmatpush.bf16.msra.mxu0 %v7024_v29 }
 0x4aa   :  { %4826 = vmatpush.bf16.msrb.mxu1 %v7500_v62  ;;  %v6888_v62 = vor.u32 %v8072_v59, %v6887_v58 }
 0x4ab   :  { %4787 = vmatpush.bf16.msra.mxu2 %v6828_v39  ;;  %4813 = vmatpush.bf16.msrb.mxu3 %v7276_v6  ;;  %v7111_v6 = vld [vmem:[#allocation22 + $0x2a8] sm:$0xf] }
 0x4ac   :  { %v7112_v0 = vor.u32 %v8128_v61, %v7111_v6  ;;  %v7307_v6 = vld [vmem:[#allocation22 + $0x430] sm:$0xf]  ;;  %v8177_v61 = vld [vmem:[#allocation22 + $0x448] sm:$0xf0] }
 0x4ad   :  { %4802 = vmatpush.bf16.msra.mxu0 %v6996_v44  ;;  %v6944_v44 = vor.u32 %v8086_v36, %v6943_v48  ;;  %v7587_v48 = vld [vmem:[#allocation22 + $0x660] sm:$0xf]  ;;  %v8247_v36 = vld [vmem:[#allocation22 + $0x678] sm:$0xf0] }
 0x4ae   :  { %4827 = vmatpush.bf16.msrb.mxu1 %v7472_v3  ;;  %v8121_v3 = vld [vmem:[#allocation22 + $0x288] sm:$0xf0] }
 0x4af   :  { %4788 = vmatpush.bf16.msra.mxu2 %v6800_v25  ;;  %4814 = vmatpush.bf16.msrb.mxu3 %v7248_v1  ;;  %v7195_v25 = vld [vmem:[#allocation22 + $0x350] sm:$0xf] }
 0x4b0   :  { %v7196_v35 = vor.u32 %v8149_v26, %v7195_v25  ;;  %v6859_v1 = vld [vmem:[#allocation22 + $0xb0] sm:$0xf]  ;;  %v6803_v25 = vld [vmem:[#allocation22 + $0x40] sm:$0xf]  ;;  %v8051_v26 = vld [vmem:[#allocation22 + $0x58] sm:$0xf0] }
 0x4b2   :  { %4828 = vmatpush.bf16.msrb.mxu1 %v7444_v13  ;;  %v6831_v13 = vld [vmem:[#allocation22 + $0x78] sm:$0xf] }
 0x4b3   :  { %4789 = vmatpush.bf16.msra.mxu2 %v6772_v38  ;;  %4815 = vmatpush.bf16.msrb.mxu3 %v7220_v11  ;;  %v2868_v38 = vperm.slane %v2864_v43, 2  ;;  %v7083_v43 = vld [vmem:[#allocation22 + $0x270] sm:$0xf]  ;;  %v6860_v11 = vor.u32 %v8065_v2, %v6859_v1  ;;  %v8083_v1 = vld [vmem:[#allocation22 + $0x15c] sm:$0xf] }
 0x4b4   :  { %v7084_v12 = vor.u32 %v8121_v3, %v7083_v43  ;;  %v6945_v2 = vld [vmem:[#allocation22 + $0x174] sm:$0xf0]  ;;  %v8139_v43 = vld [vmem:[#allocation22 + $0x31c] sm:$0xf] }
 0x4b5   :  { %v7169_v3 = vld [vmem:[#allocation22 + $0x334] sm:$0xf0] }
 0x4ed   :  { %v3216_v60 = vpop.f32.mrf.mxu0  ;;  %v3242_v55 = vpop.f32.mrf.mxu1 }
 0x4f5   :  { %v3218_v4 = vpop.f32.mrf.mxu0  ;;  %v3244_v42 = vpop.f32.mrf.mxu1 }
 0x4f6   :  { %v7419_v4 = vld [vmem:[#allocation22 + $0x510] sm:$0xf]  ;;  %v8205_v42 = vld [vmem:[#allocation22 + $0x528] sm:$0xf0] }
 0x4f9   :  { %v3203_v39 = vpop.f32.mrf.mxu2  ;;  %v3229_v14 = vpop.f32.mrf.mxu3 }
 0x4fa   :  { %v3204_v15 = vadd.f32 %v3203_v39, %v2866_v9  ;;  %v3230_v16 = vadd.f32 %v3229_v14, %v2867_v10  ;;  %v8058_v39 = vld [vmem:[#allocation22 + $0x90] sm:$0xf0] }
 0x4fb   :  { %v6832_v23 = vor.u32 %v8058_v39, %v6831_v13  ;;  %v8076_v13 = vld [vmem:[#allocation22 + $0x124] sm:$0xf]  ;;  %v6917_v39 = vld [vmem:[#allocation22 + $0x13c] sm:$0xf0] }
 0x4fc   :  { %v3217_v57 = vadd.f32 %v3216_v60, %v3204_v15  ;;  %v3243_v17 = vadd.f32 %v3242_v55, %v3230_v16  ;;  %v6916_v55 = vor.u32 %v8079_v49, %v6915_v31  ;;  %v7420_v15 = vor.u32 %v8205_v42, %v7419_v4  ;;  %v7335_v31 = vld [vmem:[#allocation22 + $0x468] sm:$0xf]  ;;  %v8184_v49 = vld [vmem:[#allocation22 + $0x480] sm:$0xf0] }
 0x4fd   :  { %v3268_v19 = vpop.f32.mrf.mxu0  ;;  %v3294_v20 = vpop.f32.mrf.mxu1  ;;  %v7644_v16 = vor.u32 %v8261_v7, %v7643_v5  ;;  %v7336_v58 = vor.u32 %v8184_v49, %v7335_v31  ;;  %v7308_v4 = vor.u32 %v8177_v61, %v7307_v6  ;;  %v7279_v5 = vld [vmem:[#allocation22 + $0x3f8] sm:$0xf]  ;;  %v8170_v7 = vld [vmem:[#allocation22 + $0x410] sm:$0xf0]  ;;  %v7645_v49 = vld [vmem:[#allocation22 + $0x6ec] sm:$0xf0] }
 0x4fe   :  { %8312 = vtanh.f32 %v3217_v57  ;;  %v7055_v57 = vld [vmem:[#allocation22 + $0x238] sm:$0xf]  ;;  %v8258_v31 = vld [vmem:[#allocation22 + $0x6d4] sm:$0xf]  ;;  %v8195_v6 = vld [vmem:[#allocation22 + $0x4dc] sm:$0xf] }
 0x4ff   :  { %8314 = vtanh.f32 %v3243_v17  ;;  %v8114_v17 = vld [vmem:[#allocation22 + $0x250] sm:$0xf0]  ;;  %v7393_v61 = vld [vmem:[#allocation22 + $0x4f4] sm:$0xf0] }
 0x500   :  { %v7056_v24 = vor.u32 %v8114_v17, %v7055_v57  ;;  %v7280_v57 = vor.u32 %v8170_v7, %v7279_v5  ;;  %v8188_v5 = vld [vmem:[#allocation22 + $0x4a4] sm:$0xf]  ;;  %v7365_v7 = vld [vmem:[#allocation22 + $0x4bc] sm:$0xf0] }
 0x501   :  { %v3205_v21 = vpop.f32.mrf.mxu2  ;;  %v3231_v22 = vpop.f32.mrf.mxu3 }
 0x502   :  { %v7615_v21 = vld [vmem:[#allocation22 + $0x698] sm:$0xf]  ;;  %v8254_v22 = vld [vmem:[#allocation22 + $0x6b0] sm:$0xf0] }
 0x504   :  { %v8313_v27 = vpop.eup %8312 }
 0x505   :  { %v8315_v29 = vpop.eup %8314  ;;  %v8981_v30 = vpack.c.bf16 %v8313_v27, %v8313_v27  ;;  %v3270_v32 = vpop.f32.mrf.mxu0 }
 0x506   :  { %v3296_v33 = vpop.f32.mrf.mxu1  ;;  %v8983_v18 = vpack.c.bf16 %v8315_v29, %v8315_v29  ;;  %v7027_v29 = vld [vmem:[#allocation22 + $0x200] sm:$0xf]  ;;  %v8107_v32 = vld [vmem:[#allocation22 + $0x218] sm:$0xf0] }
 0x507   :  { %4738 = vmatmul.bf16.vlgmr.msrb.gmra.mxu2 %v8981_v30  ;;  %v7363_v33 = vld [vmem:[#allocation22 + $0x4a0] sm:$0xf] }
 0x508   :  { %4751 = vmatmul.bf16.vlgmr.msrb.gmra.mxu0 %v8983_v18  ;;  %4834 = vmatpush.bf16.msrb.mxu2 %v6972_v28  ;;  %v7616_v28 = vor.u32 %v8254_v22, %v7615_v21  ;;  %v6920_v21 = vor.u32 %v8076_v13, %v6917_v39  ;;  %v8041_v13 = vld [vmem:[#allocation22 + $0xc] sm:$0xf]  ;;  %v6777_v39 = vld [vmem:[#allocation22 + $0x24] sm:$0xf0] }
 0x509   :  { %4847 = vmatpush.bf16.msrb.mxu0 %v7196_v35  ;;  %v3255_v45 = vpop.f32.mrf.mxu2  ;;  %v3281_v46 = vpop.f32.mrf.mxu3  ;;  %v8191_v35 = vld [vmem:[#allocation22 + $0x4b8] sm:$0xf0] }
 0x50a   :  { %v3256_v50 = vadd.f32 %v3255_v45, %v2868_v38  ;;  %v3282_v53 = vadd.f32 %v3281_v46, %v2869_v40  ;;  %v6804_v38 = vor.u32 %v8051_v26, %v6803_v25  ;;  %v7028_v40 = vor.u32 %v8107_v32, %v7027_v29  ;;  %v8069_v25 = vld [vmem:[#allocation22 + $0xec] sm:$0xf]  ;;  %v6889_v26 = vld [vmem:[#allocation22 + $0x104] sm:$0xf0] }
 0x50b   :  { %v7364_v45 = vor.u32 %v8191_v35, %v7363_v33  ;;  %v7588_v46 = vor.u32 %v8247_v36, %v7587_v48  ;;  %v7223_v33 = vld [vmem:[#allocation22 + $0x388] sm:$0xf]  ;;  %v8156_v35 = vld [vmem:[#allocation22 + $0x3a0] sm:$0xf0]  ;;  %v6892_v36 = vor.u32 %v8069_v25, %v6889_v26  ;;  %v7203_v25 = vld [vmem:[#allocation22 + $0x358] sm:$0xf] }
 0x50c   :  { %v3269_v54 = vadd.f32 %v3268_v19, %v3256_v50  ;;  %v3295_v60 = vadd.f32 %v3294_v20, %v3282_v53  ;;  %4835 = vmatpush.bf16.msrb.mxu2 %v6944_v44  ;;  %v7391_v19 = vld [vmem:[#allocation22 + $0x4d8] sm:$0xf]  ;;  %v8198_v20 = vld [vmem:[#allocation22 + $0x4f0] sm:$0xf0]  ;;  %v6999_v44 = vld [vmem:[#allocation22 + $0x1c8] sm:$0xf] }
 0x50d   :  { %4848 = vmatpush.bf16.msrb.mxu0 %v7168_v47  ;;  %v7392_v27 = vor.u32 %v8198_v20, %v7391_v19  ;;  %v8100_v47 = vld [vmem:[#allocation22 + $0x1e0] sm:$0xf0]  ;;  %v7559_v50 = vld [vmem:[#allocation22 + $0x628] sm:$0xf]  ;;  %v7251_v19 = vld [vmem:[#allocation22 + $0x3c0] sm:$0xf] }
 0x50e   :  { %8316 = vtanh.f32 %v3269_v54  ;;  %v8240_v53 = vld [vmem:[#allocation22 + $0x640] sm:$0xf0]  ;;  %v8146_v54 = vld [vmem:[#allocation22 + $0x354] sm:$0xf]  ;;  %v8163_v20 = vld [vmem:[#allocation22 + $0x3d8] sm:$0xf0] }
 0x50f   :  { %8318 = vtanh.f32 %v3295_v60  ;;  %v7197_v60 = vld [vmem:[#allocation22 + $0x36c] sm:$0xf0]  ;;  %v7560_v59 = vor.u32 %v8240_v53, %v7559_v50  ;;  %v7252_v29 = vor.u32 %v8163_v20, %v7251_v19  ;;  %v7447_v48 = vld [vmem:[#allocation22 + $0x548] sm:$0xf]  ;;  %v7224_v50 = vor.u32 %v8156_v35, %v7223_v33  ;;  %v8181_v19 = vld [vmem:[#allocation22 + $0x46c] sm:$0xf] }
 0x510   :  { %4836 = vmatpush.bf16.msrb.mxu2 %v6916_v55  ;;  %v6776_v55 = vor.u32 %v8044_v41, %v6775_v37  ;;  %v8062_v37 = vld [vmem:[#allocation22 + $0xb4] sm:$0xf]  ;;  %v6861_v41 = vld [vmem:[#allocation22 + $0xcc] sm:$0xf0]  ;;  %v7337_v20 = vld [vmem:[#allocation22 + $0x484] sm:$0xf0] }
 0x511   :  { %4849 = vmatpush.bf16.msrb.mxu0 %v7140_v56  ;;  %v3257_v34 = vpop.f32.mrf.mxu2  ;;  %v3283_v63 = vpop.f32.mrf.mxu3  ;;  %v7000_v56 = vor.u32 %v8100_v47, %v6999_v44  ;;  %v8118_v44 = vld [vmem:[#allocation22 + $0x274] sm:$0xf]  ;;  %v7421_v47 = vld [vmem:[#allocation22 + $0x52c] sm:$0xf0] }
 0x512   :  { %v7200_v34 = vor.u32 %v8146_v54, %v7197_v60  ;;  %v7531_v63 = vld [vmem:[#allocation22 + $0x5f0] sm:$0xf]  ;;  %v8055_v54 = vld [vmem:[#allocation22 + $0x7c] sm:$0xf]  ;;  %v6833_v60 = vld [vmem:[#allocation22 + $0x94] sm:$0xf0] }
 0x513   :  { %v8150_v26 = vld [vmem:[#allocation22 + $0x370] sm:$0xf0]  ;;  %v7309_v35 = vld [vmem:[#allocation22 + $0x44c] sm:$0xf0] }
 0x514   :  { %v8317_v8 = vpop.eup %8316  ;;  %4837 = vmatpush.bf16.msrb.mxu2 %v6888_v62  ;;  %v6976_v62 = vor.u32 %v8090_v51, %v6973_v52  ;;  %v6864_v51 = vor.u32 %v8062_v37, %v6861_v41  ;;  %v8174_v33 = vld [vmem:[#allocation22 + $0x434] sm:$0xf]  ;;  %v6951_v37 = vld [vmem:[#allocation22 + $0x160] sm:$0xf]  ;;  %v8087_v41 = vld [vmem:[#allocation22 + $0x178] sm:$0xf0] }
 0x515   :  { %v8319_v9 = vpop.eup %8318  ;;  %v8987_v10 = vpack.c.bf16 %v8317_v8, %v8317_v8  ;;  %4850 = vmatpush.bf16.msrb.mxu0 %v7112_v0  ;;  %v8233_v0 = vld [vmem:[#allocation22 + $0x608] sm:$0xf0]  ;;  %v6948_v8 = vor.u32 %v8083_v1, %v6945_v2  ;;  %v8048_v1 = vld [vmem:[#allocation22 + $0x44] sm:$0xf]  ;;  %v6805_v2 = vld [vmem:[#allocation22 + $0x5c] sm:$0xf0] }
 0x516   :  { %v8989_v14 = vpack.c.bf16 %v8319_v9, %v8319_v9  ;;  %v7532_v42 = vor.u32 %v8233_v0, %v7531_v63  ;;  %v7172_v9 = vor.u32 %v8139_v43, %v7169_v3  ;;  %v6836_v63 = vor.u32 %v8055_v54, %v6833_v60  ;;  %v6923_v54 = vld [vmem:[#allocation22 + $0x128] sm:$0xf]  ;;  %v8080_v60 = vld [vmem:[#allocation22 + $0x140] sm:$0xf0] }
 0x517   :  { %4764 = vmatmul.bf16.vlgmr.msra.gmra.mxu3 %v8987_v10  ;;  %4790 = vmatmul.bf16.vlgmr.msra.gmra.mxu2 %v8981_v30  ;;  %v7396_v43 = vor.u32 %v8195_v6, %v7393_v61  ;;  %v8160_v6 = vld [vmem:[#allocation22 + $0x3c4] sm:$0xf]  ;;  %v7253_v61 = vld [vmem:[#allocation22 + $0x3dc] sm:$0xf0] }
 0x518   :  { %4777 = vmatmul.bf16.vlgmr.msra.gmra.mxu1 %v8989_v14  ;;  %4803 = vmatmul.bf16.vlgmr.msra.gmra.mxu0 %v8983_v18 }
 0x519   :  { %4838 = vmatpush.bf16.msrb.mxu2 %v6860_v11  ;;  %4851 = vmatpush.bf16.msrb.mxu0 %v7084_v12  ;;  %v7503_v11 = vld [vmem:[#allocation22 + $0x5b8] sm:$0xf]  ;;  %v8226_v12 = vld [vmem:[#allocation22 + $0x5d0] sm:$0xf0] }
 0x51a   :  { %4860 = vmatpush.bf16.msra.mxu3 %v7420_v15  ;;  %4873 = vmatpush.bf16.msra.mxu1 %v7644_v16  ;;  %v8132_v15 = vld [vmem:[#allocation22 + $0x2e4] sm:$0xf]  ;;  %v7141_v16 = vld [vmem:[#allocation22 + $0x2fc] sm:$0xf0]  ;;  %v7504_v17 = vor.u32 %v8226_v12, %v7503_v11  ;;  %v6808_v11 = vor.u32 %v8048_v1, %v6805_v2  ;;  %v6895_v1 = vld [vmem:[#allocation22 + $0xf0] sm:$0xf] }
 0x51b   :  { %v7144_v22 = vor.u32 %v8132_v15, %v7141_v16  ;;  %v8097_v15 = vld [vmem:[#allocation22 + $0x1cc] sm:$0xf]  ;;  %v7368_v16 = vor.u32 %v8188_v5, %v7365_v7  ;;  %v7225_v7 = vld [vmem:[#allocation22 + $0x3a4] sm:$0xf0] }
 0x51c   :  { %v8073_v2 = vld [vmem:[#allocation22 + $0x108] sm:$0xf0] }
 0x51d   :  { %4839 = vmatpush.bf16.msrb.mxu2 %v6832_v23  ;;  %4852 = vmatpush.bf16.msrb.mxu0 %v7056_v24  ;;  %v7475_v23 = vld [vmem:[#allocation22 + $0x580] sm:$0xf]  ;;  %v8219_v24 = vld [vmem:[#allocation22 + $0x598] sm:$0xf0]  ;;  %v8153_v5 = vld [vmem:[#allocation22 + $0x38c] sm:$0xf] }
 0x51e   :  { %4861 = vmatpush.bf16.msra.mxu3 %v7392_v27  ;;  %4874 = vmatpush.bf16.msra.mxu1 %v7616_v28  ;;  %v8125_v27 = vld [vmem:[#allocation22 + $0x2ac] sm:$0xf]  ;;  %v7113_v28 = vld [vmem:[#allocation22 + $0x2c4] sm:$0xf0]  ;;  %v7476_v32 = vor.u32 %v8219_v24, %v7475_v23  ;;  %v6979_v23 = vld [vmem:[#allocation22 + $0x198] sm:$0xf] }
 0x51f   :  { %v8094_v24 = vld [vmem:[#allocation22 + $0x1b0] sm:$0xf0] }
 0x521   :  { %4840 = vmatpush.bf16.msrb.mxu2 %v6804_v38  ;;  %4853 = vmatpush.bf16.msrb.mxu0 %v7028_v40  ;;  %v7116_v38 = vor.u32 %v8125_v27, %v7113_v28  ;;  %v8212_v40 = vld [vmem:[#allocation22 + $0x560] sm:$0xf0]  ;;  %v6780_v27 = vor.u32 %v8041_v13, %v6777_v39  ;;  %v6867_v13 = vld [vmem:[#allocation22 + $0xb8] sm:$0xf]  ;;  %v8066_v39 = vld [vmem:[#allocation22 + $0xd0] sm:$0xf0] }
 0x522   :  { %4862 = vmatpush.bf16.msra.mxu3 %v7364_v45  ;;  %4875 = vmatpush.bf16.msra.mxu1 %v7588_v46  ;;  %v7085_v45 = vld [vmem:[#allocation22 + $0x28c] sm:$0xf0]  ;;  %v8202_v46 = vld [vmem:[#allocation22 + $0x514] sm:$0xf]  ;;  %v7448_v53 = vor.u32 %v8212_v40, %v7447_v48  ;;  %v6980_v48 = vor.u32 %v8094_v24, %v6979_v23  ;;  %v6868_v23 = vor.u32 %v8066_v39, %v6867_v13  ;;  %v8084_v13 = vld [vmem:[#allocation22 + $0x164] sm:$0xf] }
 0x523   :  { %v7088_v52 = vor.u32 %v8118_v44, %v7085_v45  ;;  %v7533_v40 = vld [vmem:[#allocation22 + $0x60c] sm:$0xf0]  ;;  %v7175_v44 = vld [vmem:[#allocation22 + $0x320] sm:$0xf]  ;;  %v8143_v45 = vld [vmem:[#allocation22 + $0x338] sm:$0xf0] }
 0x524   :  { %v6953_v39 = vld [vmem:[#allocation22 + $0x17c] sm:$0xf0] }
 0x525   :  { %4841 = vmatpush.bf16.msrb.mxu2 %v6776_v55  ;;  %4854 = vmatpush.bf16.msrb.mxu0 %v7000_v56  ;;  %v7424_v55 = vor.u32 %v8202_v46, %v7421_v47  ;;  %v7648_v56 = vor.u32 %v8258_v31, %v7645_v49  ;;  %v7312_v46 = vor.u32 %v8174_v33, %v7309_v35  ;;  %v8167_v31 = vld [vmem:[#allocation22 + $0x3fc] sm:$0xf]  ;;  %v7281_v49 = vld [vmem:[#allocation22 + $0x414] sm:$0xf0]  ;;  %v7399_v33 = vld [vmem:[#allocation22 + $0x4e0] sm:$0xf] }
 0x526   :  { %4863 = vmatpush.bf16.msra.mxu3 %v7336_v58  ;;  %4876 = vmatpush.bf16.msra.mxu1 %v7560_v59  ;;  %v8111_v58 = vld [vmem:[#allocation22 + $0x23c] sm:$0xf]  ;;  %v7057_v59 = vld [vmem:[#allocation22 + $0x254] sm:$0xf0] }
 0x527   :  { %4816 = vmatmul.bf16.vlgmr.msrb.gmra.mxu3 %v8987_v10  ;;  %v7060_v0 = vor.u32 %v8111_v58, %v7057_v59  ;;  %v7284_v58 = vor.u32 %v8167_v31, %v7281_v49  ;;  %v8199_v35 = vld [vmem:[#allocation22 + $0x4f8] sm:$0xf0]  ;;  %v7371_v31 = vld [vmem:[#allocation22 + $0x4a8] sm:$0xf]  ;;  %v8192_v49 = vld [vmem:[#allocation22 + $0x4c0] sm:$0xf0] }
 0x528   :  { %4829 = vmatmul.bf16.vlgmr.msrb.gmra.mxu1 %v8989_v14  ;;  %4842 = vmatmul.bf16.vlgmr.msrb.gmra.mxu2 %v8981_v30 }
 0x529   :  { %4886 = vmatpush.bf16.msra.mxu2 %v6976_v62  ;;  %4899 = vmatpush.bf16.msra.mxu0 %v7200_v34  ;;  %v8251_v62 = vld [vmem:[#allocation22 + $0x69c] sm:$0xf]  ;;  %v7617_v34 = vld [vmem:[#allocation22 + $0x6b4] sm:$0xf0] }
 0x52a   :  { %4855 = vmatmul.bf16.vlgmr.msrb.gmra.mxu0 %v8983_v18  ;;  %4864 = vmatpush.bf16.msra.mxu3 %v7308_v4  ;;  %v7620_v3 = vor.u32 %v8251_v62, %v7617_v34  ;;  %v8104_v4 = vld [vmem:[#allocation22 + $0x204] sm:$0xf]  ;;  %v6924_v62 = vor.u32 %v8080_v60, %v6923_v54  ;;  %v6783_v54 = vld [vmem:[#allocation22 + $0x10] sm:$0xf]  ;;  %v8045_v60 = vld [vmem:[#allocation22 + $0x28] sm:$0xf0] }
 0x52b   :  { %4877 = vmatpush.bf16.msra.mxu1 %v7532_v42  ;;  %v7029_v42 = vld [vmem:[#allocation22 + $0x21c] sm:$0xf0] }
 0x52c   :  { %v7032_v12 = vor.u32 %v8104_v4, %v7029_v42  ;;  %v7256_v4 = vor.u32 %v8160_v6, %v7253_v61  ;;  %v7343_v6 = vld [vmem:[#allocation22 + $0x470] sm:$0xf]  ;;  %v8185_v61 = vld [vmem:[#allocation22 + $0x488] sm:$0xf0] }
 0x52d   :  { %4887 = vmatpush.bf16.msra.mxu2 %v6948_v8  ;;  %4900 = vmatpush.bf16.msra.mxu0 %v7172_v9  ;;  %v8244_v8 = vld [vmem:[#allocation22 + $0x664] sm:$0xf]  ;;  %v7589_v9 = vld [vmem:[#allocation22 + $0x67c] sm:$0xf0] }
 0x52e   :  { %4865 = vmatpush.bf16.msra.mxu3 %v7280_v57  ;;  %v7592_v57 = vor.u32 %v8244_v8, %v7589_v9  ;;  %v8209_v8 = vld [vmem:[#allocation22 + $0x54c] sm:$0xf]  ;;  %v6896_v9 = vor.u32 %v8073_v2, %v6895_v1  ;;  %v8147_v1 = vld [vmem:[#allocation22 + $0x35c] sm:$0xf]  ;;  %v7205_v2 = vld [vmem:[#allocation22 + $0x374] sm:$0xf0] }
 0x52f   :  { %4878 = vmatpush.bf16.msra.mxu1 %v7504_v17  ;;  %v7001_v17 = vld [vmem:[#allocation22 + $0x1e4] sm:$0xf0] }
 0x530   :  { %v7004_v28 = vor.u32 %v8097_v15, %v7001_v17  ;;  %v7091_v15 = vld [vmem:[#allocation22 + $0x278] sm:$0xf]  ;;  %v8206_v17 = vld [vmem:[#allocation22 + $0x530] sm:$0xf0] }
 0x531   :  { %4888 = vmatpush.bf16.msra.mxu2 %v6920_v21  ;;  %4901 = vmatpush.bf16.msra.mxu0 %v7144_v22  ;;  %v8237_v21 = vld [vmem:[#allocation22 + $0x62c] sm:$0xf]  ;;  %v7561_v22 = vld [vmem:[#allocation22 + $0x644] sm:$0xf0] }
 0x532   :  { %4866 = vmatpush.bf16.msra.mxu3 %v7252_v29  ;;  %v7340_v29 = vor.u32 %v8181_v19, %v7337_v20  ;;  %v7651_v19 = vld [vmem:[#allocation22 + $0x6d8] sm:$0xf]  ;;  %v8262_v20 = vld [vmem:[#allocation22 + $0x6f0] sm:$0xf0] }
 0x533   :  { %4879 = vmatpush.bf16.msra.mxu1 %v7476_v32  ;;  %v7564_v32 = vor.u32 %v8237_v21, %v7561_v22  ;;  %v7228_v21 = vor.u32 %v8153_v5, %v7225_v7  ;;  %v7315_v5 = vld [vmem:[#allocation22 + $0x438] sm:$0xf]  ;;  %v8178_v7 = vld [vmem:[#allocation22 + $0x450] sm:$0xf0] }
 0x535   :  { %4889 = vmatpush.bf16.msra.mxu2 %v6892_v36  ;;  %4902 = vmatpush.bf16.msra.mxu0 %v7116_v38  ;;  %v7204_v36 = vor.u32 %v8150_v26, %v7203_v25  ;;  %v8230_v38 = vld [vmem:[#allocation22 + $0x5f4] sm:$0xf]  ;;  %v6839_v25 = vld [vmem:[#allocation22 + $0x80] sm:$0xf]  ;;  %v8059_v26 = vld [vmem:[#allocation22 + $0x98] sm:$0xf0] }
 0x536   :  { %4867 = vmatpush.bf16.msra.mxu3 %v7224_v50  ;;  %v7536_v47 = vor.u32 %v8230_v38, %v7533_v40  ;;  %v6952_v50 = vor.u32 %v8087_v41, %v6951_v37  ;;  %v6840_v38 = vor.u32 %v8059_v26, %v6839_v25  ;;  %v6811_v37 = vld [vmem:[#allocation22 + $0x48] sm:$0xf]  ;;  %v8052_v41 = vld [vmem:[#allocation22 + $0x60] sm:$0xf0]  ;;  %v8077_v25 = vld [vmem:[#allocation22 + $0x12c] sm:$0xf] }
 0x537   :  { %4880 = vmatpush.bf16.msra.mxu1 %v7448_v53  ;;  %v7176_v53 = vor.u32 %v8143_v45, %v7175_v44  ;;  %v7400_v44 = vor.u32 %v8199_v35, %v7399_v33  ;;  %v6925_v26 = vld [vmem:[#allocation22 + $0x144] sm:$0xf0]  ;;  %v8164_v35 = vld [vmem:[#allocation22 + $0x3e0] sm:$0xf0] }
 0x538   :  { %v7259_v33 = vld [vmem:[#allocation22 + $0x3c8] sm:$0xf] }
 0x539   :  { %4890 = vmatpush.bf16.msra.mxu2 %v6864_v51  ;;  %4903 = vmatpush.bf16.msra.mxu0 %v7088_v52  ;;  %v8223_v51 = vld [vmem:[#allocation22 + $0x5bc] sm:$0xf]  ;;  %v7505_v52 = vld [vmem:[#allocation22 + $0x5d4] sm:$0xf0] }
 0x53a   :  { %4912 = vmatpush.bf16.msrb.mxu3 %v7424_v55  ;;  %4881 = vmatmul.bf16.vlgmr.msra.gmra.mxu1 %v8989_v14  ;;  %v7147_v55 = vld [vmem:[#allocation22 + $0x2e8] sm:$0xf]  ;;  %v7508_v59 = vor.u32 %v8223_v51, %v7505_v52  ;;  %v6812_v51 = vor.u32 %v8052_v41, %v6811_v37  ;;  %v8070_v37 = vld [vmem:[#allocation22 + $0xf4] sm:$0xf]  ;;  %v6897_v41 = vld [vmem:[#allocation22 + $0x10c] sm:$0xf0] }
 0x53b   :  { %4925 = vmatpush.bf16.msrb.mxu1 %v7648_v56  ;;  %4868 = vmatmul.bf16.vlgmr.msra.gmra.mxu3 %v8987_v10  ;;  %v8136_v56 = vld [vmem:[#allocation22 + $0x300] sm:$0xf0] }
 0x53c   :  { %v7148_v34 = vor.u32 %v8136_v56, %v7147_v55  ;;  %v7007_v55 = vld [vmem:[#allocation22 + $0x1d0] sm:$0xf]  ;;  %v7372_v56 = vor.u32 %v8192_v49, %v7371_v31  ;;  %v8157_v49 = vld [vmem:[#allocation22 + $0x3a8] sm:$0xf0] }
 0x53d   :  { %4891 = vmatpush.bf16.msra.mxu2 %v6836_v63  ;;  %4904 = vmatpush.bf16.msra.mxu0 %v7060_v0  ;;  %v8216_v63 = vld [vmem:[#allocation22 + $0x584] sm:$0xf]  ;;  %v7477_v0 = vld [vmem:[#allocation22 + $0x59c] sm:$0xf0]  ;;  %v7231_v31 = vld [vmem:[#allocation22 + $0x390] sm:$0xf] }
 0x53e   :  { %4913 = vmatpush.bf16.msrb.mxu3 %v7396_v43  ;;  %v7119_v43 = vld [vmem:[#allocation22 + $0x2b0] sm:$0xf]  ;;  %v7480_v42 = vor.u32 %v8216_v63, %v7477_v0  ;;  %v8091_v63 = vld [vmem:[#allocation22 + $0x19c] sm:$0xf]  ;;  %v6981_v0 = vld [vmem:[#allocation22 + $0x1b4] sm:$0xf0] }
 0x53f   :  { %4926 = vmatpush.bf16.msrb.mxu1 %v7620_v3  ;;  %v8129_v3 = vld [vmem:[#allocation22 + $0x2c8] sm:$0xf0] }
 0x541   :  { %4892 = vmatpush.bf16.msra.mxu2 %v6808_v11  ;;  %4905 = vmatpush.bf16.msra.mxu0 %v7032_v12  ;;  %v7120_v11 = vor.u32 %v8129_v3, %v7119_v43  ;;  %v7449_v12 = vld [vmem:[#allocation22 + $0x564] sm:$0xf0]  ;;  %v6784_v43 = vor.u32 %v8045_v60, %v6783_v54  ;;  %v8063_v54 = vld [vmem:[#allocation22 + $0xbc] sm:$0xf]  ;;  %v6869_v60 = vld [vmem:[#allocation22 + $0xd4] sm:$0xf0] }
 0x542   :  { %4914 = vmatpush.bf16.msrb.mxu3 %v7368_v16  ;;  %v8122_v16 = vld [vmem:[#allocation22 + $0x290] sm:$0xf0]  ;;  %v7452_v22 = vor.u32 %v8209_v8, %v7449_v12  ;;  %v6984_v8 = vor.u32 %v8091_v63, %v6981_v0  ;;  %v6872_v63 = vor.u32 %v8063_v54, %v6869_v60  ;;  %v6959_v54 = vld [vmem:[#allocation22 + $0x168] sm:$0xf]  ;;  %v8088_v60 = vld [vmem:[#allocation22 + $0x180] sm:$0xf0] }
 0x543   :  { %4927 = vmatpush.bf16.msrb.mxu1 %v7592_v57  ;;  %v7427_v57 = vld [vmem:[#allocation22 + $0x518] sm:$0xf]  ;;  %v7092_v24 = vor.u32 %v8122_v16, %v7091_v15  ;;  %v8234_v12 = vld [vmem:[#allocation22 + $0x610] sm:$0xf0]  ;;  %v8140_v15 = vld [vmem:[#allocation22 + $0x324] sm:$0xf] }
 0x544   :  { %v7177_v16 = vld [vmem:[#allocation22 + $0x33c] sm:$0xf0] }
 0x545   :  { %4893 = vmatpush.bf16.msra.mxu2 %v6780_v27  ;;  %4906 = vmatpush.bf16.msra.mxu0 %v7004_v28  ;;  %v7428_v27 = vor.u32 %v8206_v17, %v7427_v57  ;;  %v7652_v28 = vor.u32 %v8262_v20, %v7651_v19  ;;  %v7316_v57 = vor.u32 %v8178_v7, %v7315_v5  ;;  %v7287_v19 = vld [vmem:[#allocation22 + $0x400] sm:$0xf]  ;;  %v8171_v20 = vld [vmem:[#allocation22 + $0x418] sm:$0xf0]  ;;  %v8196_v5 = vld [vmem:[#allocation22 + $0x4e4] sm:$0xf] }
 0x546   :  { %4915 = vmatpush.bf16.msrb.mxu3 %v7340_v29  ;;  %v7063_v29 = vld [vmem:[#allocation22 + $0x240] sm:$0xf] }
 0x547   :  { %4928 = vmatpush.bf16.msrb.mxu1 %v7564_v32  ;;  %v8115_v32 = vld [vmem:[#allocation22 + $0x258] sm:$0xf0]  ;;  %v7401_v7 = vld [vmem:[#allocation22 + $0x4fc] sm:$0xf0] }
 0x548   :  { %4894 = vmatmul.bf16.vlgmr.msra.gmra.mxu2 %v8981_v30  ;;  %4907 = vmatmul.bf16.vlgmr.msra.gmra.mxu0 %v8983_v18  ;;  %v7064_v40 = vor.u32 %v8115_v32, %v7063_v29  ;;  %v7288_v29 = vor.u32 %v8171_v20, %v7287_v19  ;;  %v8189_v19 = vld [vmem:[#allocation22 + $0x4ac] sm:$0xf]  ;;  %v7373_v20 = vld [vmem:[#allocation22 + $0x4c4] sm:$0xf0] }
 0x549   :  { %4938 = vmatpush.bf16.msrb.mxu2 %v6980_v48  ;;  %4951 = vmatpush.bf16.msrb.mxu0 %v7204_v36  ;;  %v7623_v48 = vld [vmem:[#allocation22 + $0x6a0] sm:$0xf]  ;;  %v8255_v36 = vld [vmem:[#allocation22 + $0x6b8] sm:$0xf0] }
 0x54a   :  { %4916 = vmatpush.bf16.msrb.mxu3 %v7312_v46  ;;  %v7624_v45 = vor.u32 %v8255_v36, %v7623_v48  ;;  %v7035_v46 = vld [vmem:[#allocation22 + $0x208] sm:$0xf]  ;;  %v6928_v48 = vor.u32 %v8077_v25, %v6925_v26  ;;  %v8042_v25 = vld [vmem:[#allocation22 + $0x14] sm:$0xf]  ;;  %v6785_v26 = vld [vmem:[#allocation22 + $0x2c] sm:$0xf0] }
 0x54b   :  { %4929 = vmatpush.bf16.msrb.mxu1 %v7536_v47  ;;  %v8108_v47 = vld [vmem:[#allocation22 + $0x220] sm:$0xf0] }
 0x54c   :  { %v7036_v52 = vor.u32 %v8108_v47, %v7035_v46  ;;  %v7260_v46 = vor.u32 %v8164_v35, %v7259_v33  ;;  %v8182_v33 = vld [vmem:[#allocation22 + $0x474] sm:$0xf]  ;;  %v7345_v35 = vld [vmem:[#allocation22 + $0x48c] sm:$0xf0] }
 0x54d   :  { %4939 = vmatpush.bf16.msrb.mxu2 %v6952_v50  ;;  %4952 = vmatpush.bf16.msrb.mxu0 %v7176_v53  ;;  %v7595_v50 = vld [vmem:[#allocation22 + $0x668] sm:$0xf]  ;;  %v8248_v53 = vld [vmem:[#allocation22 + $0x680] sm:$0xf0] }
 0x54e   :  { %4917 = vmatpush.bf16.msrb.mxu3 %v7284_v58  ;;  %v7596_v58 = vor.u32 %v8248_v53, %v7595_v50  ;;  %v7455_v50 = vld [vmem:[#allocation22 + $0x550] sm:$0xf]  ;;  %v6900_v53 = vor.u32 %v8070_v37, %v6897_v41  ;;  %v7211_v37 = vld [vmem:[#allocation22 + $0x360] sm:$0xf]  ;;  %v8151_v41 = vld [vmem:[#allocation22 + $0x378] sm:$0xf0] }
 0x54f   :  { %4930 = vmatpush.bf16.msrb.mxu1 %v7508_v59  ;;  %v8101_v59 = vld [vmem:[#allocation22 + $0x1e8] sm:$0xf0] }
 0x550   :  { %v7008_v3 = vor.u32 %v8101_v59, %v7007_v55  ;;  %v8119_v55 = vld [vmem:[#allocation22 + $0x27c] sm:$0xf]  ;;  %v7429_v59 = vld [vmem:[#allocation22 + $0x534] sm:$0xf0] }
 0x551   :  { %4940 = vmatpush.bf16.msrb.mxu2 %v6924_v62  ;;  %4953 = vmatpush.bf16.msrb.mxu0 %v7148_v34  ;;  %v7567_v62 = vld [vmem:[#allocation22 + $0x630] sm:$0xf]  ;;  %v8241_v34 = vld [vmem:[#allocation22 + $0x648] sm:$0xf0] }
 0x552   :  { %4918 = vmatpush.bf16.msrb.mxu3 %v7256_v4  ;;  %v7344_v4 = vor.u32 %v8185_v61, %v7343_v6  ;;  %v8259_v6 = vld [vmem:[#allocation22 + $0x6dc] sm:$0xf]  ;;  %v7653_v61 = vld [vmem:[#allocation22 + $0x6f4] sm:$0xf0] }
 0x553   :  { %4931 = vmatpush.bf16.msrb.mxu1 %v7480_v42  ;;  %v7568_v42 = vor.u32 %v8241_v34, %v7567_v62  ;;  %v7232_v62 = vor.u32 %v8157_v49, %v7231_v31  ;;  %v8175_v31 = vld [vmem:[#allocation22 + $0x43c] sm:$0xf]  ;;  %v7317_v49 = vld [vmem:[#allocation22 + $0x454] sm:$0xf0] }
 0x555   :  { %4941 = vmatpush.bf16.msrb.mxu2 %v6896_v9  ;;  %4954 = vmatpush.bf16.msrb.mxu0 %v7120_v11  ;;  %v7208_v9 = vor.u32 %v8147_v1, %v7205_v2  ;;  %v7539_v11 = vld [vmem:[#allocation22 + $0x5f8] sm:$0xf]  ;;  %v8056_v1 = vld [vmem:[#allocation22 + $0x84] sm:$0xf]  ;;  %v6841_v2 = vld [vmem:[#allocation22 + $0x9c] sm:$0xf0] }
 0x556   :  { %4919 = vmatpush.bf16.msrb.mxu3 %v7228_v21  ;;  %v7540_v17 = vor.u32 %v8234_v12, %v7539_v11  ;;  %v6956_v21 = vor.u32 %v8084_v13, %v6953_v39  ;;  %v6844_v11 = vor.u32 %v8056_v1, %v6841_v2  ;;  %v8049_v13 = vld [vmem:[#allocation22 + $0x4c] sm:$0xf]  ;;  %v6813_v39 = vld [vmem:[#allocation22 + $0x64] sm:$0xf0]  ;;  %v6931_v1 = vld [vmem:[#allocation22 + $0x130] sm:$0xf] }
 0x557   :  { %4932 = vmatpush.bf16.msrb.mxu1 %v7452_v22  ;;  %v7180_v22 = vor.u32 %v8140_v15, %v7177_v16  ;;  %v7404_v15 = vor.u32 %v8196_v5, %v7401_v7  ;;  %v8081_v2 = vld [vmem:[#allocation22 + $0x148] sm:$0xf0]  ;;  %v7261_v7 = vld [vmem:[#allocation22 + $0x3e4] sm:$0xf0] }
 0x558   :  { %v8161_v5 = vld [vmem:[#allocation22 + $0x3cc] sm:$0xf] }
 0x559   :  { %4942 = vmatpush.bf16.msrb.mxu2 %v6868_v23  ;;  %4955 = vmatpush.bf16.msrb.mxu0 %v7092_v24  ;;  %v7511_v23 = vld [vmem:[#allocation22 + $0x5c0] sm:$0xf]  ;;  %v8227_v24 = vld [vmem:[#allocation22 + $0x5d8] sm:$0xf0] }
 0x55a   :  { %4964 = vmatpush.bf16.msra.mxu3 %v7428_v27  ;;  %4933 = vmatmul.bf16.vlgmr.msrb.gmra.mxu1 %v8989_v14  ;;  %v8133_v27 = vld [vmem:[#allocation22 + $0x2ec] sm:$0xf]  ;;  %v7512_v32 = vor.u32 %v8227_v24, %v7511_v23  ;;  %v6816_v23 = vor.u32 %v8049_v13, %v6813_v39  ;;  %v7485_v13 = vld [vmem:[#allocation22 + $0x5a4] sm:$0xf0]  ;;  %v6903_v39 = vld [vmem:[#allocation22 + $0xf8] sm:$0xf] }
 0x55b   :  { %4977 = vmatpush.bf16.msra.mxu1 %v7652_v28  ;;  %4920 = vmatmul.bf16.vlgmr.msrb.gmra.mxu3 %v8987_v10  ;;  %v7149_v28 = vld [vmem:[#allocation22 + $0x304] sm:$0xf0] }
 0x55c   :  { %v7152_v36 = vor.u32 %v8133_v27, %v7149_v28  ;;  %v8098_v27 = vld [vmem:[#allocation22 + $0x1d4] sm:$0xf]  ;;  %v7376_v28 = vor.u32 %v8189_v19, %v7373_v20 }
 0x55d   :  { %4943 = vmatpush.bf16.msrb.mxu2 %v6840_v38  ;;  %4956 = vmatpush.bf16.msrb.mxu0 %v7064_v40  ;;  %v7483_v38 = vld [vmem:[#allocation22 + $0x588] sm:$0xf]  ;;  %v8220_v40 = vld [vmem:[#allocation22 + $0x5a0] sm:$0xf0]  ;;  %v8154_v20 = vld [vmem:[#allocation22 + $0x394] sm:$0xf] }
 0x55e   :  { %4965 = vmatpush.bf16.msra.mxu3 %v7400_v44  ;;  %v8126_v44 = vld [vmem:[#allocation22 + $0x2b4] sm:$0xf]  ;;  %v7484_v47 = vor.u32 %v8220_v40, %v7483_v38  ;;  %v6987_v38 = vld [vmem:[#allocation22 + $0x1a0] sm:$0xf]  ;;  %v8095_v40 = vld [vmem:[#allocation22 + $0x1b8] sm:$0xf0] }
 0x55f   :  { %4978 = vmatpush.bf16.msra.mxu1 %v7624_v45  ;;  %v7121_v45 = vld [vmem:[#allocation22 + $0x2cc] sm:$0xf0] }
 0x561   :  { %4944 = vmatpush.bf16.msrb.mxu2 %v6812_v51  ;;  %4957 = vmatpush.bf16.msrb.mxu0 %v7036_v52  ;;  %v7124_v51 = vor.u32 %v8126_v44, %v7121_v45  ;;  %v8213_v52 = vld [vmem:[#allocation22 + $0x568] sm:$0xf0]  ;;  %v6788_v44 = vor.u32 %v8042_v25, %v6785_v26  ;;  %v7457_v25 = vld [vmem:[#allocation22 + $0x56c] sm:$0xf0]  ;;  %v6875_v26 = vld [vmem:[#allocation22 + $0xc0] sm:$0xf] }
 0x562   :  { %4966 = vmatpush.bf16.msra.mxu3 %v7372_v56  ;;  %v7093_v56 = vld [vmem:[#allocation22 + $0x294] sm:$0xf0]  ;;  %v7456_v34 = vor.u32 %v8213_v52, %v7455_v50  ;;  %v6988_v50 = vor.u32 %v8095_v40, %v6987_v38 }
 0x563   :  { %4979 = vmatpush.bf16.msra.mxu1 %v7596_v58  ;;  %v8203_v58 = vld [vmem:[#allocation22 + $0x51c] sm:$0xf]  ;;  %v7096_v0 = vor.u32 %v8119_v55, %v7093_v56  ;;  %v7541_v52 = vld [vmem:[#allocation22 + $0x614] sm:$0xf0]  ;;  %v7183_v55 = vld [vmem:[#allocation22 + $0x328] sm:$0xf] }
 0x564   :  { %v8144_v56 = vld [vmem:[#allocation22 + $0x340] sm:$0xf0] }
 0x565   :  { %4945 = vmatpush.bf16.msrb.mxu2 %v6784_v43  ;;  %4958 = vmatpush.bf16.msrb.mxu0 %v7008_v3  ;;  %v7432_v43 = vor.u32 %v8203_v58, %v7429_v59  ;;  %v7656_v3 = vor.u32 %v8259_v6, %v7653_v61  ;;  %v7320_v58 = vor.u32 %v8175_v31, %v7317_v49  ;;  %v8168_v6 = vld [vmem:[#allocation22 + $0x404] sm:$0xf]  ;;  %v7289_v61 = vld [vmem:[#allocation22 + $0x41c] sm:$0xf0] }
 0x566   :  { %4967 = vmatpush.bf16.msra.mxu3 %v7344_v4  ;;  %v8112_v4 = vld [vmem:[#allocation22 + $0x244] sm:$0xf] }
 0x567   :  { %4980 = vmatpush.bf16.msra.mxu1 %v7568_v42  ;;  %v7065_v42 = vld [vmem:[#allocation22 + $0x25c] sm:$0xf0] }
 0x568   :  { %4946 = vmatmul.bf16.vlgmr.msrb.gmra.mxu2 %v8981_v30  ;;  %4959 = vmatmul.bf16.vlgmr.msrb.gmra.mxu0 %v8983_v18  ;;  %v7068_v12 = vor.u32 %v8112_v4, %v7065_v42  ;;  %v7292_v4 = vor.u32 %v8168_v6, %v7289_v61  ;;  %v8053_v6 = vld [vmem:[#allocation22 + $0x68] sm:$0xf0] }
 0x569   :  { %4990 = vmatpush.bf16.msra.mxu2 %v6984_v8  ;;  %5003 = vmatpush.bf16.msra.mxu0 %v7208_v9  ;;  %v8252_v8 = vld [vmem:[#allocation22 + $0x6a4] sm:$0xf]  ;;  %v7625_v9 = vld [vmem:[#allocation22 + $0x6bc] sm:$0xf0] }
 0x56a   :  { %4968 = vmatpush.bf16.msra.mxu3 %v7316_v57  ;;  %v7628_v16 = vor.u32 %v8252_v8, %v7625_v9  ;;  %v8105_v57 = vld [vmem:[#allocation22 + $0x20c] sm:$0xf]  ;;  %v6932_v8 = vor.u32 %v8081_v2, %v6931_v1  ;;  %v7379_v1 = vld [vmem:[#allocation22 + $0x4b0] sm:$0xf] }
 0x56b   :  { %4981 = vmatpush.bf16.msra.mxu1 %v7540_v17  ;;  %v7037_v17 = vld [vmem:[#allocation22 + $0x224] sm:$0xf0]  ;;  %v8193_v2 = vld [vmem:[#allocation22 + $0x4c8] sm:$0xf0] }
 0x56c   :  { %v7040_v24 = vor.u32 %v8105_v57, %v7037_v17  ;;  %v8130_v57 = vld [vmem:[#allocation22 + $0x2d0] sm:$0xf0]  ;;  %v7264_v17 = vor.u32 %v8161_v5, %v7261_v7 }
 0x56d   :  { %4991 = vmatpush.bf16.msra.mxu2 %v6956_v21  ;;  %5004 = vmatpush.bf16.msra.mxu0 %v7180_v22  ;;  %v8245_v21 = vld [vmem:[#allocation22 + $0x66c] sm:$0xf]  ;;  %v7597_v22 = vld [vmem:[#allocation22 + $0x684] sm:$0xf0] }
 0x56e   :  { %4969 = vmatpush.bf16.msra.mxu3 %v7288_v29  ;;  %v7600_v29 = vor.u32 %v8245_v21, %v7597_v22  ;;  %v7233_v21 = vld [vmem:[#allocation22 + $0x3ac] sm:$0xf0]  ;;  %v8210_v22 = vld [vmem:[#allocation22 + $0x554] sm:$0xf] }
 0x56f   :  { %4982 = vmatpush.bf16.msra.mxu1 %v7512_v32  ;;  %v7009_v32 = vld [vmem:[#allocation22 + $0x1ec] sm:$0xf0]  ;;  %v7236_v38 = vor.u32 %v8154_v20, %v7233_v21  ;;  %v7460_v40 = vor.u32 %v8210_v22, %v7457_v25  ;;  %v8242_v20 = vld [vmem:[#allocation22 + $0x650] sm:$0xf0] }
 0x570   :  { %v7012_v45 = vor.u32 %v8098_v27, %v7009_v32  ;;  %v8067_v27 = vld [vmem:[#allocation22 + $0xd8] sm:$0xf0] }
 0x571   :  { %4992 = vmatpush.bf16.msra.mxu2 %v6928_v48  ;;  %5005 = vmatpush.bf16.msra.mxu0 %v7152_v36  ;;  %v8238_v48 = vld [vmem:[#allocation22 + $0x634] sm:$0xf]  ;;  %v7569_v36 = vld [vmem:[#allocation22 + $0x64c] sm:$0xf0]  ;;  %v8123_v32 = vld [vmem:[#allocation22 + $0x298] sm:$0xf0] }
 0x572   :  { %4970 = vmatpush.bf16.msra.mxu3 %v7260_v46  ;;  %v7348_v46 = vor.u32 %v8182_v33, %v7345_v35  ;;  %v7435_v33 = vld [vmem:[#allocation22 + $0x520] sm:$0xf]  ;;  %v8207_v35 = vld [vmem:[#allocation22 + $0x538] sm:$0xf0] }
 0x573   :  { %4983 = vmatpush.bf16.msra.mxu1 %v7484_v47  ;;  %v7572_v47 = vor.u32 %v8238_v48, %v7569_v36  ;;  %v7659_v48 = vld [vmem:[#allocation22 + $0x6e0] sm:$0xf]  ;;  %v8263_v36 = vld [vmem:[#allocation22 + $0x6f8] sm:$0xf0]  ;;  %v7436_v31 = vor.u32 %v8207_v35, %v7435_v33 }
 0x574   :  { %v7660_v49 = vor.u32 %v8263_v36, %v7659_v48  ;;  %v7547_v33 = vld [vmem:[#allocation22 + $0x600] sm:$0xf]  ;;  %v8235_v35 = vld [vmem:[#allocation22 + $0x618] sm:$0xf0] }
 0x575   :  { %4993 = vmatpush.bf16.msra.mxu2 %v6900_v53  ;;  %5006 = vmatpush.bf16.msra.mxu0 %v7124_v51  ;;  %v7212_v53 = vor.u32 %v8151_v41, %v7211_v37  ;;  %v8231_v51 = vld [vmem:[#allocation22 + $0x5fc] sm:$0xf]  ;;  %v6876_v41 = vor.u32 %v8067_v27, %v6875_v26 }
 0x576   :  { %4971 = vmatpush.bf16.msra.mxu3 %v7232_v62  ;;  %v7544_v59 = vor.u32 %v8231_v51, %v7541_v52  ;;  %v6960_v62 = vor.u32 %v8088_v60, %v6959_v54  ;;  %v9016_v37 = vld [vmem:[%s9057_s16] sm:$0xff]  ;;  %v7407_v51 = vld [vmem:[#allocation22 + $0x4e8] sm:$0xf]  ;;  %v8200_v52 = vld [vmem:[#allocation22 + $0x500] sm:$0xf0]  ;;  %s8747_s16 = smov [#allocation23]  }
 0x577   :  { %4984 = vmatpush.bf16.msra.mxu1 %v7456_v34  ;;  %v7184_v34 = vor.u32 %v8144_v56, %v7183_v55  ;;  %v7631_v54 = vld [vmem:[#allocation22 + $0x6a8] sm:$0xf]  ;;  %v8256_v60 = vld [vmem:[#allocation22 + $0x6c0] sm:$0xf0]  ;;  %v3564_v55 = vperm.slane %v9016_v37, 0  ;;  %v7408_v61 = vor.u32 %v8200_v52, %v7407_v51  ;;  %s5239_s0 = sshll.u32 %s8747_s16, 4  ;;  %s5240_s0 = int_to_ptr.vmem [resolvable:$true] %s5239_s0 }
 0x578   :  { %v7267_v52 = vld [vmem:[#allocation22 + $0x3d0] sm:$0xf]  ;;  %5244 = dma.vmem_to_hbm [thread:$0]  %s5240_s0, 128, %s5242_s11, [#allocation4]  }
 0x579   :  { %4994 = vmatpush.bf16.msra.mxu2 %v6872_v63  ;;  %5007 = vmatpush.bf16.msra.mxu0 %v7096_v0  ;;  %v8224_v63 = vld [vmem:[#allocation22 + $0x5c4] sm:$0xf]  ;;  %v7513_v0 = vld [vmem:[#allocation22 + $0x5dc] sm:$0xf0] }
 0x57a   :  { %5016 = vmatpush.bf16.msrb.mxu3 %v7432_v43  ;;  %4985 = vmatmul.bf16.vlgmr.msra.gmra.mxu1 %v8989_v14  ;;  %v7155_v43 = vld [vmem:[#allocation22 + $0x2f0] sm:$0xf]  ;;  %v7516_v42 = vor.u32 %v8224_v63, %v7513_v0  ;;  %v8109_v0 = vld [vmem:[#allocation22 + $0x228] sm:$0xf0] }
 0x57b   :  { %5029 = vmatpush.bf16.msrb.mxu1 %v7656_v3  ;;  %4972 = vmatmul.bf16.vlgmr.msra.gmra.mxu3 %v8987_v10  ;;  %v8137_v3 = vld [vmem:[#allocation22 + $0x308] sm:$0xf0]  ;;  %v7043_v63 = vld [vmem:[#allocation22 + $0x210] sm:$0xf] }
 0x57c   :  { %v7156_v9 = vor.u32 %v8137_v3, %v7155_v43  ;;  %v7603_v43 = vld [vmem:[#allocation22 + $0x670] sm:$0xf]  ;;  %v8249_v3 = vld [vmem:[#allocation22 + $0x688] sm:$0xf0]  ;;  %v7044_v5 = vor.u32 %v8109_v0, %v7043_v63  ;;  %v8214_v63 = vld [vmem:[#allocation22 + $0x570] sm:$0xf0] }
 0x57d   :  { %4995 = vmatpush.bf16.msra.mxu2 %v6844_v11  ;;  %5008 = vmatpush.bf16.msra.mxu0 %v7068_v12  ;;  %v8217_v12 = vld [vmem:[#allocation22 + $0x58c] sm:$0xf] }
 0x57e   :  { %5017 = vmatpush.bf16.msrb.mxu3 %v7404_v15  ;;  %v8074_v15 = vld [vmem:[#allocation22 + $0x110] sm:$0xf0]  ;;  %v7488_v19 = vor.u32 %v8217_v12, %v7485_v13  ;;  %v7380_v13 = vor.u32 %v8193_v2, %v7379_v1 }
 0x57f   :  { %5030 = vmatpush.bf16.msrb.mxu1 %v7628_v16  ;;  %v7127_v16 = vld [vmem:[#allocation22 + $0x2b8] sm:$0xf]  ;;  %v8046_v12 = vld [vmem:[#allocation22 + $0x30] sm:$0xf0] }
 0x581   :  { %4996 = vmatpush.bf16.msra.mxu2 %v6816_v23  ;;  %5009 = vmatpush.bf16.msra.mxu0 %v7040_v24  ;;  %v6904_v23 = vor.u32 %v8074_v15, %v6903_v39  ;;  %v7128_v24 = vor.u32 %v8130_v57, %v7127_v16  ;;  %v7604_v39 = vor.u32 %v8249_v3, %v7603_v43  ;;  %v7015_v15 = vld [vmem:[#allocation22 + $0x1d8] sm:$0xf]  ;;  %v8102_v16 = vld [vmem:[#allocation22 + $0x1f0] sm:$0xf0] }
 0x582   :  { %5018 = vmatpush.bf16.msrb.mxu3 %v7376_v28  ;;  %v7351_v57 = vld [vmem:[#allocation22 + $0x478] sm:$0xf]  ;;  %v7016_v22 = vor.u32 %v8102_v16, %v7015_v15  ;;  %v3566_v16 = vperm.slane %v9016_v37, 2 }
 0x583   :  { %5031 = vmatpush.bf16.msrb.mxu1 %v7600_v29  ;;  %v7099_v29 = vld [vmem:[#allocation22 + $0x280] sm:$0xf] }
 0x585   :  { %4997 = vmatpush.bf16.msra.mxu2 %v6788_v44  ;;  %5010 = vmatpush.bf16.msra.mxu0 %v7012_v45  ;;  %v9011_v11 = vpop.f32.mrf.mxu0  ;;  %v7100_v44 = vor.u32 %v8123_v32, %v7099_v29  ;;  %v8179_v32 = vld [vmem:[#allocation22 + $0x458] sm:$0xf0] }
 0x586   :  { %5019 = vmatpush.bf16.msrb.mxu3 %v7348_v46  ;;  %v6847_v46 = vld [vmem:[#allocation22 + $0x88] sm:$0xf] }
 0x587   :  { %5032 = vmatpush.bf16.msrb.mxu1 %v7572_v47  ;;  %v8060_v47 = vld [vmem:[#allocation22 + $0xa0] sm:$0xf0] }
 0x588   :  { %4998 = vmatmul.bf16.vlgmr.msra.gmra.mxu2 %v8981_v30  ;;  %5011 = vmatmul.bf16.vlgmr.msra.gmra.mxu0 %v8983_v18  ;;  %v6848_v56 = vor.u32 %v8060_v47, %v6847_v46  ;;  %v7519_v46 = vld [vmem:[#allocation22 + $0x5c8] sm:$0xf]  ;;  %v8228_v47 = vld [vmem:[#allocation22 + $0x5e0] sm:$0xf0] }
 0x589   :  { %5042 = vmatpush.bf16.msrb.mxu2 %v6988_v50  ;;  %5055 = vmatpush.bf16.msrb.mxu0 %v7212_v53  ;;  %v7071_v50 = vld [vmem:[#allocation22 + $0x248] sm:$0xf]  ;;  %v8116_v53 = vld [vmem:[#allocation22 + $0x260] sm:$0xf0] }
 0x58a   :  { %5020 = vmatpush.bf16.msrb.mxu3 %v7320_v58  ;;  %v4739_v28 = vpop.f32.mrf.mxu2  ;;  %v7072_v58 = vor.u32 %v8116_v53, %v7071_v50  ;;  %v7520_v50 = vor.u32 %v8228_v47, %v7519_v46 }
 0x58b   :  { %5033 = vmatpush.bf16.msrb.mxu1 %v7544_v59  ;;  %v6819_v59 = vld [vmem:[#allocation22 + $0x50] sm:$0xf] }
 0x58d   :  { %5043 = vmatpush.bf16.msrb.mxu2 %v6960_v62  ;;  %5056 = vmatpush.bf16.msrb.mxu0 %v7184_v34  ;;  %v4754_v45 = vpop.f32.mrf.mxu0  ;;  %v7632_v62 = vor.u32 %v8256_v60, %v7631_v54  ;;  %v8165_v54 = vld [vmem:[#allocation22 + $0x3e8] sm:$0xf0]  ;;  %v7491_v60 = vld [vmem:[#allocation22 + $0x590] sm:$0xf] }
 0x58e   :  { %5021 = vmatpush.bf16.msrb.mxu3 %v7292_v4  ;;  %v4740_v4 = vadd.f32 %v4739_v28, %v3564_v55  ;;  %v7323_v28 = vld [vmem:[#allocation22 + $0x440] sm:$0xf]  ;;  %v8221_v55 = vld [vmem:[#allocation22 + $0x5a8] sm:$0xf0] }
 0x58f   :  { %5034 = vmatpush.bf16.msrb.mxu1 %v7516_v42  ;;  %v6820_v42 = vor.u32 %v8053_v6, %v6819_v59  ;;  %v7492_v59 = vor.u32 %v8221_v55, %v7491_v60  ;;  %v7239_v6 = vld [vmem:[#allocation22 + $0x398] sm:$0xf] }
 0x591   :  { %5044 = vmatpush.bf16.msrb.mxu2 %v6932_v8  ;;  %5057 = vmatpush.bf16.msrb.mxu0 %v7156_v9  ;;  %v6791_v9 = vld [vmem:[#allocation22 + $0x18] sm:$0xf] }
 0x592   :  { %5022 = vmatpush.bf16.msrb.mxu3 %v7264_v17  ;;  %v4741_v34 = vpop.f32.mrf.mxu2  ;;  %v8186_v17 = vld [vmem:[#allocation22 + $0x490] sm:$0xf0]  ;;  %v6792_v21 = vor.u32 %v8046_v12, %v6791_v9 }
 0x593   :  { %5035 = vmatpush.bf16.msrb.mxu1 %v7488_v19  ;;  %v7575_v19 = vld [vmem:[#allocation22 + $0x638] sm:$0xf] }
 0x594   :  { %v7576_v25 = vor.u32 %v8242_v20, %v7575_v19  ;;  %v7463_v34 = vld [vmem:[#allocation22 + $0x558] sm:$0xf] }
 0x595   :  { %5045 = vmatpush.bf16.msrb.mxu2 %v6904_v23  ;;  %5058 = vmatpush.bf16.msrb.mxu0 %v7128_v24  ;;  %v4778_v7 = vpop.f32.mrf.mxu1  ;;  %v9021_v8 = vpop.f32.mrf.mxu0  ;;  %v4753_v23 = vadd.f32 %v9011_v11, %v4740_v4  ;;  %v7352_v24 = vor.u32 %v8186_v17, %v7351_v57  ;;  %v7548_v11 = vor.u32 %v8235_v35, %v7547_v33 }
 0x596   :  { %5023 = vmatpush.bf16.msrb.mxu3 %v7236_v38  ;;  %v7464_v2 = vor.u32 %v8214_v63, %v7463_v34 }
 0x597   :  { %5036 = vmatpush.bf16.msrb.mxu1 %v7460_v40  ;;  %v7324_v40 = vor.u32 %v8179_v32, %v7323_v28 }
 0x599   :  { %5046 = vmatpush.bf16.msrb.mxu2 %v6876_v41  ;;  %5059 = vmatpush.bf16.msrb.mxu0 %v7100_v44  ;;  %v7295_v41 = vld [vmem:[#allocation22 + $0x408] sm:$0xf]  ;;  %v8172_v44 = vld [vmem:[#allocation22 + $0x420] sm:$0xf0] }
 0x59a   :  { %5068 = vmatpush.bf16.msra.mxu3 %v7436_v31  ;;  %5037 = vmatmul.bf16.vlgmr.msrb.gmra.mxu1 %v8989_v14  ;;  %v4765_v26 = vpop.f32.mrf.mxu3  ;;  %v4791_v27 = vpop.f32.mrf.mxu2  ;;  %v3565_v31 = vperm.slane %v9016_v37, 1 }
 0x59b   :  { %5081 = vmatpush.bf16.msra.mxu1 %v7660_v49  ;;  %5024 = vmatmul.bf16.vlgmr.msrb.gmra.mxu3 %v8987_v10  ;;  %v4766_v29 = vadd.f32 %v4765_v26, %v4753_v23  ;;  %v7296_v49 = vor.u32 %v8172_v44, %v7295_v41 }
 0x59d   :  { %5047 = vmatpush.bf16.msrb.mxu2 %v6848_v56  ;;  %5060 = vmatpush.bf16.msrb.mxu0 %v7072_v58  ;;  %v4779_v48 = vadd.f32 %v4778_v7, %v4766_v29  ;;  %v4780_v36 = vpop.f32.mrf.mxu1  ;;  %v4806_v38 = vpop.f32.mrf.mxu0  ;;  %v4792_v58 = vadd.f32 %v4791_v27, %v3565_v31 }
 0x59e   :  { %5069 = vmatpush.bf16.msra.mxu3 %v7408_v61 }
 0x59f   :  { %5082 = vmatpush.bf16.msra.mxu1 %v7632_v62  ;;  %v7661_v45 = vmul.f32 -1.442695, %v4779_v48  ;;  %v8158_v62 = vld [vmem:[#allocation22 + $0x3b0] sm:$0xf0]  ;;  %v4805_v43 = vadd.f32 %v9021_v8, %v4792_v58 }
 0x5a0   :  { %v7240_v1 = vor.u32 %v8158_v62, %v7239_v6 }
 0x5a1   :  { %5048 = vmatpush.bf16.msrb.mxu2 %v6820_v42  ;;  %5061 = vmatpush.bf16.msrb.mxu0 %v7044_v5  ;;  %8320 = vpow2.f32 %v7661_v45 }
 0x5a2   :  { %5070 = vmatpush.bf16.msra.mxu3 %v7380_v13  ;;  %v4767_v53 = vpop.f32.mrf.mxu3  ;;  %v4793_v51 = vpop.f32.mrf.mxu2 }
 0x5a3   :  { %5083 = vmatpush.bf16.msra.mxu1 %v7604_v39 }
 0x5a5   :  { %5049 = vmatpush.bf16.msrb.mxu2 %v6792_v21  ;;  %5062 = vmatpush.bf16.msrb.mxu0 %v7016_v22  ;;  %v4830_v56 = vpop.f32.mrf.mxu1 }
 0x5a6   :  { %5071 = vmatpush.bf16.msra.mxu3 %v7352_v24 }
 0x5a7   :  { %5084 = vmatpush.bf16.msra.mxu1 %v7576_v25  ;;  %v8321_v61 = vpop.eup %8320 }
 0x5a8   :  { %5050 = vmatmul.bf16.vlgmr.msrb.gmra.mxu2 %v8981_v30  ;;  %5063 = vmatmul.bf16.vlgmr.msrb.gmra.mxu0 %v8983_v18  ;;  %v7268_v30 = vor.u32 %v8165_v54, %v7267_v52  ;;  %v4856_v18 = vpop.f32.mrf.mxu0  ;;  %v5115_v0 = vadd.f32 1.0, %v8321_v61  ;;  %v3567_v54 = vperm.slane %v9016_v37, 3 }
 0x5aa   :  { %5072 = vmatpush.bf16.msra.mxu3 %v7324_v40  ;;  %8322 = vrcp.f32 %v5115_v0  ;;  %v4817_v3 = vpop.f32.mrf.mxu3  ;;  %v5133_v57 = vand.u32 2147483648, %v5115_v0  ;;  %v5131_v20 = vand.u32 2147483647, %v5115_v0  ;;  %vm5127_vm2 = vweird.f32 %v5115_v0 }
 0x5ab   :  { %5085 = vmatpush.bf16.msra.mxu1 %v7548_v11  ;;  %v4818_v4 = vadd.f32 %v4817_v3, %v4805_v43  ;;  %v4843_v42 = vpop.f32.mrf.mxu2 }
 0x5ac   :  { %v4844_v23 = vadd.f32 %v4843_v42, %v3566_v16  ;;  %v5134_v25 = vor.u32 1.1754944e-38, %v5133_v57  ;;  %vm5132_vm4 = vcmp.eq.f32.partialorder %v5131_v20, 8.507059e+37 }
 0x5ad   :  { %v4832_v5 = vpop.f32.mrf.mxu1  ;;  %v4831_v7 = vadd.f32 %v4830_v56, %v4818_v4 }
 0x5ae   :  { %5073 = vmatpush.bf16.msra.mxu3 %v7296_v49  ;;  %v4857_v27 = vadd.f32 %v4856_v18, %v4844_v23 }
 0x5af   :  { %5086 = vmatpush.bf16.msra.mxu1 %v7520_v50  ;;  %v7662_v13 = vmul.f32 -1.442695, %v4831_v7 }
 0x5b0   :  { %v4858_v9 = vpop.f32.mrf.mxu0  ;;  %v8323_v12 = vpop.eup %8322 }
 0x5b1   :  { %v5123_v39 = vmul.f32 %v8323_v12, %v5115_v0  ;;  %8324 = vpow2.f32 %v7662_v13  ;;  %vm5128_vm1 = vweird.f32 %v8323_v12 }
 0x5b2   :  { %5074 = vmatpush.bf16.msra.mxu3 %v7268_v30  ;;  %v4819_v8 = vpop.f32.mrf.mxu3  ;;  %vm5129_vm3 = vmor %vm5127_vm2, %vm5128_vm1 }
 0x5b3   :  { %5087 = vmatpush.bf16.msra.mxu1 %v7492_v59  ;;  %v5124_v15 = vsub.f32 1.0, %v5123_v39  ;;  %v4845_v17 = vpop.f32.mrf.mxu2 }
 0x5b5   :  { %v5125_v19 = vmul.f32 %v8323_v12, %v5124_v15  ;;  %v3568_v15 = vperm.slane %v9016_v37, 4 }
 0x5b6   :  { %5075 = vmatpush.bf16.msra.mxu3 %v7240_v1 }
 0x5b7   :  { %5088 = vmatpush.bf16.msra.mxu1 %v7464_v2  ;;  %v4882_v21 = vpop.f32.mrf.mxu1  ;;  %v5126_v22 = vadd.f32 %v8323_v12, %v5125_v19  ;;  %v8325_v24 = vpop.eup %8324 }
 0x5b9   :  { %5076 = vmatmul.bf16.vlgmr.msra.gmra.mxu3 %v8987_v10  ;;  %v5130_v10 = vsel %vm5129_vm3, %v8323_v12, %v5126_v22 }
 0x5ba   :  { %5089 = vmatmul.bf16.vlgmr.msra.gmra.mxu1 %v8989_v14  ;;  %v5116_v14 = vadd.f32 1.0, %v8325_v24  ;;  %v5135_v26 = vsel %vm5132_vm4, %v5134_v25, %v5130_v10 }
 0x5bb   :  { %5227 = vst [vmem:[#allocation24] sm:$0xff] %v5135_v26 }
 0x5bc   :  { %8326 = vrcp.f32 %v5116_v14  ;;  %v5148_v41 = vand.u32 2147483648, %v5116_v14  ;;  %v5146_v45 = vand.u32 2147483647, %v5116_v14  ;;  %vm5142_vm6 = vweird.f32 %v5116_v14 }
 0x5be   :  { %v4869_v28 = vpop.f32.mrf.mxu3  ;;  %v5149_v31 = vor.u32 1.1754944e-38, %v5148_v41  ;;  %vm5147_vm8 = vcmp.eq.f32.partialorder %v5146_v45, 8.507059e+37  ;;  %v3569_v41 = vperm.slane %v9016_v37, 5 }
 0x5bf   :  { %v4870_v29 = vadd.f32 %v4869_v28, %v4857_v27  ;;  %v4884_v32 = vpop.f32.mrf.mxu1 }
 0x5c1   :  { %v4883_v33 = vadd.f32 %v4882_v21, %v4870_v29 }
 0x5c2   :  { %v8327_v35 = vpop.eup %8326 }
 0x5c3   :  { %v7663_v48 = vmul.f32 -1.442695, %v4883_v33  ;;  %v5138_v36 = vmul.f32 %v8327_v35, %v5116_v14  ;;  %vm5143_vm5 = vweird.f32 %v8327_v35 }
 0x5c4   :  { %vm5144_vm7 = vmor %vm5142_vm6, %vm5143_vm5 }
 0x5c5   :  { %8328 = vpow2.f32 %v7663_v48  ;;  %v4908_v38 = vpop.f32.mrf.mxu0  ;;  %v5139_v40 = vsub.f32 1.0, %v5138_v36 }
 0x5c6   :  { %v4871_v11 = vpop.f32.mrf.mxu3 }
 0x5c7   :  { %v5140_v44 = vmul.f32 %v8327_v35, %v5139_v40 }
 0x5c9   :  { %v5141_v46 = vadd.f32 %v8327_v35, %v5140_v44 }
 0x5cb   :  { %v8329_v47 = vpop.eup %8328  ;;  %v4895_v49 = vpop.f32.mrf.mxu2  ;;  %v5145_v50 = vsel %vm5144_vm7, %v8327_v35, %v5141_v46 }
 0x5cc   :  { %v5117_v53 = vadd.f32 1.0, %v8329_v47  ;;  %v5150_v51 = vsel %vm5147_vm8, %v5149_v31, %v5145_v50  ;;  %v4896_v59 = vadd.f32 %v4895_v49, %v3567_v54 }
 0x5cd   :  { %v4910_v52 = vpop.f32.mrf.mxu0  ;;  %5228 = vst [vmem:[#allocation24 + $0x8] sm:$0xff] %v5150_v51 }
 0x5ce   :  { %8330 = vrcp.f32 %v5117_v53  ;;  %v5163_v18 = vand.u32 2147483648, %v5117_v53  ;;  %v5161_v61 = vand.u32 2147483647, %v5117_v53  ;;  %vm5157_vm10 = vweird.f32 %v5117_v53 }
 0x5cf   :  { %v4909_v34 = vadd.f32 %v4908_v38, %v4896_v59 }
 0x5d0   :  { %v5164_v63 = vor.u32 1.1754944e-38, %v5163_v18  ;;  %vm5162_vm12 = vcmp.eq.f32.partialorder %v5161_v61, 8.507059e+37 }
 0x5d3   :  { %v4897_v60 = vpop.f32.mrf.mxu2 }
 0x5d4   :  { %v8331_v55 = vpop.eup %8330 }
 0x5d5   :  { %v5153_v56 = vmul.f32 %v8331_v55, %v5117_v53  ;;  %vm5158_vm9 = vweird.f32 %v8331_v55 }
 0x5d6   :  { %vm5159_vm11 = vmor %vm5157_vm10, %vm5158_vm9 }
 0x5d7   :  { %v4934_v58 = vpop.f32.mrf.mxu1  ;;  %v5154_v30 = vsub.f32 1.0, %v5153_v56 }
 0x5d9   :  { %v5155_v6 = vmul.f32 %v8331_v55, %v5154_v30 }
 0x5db   :  { %v5156_v62 = vadd.f32 %v8331_v55, %v5155_v6 }
 0x5dd   :  { %v5160_v1 = vsel %vm5159_vm11, %v8331_v55, %v5156_v62 }
 0x5de   :  { %v4921_v0 = vpop.f32.mrf.mxu3  ;;  %v5165_v43 = vsel %vm5162_vm12, %v5164_v63, %v5160_v1 }
 0x5df   :  { %v4922_v2 = vadd.f32 %v4921_v0, %v4909_v34  ;;  %v4936_v3 = vpop.f32.mrf.mxu1  ;;  %5229 = vst [vmem:[#allocation24 + $0x10] sm:$0xff] %v5165_v43 }
 0x5e1   :  { %v4935_v4 = vadd.f32 %v4934_v58, %v4922_v2  ;;  %v3570_v2 = vperm.slane %v9016_v37, 6 }
 0x5e3   :  { %v7664_v42 = vmul.f32 -1.442695, %v4935_v4 }
 0x5e5   :  { %8332 = vpow2.f32 %v7664_v42  ;;  %v4960_v5 = vpop.f32.mrf.mxu0 }
 0x5e6   :  { %v4923_v7 = vpop.f32.mrf.mxu3 }
 0x5eb   :  { %v8333_v9 = vpop.eup %8332  ;;  %v4947_v12 = vpop.f32.mrf.mxu2 }
 0x5ec   :  { %v5118_v13 = vadd.f32 1.0, %v8333_v9  ;;  %v4948_v20 = vadd.f32 %v4947_v12, %v3568_v15 }
 0x5ed   :  { %v4962_v39 = vpop.f32.mrf.mxu0 }
 0x5ee   :  { %8334 = vrcp.f32 %v5118_v13  ;;  %v5178_v21 = vand.u32 2147483648, %v5118_v13  ;;  %v5176_v23 = vand.u32 2147483647, %v5118_v13  ;;  %vm5172_vm14 = vweird.f32 %v5118_v13 }
 0x5ef   :  { %v4961_v25 = vadd.f32 %v4960_v5, %v4948_v20 }
 0x5f0   :  { %v5179_v10 = vor.u32 1.1754944e-38, %v5178_v21  ;;  %vm5177_vm0 = vcmp.eq.f32.partialorder %v5176_v23, 8.507059e+37 }
 0x5f3   :  { %v4949_v16 = vpop.f32.mrf.mxu2 }
 0x5f4   :  { %v8335_v8 = vpop.eup %8334 }
 0x5f5   :  { %v5168_v57 = vmul.f32 %v8335_v8, %v5118_v13  ;;  %vm5173_vm13 = vweird.f32 %v8335_v8 }
 0x5f6   :  { %vm5174_vm15 = vmor %vm5172_vm14, %vm5173_vm13 }
 0x5f7   :  { %v4986_v17 = vpop.f32.mrf.mxu1  ;;  %v5169_v19 = vsub.f32 1.0, %v5168_v57 }
 0x5f9   :  { %v5170_v22 = vmul.f32 %v8335_v8, %v5169_v19 }
 0x5fb   :  { %v5171_v24 = vadd.f32 %v8335_v8, %v5170_v22 }
 0x5fd   :  { %v5175_v26 = vsel %vm5174_vm15, %v8335_v8, %v5171_v24 }
 0x5fe   :  { %v4973_v14 = vpop.f32.mrf.mxu3  ;;  %v5180_v28 = vsel %vm5177_vm0, %v5179_v10, %v5175_v26 }
 0x5ff   :  { %v4974_v27 = vadd.f32 %v4973_v14, %v4961_v25  ;;  %v4988_v29 = vpop.f32.mrf.mxu1  ;;  %5230 = vst [vmem:[#allocation24 + $0x18] sm:$0xff] %v5180_v28 }
 0x601   :  { %v4987_v32 = vadd.f32 %v4986_v17, %v4974_v27 }
 0x603   :  { %v7665_v33 = vmul.f32 -1.442695, %v4987_v32 }
 0x605   :  { %8336 = vpow2.f32 %v7665_v33  ;;  %v5012_v35 = vpop.f32.mrf.mxu0 }
 0x606   :  { %v4975_v48 = vpop.f32.mrf.mxu3 }
 0x60b   :  { %v8337_v36 = vpop.eup %8336  ;;  %v4999_v38 = vpop.f32.mrf.mxu2 }
 0x60c   :  { %v5119_v40 = vadd.f32 1.0, %v8337_v36  ;;  %v5000_v49 = vadd.f32 %v4999_v38, %v3569_v41 }
 0x60d   :  { %v5014_v11 = vpop.f32.mrf.mxu0 }
 0x60e   :  { %8338 = vrcp.f32 %v5119_v40  ;;  %v5193_v50 = vand.u32 2147483648, %v5119_v40  ;;  %v5191_v51 = vand.u32 2147483647, %v5119_v40  ;;  %vm5187_vm2 = vweird.f32 %v5119_v40 }
 0x60f   :  { %v5013_v54 = vadd.f32 %v5012_v35, %v5000_v49 }
 0x610   :  { %v5194_v60 = vor.u32 1.1754944e-38, %v5193_v50  ;;  %vm5192_vm4 = vcmp.eq.f32.partialorder %v5191_v51, 8.507059e+37 }
 0x613   :  { %v5001_v44 = vpop.f32.mrf.mxu2 }
 0x614   :  { %v8339_v45 = vpop.eup %8338 }
 0x615   :  { %v5183_v46 = vmul.f32 %v8339_v45, %v5119_v40  ;;  %vm5188_vm1 = vweird.f32 %v8339_v45 }
 0x616   :  { %vm5189_vm3 = vmor %vm5187_vm2, %vm5188_vm1 }
 0x617   :  { %v5038_v47 = vpop.f32.mrf.mxu1  ;;  %v5184_v31 = vsub.f32 1.0, %v5183_v46 }
 0x619   :  { %v5185_v53 = vmul.f32 %v8339_v45, %v5184_v31 }
 0x61b   :  { %v5186_v52 = vadd.f32 %v8339_v45, %v5185_v53 }
 0x61d   :  { %v5190_v56 = vsel %vm5189_vm3, %v8339_v45, %v5186_v52 }
 0x61e   :  { %v5025_v55 = vpop.f32.mrf.mxu3  ;;  %v5195_v30 = vsel %vm5192_vm4, %v5194_v60, %v5190_v56 }
 0x61f   :  { %v5026_v58 = vadd.f32 %v5025_v55, %v5013_v54  ;;  %v5040_v59 = vpop.f32.mrf.mxu1  ;;  %5231 = vst [vmem:[#allocation24 + $0x20] sm:$0xff] %v5195_v30 }
 0x621   :  { %v5039_v18 = vadd.f32 %v5038_v47, %v5026_v58 }
 0x623   :  { %v7666_v6 = vmul.f32 -1.442695, %v5039_v18 }
 0x625   :  { %8340 = vpow2.f32 %v7666_v6  ;;  %v5064_v61 = vpop.f32.mrf.mxu0 }
 0x626   :  { %v5027_v62 = vpop.f32.mrf.mxu3 }
 0x62b   :  { %v8341_v34 = vpop.eup %8340  ;;  %v5051_v63 = vpop.f32.mrf.mxu2 }
 0x62c   :  { %v5120_v0 = vadd.f32 1.0, %v8341_v34  ;;  %v5052_v7 = vadd.f32 %v5051_v63, %v3570_v2 }
 0x62d   :  { %v5066_v1 = vpop.f32.mrf.mxu0 }
 0x62e   :  { %8342 = vrcp.f32 %v5120_v0  ;;  %v5208_v9 = vand.u32 2147483648, %v5120_v0  ;;  %v5206_v13 = vand.u32 2147483647, %v5120_v0  ;;  %vm5202_vm6 = vweird.f32 %v5120_v0 }
 0x62f   :  { %v5065_v15 = vadd.f32 %v5064_v61, %v5052_v7 }
 0x630   :  { %v5209_v16 = vor.u32 1.1754944e-38, %v5208_v9  ;;  %vm5207_vm8 = vcmp.eq.f32.partialorder %v5206_v13, 8.507059e+37 }
 0x633   :  { %v5053_v43 = vpop.f32.mrf.mxu2 }
 0x634   :  { %v8343_v3 = vpop.eup %8342 }
 0x635   :  { %v5198_v4 = vmul.f32 %v8343_v3, %v5120_v0  ;;  %vm5203_vm5 = vweird.f32 %v8343_v3 }
 0x636   :  { %vm5204_vm7 = vmor %vm5202_vm6, %vm5203_vm5 }
 0x637   :  { %v5090_v42 = vpop.f32.mrf.mxu1  ;;  %v5199_v5 = vsub.f32 1.0, %v5198_v4 }
 0x639   :  { %v5200_v12 = vmul.f32 %v8343_v3, %v5199_v5 }
 0x63b   :  { %v5201_v39 = vadd.f32 %v8343_v3, %v5200_v12 }
 0x63c   :  { %v5077_v8 = vpop.f32.mrf.mxu3 }
 0x63d   :  { %v5205_v57 = vsel %vm5204_vm7, %v8343_v3, %v5201_v39  ;;  %v5078_v17 = vadd.f32 %v5077_v8, %v5065_v15 }
 0x63e   :  { %v5210_v37 = vsel %vm5207_vm8, %v5209_v16, %v5205_v57 }
 0x63f   :  { %v5092_v19 = vpop.f32.mrf.mxu1  ;;  %5232 = vst [vmem:[#allocation24 + $0x28] sm:$0xff] %v5210_v37  ;;  %v5091_v20 = vadd.f32 %v5090_v42, %v5078_v17 }
 0x641   :  { %v7667_v21 = vmul.f32 -1.442695, %v5091_v20 }
 0x643   :  { %8344 = vpow2.f32 %v7667_v21 }
 0x644   :  { %v5079_v22 = vpop.f32.mrf.mxu3 }
 0x649   :  { %v8345_v23 = vpop.eup %8344 }
 0x64a   :  { %v5121_v24 = vadd.f32 1.0, %v8345_v23 }
 0x64c   :  { %8346 = vrcp.f32 %v5121_v24  ;;  %v5223_v26 = vand.u32 2147483648, %v5121_v24  ;;  %v5221_v28 = vand.u32 2147483647, %v5121_v24  ;;  %vm5217_vm10 = vweird.f32 %v5121_v24 }
 0x64e   :  { %v5224_v32 = vor.u32 1.1754944e-38, %v5223_v26  ;;  %vm5222_vm12 = vcmp.eq.f32.partialorder %v5221_v28, 8.507059e+37 }
 0x652   :  { %v8347_v25 = vpop.eup %8346 }
 0x653   :  { %v5213_v10 = vmul.f32 %v8347_v25, %v5121_v24  ;;  %vm5218_vm9 = vweird.f32 %v8347_v25 }
 0x654   :  { %vm5219_vm11 = vmor %vm5217_vm10, %vm5218_vm9 }
 0x655   :  { %v5214_v14 = vsub.f32 1.0, %v5213_v10 }
 0x657   :  { %v5215_v27 = vmul.f32 %v8347_v25, %v5214_v14 }
 0x659   :  { %v5216_v29 = vadd.f32 %v8347_v25, %v5215_v27 }
 0x65b   :  { %v5220_v33 = vsel %vm5219_vm11, %v8347_v25, %v5216_v29 }
 0x65c   :  { %v5225_v35 = vsel %vm5222_vm12, %v5224_v32, %v5220_v33 }
 0x65d   :  { %5233 = vst [vmem:[#allocation24 + $0x30] sm:$0xff] %v5225_v35 }
 0x65e   :  { %5255 = dma.vmem_to_hbm [thread:$0]  %s5251_s27, 896, %s5253_s13, [#allocation25]  }
 0x65f   :  { %8722 = dma.done.wait [#allocation4], 128  }
 0x660   :  { %8723 = vsyncadd [#allocation4], 4294967168 }
 0x661   :  { %8724 = dma.done.wait [#allocation25], 896  }
 0x662   :  { %8725 = vsyncadd [#allocation25], 4294966400 }
 0x663   :  { %5264 = vsyncpa [#allocation3], 1 }
 0x664   :  { %5265 = vsyncpa [#allocation6], 1 }
 0x665   :  { %5266 = vsyncpa [#allocation9], 1 }
 0x666   :  { %5267 = vsyncpa [#allocation12], 1 }
 0x667   :  { %5268 = vsyncpa [#allocation15], 1 }
 0x668   :  { %5269 = vsyncpa [#allocation18], 1 }
 0x669   :  { %5270 = vsyncpa [#allocation21], 1 }
 0x66a   :  { %5271 = vsyncpa [#allocation4], 1 }
 0x66b   :  { %5272 = vsyncpa [#allocation25], 1 }

// kernel: tpu_custom_call.1
= control target key start
LH: loop header
LB: loop body
LE: loop exit
PB: predicated region body
PF: predicated region fallthrough
CT: control target
= control target key end

     0   :  { %s9041_s0 = inlined_call_operand.hbm [shape: bf16[8,784], index: 0, kind: input, shape index: {}]   ;;  %s9042_s1 = inlined_call_operand.hbm [shape: bf16[784,512], index: 1, kind: input, shape index: {}]   ;;  %s9043_s2 = inlined_call_operand.hbm [shape: f32[1,512], index: 2, kind: input, shape index: {}]   ;;  %s9044_s3 = inlined_call_operand.hbm [shape: bf16[512,256], index: 3, kind: input, shape index: {}]   ;;  %s9045_s4 = inlined_call_operand.vmem [shape: f32[1,256], index: 4, kind: input, shape index: {}]   ;;  %s9046_s5 = inlined_call_operand.hbm [shape: bf16[256,128], index: 5, kind: input, shape index: {}]   ;;  %s9047_s6 = inlined_call_operand.vmem [shape: f32[1,128], index: 6, kind: input, shape index: {}]   ;;  %s9048_s7 = inlined_call_operand.hbm [shape: bf16[128,128], index: 7, kind: input, shape index: {}]   ;;  %s9049_s8 = inlined_call_operand.hbm [shape: f32[1,128], index: 8, kind: input, shape index: {}]   ;;  %s9050_s9 = inlined_call_operand.hbm [shape: bf16[128,128], index: 9, kind: input, shape index: {}]   ;;  %s9051_s10 = inlined_call_operand.hbm [shape: f32[1,128], index: 10, kind: input, shape index: {}]   ;;  %s9052_s11 = inlined_call_operand.hbm [shape: bf16[128,256], index: 11, kind: input, shape index: {}]   ;;  %s9053_s12 = inlined_call_operand.hbm [shape: f32[1,256], index: 12, kind: input, shape index: {}]   ;;  %s9054_s13 = inlined_call_operand.hbm [shape: bf16[256,512], index: 13, kind: input, shape index: {}]   ;;  %s9055_s14 = inlined_call_operand.vmem [shape: f32[1,512], index: 14, kind: input, shape index: {}]   ;;  %s9056_s15 = inlined_call_operand.hbm [shape: bf16[512,896], index: 15, kind: input, shape index: {}]   ;;  %s9057_s16 = inlined_call_operand.vmem [shape: f32[1,896], index: 16, kind: input, shape index: {}]   ;;  %s9058_s17 = inlined_call_operand.hbm [shape: f32[8,128], index: 17, kind: output, shape index: {0}]   ;;  %s9059_s18 = inlined_call_operand.hbm [shape: f32[8,896], index: 18, kind: output, shape index: {1}]  }
   0x1   :  { %9060 = sst [smem:[#allocation35_spill]] %s9041_s0 }
   0x2   :  { %9061 = sst [smem:[#allocation36_spill]] %s9042_s1 }
   0x3   :  { %9062 = sst [smem:[#allocation37_spill]] %s9043_s2 }
   0x4   :  { %9063 = sst [smem:[#allocation38_spill]] %s9059_s18 }
   0x5   :  { %24 = vsyncpa [#allocation3], 0 }
   0x6   :  { %25 = vsyncpa [#allocation6], 0 }
   0x7   :  { %26 = vsyncpa [#allocation9], 0 }
   0x8   :  { %27 = vsyncpa [#allocation12], 0 }
   0x9   :  { %28 = vsyncpa [#allocation15], 0 }
   0xa   :  { %29 = vsyncpa [#allocation18], 0 }
   0xb   :  { %30 = vsyncpa [#allocation21], 0 }
   0xc   :  { %31 = vsyncpa [#allocation4], 0  ;;  %s9064_s29 = sld [smem:[#allocation36_spill]] }
  0x12   :  { %s48_s30 = sshll.u32 %s9064_s29, 4  ;;  %s49_s30 = int_to_ptr.hbm [resolvable:$true] %s48_s30 }
  0x13   :  { %32 = vsyncpa [#allocation25], 0  ;;  %s8726_s0 = smov [#allocation5]   ;;  %s72_s21 = sshll.u32 %s9044_s3, 4  ;;  %s73_s21 = int_to_ptr.hbm [resolvable:$true] %s72_s21 }
  0x14   :  { %s50_s19 = sshll.u32 %s8726_s0, 4  ;;  %s8727_s22 = smov 256   ;;  %s51_s19 = int_to_ptr.vmem [resolvable:$true] %s50_s19 }
  0x15   :  { %s8728_s2 = smov 16   ;;  %s8729_s23 = smov [#allocation8]  }
  0x16   :  { %56 = dma.hbm_to_vmem [thread:$0]  %s49_s30, 25088, %s51_s19, [#allocation6], %s8727_s22, %s8727_s22, %s8728_s2  }
  0x17   :  { %s74_s24 = sshll.u32 %s8729_s23, 4  ;;  %s8730_s25 = smov 128   ;;  %s75_s24 = int_to_ptr.vmem [resolvable:$true] %s74_s24 }
  0x18   :  { %s8731_s26 = smov 8   ;;  %s102_s29 = sshll.u32 %s9048_s7, 4  ;;  %s103_s29 = int_to_ptr.hbm [resolvable:$true] %s102_s29 }
  0x19   :  { %80 = dma.hbm_to_vmem [thread:$0]  %s73_s21, 8192, %s75_s24, [#allocation9], %s8730_s25, %s8730_s25, %s8731_s26  }
  0x1a   :  { %s8732_s0 = smov [#allocation11]   ;;  %s126_s18 = sshll.u32 %s9050_s9, 4  ;;  %s127_s18 = int_to_ptr.hbm [resolvable:$true] %s126_s18 }
  0x1b   :  { %s104_s3 = sshll.u32 %s8732_s0, 4  ;;  %s8733_s30 = smov 64   ;;  %s105_s3 = int_to_ptr.vmem [resolvable:$true] %s104_s3 }
  0x1c   :  { %s8734_s19 = smov 4   ;;  %s8735_s21 = smov [#allocation14]  }
  0x1d   :  { %110 = dma.hbm_to_vmem [thread:$0]  %s103_s29, 1024, %s105_s3, [#allocation12], %s8733_s30, %s8733_s30, %s8734_s19  }
  0x1e   :  { %s128_s23 = sshll.u32 %s8735_s21, 4  ;;  %s150_s7 = sshll.u32 %s9052_s11, 4  ;;  %s129_s23 = int_to_ptr.vmem [resolvable:$true] %s128_s23  ;;  %s151_s7 = int_to_ptr.hbm [resolvable:$true] %s150_s7 }
  0x1f   :  { %134 = dma.hbm_to_vmem [thread:$0]  %s127_s18, 1024, %s129_s23, [#allocation15], %s8733_s30, %s8733_s30, %s8734_s19  }
  0x20   :  { %s174_s0 = sshll.u32 %s9054_s13, 4  ;;  %s8736_s1 = smov [#allocation17]   ;;  %s175_s0 = int_to_ptr.hbm [resolvable:$true] %s174_s0 }
  0x21   :  { %s152_s20 = sshll.u32 %s8736_s1, 4  ;;  %s8737_s29 = smov [#allocation20]   ;;  %s153_s20 = int_to_ptr.vmem [resolvable:$true] %s152_s20 }
  0x22   :  { %158 = dma.hbm_to_vmem [thread:$0]  %s151_s7, 2048, %s153_s20, [#allocation18], %s8730_s25, %s8730_s25, %s8731_s26  }
  0x23   :  { %s176_s3 = sshll.u32 %s8737_s29, 4  ;;  %s9065_s11 = sld [smem:[#allocation35_spill]]  ;;  %s177_s3 = int_to_ptr.vmem [resolvable:$true] %s176_s3 }
  0x24   :  { %182 = dma.hbm_to_vmem [thread:$0]  %s175_s0, 8192, %s177_s3, [#allocation21], %s8727_s22, %s8727_s22, %s8728_s2  }
  0x25   :  { %s9066_s13 = sld [smem:[#allocation37_spill]]  ;;  %s8738_s28 = smov [#allocation2]  }
  0x26   :  { %s40_s1 = sshll.u32 %s8738_s28, 4  ;;  %s8739_s25 = smov [#allocation7]   ;;  %s41_s1 = int_to_ptr.vmem [resolvable:$true] %s40_s1 }
  0x27   :  { %s64_s26 = sshll.u32 %s8739_s25, 4  ;;  %s87_s29 = sshll.u32 %s9046_s5, 4  ;;  %s65_s26 = int_to_ptr.vmem [resolvable:$true] %s64_s26  ;;  %s88_s29 = int_to_ptr.hbm [resolvable:$true] %s87_s29 }
  0x28   :  { %s116_s2 = sshll.u32 %s9049_s8, 4  ;;  %s8740_s0 = smov [#allocation10]   ;;  %s117_s2 = int_to_ptr.hbm [resolvable:$true] %s116_s2 }
  0x29   :  { %s38_s27 = sshll.u32 %s9065_s11, 4  ;;  %s89_s3 = sshll.u32 %s8740_s0, 4  ;;  %s39_s27 = int_to_ptr.hbm [resolvable:$true] %s38_s27  ;;  %s90_s3 = int_to_ptr.vmem [resolvable:$true] %s89_s3 }
  0x2a   :  { %43 = dma.hbm_to_vmem [thread:$0]  %s39_s27, 448, %s41_s1, [#allocation3]  }
  0x2b   :  { %s62_s9 = sshll.u32 %s9066_s13, 4  ;;  %s8741_s24 = smov [#allocation13]   ;;  %s63_s9 = int_to_ptr.hbm [resolvable:$true] %s62_s9 }
  0x2c   :  { %67 = dma.hbm_to_vmem [thread:$0]  %s63_s9, 64, %s65_s26, [#allocation6]  }
  0x2d   :  { %95 = dma.hbm_to_vmem [thread:$0]  %s88_s29, 2048, %s90_s3, [#allocation9], %s8733_s30, %s8733_s30, %s8734_s19  }
  0x2e   :  { %s118_s11 = sshll.u32 %s8741_s24, 4  ;;  %s140_s5 = sshll.u32 %s9051_s10, 4  ;;  %s119_s11 = int_to_ptr.vmem [resolvable:$true] %s118_s11  ;;  %s141_s5 = int_to_ptr.hbm [resolvable:$true] %s140_s5 }
  0x2f   :  { %121 = dma.hbm_to_vmem [thread:$0]  %s117_s2, 16, %s119_s11, [#allocation12]  }
  0x30   :  { %s164_s8 = sshll.u32 %s9053_s12, 4  ;;  %s8742_s9 = smov [#allocation16]   ;;  %s165_s8 = int_to_ptr.hbm [resolvable:$true] %s164_s8 }
  0x31   :  { %s142_s28 = sshll.u32 %s8742_s9, 4  ;;  %s8743_s1 = smov [#allocation19]   ;;  %s143_s28 = int_to_ptr.vmem [resolvable:$true] %s142_s28 }
  0x32   :  { %145 = dma.hbm_to_vmem [thread:$0]  %s141_s5, 16, %s143_s28, [#allocation15]  }
  0x33   :  { %s166_s30 = sshll.u32 %s8743_s1, 4  ;;  %s189_s26 = sshll.u32 %s9056_s15, 4  ;;  %s167_s30 = int_to_ptr.vmem [resolvable:$true] %s166_s30  ;;  %s190_s26 = int_to_ptr.hbm [resolvable:$true] %s189_s26 }
  0x34   :  { %169 = dma.hbm_to_vmem [thread:$0]  %s165_s8, 32, %s167_s30, [#allocation18]  }
  0x35   :  { %s8744_s10 = smov [#allocation22]   ;;  %s8745_s20 = smov 448  }
  0x36   :  { %s191_s7 = sshll.u32 %s8744_s10, 4  ;;  %s8746_s29 = smov 28   ;;  %s192_s7 = int_to_ptr.vmem [resolvable:$true] %s191_s7 }
  0x37   :  { %197 = dma.hbm_to_vmem [thread:$0]  %s190_s26, 28672, %s192_s7, [#allocation21], %s8745_s20, %s8745_s20, %s8746_s29  }
  0x38   :  { %8708 = dma.done.wait [#allocation3], 448  }
  0x39   :  { %8709 = vsyncadd [#allocation3], 4294966848 }
  0x3a   :  { %8710 = dma.done.wait [#allocation6], 25152  }
  0x3b   :  { %8711 = vsyncadd [#allocation6], 4294942144 }
  0x3c   :  { %8712 = dma.done.wait [#allocation9], 10240  }
  0x3d   :  { %8713 = vsyncadd [#allocation9], 4294957056 }
  0x3e   :  { %8714 = dma.done.wait [#allocation12], 1040  }
  0x3f   :  { %8715 = vsyncadd [#allocation12], 4294966256 }
  0x40   :  { %8716 = dma.done.wait [#allocation15], 1040  }
  0x41   :  { %8717 = vsyncadd [#allocation15], 4294966256 }
  0x42   :  { %8718 = dma.done.wait [#allocation18], 2080  }
  0x43   :  { %8719 = vsyncadd [#allocation18], 4294965216 }
  0x44   :  { %8720 = dma.done.wait [#allocation21], 36864  }
  0x45   :  { %8721 = vsyncadd [#allocation21], 4294930432  ;;  %v5387_v0 = vld [vmem:[#allocation5 + $0xe0] sm:$0xf]  ;;  %v7698_v1 = vld [vmem:[#allocation5 + $0xec] sm:$0xf0] }
  0x46   :  { %v5515_v2 = vld [vmem:[#allocation5 + $0x1e0] sm:$0xf]  ;;  %v5388_v3 = vor.u32 %v7698_v1, %v5387_v0  ;;  %v7730_v4 = vld [vmem:[#allocation5 + $0x1ec] sm:$0xf0]  ;;  %vm1467_vm0 = vcmask 130048   ;;  %s5241_s11 = sshll.u32 %s9058_s17, 4  ;;  %s5242_s11 = int_to_ptr.hbm [resolvable:$true] %s5241_s11 }
  0x47   :  { %v5643_v5 = vld [vmem:[#allocation5 + $0x2e0] sm:$0xf]  ;;  %v7762_v6 = vld [vmem:[#allocation5 + $0x2ec] sm:$0xf0]  ;;  %v5516_v7 = vor.u32 %v7730_v4, %v5515_v2  ;;  %s8748_s17 = smov [#allocation24]   ;;  %s9067_s23 = sld [smem:[#allocation38_spill]] }
  0x48   :  { %v5644_v8 = vor.u32 %v7762_v6, %v5643_v5  ;;  %v5771_v9 = vld [vmem:[#allocation5 + $0x3e0] sm:$0xf]  ;;  %v7794_v10 = vld [vmem:[#allocation5 + $0x3ec] sm:$0xf0]  ;;  %1471 = vmatpush.bf16.msra.mxu0 %v5388_v3  ;;  %s5250_s27 = sshll.u32 %s8748_s17, 4  ;;  %s5251_s27 = int_to_ptr.vmem [resolvable:$true] %s5250_s27 }
  0x49   :  { %v5371_v11 = vld [vmem:[#allocation5 + $0xc0] sm:$0xf]  ;;  %v5772_v12 = vor.u32 %v7794_v10, %v5771_v9  ;;  %v7694_v13 = vld [vmem:[#allocation5 + $0xcc] sm:$0xf0]  ;;  %1484 = vmatpush.bf16.msra.mxu1 %v5516_v7 }
  0x4a   :  { %v5499_v14 = vld [vmem:[#allocation5 + $0x1c0] sm:$0xf]  ;;  %v7726_v15 = vld [vmem:[#allocation5 + $0x1cc] sm:$0xf0]  ;;  %1497 = vmatpush.bf16.msra.mxu2 %v5644_v8  ;;  %v5372_v16 = vor.u32 %v7694_v13, %v5371_v11 }
  0x4b   :  { %v5500_v17 = vor.u32 %v7726_v15, %v5499_v14  ;;  %v5627_v18 = vld [vmem:[#allocation5 + $0x2c0] sm:$0xf]  ;;  %v7758_v19 = vld [vmem:[#allocation5 + $0x2cc] sm:$0xf0]  ;;  %1510 = vmatpush.bf16.msra.mxu3 %v5772_v12 }
  0x4c   :  { %v5755_v20 = vld [vmem:[#allocation5 + $0x3c0] sm:$0xf]  ;;  %v5628_v21 = vor.u32 %v7758_v19, %v5627_v18  ;;  %v7790_v22 = vld [vmem:[#allocation5 + $0x3cc] sm:$0xf0]  ;;  %1472 = vmatpush.bf16.msra.mxu0 %v5372_v16 }
  0x4d   :  { %v5355_v23 = vld [vmem:[#allocation5 + $0xa0] sm:$0xf]  ;;  %v7690_v24 = vld [vmem:[#allocation5 + $0xac] sm:$0xf0]  ;;  %v5756_v25 = vor.u32 %v7790_v22, %v5755_v20  ;;  %1485 = vmatpush.bf16.msra.mxu1 %v5500_v17  ;;  %s5252_s13 = sshll.u32 %s9067_s23, 4  ;;  %s5253_s13 = int_to_ptr.hbm [resolvable:$true] %s5252_s13 }
  0x4e   :  { %v5483_v26 = vld [vmem:[#allocation5 + $0x1a0] sm:$0xf]  ;;  %v7722_v27 = vld [vmem:[#allocation5 + $0x1ac] sm:$0xf0]  ;;  %v5356_v29 = vor.u32 %v7690_v24, %v5355_v23  ;;  %1498 = vmatpush.bf16.msra.mxu2 %v5628_v21 }
  0x4f   :  { %v5611_v28 = vld [vmem:[#allocation5 + $0x2a0] sm:$0xf]  ;;  %v7754_v30 = vld [vmem:[#allocation5 + $0x2ac] sm:$0xf0]  ;;  %v5484_v33 = vor.u32 %v7722_v27, %v5483_v26  ;;  %1511 = vmatpush.bf16.msra.mxu3 %v5756_v25 }
  0x50   :  { %v5739_v31 = vld [vmem:[#allocation5 + $0x3a0] sm:$0xf]  ;;  %v7786_v32 = vld [vmem:[#allocation5 + $0x3ac] sm:$0xf0]  ;;  %v5612_v34 = vor.u32 %v7754_v30, %v5611_v28  ;;  %1473 = vmatpush.bf16.msra.mxu0 %v5356_v29 }
  0x51   :  { %v5339_v35 = vld [vmem:[#allocation5 + $0x80] sm:$0xf]  ;;  %v7686_v36 = vld [vmem:[#allocation5 + $0x8c] sm:$0xf0]  ;;  %v5740_v38 = vor.u32 %v7786_v32, %v5739_v31  ;;  %1486 = vmatpush.bf16.msra.mxu1 %v5484_v33 }
  0x52   :  { %v5467_v37 = vld [vmem:[#allocation5 + $0x180] sm:$0xf]  ;;  %v7718_v39 = vld [vmem:[#allocation5 + $0x18c] sm:$0xf0]  ;;  %v5340_v44 = vor.u32 %v7686_v36, %v5339_v35  ;;  %1499 = vmatpush.bf16.msra.mxu2 %v5612_v34  ;;  %v7696_v34 = vld [vmem:[#allocation5 + $0xe4] sm:$0xf] }
  0x53   :  { %v5595_v40 = vld [vmem:[#allocation5 + $0x280] sm:$0xf]  ;;  %v7750_v41 = vld [vmem:[#allocation5 + $0x28c] sm:$0xf0]  ;;  %v5468_v45 = vor.u32 %v7718_v39, %v5467_v37  ;;  %1512 = vmatpush.bf16.msra.mxu3 %v5740_v38  ;;  %v5389_v35 = vld [vmem:[#allocation5 + $0xf0] sm:$0xf0] }
  0x54   :  { %v5723_v42 = vld [vmem:[#allocation5 + $0x380] sm:$0xf]  ;;  %v7782_v43 = vld [vmem:[#allocation5 + $0x38c] sm:$0xf0]  ;;  %v5596_v46 = vor.u32 %v7750_v41, %v5595_v40  ;;  %1474 = vmatpush.bf16.msra.mxu0 %v5340_v44  ;;  %v253_v37 = vld [vmem:[#allocation2] sm:$0xff] }
  0x55   :  { %v5323_v47 = vld [vmem:[#allocation5 + $0x60] sm:$0xf]  ;;  %v7682_v48 = vld [vmem:[#allocation5 + $0x6c] sm:$0xf0]  ;;  %v5724_v50 = vor.u32 %v7782_v43, %v5723_v42  ;;  %1487 = vmatpush.bf16.msra.mxu1 %v5468_v45  ;;  %v467_v41 = vunpack.c.l.b16 %v253_v37 }
  0x56   :  { %v5451_v49 = vld [vmem:[#allocation5 + $0x160] sm:$0xf]  ;;  %v7714_v51 = vld [vmem:[#allocation5 + $0x16c] sm:$0xf0]  ;;  %v5324_v56 = vor.u32 %v7682_v48, %v5323_v47  ;;  %1500 = vmatpush.bf16.msra.mxu2 %v5596_v46  ;;  %v7728_v46 = vld [vmem:[#allocation5 + $0x1e4] sm:$0xf] }
  0x57   :  { %v5579_v52 = vld [vmem:[#allocation5 + $0x260] sm:$0xf]  ;;  %v7746_v53 = vld [vmem:[#allocation5 + $0x26c] sm:$0xf0]  ;;  %v5452_v57 = vor.u32 %v7714_v51, %v5451_v49  ;;  %1513 = vmatpush.bf16.msra.mxu3 %v5724_v50  ;;  %v5517_v47 = vld [vmem:[#allocation5 + $0x1f0] sm:$0xf0]  ;;  %v5392_v49 = vor.u32 %v7696_v34, %v5389_v35 }
  0x58   :  { %v5707_v54 = vld [vmem:[#allocation5 + $0x360] sm:$0xf]  ;;  %v7778_v55 = vld [vmem:[#allocation5 + $0x36c] sm:$0xf0]  ;;  %v5580_v58 = vor.u32 %v7746_v53, %v5579_v52  ;;  %1475 = vmatpush.bf16.msra.mxu0 %v5324_v56  ;;  %v5373_v56 = vld [vmem:[#allocation5 + $0xd0] sm:$0xf0] }
  0x59   :  { %v5307_v59 = vld [vmem:[#allocation5 + $0x40] sm:$0xf]  ;;  %v7678_v60 = vld [vmem:[#allocation5 + $0x4c] sm:$0xf0]  ;;  %v5708_v62 = vor.u32 %v7778_v55, %v5707_v54  ;;  %1488 = vmatpush.bf16.msra.mxu1 %v5452_v57  ;;  %v7692_v55 = vld [vmem:[#allocation5 + $0xc4] sm:$0xf]  ;;  %v8900_v57 = vpack.c.b16 %v467_v41, %v467_v41 }
  0x5a   :  { %v5435_v61 = vld [vmem:[#allocation5 + $0x140] sm:$0xf]  ;;  %v7710_v63 = vld [vmem:[#allocation5 + $0x14c] sm:$0xf0]  ;;  %v5308_v4 = vor.u32 %v7678_v60, %v5307_v59  ;;  %1501 = vmatpush.bf16.msra.mxu2 %v5580_v58  ;;  %v468_v58 = vunpack.c.h.b16 %v253_v37  ;;  %v5325_v34 = vld [vmem:[#allocation5 + $0x70] sm:$0xf0] }
  0x5b   :  { %v5563_v0 = vld [vmem:[#allocation5 + $0x240] sm:$0xf]  ;;  %v7742_v1 = vld [vmem:[#allocation5 + $0x24c] sm:$0xf0]  ;;  %v5436_v5 = vor.u32 %v7710_v63, %v5435_v61  ;;  %1514 = vmatpush.bf16.msra.mxu3 %v5708_v62  ;;  %v5520_v61 = vor.u32 %v7728_v46, %v5517_v47  ;;  %v7724_v63 = vld [vmem:[#allocation5 + $0x1c4] sm:$0xf] }
  0x5c   :  { %v5691_v2 = vld [vmem:[#allocation5 + $0x340] sm:$0xf]  ;;  %v7774_v3 = vld [vmem:[#allocation5 + $0x34c] sm:$0xf0]  ;;  %v5564_v6 = vor.u32 %v7742_v1, %v5563_v0  ;;  %1476 = vmatpush.bf16.msra.mxu0 %v5308_v4  ;;  %v5501_v0 = vld [vmem:[#allocation5 + $0x1d0] sm:$0xf0] }
  0x5d   :  { %v5291_v7 = vld [vmem:[#allocation5 + $0x20] sm:$0xf]  ;;  %v7674_v8 = vld [vmem:[#allocation5 + $0x2c] sm:$0xf0]  ;;  %v5692_v10 = vor.u32 %v7774_v3, %v5691_v2  ;;  %1489 = vmatpush.bf16.msra.mxu1 %v5436_v5  ;;  %v5376_v2 = vor.u32 %v7692_v55, %v5373_v56  ;;  %v7676_v46 = vld [vmem:[#allocation5 + $0x44] sm:$0xf] }
  0x5e   :  { %v5419_v9 = vld [vmem:[#allocation5 + $0x120] sm:$0xf]  ;;  %v7706_v11 = vld [vmem:[#allocation5 + $0x12c] sm:$0xf0]  ;;  %v5292_v17 = vor.u32 %v7674_v8, %v5291_v7  ;;  %1502 = vmatpush.bf16.msra.mxu2 %v5564_v6  ;;  %v8906_v6 = vpack.c.b16 %v468_v58, %v468_v58  ;;  %v7688_v8 = vld [vmem:[#allocation5 + $0xa4] sm:$0xf] }
  0x5f   :  { %v5547_v12 = vld [vmem:[#allocation5 + $0x220] sm:$0xf]  ;;  %v7738_v13 = vld [vmem:[#allocation5 + $0x22c] sm:$0xf0]  ;;  %v5420_v21 = vor.u32 %v7706_v11, %v5419_v9  ;;  %1515 = vmatpush.bf16.msra.mxu3 %v5692_v10  ;;  %v5357_v9 = vld [vmem:[#allocation5 + $0xb0] sm:$0xf0]  ;;  %v5504_v10 = vor.u32 %v7724_v63, %v5501_v0 }
  0x60   :  { %v5675_v14 = vld [vmem:[#allocation5 + $0x320] sm:$0xf]  ;;  %v7770_v15 = vld [vmem:[#allocation5 + $0x32c] sm:$0xf0]  ;;  %v5548_v22 = vor.u32 %v7738_v13, %v5547_v12  ;;  %1477 = vmatpush.bf16.msra.mxu0 %v5292_v17  ;;  %v7720_v12 = vld [vmem:[#allocation5 + $0x1a4] sm:$0xf] }
  0x61   :  { %v5275_v16 = vld [vmem:[#allocation5] sm:$0xf]  ;;  %v7670_v18 = vld [vmem:[#allocation5 + $0xc] sm:$0xf0]  ;;  %v5676_v26 = vor.u32 %v7770_v15, %v5675_v14  ;;  %1490 = vmatpush.bf16.msra.mxu1 %v5420_v21  ;;  %v5485_v13 = vld [vmem:[#allocation5 + $0x1b0] sm:$0xf0]  ;;  %v5360_v15 = vor.u32 %v7688_v8, %v5357_v9 }
  0x62   :  { %v5403_v19 = vld [vmem:[#allocation5 + $0x100] sm:$0xf]  ;;  %v7702_v20 = vld [vmem:[#allocation5 + $0x10c] sm:$0xf0]  ;;  %v5276_v33 = vor.u32 %v7670_v18, %v5275_v16  ;;  %1503 = vmatpush.bf16.msra.mxu2 %v5548_v22  ;;  %v5341_v21 = vld [vmem:[#allocation5 + $0x90] sm:$0xf0] }
  0x63   :  { %v5531_v23 = vld [vmem:[#allocation5 + $0x200] sm:$0xf]  ;;  %v7734_v24 = vld [vmem:[#allocation5 + $0x20c] sm:$0xf0]  ;;  %v5404_v38 = vor.u32 %v7702_v20, %v5403_v19  ;;  %1516 = vmatpush.bf16.msra.mxu3 %v5676_v26  ;;  %v7684_v20 = vld [vmem:[#allocation5 + $0x84] sm:$0xf] }
  0x64   :  { %v254_v25 = vld [vmem:[#allocation2 + $0x8] sm:$0xff]  ;;  %v5659_v27 = vld [vmem:[#allocation5 + $0x300] sm:$0xf]  ;;  %v5532_v39 = vor.u32 %v7734_v24, %v5531_v23  ;;  %1478 = vmatpush.bf16.msra.mxu0 %v5276_v33  ;;  %v256_v22 = vld [vmem:[#allocation2 + $0x18] sm:$0xf]  ;;  %v5488_v23 = vor.u32 %v7720_v12, %v5485_v13 }
  0x65   :  { %v7766_v28 = vld [vmem:[#allocation5 + $0x30c] sm:$0xf0]  ;;  %v5899_v29 = vld [vmem:[#allocation5 + $0x4e0] sm:$0xf]  ;;  %v469_v36 = vunpack.c.l.b16 %v254_v25  ;;  %v470_v42 = vunpack.c.h.b16 %v254_v25  ;;  %1491 = vmatpush.bf16.msra.mxu1 %v5404_v38  ;;  %v7716_v25 = vld [vmem:[#allocation5 + $0x184] sm:$0xf]  ;;  %v473_v35 = vunpack.c.l.b16 %v256_v22 }
  0x66   :  { %v7826_v30 = vld [vmem:[#allocation5 + $0x4ec] sm:$0xf0]  ;;  %v6027_v31 = vld [vmem:[#allocation5 + $0x5e0] sm:$0xf]  ;;  %v5660_v43 = vor.u32 %v7766_v28, %v5659_v27  ;;  %1504 = vmatpush.bf16.msra.mxu2 %v5532_v39  ;;  %v5469_v26 = vld [vmem:[#allocation5 + $0x190] sm:$0xf0]  ;;  %v5344_v28 = vor.u32 %v7684_v20, %v5341_v21 }
  0x67   :  { %v7858_v32 = vld [vmem:[#allocation5 + $0x5ec] sm:$0xf0]  ;;  %v6043_v40 = vld [vmem:[#allocation5 + $0x600] sm:$0xf]  ;;  %v5900_v44 = vor.u32 %v7826_v30, %v5899_v29  ;;  %v8898_v53 = vpack.c.b16 %v469_v36, %v469_v36  ;;  %v8902_v60 = vpack.c.b16 %v470_v42, %v470_v42  ;;  %1479 = vmatmul.bf16.vlgmr.msra.gmra.mxu0 %v8900_v57  ;;  %v7680_v33 = vld [vmem:[#allocation5 + $0x64] sm:$0xf]  ;;  %v5472_v36 = vor.u32 %v7716_v25, %v5469_v26 }
  0x68   :  { %v7862_v45 = vld [vmem:[#allocation5 + $0x60c] sm:$0xf0]  ;;  %v6028_v48 = vor.u32 %v7858_v32, %v6027_v31  ;;  %v5883_v50 = vld [vmem:[#allocation5 + $0x4c0] sm:$0xf]  ;;  %1517 = vmatpush.bf16.msra.mxu3 %v5660_v43  ;;  %1492 = vmatmul.bf16.vlgmr.msra.gmra.mxu1 %v8906_v6  ;;  %v7712_v38 = vld [vmem:[#allocation5 + $0x164] sm:$0xf]  ;;  %v5328_v41 = vor.u32 %v7680_v33, %v5325_v34 }
  0x69   :  { %v7822_v51 = vld [vmem:[#allocation5 + $0x4cc] sm:$0xf0]  ;;  %v6011_v52 = vld [vmem:[#allocation5 + $0x5c0] sm:$0xf]  ;;  %v6044_v59 = vor.u32 %v7862_v45, %v6043_v40  ;;  %1523 = vmatpush.bf16.msrb.mxu0 %v5900_v44  ;;  %1505 = vmatmul.bf16.vlgmr.msra.gmra.mxu2 %v8898_v53  ;;  %v5453_v39 = vld [vmem:[#allocation5 + $0x170] sm:$0xf0] }
  0x6a   :  { %v7854_v54 = vld [vmem:[#allocation5 + $0x5cc] sm:$0xf0]  ;;  %v5884_v62 = vor.u32 %v7822_v51, %v5883_v50  ;;  %1536 = vmatpush.bf16.msrb.mxu1 %v6028_v48  ;;  %v5867_v3 = vld [vmem:[#allocation5 + $0x4a0] sm:$0xf]  ;;  %v5309_v47 = vld [vmem:[#allocation5 + $0x50] sm:$0xf0]  ;;  %v8910_v48 = vpack.c.b16 %v473_v35, %v473_v35 }
  0x6b   :  { %v6012_v1 = vor.u32 %v7854_v54, %v6011_v52  ;;  %v7818_v4 = vld [vmem:[#allocation5 + $0x4ac] sm:$0xf0]  ;;  %v5995_v5 = vld [vmem:[#allocation5 + $0x5a0] sm:$0xf]  ;;  %1556 = vmatpush.bf16.msrb.mxu2 %v6044_v59  ;;  %1518 = vmatmul.bf16.vlgmr.msra.gmra.mxu3 %v8902_v60  ;;  %v7708_v51 = vld [vmem:[#allocation5 + $0x144] sm:$0xf]  ;;  %v5312_v55 = vor.u32 %v7676_v46, %v5309_v47 }
  0x6c   :  { %1562 = vmatpush.bf16.msrb.mxu3 %v5392_v49  ;;  %v7850_v7 = vld [vmem:[#allocation5 + $0x5ac] sm:$0xf0]  ;;  %v5868_v11 = vor.u32 %v7818_v4, %v5867_v3  ;;  %v5851_v16 = vld [vmem:[#allocation5 + $0x480] sm:$0xf]  ;;  %v5456_v49 = vor.u32 %v7712_v38, %v5453_v39  ;;  %v5437_v52 = vld [vmem:[#allocation5 + $0x150] sm:$0xf0] }
  0x6d   :  { %1524 = vmatpush.bf16.msrb.mxu0 %v5884_v62  ;;  %v5996_v14 = vor.u32 %v7850_v7, %v5995_v5  ;;  %v7814_v17 = vld [vmem:[#allocation5 + $0x48c] sm:$0xf0]  ;;  %v5979_v18 = vld [vmem:[#allocation5 + $0x580] sm:$0xf]  ;;  %v7672_v62 = vld [vmem:[#allocation5 + $0x24] sm:$0xf] }
  0x6e   :  { %1537 = vmatpush.bf16.msrb.mxu1 %v6012_v1  ;;  %v7846_v19 = vld [vmem:[#allocation5 + $0x58c] sm:$0xf0]  ;;  %v5852_v24 = vor.u32 %v7814_v17, %v5851_v16  ;;  %v5835_v29 = vld [vmem:[#allocation5 + $0x460] sm:$0xf]  ;;  %v5293_v63 = vld [vmem:[#allocation5 + $0x30] sm:$0xf0]  ;;  %v5440_v1 = vor.u32 %v7708_v51, %v5437_v52 }
  0x6f   :  { %1575 = vmatpush.bf16.msra.mxu2 %v5520_v61  ;;  %v5980_v27 = vor.u32 %v7846_v19, %v5979_v18  ;;  %v7810_v30 = vld [vmem:[#allocation5 + $0x46c] sm:$0xf0]  ;;  %v5963_v31 = vld [vmem:[#allocation5 + $0x560] sm:$0xf]  ;;  %v7704_v0 = vld [vmem:[#allocation5 + $0x124] sm:$0xf]  ;;  %v5296_v8 = vor.u32 %v7672_v62, %v5293_v63 }
  0x70   :  { %1563 = vmatpush.bf16.msrb.mxu3 %v5376_v2  ;;  %v7842_v32 = vld [vmem:[#allocation5 + $0x56c] sm:$0xf0]  ;;  %v5836_v37 = vor.u32 %v7810_v30, %v5835_v29  ;;  %v5819_v42 = vld [vmem:[#allocation5 + $0x440] sm:$0xf]  ;;  %v5421_v3 = vld [vmem:[#allocation5 + $0x130] sm:$0xf0] }
  0x71   :  { %1525 = vmatpush.bf16.msrb.mxu0 %v5868_v11  ;;  %v5964_v40 = vor.u32 %v7842_v32, %v5963_v31  ;;  %v7806_v43 = vld [vmem:[#allocation5 + $0x44c] sm:$0xf0]  ;;  %v5947_v44 = vld [vmem:[#allocation5 + $0x540] sm:$0xf]  ;;  %v255_v5 = vld [vmem:[#allocation2 + $0x10] sm:$0xff]  ;;  %v5424_v19 = vor.u32 %v7704_v0, %v5421_v3 }
  0x72   :  { %1538 = vmatpush.bf16.msrb.mxu1 %v5996_v14  ;;  %v7838_v45 = vld [vmem:[#allocation5 + $0x54c] sm:$0xf0]  ;;  %v5820_v50 = vor.u32 %v7806_v43, %v5819_v42  ;;  %v5803_v56 = vld [vmem:[#allocation5 + $0x420] sm:$0xf]  ;;  %v7668_v12 = vld [vmem:[#allocation5 + $0x4] sm:$0xf]  ;;  %v471_v18 = vunpack.c.l.b16 %v255_v5 }
  0x73   :  { %1576 = vmatpush.bf16.msra.mxu2 %v5504_v10  ;;  %v5948_v54 = vor.u32 %v7838_v45, %v5947_v44  ;;  %v7802_v58 = vld [vmem:[#allocation5 + $0x42c] sm:$0xf0]  ;;  %v5931_v59 = vld [vmem:[#allocation5 + $0x520] sm:$0xf]  ;;  %v5277_v13 = vld [vmem:[#allocation5 + $0x10] sm:$0xf0] }
  0x74   :  { %1564 = vmatpush.bf16.msrb.mxu3 %v5360_v15  ;;  %v7834_v61 = vld [vmem:[#allocation5 + $0x52c] sm:$0xf0]  ;;  %v5804_v2 = vor.u32 %v7802_v58, %v5803_v56  ;;  %v5787_v4 = vld [vmem:[#allocation5 + $0x400] sm:$0xf]  ;;  %v7760_v14 = vld [vmem:[#allocation5 + $0x2e4] sm:$0xf]  ;;  %v5280_v25 = vor.u32 %v7668_v12, %v5277_v13  ;;  %v8914_v34 = vpack.c.b16 %v471_v18, %v471_v18 }
  0x75   :  { %1526 = vmatpush.bf16.msrb.mxu0 %v5852_v24  ;;  %v5932_v7 = vor.u32 %v7834_v61, %v5931_v59  ;;  %v7798_v9 = vld [vmem:[#allocation5 + $0x40c] sm:$0xf0]  ;;  %v5915_v10 = vld [vmem:[#allocation5 + $0x500] sm:$0xf]  ;;  %v5645_v15 = vld [vmem:[#allocation5 + $0x2f0] sm:$0xf0] }
  0x76   :  { %1539 = vmatpush.bf16.msrb.mxu1 %v5980_v27  ;;  %v7830_v11 = vld [vmem:[#allocation5 + $0x50c] sm:$0xf0]  ;;  %v7792_v16 = vld [vmem:[#allocation5 + $0x3e4] sm:$0xf]  ;;  %v5773_v17 = vld [vmem:[#allocation5 + $0x3f0] sm:$0xf0]  ;;  %v5788_v20 = vor.u32 %v7798_v9, %v5787_v4 }
  0x77   :  { %1577 = vmatpush.bf16.msra.mxu2 %v5488_v23  ;;  %v7824_v21 = vld [vmem:[#allocation5 + $0x4e4] sm:$0xf]  ;;  %v5901_v22 = vld [vmem:[#allocation5 + $0x4f0] sm:$0xf0]  ;;  %v472_v23 = vunpack.c.h.b16 %v255_v5  ;;  %v5916_v24 = vor.u32 %v7830_v11, %v5915_v10  ;;  %v5776_v29 = vor.u32 %v7792_v16, %v5773_v17 }
  0x78   :  { %1565 = vmatpush.bf16.msrb.mxu3 %v5344_v28  ;;  %v7700_v26 = vld [vmem:[#allocation5 + $0x104] sm:$0xf]  ;;  %v5405_v27 = vld [vmem:[#allocation5 + $0x110] sm:$0xf0]  ;;  %v5648_v28 = vor.u32 %v7760_v14, %v5645_v15  ;;  %v5904_v33 = vor.u32 %v7824_v21, %v5901_v22 }
  0x79   :  { %1527 = vmatpush.bf16.msrb.mxu0 %v5836_v37  ;;  %6057 = vmatmul.msk.bf16.vlgmr.msrb.gmra.mxu2 %vm1467_vm0, %v8910_v48  ;;  %v7856_v30 = vld [vmem:[#allocation5 + $0x5e4] sm:$0xf]  ;;  %v6029_v31 = vld [vmem:[#allocation5 + $0x5f0] sm:$0xf0]  ;;  %v5408_v38 = vor.u32 %v7700_v26, %v5405_v27  ;;  %v8916_v39 = vpack.c.b16 %v472_v23, %v472_v23 }
  0x7a   :  { %1540 = vmatpush.bf16.msrb.mxu1 %v5964_v40  ;;  %v7756_v32 = vld [vmem:[#allocation5 + $0x2c4] sm:$0xf]  ;;  %v5629_v35 = vld [vmem:[#allocation5 + $0x2d0] sm:$0xf0]  ;;  %v6032_v42 = vor.u32 %v7856_v30, %v6029_v31 }
  0x7b   :  { %1578 = vmatpush.bf16.msra.mxu2 %v5472_v36  ;;  %v7788_v36 = vld [vmem:[#allocation5 + $0x3c4] sm:$0xf]  ;;  %v5757_v37 = vld [vmem:[#allocation5 + $0x3d0] sm:$0xf0]  ;;  %v5632_v43 = vor.u32 %v7756_v32, %v5629_v35 }
  0x7c   :  { %1566 = vmatpush.bf16.msrb.mxu3 %v5328_v41  ;;  %v7820_v40 = vld [vmem:[#allocation5 + $0x4c4] sm:$0xf]  ;;  %v5885_v41 = vld [vmem:[#allocation5 + $0x4d0] sm:$0xf0]  ;;  %v5760_v44 = vor.u32 %v7788_v36, %v5757_v37 }
  0x7d   :  { %1528 = vmatpush.bf16.msrb.mxu0 %v5820_v50  ;;  %v7852_v45 = vld [vmem:[#allocation5 + $0x5c4] sm:$0xf]  ;;  %v6013_v46 = vld [vmem:[#allocation5 + $0x5d0] sm:$0xf0] }
  0x7e   :  { %1541 = vmatpush.bf16.msrb.mxu1 %v5948_v54  ;;  %v7752_v47 = vld [vmem:[#allocation5 + $0x2a4] sm:$0xf]  ;;  %v5613_v50 = vld [vmem:[#allocation5 + $0x2b0] sm:$0xf0]  ;;  %v6016_v56 = vor.u32 %v7852_v45, %v6013_v46 }
  0x7f   :  { %1579 = vmatpush.bf16.msra.mxu2 %v5456_v49  ;;  %v5888_v49 = vor.u32 %v7820_v40, %v5885_v41  ;;  %v7784_v51 = vld [vmem:[#allocation5 + $0x3a4] sm:$0xf]  ;;  %v5741_v52 = vld [vmem:[#allocation5 + $0x3b0] sm:$0xf0]  ;;  %v5616_v58 = vor.u32 %v7752_v47, %v5613_v50 }
  0x80   :  { %1567 = vmatpush.bf16.msrb.mxu3 %v5312_v55  ;;  %v7816_v54 = vld [vmem:[#allocation5 + $0x4a4] sm:$0xf]  ;;  %v5869_v55 = vld [vmem:[#allocation5 + $0x4b0] sm:$0xf0]  ;;  %v5744_v59 = vor.u32 %v7784_v51, %v5741_v52 }
  0x81   :  { %1529 = vmatpush.bf16.msrb.mxu0 %v5804_v2  ;;  %v7848_v61 = vld [vmem:[#allocation5 + $0x5a4] sm:$0xf]  ;;  %v5997_v62 = vld [vmem:[#allocation5 + $0x5b0] sm:$0xf0]  ;;  %v5872_v0 = vor.u32 %v7816_v54, %v5869_v55 }
  0x82   :  { %1542 = vmatpush.bf16.msrb.mxu1 %v5932_v7  ;;  %v7748_v63 = vld [vmem:[#allocation5 + $0x284] sm:$0xf]  ;;  %v5725_v3 = vld [vmem:[#allocation5 + $0x390] sm:$0xf0]  ;;  %v6000_v7 = vor.u32 %v7848_v61, %v5997_v62  ;;  %v5395_v61 = vld [vmem:[#allocation5 + $0xe8] sm:$0xf] }
  0x83   :  { %1580 = vmatpush.bf16.msra.mxu2 %v5440_v1  ;;  %v5597_v1 = vld [vmem:[#allocation5 + $0x290] sm:$0xf0]  ;;  %v7780_v2 = vld [vmem:[#allocation5 + $0x384] sm:$0xf]  ;;  %v7699_v62 = vld [vmem:[#allocation5 + $0xf4] sm:$0xf0] }
  0x84   :  { %1568 = vmatpush.bf16.msrb.mxu3 %v5296_v8  ;;  %v7812_v4 = vld [vmem:[#allocation5 + $0x484] sm:$0xf]  ;;  %v5853_v5 = vld [vmem:[#allocation5 + $0x490] sm:$0xf0]  ;;  %v5600_v8 = vor.u32 %v7748_v63, %v5597_v1  ;;  %v5728_v9 = vor.u32 %v7780_v2, %v5725_v3  ;;  %v5523_v63 = vld [vmem:[#allocation5 + $0x1e8] sm:$0xf] }
  0x85   :  { %1530 = vmatpush.bf16.msrb.mxu0 %v5788_v20  ;;  %v7844_v10 = vld [vmem:[#allocation5 + $0x584] sm:$0xf]  ;;  %v5981_v11 = vld [vmem:[#allocation5 + $0x590] sm:$0xf0]  ;;  %v5856_v13 = vor.u32 %v7812_v4, %v5853_v5  ;;  %v7731_v1 = vld [vmem:[#allocation5 + $0x1f4] sm:$0xf0] }
  0x86   :  { %1543 = vmatpush.bf16.msrb.mxu1 %v5916_v24  ;;  %v7744_v12 = vld [vmem:[#allocation5 + $0x264] sm:$0xf]  ;;  %v5581_v14 = vld [vmem:[#allocation5 + $0x270] sm:$0xf0] }
  0x87   :  { %1581 = vmatpush.bf16.msra.mxu2 %v5424_v19  ;;  %v7776_v15 = vld [vmem:[#allocation5 + $0x364] sm:$0xf]  ;;  %v5709_v16 = vld [vmem:[#allocation5 + $0x370] sm:$0xf0]  ;;  %v5984_v19 = vor.u32 %v7844_v10, %v5981_v11  ;;  %v5584_v20 = vor.u32 %v7744_v12, %v5581_v14  ;;  %v5396_v10 = vor.u32 %v7699_v62, %v5395_v61  ;;  %v5779_v11 = vld [vmem:[#allocation5 + $0x3e8] sm:$0xf]  ;;  %v5524_v14 = vor.u32 %v7731_v1, %v5523_v63 }
  0x88   :  { %1569 = vmatpush.bf16.msrb.mxu3 %v5280_v25  ;;  %1531 = vmatmul.bf16.vlgmr.msrb.gmra.mxu0 %v8914_v34  ;;  %v7808_v17 = vld [vmem:[#allocation5 + $0x464] sm:$0xf]  ;;  %v5837_v18 = vld [vmem:[#allocation5 + $0x470] sm:$0xf0]  ;;  %v5712_v21 = vor.u32 %v7776_v15, %v5709_v16  ;;  %v7795_v12 = vld [vmem:[#allocation5 + $0x3f4] sm:$0xf0] }
  0x89   :  { %1588 = vmatpush.bf16.msra.mxu0 %v5648_v28  ;;  %1544 = vmatmul.bf16.vlgmr.msrb.gmra.mxu1 %v8916_v39  ;;  %v7840_v22 = vld [vmem:[#allocation5 + $0x564] sm:$0xf]  ;;  %v5965_v23 = vld [vmem:[#allocation5 + $0x570] sm:$0xf0]  ;;  %v5840_v25 = vor.u32 %v7808_v17, %v5837_v18  ;;  %v7695_v15 = vld [vmem:[#allocation5 + $0xd4] sm:$0xf0] }
  0x8a   :  { %1601 = vmatpush.bf16.msra.mxu1 %v5776_v29  ;;  %v7740_v24 = vld [vmem:[#allocation5 + $0x244] sm:$0xf]  ;;  %v5565_v26 = vld [vmem:[#allocation5 + $0x250] sm:$0xf0]  ;;  %v5968_v31 = vor.u32 %v7840_v22, %v5965_v23  ;;  %v5651_v17 = vld [vmem:[#allocation5 + $0x2e8] sm:$0xf]  ;;  %v5780_v22 = vor.u32 %v7795_v12, %v5779_v11 }
  0x8b   :  { %1582 = vmatpush.bf16.msra.mxu2 %v5408_v38  ;;  %1570 = vmatmul.bf16.vlgmr.msrb.gmra.mxu3 %v8900_v57  ;;  %v7772_v27 = vld [vmem:[#allocation5 + $0x344] sm:$0xf]  ;;  %v5693_v28 = vld [vmem:[#allocation5 + $0x350] sm:$0xf0]  ;;  %v7763_v18 = vld [vmem:[#allocation5 + $0x2f4] sm:$0xf0] }
  0x8c   :  { %1614 = vmatpush.bf16.msra.mxu3 %v5904_v33  ;;  %v7804_v29 = vld [vmem:[#allocation5 + $0x444] sm:$0xf]  ;;  %v5821_v30 = vld [vmem:[#allocation5 + $0x450] sm:$0xf0]  ;;  %v5568_v33 = vor.u32 %v7740_v24, %v5565_v26  ;;  %v5696_v35 = vor.u32 %v7772_v27, %v5693_v28  ;;  %v5763_v24 = vld [vmem:[#allocation5 + $0x3c8] sm:$0xf]  ;;  %v5652_v27 = vor.u32 %v7763_v18, %v5651_v17 }
  0x8d   :  { %1589 = vmatpush.bf16.msra.mxu0 %v5632_v43  ;;  %v7836_v32 = vld [vmem:[#allocation5 + $0x544] sm:$0xf]  ;;  %v5949_v36 = vld [vmem:[#allocation5 + $0x550] sm:$0xf0]  ;;  %v5824_v40 = vor.u32 %v7804_v29, %v5821_v30  ;;  %v5363_v26 = vld [vmem:[#allocation5 + $0xa8] sm:$0xf] }
  0x8e   :  { %1602 = vmatpush.bf16.msra.mxu1 %v5760_v44  ;;  %1583 = vmatmul.bf16.vlgmr.msra.gmra.mxu2 %v8906_v6  ;;  %v7736_v37 = vld [vmem:[#allocation5 + $0x224] sm:$0xf]  ;;  %v5549_v38 = vld [vmem:[#allocation5 + $0x230] sm:$0xf0]  ;;  %v5952_v45 = vor.u32 %v7836_v32, %v5949_v36  ;;  %v7691_v29 = vld [vmem:[#allocation5 + $0xb4] sm:$0xf0] }
  0x8f   :  { %1627 = vmatpush.bf16.msrb.mxu2 %v6032_v42  ;;  %v7768_v41 = vld [vmem:[#allocation5 + $0x324] sm:$0xf]  ;;  %v5677_v42 = vld [vmem:[#allocation5 + $0x330] sm:$0xf0]  ;;  %v5552_v50 = vor.u32 %v7736_v37, %v5549_v38  ;;  %v5635_v30 = vld [vmem:[#allocation5 + $0x2c8] sm:$0xf]  ;;  %v5364_v36 = vor.u32 %v7691_v29, %v5363_v26 }
  0x90   :  { %1615 = vmatpush.bf16.msra.mxu3 %v5888_v49  ;;  %v7800_v43 = vld [vmem:[#allocation5 + $0x424] sm:$0xf]  ;;  %v5805_v44 = vld [vmem:[#allocation5 + $0x430] sm:$0xf0]  ;;  %v5680_v51 = vor.u32 %v7768_v41, %v5677_v42  ;;  %v5491_v32 = vld [vmem:[#allocation5 + $0x1a8] sm:$0xf] }
  0x91   :  { %1590 = vmatpush.bf16.msra.mxu0 %v5616_v58  ;;  %v7832_v46 = vld [vmem:[#allocation5 + $0x524] sm:$0xf]  ;;  %v5933_v47 = vld [vmem:[#allocation5 + $0x530] sm:$0xf0]  ;;  %v5747_v37 = vld [vmem:[#allocation5 + $0x3a8] sm:$0xf] }
  0x92   :  { %1603 = vmatpush.bf16.msra.mxu1 %v5744_v59  ;;  %v7732_v49 = vld [vmem:[#allocation5 + $0x204] sm:$0xf]  ;;  %v5533_v52 = vld [vmem:[#allocation5 + $0x210] sm:$0xf0]  ;;  %v7787_v38 = vld [vmem:[#allocation5 + $0x3b4] sm:$0xf0] }
  0x93   :  { %1628 = vmatpush.bf16.msrb.mxu2 %v6016_v56  ;;  %v7764_v54 = vld [vmem:[#allocation5 + $0x304] sm:$0xf]  ;;  %v5661_v55 = vld [vmem:[#allocation5 + $0x310] sm:$0xf0]  ;;  %v5808_v56 = vor.u32 %v7800_v43, %v5805_v44  ;;  %v5536_v4 = vor.u32 %v7732_v49, %v5533_v52  ;;  %v7687_v43 = vld [vmem:[#allocation5 + $0x94] sm:$0xf0]  ;;  %v5748_v49 = vor.u32 %v7787_v38, %v5747_v37 }
  0x94   :  { %1616 = vmatpush.bf16.msra.mxu3 %v5872_v0  ;;  %v7796_v58 = vld [vmem:[#allocation5 + $0x404] sm:$0xf]  ;;  %v5789_v59 = vld [vmem:[#allocation5 + $0x410] sm:$0xf0]  ;;  %v5936_v0 = vor.u32 %v7832_v46, %v5933_v47  ;;  %v5664_v5 = vor.u32 %v7764_v54, %v5661_v55  ;;  %v5619_v44 = vld [vmem:[#allocation5 + $0x2a8] sm:$0xf] }
  0x95   :  { %1591 = vmatpush.bf16.msra.mxu0 %v5600_v8  ;;  %v7860_v2 = vld [vmem:[#allocation5 + $0x604] sm:$0xf]  ;;  %v6045_v3 = vld [vmem:[#allocation5 + $0x610] sm:$0xf0]  ;;  %v5475_v46 = vld [vmem:[#allocation5 + $0x188] sm:$0xf] }
  0x96   :  { %1604 = vmatpush.bf16.msra.mxu1 %v5728_v9  ;;  %v5917_v8 = vld [vmem:[#allocation5 + $0x510] sm:$0xf0]  ;;  %v5792_v9 = vor.u32 %v7796_v58, %v5789_v59  ;;  %v6048_v16 = vor.u32 %v7860_v2, %v6045_v3  ;;  %v7719_v47 = vld [vmem:[#allocation5 + $0x194] sm:$0xf0]  ;;  %v5331_v54 = vld [vmem:[#allocation5 + $0x68] sm:$0xf] }
  0x97   :  { %1629 = vmatpush.bf16.msrb.mxu2 %v6000_v7  ;;  %v7828_v7 = vld [vmem:[#allocation5 + $0x504] sm:$0xf]  ;;  %v7783_v52 = vld [vmem:[#allocation5 + $0x394] sm:$0xf0]  ;;  %v5603_v59 = vld [vmem:[#allocation5 + $0x288] sm:$0xf] }
  0x98   :  { %1617 = vmatpush.bf16.msra.mxu3 %v5856_v13  ;;  %v5379_v13 = vld [vmem:[#allocation5 + $0xc8] sm:$0xf]  ;;  %v7683_v58 = vld [vmem:[#allocation5 + $0x74] sm:$0xf0] }
  0x99   :  { %1592 = vmatpush.bf16.msra.mxu0 %v5584_v20  ;;  %v5507_v20 = vld [vmem:[#allocation5 + $0x1c8] sm:$0xf]  ;;  %v5380_v23 = vor.u32 %v7695_v15, %v5379_v13  ;;  %v7751_v61 = vld [vmem:[#allocation5 + $0x294] sm:$0xf0]  ;;  %v5332_v1 = vor.u32 %v7683_v58, %v5331_v54 }
  0x9a   :  { %1605 = vmatpush.bf16.msra.mxu1 %v5712_v21  ;;  %v7727_v21 = vld [vmem:[#allocation5 + $0x1d4] sm:$0xf0]  ;;  %v5459_v62 = vld [vmem:[#allocation5 + $0x168] sm:$0xf] }
  0x9b   :  { %1630 = vmatpush.bf16.msrb.mxu2 %v5984_v19  ;;  %v5920_v19 = vor.u32 %v7828_v7, %v5917_v8  ;;  %v5508_v28 = vor.u32 %v7727_v21, %v5507_v20  ;;  %v7715_v63 = vld [vmem:[#allocation5 + $0x174] sm:$0xf0]  ;;  %v5715_v2 = vld [vmem:[#allocation5 + $0x368] sm:$0xf] }
  0x9c   :  { %1618 = vmatpush.bf16.msra.mxu3 %v5840_v25  ;;  %v7791_v25 = vld [vmem:[#allocation5 + $0x3d4] sm:$0xf0]  ;;  %v5460_v7 = vor.u32 %v7715_v63, %v5459_v62  ;;  %v5443_v11 = vld [vmem:[#allocation5 + $0x148] sm:$0xf] }
  0x9d   :  { %1593 = vmatpush.bf16.msra.mxu0 %v5568_v33  ;;  %v7723_v33 = vld [vmem:[#allocation5 + $0x1b4] sm:$0xf0]  ;;  %v5699_v15 = vld [vmem:[#allocation5 + $0x348] sm:$0xf] }
  0x9e   :  { %1606 = vmatpush.bf16.msra.mxu1 %v5696_v35  ;;  %v5764_v35 = vor.u32 %v7791_v25, %v5763_v24  ;;  %v5492_v42 = vor.u32 %v7723_v33, %v5491_v32  ;;  %v7779_v3 = vld [vmem:[#allocation5 + $0x374] sm:$0xf0]  ;;  %v5299_v17 = vld [vmem:[#allocation5 + $0x28] sm:$0xf] }
  0x9f   :  { %1631 = vmatpush.bf16.msrb.mxu2 %v5968_v31  ;;  %v7759_v31 = vld [vmem:[#allocation5 + $0x2d4] sm:$0xf0]  ;;  %v5716_v13 = vor.u32 %v7779_v3, %v5715_v2  ;;  %v5571_v21 = vld [vmem:[#allocation5 + $0x248] sm:$0xf] }
  0xa0   :  { %1619 = vmatpush.bf16.msra.mxu3 %v5824_v40  ;;  %v5347_v40 = vld [vmem:[#allocation5 + $0x88] sm:$0xf]  ;;  %v5636_v41 = vor.u32 %v7759_v31, %v5635_v30  ;;  %v7679_v8 = vld [vmem:[#allocation5 + $0x54] sm:$0xf0] }
  0xa1   :  { %1594 = vmatpush.bf16.msra.mxu0 %v5552_v50  ;;  %v5348_v50 = vor.u32 %v7687_v43, %v5347_v40  ;;  %v7711_v12 = vld [vmem:[#allocation5 + $0x154] sm:$0xf0]  ;;  %v5683_v26 = vld [vmem:[#allocation5 + $0x328] sm:$0xf] }
  0xa2   :  { %1607 = vmatpush.bf16.msra.mxu1 %v5680_v51  ;;  %v5731_v51 = vld [vmem:[#allocation5 + $0x388] sm:$0xf]  ;;  %v7675_v20 = vld [vmem:[#allocation5 + $0x34] sm:$0xf0] }
  0xa3   :  { %1632 = vmatpush.bf16.msrb.mxu2 %v5952_v45  ;;  %v7755_v45 = vld [vmem:[#allocation5 + $0x2b4] sm:$0xf0]  ;;  %v5283_v29 = vld [vmem:[#allocation5 + $0x8] sm:$0xf] }
  0xa4   :  { %1620 = vmatpush.bf16.msra.mxu3 %v5808_v56  ;;  %v5620_v55 = vor.u32 %v7755_v45, %v5619_v44  ;;  %v5476_v56 = vor.u32 %v7719_v47, %v5475_v46  ;;  %v7707_v24 = vld [vmem:[#allocation5 + $0x134] sm:$0xf0]  ;;  %v5411_v33 = vld [vmem:[#allocation5 + $0x108] sm:$0xf] }
  0xa5   :  { %1595 = vmatpush.bf16.msra.mxu0 %v5536_v4  ;;  %v5315_v4 = vld [vmem:[#allocation5 + $0x48] sm:$0xf]  ;;  %v7671_v30 = vld [vmem:[#allocation5 + $0x14] sm:$0xf0] }
  0xa6   :  { %1608 = vmatpush.bf16.msra.mxu1 %v5664_v5  ;;  %v5604_v5 = vor.u32 %v7751_v61, %v5603_v59  ;;  %v7703_v37 = vld [vmem:[#allocation5 + $0x114] sm:$0xf0]  ;;  %v5907_v38 = vld [vmem:[#allocation5 + $0x4e8] sm:$0xf]  ;;  %v5284_v45 = vor.u32 %v7671_v30, %v5283_v29  ;;  %v7685_v29 = vld [vmem:[#allocation5 + $0x8c] sm:$0xf] }
  0xa7   :  { %1633 = vmatpush.bf16.msrb.mxu2 %v5936_v0  ;;  %v5732_v0 = vor.u32 %v7783_v52, %v5731_v51  ;;  %v7827_v40 = vld [vmem:[#allocation5 + $0x4f4] sm:$0xf0]  ;;  %v5667_v44 = vld [vmem:[#allocation5 + $0x308] sm:$0xf]  ;;  %v5412_v51 = vor.u32 %v7703_v37, %v5411_v33  ;;  %v7721_v33 = vld [vmem:[#allocation5 + $0x1ac] sm:$0xf] }
  0xa8   :  { %1621 = vmatpush.bf16.msra.mxu3 %v5792_v9  ;;  %1596 = vmatmul.bf16.vlgmr.msra.gmra.mxu0 %v8898_v53  ;;  %v5587_v9 = vld [vmem:[#allocation5 + $0x268] sm:$0xf]  ;;  %v7859_v43 = vld [vmem:[#allocation5 + $0x5f4] sm:$0xf0]  ;;  %v5908_v52 = vor.u32 %v7827_v40, %v5907_v38 }
  0xa9   :  { %1647 = vmatpush.bf16.msrb.mxu0 %v6048_v16  ;;  %1609 = vmatmul.bf16.vlgmr.msra.gmra.mxu1 %v8902_v60  ;;  %v7775_v16 = vld [vmem:[#allocation5 + $0x354] sm:$0xf0]  ;;  %v5891_v54 = vld [vmem:[#allocation5 + $0x4c8] sm:$0xf] }
  0xaa   :  { %1653 = vmatpush.bf16.msrb.mxu1 %v5396_v10  ;;  %v7747_v10 = vld [vmem:[#allocation5 + $0x274] sm:$0xf0]  ;;  %v5700_v25 = vor.u32 %v7775_v16, %v5699_v15  ;;  %v6051_v61 = vld [vmem:[#allocation5 + $0x608] sm:$0xf] }
  0xab   :  { %1634 = vmatpush.bf16.msrb.mxu2 %v5920_v19  ;;  %1622 = vmatmul.bf16.vlgmr.msra.gmra.mxu3 %v8914_v34  ;;  %v5588_v18 = vor.u32 %v7747_v10, %v5587_v9  ;;  %v5444_v19 = vor.u32 %v7711_v12, %v5443_v11  ;;  %v7767_v46 = vld [vmem:[#allocation5 + $0x314] sm:$0xf0]  ;;  %v7729_v9 = vld [vmem:[#allocation5 + $0x1ec] sm:$0xf]  ;;  %v5525_v10 = vld [vmem:[#allocation5 + $0x1f8] sm:$0xf0] }
  0xac   :  { %1666 = vmatpush.bf16.msrb.mxu3 %v5524_v14  ;;  %v5316_v14 = vor.u32 %v7679_v8, %v5315_v4  ;;  %v7823_v59 = vld [vmem:[#allocation5 + $0x4d4] sm:$0xf0]  ;;  %v5668_v63 = vor.u32 %v7767_v46, %v5667_v44  ;;  %v7693_v4 = vld [vmem:[#allocation5 + $0xcc] sm:$0xf]  ;;  %v5875_v12 = vld [vmem:[#allocation5 + $0x4a8] sm:$0xf] }
  0xad   :  { %1679 = vmatpush.bf16.msra.mxu0 %v5652_v27  ;;  %v5300_v27 = vor.u32 %v7675_v20, %v5299_v17  ;;  %v7863_v62 = vld [vmem:[#allocation5 + $0x614] sm:$0xf0]  ;;  %v7689_v17 = vld [vmem:[#allocation5 + $0xac] sm:$0xf]  ;;  %v5365_v20 = vld [vmem:[#allocation5 + $0xb8] sm:$0xf0] }
  0xae   :  { %1654 = vmatpush.bf16.msrb.mxu1 %v5380_v23  ;;  %1635 = vmatmul.bf16.vlgmr.msrb.gmra.mxu2 %v8916_v39  ;;  %v5427_v23 = vld [vmem:[#allocation5 + $0x128] sm:$0xf]  ;;  %v6052_v8 = vor.u32 %v7863_v62, %v6051_v61  ;;  %v7851_v15 = vld [vmem:[#allocation5 + $0x5b4] sm:$0xf0]  ;;  %v5333_v46 = vld [vmem:[#allocation5 + $0x78] sm:$0xf0] }
  0xaf   :  { %1692 = vmatpush.bf16.msra.mxu2 %v5780_v22  ;;  %v7743_v22 = vld [vmem:[#allocation5 + $0x254] sm:$0xf0]  ;;  %v5428_v32 = vor.u32 %v7707_v24, %v5427_v23  ;;  %v5859_v24 = vld [vmem:[#allocation5 + $0x488] sm:$0xf]  ;;  %v5317_v62 = vld [vmem:[#allocation5 + $0x58] sm:$0xf0] }
  0xb0   :  { %1667 = vmatpush.bf16.msrb.mxu3 %v5508_v28  ;;  %v7771_v28 = vld [vmem:[#allocation5 + $0x334] sm:$0xf0]  ;;  %v5572_v31 = vor.u32 %v7743_v22, %v5571_v21  ;;  %v7725_v21 = vld [vmem:[#allocation5 + $0x1cc] sm:$0xf]  ;;  %v5509_v22 = vld [vmem:[#allocation5 + $0x1d8] sm:$0xf0] }
  0xb1   :  { %1680 = vmatpush.bf16.msra.mxu0 %v5636_v41  ;;  %v5684_v41 = vor.u32 %v7771_v28, %v5683_v26  ;;  %v5987_v26 = vld [vmem:[#allocation5 + $0x588] sm:$0xf]  ;;  %v5368_v28 = vor.u32 %v7689_v17, %v5365_v20  ;;  %v5512_v30 = vor.u32 %v7725_v21, %v5509_v22  ;;  %v7811_v38 = vld [vmem:[#allocation5 + $0x474] sm:$0xf0]  ;;  %v5653_v20 = vld [vmem:[#allocation5 + $0x2f8] sm:$0xf0] }
  0xb2   :  { %1655 = vmatpush.bf16.msrb.mxu1 %v5364_v36  ;;  %v7739_v36 = vld [vmem:[#allocation5 + $0x234] sm:$0xf0]  ;;  %v5843_v37 = vld [vmem:[#allocation5 + $0x468] sm:$0xf]  ;;  %v7793_v22 = vld [vmem:[#allocation5 + $0x3ec] sm:$0xf] }
  0xb3   :  { %1693 = vmatpush.bf16.msra.mxu2 %v5764_v35  ;;  %v5555_v35 = vld [vmem:[#allocation5 + $0x228] sm:$0xf] }
  0xb4   :  { %1668 = vmatpush.bf16.msrb.mxu3 %v5492_v42  ;;  %v6035_v42 = vld [vmem:[#allocation5 + $0x5e8] sm:$0xf]  ;;  %v5556_v47 = vor.u32 %v7739_v36, %v5555_v35  ;;  %v5493_v35 = vld [vmem:[#allocation5 + $0x1b8] sm:$0xf0] }
  0xb5   :  { %1681 = vmatpush.bf16.msra.mxu0 %v5620_v55  ;;  %v5539_v55 = vld [vmem:[#allocation5 + $0x208] sm:$0xf]  ;;  %v6036_v58 = vor.u32 %v7859_v43, %v6035_v42  ;;  %v7681_v43 = vld [vmem:[#allocation5 + $0x6c] sm:$0xf]  ;;  %v5496_v44 = vor.u32 %v7721_v33, %v5493_v35  ;;  %v5637_v35 = vld [vmem:[#allocation5 + $0x2d8] sm:$0xf0] }
  0xb6   :  { %1656 = vmatpush.bf16.msrb.mxu1 %v5348_v50  ;;  %v5397_v50 = vld [vmem:[#allocation5 + $0xf8] sm:$0xf0]  ;;  %v5971_v40 = vld [vmem:[#allocation5 + $0x568] sm:$0xf] }
  0xb7   :  { %1694 = vmatpush.bf16.msra.mxu2 %v5748_v49  ;;  %v7697_v49 = vld [vmem:[#allocation5 + $0xec] sm:$0xf]  ;;  %v5923_v17 = vld [vmem:[#allocation5 + $0x508] sm:$0xf] }
  0xb8   :  { %1669 = vmatpush.bf16.msrb.mxu3 %v5476_v56  ;;  %6058 = vmatmul.msk.bf16.vlgmr.msrb.gmra.mxu0 %vm1467_vm0, %v8910_v48  ;;  %v7735_v56 = vld [vmem:[#allocation5 + $0x214] sm:$0xf0]  ;;  %v5400_v2 = vor.u32 %v7697_v49, %v5397_v50  ;;  %v5477_v49 = vld [vmem:[#allocation5 + $0x198] sm:$0xf0] }
  0xb9   :  { %1682 = vmatpush.bf16.msra.mxu0 %v5604_v5  ;;  %v5540_v3 = vor.u32 %v7735_v56, %v5539_v55  ;;  %v5892_v5 = vor.u32 %v7823_v59, %v5891_v54  ;;  %v5955_v54 = vld [vmem:[#allocation5 + $0x548] sm:$0xf]  ;;  %v7839_v55 = vld [vmem:[#allocation5 + $0x554] sm:$0xf0]  ;;  %v5336_v56 = vor.u32 %v7681_v43, %v5333_v46  ;;  %v7821_v43 = vld [vmem:[#allocation5 + $0x4cc] sm:$0xf] }
  0xba   :  { %1657 = vmatpush.bf16.msrb.mxu1 %v5332_v1  ;;  %v7855_v1 = vld [vmem:[#allocation5 + $0x5d4] sm:$0xf0]  ;;  %v5893_v46 = vld [vmem:[#allocation5 + $0x4d8] sm:$0xf0] }
  0xbb   :  { %1695 = vmatpush.bf16.msra.mxu2 %v5732_v0  ;;  %v6019_v0 = vld [vmem:[#allocation5 + $0x5c8] sm:$0xf] }
  0xbc   :  { %1670 = vmatpush.bf16.msrb.mxu3 %v5460_v7  ;;  %v5381_v7 = vld [vmem:[#allocation5 + $0xd8] sm:$0xf0]  ;;  %v6020_v11 = vor.u32 %v7855_v1, %v6019_v0  ;;  %v5956_v1 = vor.u32 %v7839_v55, %v5955_v54 }
  0xbd   :  { %1683 = vmatpush.bf16.msra.mxu0 %v5588_v18  ;;  %v5384_v16 = vor.u32 %v7693_v4, %v5381_v7  ;;  %v5528_v18 = vor.u32 %v7729_v9, %v5525_v10  ;;  %v5461_v0 = vld [vmem:[#allocation5 + $0x178] sm:$0xf0]  ;;  %v5939_v4 = vld [vmem:[#allocation5 + $0x528] sm:$0xf] }
  0xbe   :  { %1658 = vmatpush.bf16.msrb.mxu1 %v5316_v14  ;;  %v6003_v14 = vld [vmem:[#allocation5 + $0x5a8] sm:$0xf]  ;;  %v5413_v54 = vld [vmem:[#allocation5 + $0x118] sm:$0xf0] }
  0xbf   :  { %1696 = vmatpush.bf16.msra.mxu2 %v5716_v13  ;;  %v7819_v13 = vld [vmem:[#allocation5 + $0x4b4] sm:$0xf0]  ;;  %v6004_v23 = vor.u32 %v7851_v15, %v6003_v14  ;;  %v5795_v15 = vld [vmem:[#allocation5 + $0x408] sm:$0xf]  ;;  %v5749_v55 = vld [vmem:[#allocation5 + $0x3b8] sm:$0xf0] }
  0xc0   :  { %1671 = vmatpush.bf16.msrb.mxu3 %v5444_v19  ;;  %v5876_v19 = vor.u32 %v7819_v13, %v5875_v12  ;;  %v7709_v12 = vld [vmem:[#allocation5 + $0x14c] sm:$0xf]  ;;  %v5445_v13 = vld [vmem:[#allocation5 + $0x158] sm:$0xf0] }
  0xc1   :  { %1684 = vmatpush.bf16.msra.mxu0 %v5572_v31 }
  0xc2   :  { %1659 = vmatpush.bf16.msrb.mxu1 %v5300_v27  ;;  %v7847_v27 = vld [vmem:[#allocation5 + $0x594] sm:$0xf0] }
  0xc3   :  { %1697 = vmatpush.bf16.msra.mxu2 %v5700_v25  ;;  %v7815_v25 = vld [vmem:[#allocation5 + $0x494] sm:$0xf0]  ;;  %v5988_v36 = vor.u32 %v7847_v27, %v5987_v26  ;;  %v7669_v26 = vld [vmem:[#allocation5 + $0xc] sm:$0xf]  ;;  %v5285_v27 = vld [vmem:[#allocation5 + $0x18] sm:$0xf0] }
  0xc4   :  { %1672 = vmatpush.bf16.msrb.mxu3 %v5428_v32  ;;  %v5860_v31 = vor.u32 %v7815_v25, %v5859_v24  ;;  %v5349_v32 = vld [vmem:[#allocation5 + $0x98] sm:$0xf0]  ;;  %v5448_v24 = vor.u32 %v7709_v12, %v5445_v13  ;;  %v7813_v12 = vld [vmem:[#allocation5 + $0x48c] sm:$0xf] }
  0xc5   :  { %1685 = vmatpush.bf16.msra.mxu0 %v5556_v47  ;;  %v5352_v42 = vor.u32 %v7685_v29, %v5349_v32  ;;  %v7717_v47 = vld [vmem:[#allocation5 + $0x18c] sm:$0xf]  ;;  %v5861_v13 = vld [vmem:[#allocation5 + $0x498] sm:$0xf0] }
  0xc6   :  { %1660 = vmatpush.bf16.msrb.mxu1 %v5284_v45  ;;  %v5844_v45 = vor.u32 %v7811_v38, %v5843_v37  ;;  %v5480_v59 = vor.u32 %v7717_v47, %v5477_v49  ;;  %v7757_v32 = vld [vmem:[#allocation5 + $0x2cc] sm:$0xf]  ;;  %v5429_v37 = vld [vmem:[#allocation5 + $0x138] sm:$0xf0]  ;;  %v5288_v38 = vor.u32 %v7669_v26, %v5285_v27 }
  0xc7   :  { %1698 = vmatpush.bf16.msra.mxu2 %v5684_v41  ;;  %v7843_v41 = vld [vmem:[#allocation5 + $0x574] sm:$0xf0]  ;;  %v7753_v47 = vld [vmem:[#allocation5 + $0x2ac] sm:$0xf]  ;;  %v5621_v49 = vld [vmem:[#allocation5 + $0x2b8] sm:$0xf0] }
  0xc8   :  { %1673 = vmatpush.bf16.msrb.mxu3 %v5412_v51  ;;  %v5972_v50 = vor.u32 %v7843_v41, %v5971_v40  ;;  %v5827_v51 = vld [vmem:[#allocation5 + $0x448] sm:$0xf]  ;;  %v7789_v40 = vld [vmem:[#allocation5 + $0x3cc] sm:$0xf]  ;;  %v5765_v41 = vld [vmem:[#allocation5 + $0x3d8] sm:$0xf0] }
  0xc9   :  { %1661 = vmatmul.bf16.vlgmr.msrb.gmra.mxu1 %v8900_v57  ;;  %1686 = vmatpush.bf16.msra.mxu0 %v5540_v3  ;;  %v7803_v3 = vld [vmem:[#allocation5 + $0x434] sm:$0xf0] }
  0xca   :  { %1705 = vmatpush.bf16.msra.mxu1 %v5908_v52  ;;  %v7807_v52 = vld [vmem:[#allocation5 + $0x454] sm:$0xf0] }
  0xcb   :  { %1699 = vmatpush.bf16.msra.mxu2 %v5668_v63  ;;  %1674 = vmatmul.bf16.vlgmr.msrb.gmra.mxu3 %v8906_v6  ;;  %v5828_v61 = vor.u32 %v7807_v52, %v5827_v51  ;;  %v7713_v63 = vld [vmem:[#allocation5 + $0x16c] sm:$0xf] }
  0xcc   :  { %1718 = vmatpush.bf16.msra.mxu3 %v6036_v58  ;;  %1687 = vmatmul.bf16.vlgmr.msra.gmra.mxu0 %v8898_v53  ;;  %v7677_v58 = vld [vmem:[#allocation5 + $0x4c] sm:$0xf]  ;;  %v5464_v9 = vor.u32 %v7713_v63, %v5461_v0  ;;  %v5877_v0 = vld [vmem:[#allocation5 + $0x4b8] sm:$0xf0] }
  0xcd   :  { %1738 = vmatpush.bf16.msrb.mxu0 %v6052_v8  ;;  %v5320_v7 = vor.u32 %v7677_v58, %v5317_v62  ;;  %v7673_v8 = vld [vmem:[#allocation5 + $0x2c] sm:$0xf]  ;;  %v6037_v58 = vld [vmem:[#allocation5 + $0x5f8] sm:$0xf0] }
  0xce   :  { %1706 = vmatpush.bf16.msra.mxu1 %v5892_v5  ;;  %1700 = vmatmul.bf16.vlgmr.msra.gmra.mxu2 %v8902_v60  ;;  %v7835_v5 = vld [vmem:[#allocation5 + $0x534] sm:$0xf0]  ;;  %v7785_v51 = vld [vmem:[#allocation5 + $0x3ac] sm:$0xf] }
  0xcf   :  { %1744 = vmatpush.bf16.msrb.mxu2 %v5400_v2  ;;  %v5811_v2 = vld [vmem:[#allocation5 + $0x428] sm:$0xf]  ;;  %v5940_v14 = vor.u32 %v7835_v5, %v5939_v4  ;;  %v7701_v52 = vld [vmem:[#allocation5 + $0x10c] sm:$0xf]  ;;  %v5605_v4 = vld [vmem:[#allocation5 + $0x298] sm:$0xf0] }
  0xd0   :  { %1719 = vmatpush.bf16.msra.mxu3 %v6020_v11  ;;  %v5812_v10 = vor.u32 %v7803_v3, %v5811_v2  ;;  %v5301_v11 = vld [vmem:[#allocation5 + $0x38] sm:$0xf0]  ;;  %v5416_v62 = vor.u32 %v7701_v52, %v5413_v54  ;;  %v7817_v63 = vld [vmem:[#allocation5 + $0x4ac] sm:$0xf] }
  0xd1   :  { %1757 = vmatpush.bf16.msra.mxu0 %v5528_v18  ;;  %v7831_v18 = vld [vmem:[#allocation5 + $0x514] sm:$0xf0]  ;;  %v5304_v21 = vor.u32 %v7673_v8, %v5301_v11  ;;  %v7749_v3 = vld [vmem:[#allocation5 + $0x28c] sm:$0xf] }
  0xd2   :  { %1707 = vmatpush.bf16.msra.mxu1 %v5876_v19  ;;  %v7761_v19 = vld [vmem:[#allocation5 + $0x2ec] sm:$0xf]  ;;  %v5608_v11 = vor.u32 %v7749_v3, %v5605_v4  ;;  %v6119_v3 = vld [vmem:[#allocation8 + $0x70] sm:$0xf] }
  0xd3   :  { %1745 = vmatpush.bf16.msrb.mxu2 %v5384_v16  ;;  %v7799_v16 = vld [vmem:[#allocation5 + $0x414] sm:$0xf0]  ;;  %v5656_v29 = vor.u32 %v7761_v19, %v5653_v20  ;;  %v7781_v5 = vld [vmem:[#allocation5 + $0x38c] sm:$0xf]  ;;  %v5717_v19 = vld [vmem:[#allocation5 + $0x378] sm:$0xf0] }
  0xd4   :  { %1720 = vmatpush.bf16.msra.mxu3 %v6004_v23  ;;  %v5781_v23 = vld [vmem:[#allocation5 + $0x3f8] sm:$0xf0]  ;;  %v5796_v25 = vor.u32 %v7799_v16, %v5795_v15  ;;  %v7853_v8 = vld [vmem:[#allocation5 + $0x5cc] sm:$0xf] }
  0xd5   :  { %1758 = vmatpush.bf16.msra.mxu0 %v5512_v30  ;;  %v7825_v30 = vld [vmem:[#allocation5 + $0x4ec] sm:$0xf]  ;;  %v5784_v33 = vor.u32 %v7793_v22, %v5781_v23  ;;  %v5864_v22 = vor.u32 %v7813_v12, %v5861_v13 }
  0xd6   :  { %1708 = vmatpush.bf16.msra.mxu1 %v5860_v31  ;;  %v5909_v31 = vld [vmem:[#allocation5 + $0x4f8] sm:$0xf0]  ;;  %v7745_v16 = vld [vmem:[#allocation5 + $0x26c] sm:$0xf] }
  0xd7   :  { %1746 = vmatpush.bf16.msrb.mxu2 %v5368_v28  ;;  %v5924_v28 = vor.u32 %v7831_v18, %v5923_v17  ;;  %v7777_v17 = vld [vmem:[#allocation5 + $0x36c] sm:$0xf] }
  0xd8   :  { %1721 = vmatpush.bf16.msra.mxu3 %v5988_v36  ;;  %v7705_v36 = vld [vmem:[#allocation5 + $0x12c] sm:$0xf]  ;;  %v5720_v26 = vor.u32 %v7777_v17, %v5717_v19  ;;  %v6053_v19 = vld [vmem:[#allocation5 + $0x618] sm:$0xf0] }
  0xd9   :  { %1759 = vmatpush.bf16.msra.mxu0 %v5496_v44  ;;  %v5640_v44 = vor.u32 %v7757_v32, %v5637_v35  ;;  %v7849_v20 = vld [vmem:[#allocation5 + $0x5ac] sm:$0xf]  ;;  %v5701_v32 = vld [vmem:[#allocation5 + $0x358] sm:$0xf0] }
  0xda   :  { %1709 = vmatpush.bf16.msra.mxu1 %v5844_v45  ;;  %v5432_v45 = vor.u32 %v7705_v36, %v5429_v37  ;;  %v5989_v35 = vld [vmem:[#allocation5 + $0x598] sm:$0xf0]  ;;  %v8942_v37 = vld [vmem:[#allocation7] sm:$0xf]  ;;  %v7837_v4 = vld [vmem:[#allocation5 + $0x54c] sm:$0xf] }
  0xdb   :  { %1747 = vmatpush.bf16.msrb.mxu2 %v5352_v42  ;;  %v5912_v42 = vor.u32 %v7825_v30, %v5909_v31  ;;  %v7773_v30 = vld [vmem:[#allocation5 + $0x34c] sm:$0xf]  ;;  %v455_v54 = vperm.slane %v8942_v37, 0 }
  0xdc   :  { %1722 = vmatpush.bf16.msra.mxu3 %v5972_v50  ;;  %6059 = vmatmul.msk.bf16.vlgmr.msrb.gmra.mxu0 %vm1467_vm0, %v8910_v48  ;;  %v5768_v50 = vor.u32 %v7789_v40, %v5765_v41  ;;  %v7805_v40 = vld [vmem:[#allocation5 + $0x44c] sm:$0xf]  ;;  %v5829_v41 = vld [vmem:[#allocation5 + $0x458] sm:$0xf0] }
  0xdd   :  { %1760 = vmatpush.bf16.msra.mxu0 %v5480_v59  ;;  %v5896_v59 = vor.u32 %v7821_v43, %v5893_v46  ;;  %v5704_v43 = vor.u32 %v7773_v30, %v5701_v32  ;;  %v5557_v46 = vld [vmem:[#allocation5 + $0x238] sm:$0xf0]  ;;  %v7861_v17 = vld [vmem:[#allocation5 + $0x60c] sm:$0xf]  ;;  %v6175_v30 = vld [vmem:[#allocation8 + $0xe0] sm:$0xf] }
  0xde   :  { %1710 = vmatpush.bf16.msra.mxu1 %v5828_v61  ;;  %v5624_v61 = vor.u32 %v7753_v47, %v5621_v49  ;;  %v7769_v47 = vld [vmem:[#allocation5 + $0x32c] sm:$0xf]  ;;  %v5685_v49 = vld [vmem:[#allocation5 + $0x338] sm:$0xf0] }
  0xdf   :  { %1748 = vmatpush.bf16.msrb.mxu2 %v5336_v56  ;;  %v7857_v56 = vld [vmem:[#allocation5 + $0x5ec] sm:$0xf] }
  0xe0   :  { %1723 = vmatpush.bf16.msra.mxu3 %v5956_v1  ;;  %v5752_v1 = vor.u32 %v7785_v51, %v5749_v55  ;;  %v6040_v2 = vor.u32 %v7857_v56, %v6037_v58  ;;  %v5973_v51 = vld [vmem:[#allocation5 + $0x578] sm:$0xf0]  ;;  %v5832_v55 = vor.u32 %v7805_v40, %v5829_v41  ;;  %v7801_v58 = vld [vmem:[#allocation5 + $0x42c] sm:$0xf]  ;;  %v6103_v40 = vld [vmem:[#allocation8 + $0x50] sm:$0xf] }
  0xe1   :  { %1761 = vmatpush.bf16.msra.mxu0 %v5464_v9  ;;  %v6021_v9 = vld [vmem:[#allocation5 + $0x5d8] sm:$0xf0]  ;;  %v7893_v32 = vld [vmem:[#allocation8 + $0xe4] sm:$0xf0] }
  0xe2   :  { %1711 = vmatpush.bf16.msra.mxu1 %v5812_v10  ;;  %v5880_v10 = vor.u32 %v7817_v63, %v5877_v0  ;;  %v6024_v15 = vor.u32 %v7853_v8, %v6021_v9  ;;  %v5541_v0 = vld [vmem:[#allocation5 + $0x218] sm:$0xf0] }
  0xe3   :  { %1749 = vmatpush.bf16.msrb.mxu2 %v5320_v7  ;;  %v5733_v7 = vld [vmem:[#allocation5 + $0x398] sm:$0xf0] }
  0xe4   :  { %1724 = vmatpush.bf16.msra.mxu3 %v5940_v14  ;;  %v5736_v14 = vor.u32 %v7781_v5, %v5733_v7  ;;  %v8937_v18 = vpop.f32.mrf.mxu0  ;;  %v5957_v5 = vld [vmem:[#allocation5 + $0x558] sm:$0xf0] }
  0xe5   :  { %1762 = vmatpush.bf16.msra.mxu0 %v5448_v24  ;;  %v7809_v24 = vld [vmem:[#allocation5 + $0x46c] sm:$0xf]  ;;  %v8940_v31 = vpop.f32.mrf.mxu1  ;;  %v7879_v9 = vld [vmem:[#allocation8 + $0x74] sm:$0xf0] }
  0xe6   :  { %1712 = vmatpush.bf16.msra.mxu1 %v5796_v25  ;;  %v5845_v25 = vld [vmem:[#allocation5 + $0x478] sm:$0xf0] }
  0xe7   :  { %1750 = vmatpush.bf16.msrb.mxu2 %v5304_v21  ;;  %v6005_v21 = vld [vmem:[#allocation5 + $0x5b8] sm:$0xf0]  ;;  %v5848_v36 = vor.u32 %v7809_v24, %v5845_v25 }
  0xe8   :  { %1725 = vmatpush.bf16.msra.mxu3 %v5924_v28  ;;  %v6008_v27 = vor.u32 %v7849_v20, %v6005_v21  ;;  %v7741_v28 = vld [vmem:[#allocation5 + $0x24c] sm:$0xf]  ;;  %v1481_v21 = vadd.f32 %v8937_v18, %v455_v54  ;;  %v5941_v24 = vld [vmem:[#allocation5 + $0x538] sm:$0xf0] }
  0xe9   :  { %1713 = vmatmul.bf16.vlgmr.msra.gmra.mxu1 %v8914_v34  ;;  %1763 = vmatpush.bf16.msra.mxu0 %v5432_v45  ;;  %v7737_v45 = vld [vmem:[#allocation5 + $0x22c] sm:$0xf]  ;;  %v7875_v41 = vld [vmem:[#allocation8 + $0x54] sm:$0xf0] }
  0xea   :  { %1770 = vmatpush.bf16.msrb.mxu1 %v5656_v29  ;;  %v5573_v29 = vld [vmem:[#allocation5 + $0x258] sm:$0xf0]  ;;  %v5560_v56 = vor.u32 %v7737_v45, %v5557_v46  ;;  %v7829_v18 = vld [vmem:[#allocation5 + $0x50c] sm:$0xf]  ;;  %v6167_v45 = vld [vmem:[#allocation8 + $0xd0] sm:$0xf] }
  0xeb   :  { %1751 = vmatpush.bf16.msrb.mxu2 %v5288_v38  ;;  %1726 = vmatmul.bf16.vlgmr.msra.gmra.mxu3 %v8916_v39  ;;  %v5576_v38 = vor.u32 %v7741_v28, %v5573_v29  ;;  %v7877_v28 = vld [vmem:[#allocation8 + $0x64] sm:$0xf0]  ;;  %v6056_v29 = vor.u32 %v7861_v17, %v6053_v19  ;;  %v7891_v46 = vld [vmem:[#allocation8 + $0xd4] sm:$0xf0]  ;;  %v6063_v19 = vld [vmem:[#allocation8] sm:$0xf] }
  0xec   :  { %1783 = vmatpush.bf16.msrb.mxu3 %v5784_v33  ;;  %v7845_v33 = vld [vmem:[#allocation5 + $0x58c] sm:$0xf]  ;;  %v1482_v52 = vpop.f32.mrf.mxu0 }
  0xed   :  { %1764 = vmatpush.bf16.msra.mxu0 %v5416_v62  ;;  %v5688_v62 = vor.u32 %v7769_v47, %v5685_v49  ;;  %v1495_v7 = vpop.f32.mrf.mxu1  ;;  %v6104_v49 = vor.u32 %v7875_v41, %v6103_v40  ;;  %v6159_v52 = vld [vmem:[#allocation8 + $0xc0] sm:$0xf]  ;;  %v7889_v54 = vld [vmem:[#allocation8 + $0xc4] sm:$0xf0]  ;;  %v6177_v40 = vld [vmem:[#allocation8 + $0xe8] sm:$0xf0] }
  0xee   :  { %1771 = vmatpush.bf16.msrb.mxu1 %v5640_v44  ;;  %1752 = vmatmul.bf16.vlgmr.msrb.gmra.mxu2 %v8900_v57  ;;  %v5589_v57 = vld [vmem:[#allocation5 + $0x278] sm:$0xf0]  ;;  %v5992_v44 = vor.u32 %v7845_v33, %v5989_v35  ;;  %v1494_v35 = vadd.f32 %v8940_v31, %v1481_v21  ;;  %v7885_v7 = vld [vmem:[#allocation8 + $0xa4] sm:$0xf0]  ;;  %v7878_v21 = vld [vmem:[#allocation8 + $0x74] sm:$0xf] }
  0xef   :  { %1796 = vmatpush.bf16.msra.mxu2 %v5912_v42  ;;  %v5592_v23 = vor.u32 %v7745_v16, %v5589_v57  ;;  %v8946_v42 = vpop.f32.mrf.mxu3  ;;  %v5960_v57 = vor.u32 %v7837_v4, %v5957_v5  ;;  %v7869_v4 = vld [vmem:[#allocation8 + $0x24] sm:$0xf0]  ;;  %v6143_v5 = vld [vmem:[#allocation8 + $0xa0] sm:$0xf]  ;;  %v456_v41 = vperm.slane %v8942_v37, 1 }
  0xf0   :  { %1784 = vmatpush.bf16.msrb.mxu3 %v5768_v50  ;;  %1765 = vmatmul.bf16.vlgmr.msra.gmra.mxu0 %v8906_v6  ;;  %v8944_v6 = vpop.f32.mrf.mxu2  ;;  %v7841_v50 = vld [vmem:[#allocation5 + $0x56c] sm:$0xf] }
  0xf1   :  { %1809 = vmatpush.bf16.msrb.mxu0 %v6040_v2  ;;  %v5976_v63 = vor.u32 %v7841_v50, %v5973_v51  ;;  %v5669_v2 = vld [vmem:[#allocation5 + $0x318] sm:$0xf0]  ;;  %v1507_v31 = vadd.f32 %v8944_v6, %v1494_v35  ;;  %v6095_v50 = vld [vmem:[#allocation8 + $0x40] sm:$0xf]  ;;  %v6168_v51 = vor.u32 %v7891_v46, %v6167_v45  ;;  %v6160_v6 = vor.u32 %v7889_v54, %v6159_v52  ;;  %v7876_v35 = vld [vmem:[#allocation8 + $0x64] sm:$0xf] }
  0xf2   :  { %1772 = vmatpush.bf16.msrb.mxu1 %v5624_v61  ;;  %v7733_v61 = vld [vmem:[#allocation5 + $0x20c] sm:$0xf]  ;;  %v7874_v45 = vld [vmem:[#allocation8 + $0x54] sm:$0xf]  ;;  %v6105_v46 = vld [vmem:[#allocation8 + $0x58] sm:$0xf0] }
  0xf3   :  { %1797 = vmatpush.bf16.msra.mxu2 %v5896_v59  ;;  %v5813_v59 = vld [vmem:[#allocation5 + $0x438] sm:$0xf0]  ;;  %v5544_v13 = vor.u32 %v7733_v61, %v5541_v0  ;;  %v6097_v52 = vld [vmem:[#allocation8 + $0x48] sm:$0xf0] }
  0xf4   :  { %1785 = vmatpush.bf16.msrb.mxu3 %v5752_v1  ;;  %v7765_v1 = vld [vmem:[#allocation5 + $0x30c] sm:$0xf]  ;;  %v5816_v8 = vor.u32 %v7801_v58, %v5813_v59  ;;  %v6087_v58 = vld [vmem:[#allocation8 + $0x30] sm:$0xf]  ;;  %v7871_v59 = vld [vmem:[#allocation8 + $0x34] sm:$0xf0] }
  0xf5   :  { %1810 = vmatpush.bf16.msrb.mxu0 %v6024_v15  ;;  %v5797_v15 = vld [vmem:[#allocation5 + $0x418] sm:$0xf0]  ;;  %v5672_v16 = vor.u32 %v7765_v1, %v5669_v2  ;;  %v6088_v2 = vor.u32 %v7871_v59, %v6087_v58 }
  0xf6   :  { %1773 = vmatpush.bf16.msrb.mxu1 %v5608_v11  ;;  %v7895_v11 = vld [vmem:[#allocation8 + $0xf4] sm:$0xf0] }
  0xf7   :  { %1798 = vmatpush.bf16.msra.mxu2 %v5880_v10  ;;  %v6183_v10 = vld [vmem:[#allocation8 + $0xf0] sm:$0xf]  ;;  %v1521_v20 = vpop.f32.mrf.mxu3  ;;  %v7887_v0 = vld [vmem:[#allocation8 + $0xb4] sm:$0xf0] }
  0xf8   :  { %1786 = vmatpush.bf16.msrb.mxu3 %v5736_v14  ;;  %v1508_v12 = vpop.f32.mrf.mxu2  ;;  %v7797_v14 = vld [vmem:[#allocation5 + $0x40c] sm:$0xf]  ;;  %v6184_v25 = vor.u32 %v7895_v11, %v6183_v10  ;;  %v6071_v10 = vld [vmem:[#allocation8 + $0x10] sm:$0xf]  ;;  %v7867_v11 = vld [vmem:[#allocation8 + $0x14] sm:$0xf0] }
  0xf9   :  { %1811 = vmatpush.bf16.msrb.mxu0 %v6008_v27  ;;  %v6111_v27 = vld [vmem:[#allocation8 + $0x60] sm:$0xf]  ;;  %v6072_v17 = vor.u32 %v7867_v11, %v6071_v10  ;;  %v7865_v20 = vld [vmem:[#allocation8 + $0x4] sm:$0xf0]  ;;  %v7911_v59 = vld [vmem:[#allocation8 + $0x174] sm:$0xf0] }
  0xfa   :  { %1774 = vmatpush.bf16.msrb.mxu1 %v5592_v23  ;;  %v7833_v23 = vld [vmem:[#allocation5 + $0x52c] sm:$0xf]  ;;  %v7868_v10 = vld [vmem:[#allocation8 + $0x24] sm:$0xf]  ;;  %v6081_v11 = vld [vmem:[#allocation8 + $0x28] sm:$0xf0] }
  0xfb   :  { %1799 = vmatpush.bf16.msra.mxu2 %v5864_v22  ;;  %v6120_v22 = vor.u32 %v7879_v9, %v6119_v3  ;;  %v5944_v33 = vor.u32 %v7833_v23, %v5941_v24  ;;  %v6079_v3 = vld [vmem:[#allocation8 + $0x20] sm:$0xf]  ;;  %v6121_v23 = vld [vmem:[#allocation8 + $0x78] sm:$0xf0] }
  0xfc   :  { %1787 = vmatpush.bf16.msrb.mxu3 %v5720_v26  ;;  %v5800_v26 = vor.u32 %v7797_v14, %v5797_v15  ;;  %v6080_v9 = vor.u32 %v7869_v4, %v6079_v3  ;;  %v6135_v15 = vld [vmem:[#allocation8 + $0x90] sm:$0xf]  ;;  %v6127_v24 = vld [vmem:[#allocation8 + $0x80] sm:$0xf]  ;;  %v7886_v3 = vld [vmem:[#allocation8 + $0xb4] sm:$0xf] }
  0xfd   :  { %1812 = vmatpush.bf16.msrb.mxu0 %v5992_v44  ;;  %v6153_v4 = vld [vmem:[#allocation8 + $0xb8] sm:$0xf0] }
  0xfe   :  { %1775 = vmatpush.bf16.msrb.mxu1 %v5576_v38  ;;  %v5925_v38 = vld [vmem:[#allocation5 + $0x518] sm:$0xf0] }
  0xff   :  { %1800 = vmatpush.bf16.msra.mxu2 %v5848_v36  ;;  %v6112_v36 = vor.u32 %v7877_v28, %v6111_v27  ;;  %v5928_v47 = vor.u32 %v7829_v18, %v5925_v38  ;;  %v6185_v27 = vld [vmem:[#allocation8 + $0xf8] sm:$0xf0]  ;;  %v6064_v28 = vor.u32 %v7865_v20, %v6063_v19  ;;  %v7892_v38 = vld [vmem:[#allocation8 + $0xe4] sm:$0xf]  ;;  %v7866_v19 = vld [vmem:[#allocation8 + $0x14] sm:$0xf] }
 0x100   :  { %1788 = vmatpush.bf16.msrb.mxu3 %v5704_v43  ;;  %v6176_v43 = vor.u32 %v7893_v32, %v6175_v30  ;;  %v1558_v44 = vpop.f32.mrf.mxu2  ;;  %v6073_v20 = vld [vmem:[#allocation8 + $0x18] sm:$0xf0] }
 0x101   :  { %1813 = vmatpush.bf16.msrb.mxu0 %v5976_v63  ;;  %v6151_v63 = vld [vmem:[#allocation8 + $0xb0] sm:$0xf] }
 0x102   :  { %1776 = vmatpush.bf16.msrb.mxu1 %v5560_v56 }
 0x103   :  { %1801 = vmatpush.bf16.msra.mxu2 %v5832_v55 }
 0x104   :  { %1789 = vmatpush.bf16.msrb.mxu3 %v5688_v62 }
 0x105   :  { %1814 = vmatpush.bf16.msrb.mxu0 %v5960_v57  ;;  %v1532_v56 = vpop.f32.mrf.mxu0 }
 0x106   :  { %1777 = vmatpush.bf16.msrb.mxu1 %v5544_v13  ;;  %v1545_v62 = vpop.f32.mrf.mxu1 }
 0x107   :  { %1802 = vmatpush.bf16.msra.mxu2 %v5816_v8 }
 0x108   :  { %1790 = vmatpush.bf16.msrb.mxu3 %v5672_v16  ;;  %v7883_v16 = vld [vmem:[#allocation8 + $0x94] sm:$0xf0] }
 0x109   :  { %1778 = vmatmul.bf16.vlgmr.msrb.gmra.mxu1 %v8898_v53  ;;  %1815 = vmatpush.bf16.msrb.mxu0 %v5944_v33  ;;  %v7873_v53 = vld [vmem:[#allocation8 + $0x44] sm:$0xf0] }
 0x10a   :  { %2246 = vmatpush.bf16.msra.mxu1 %v6184_v25  ;;  %v6096_v55 = vor.u32 %v7873_v53, %v6095_v50  ;;  %v7881_v25 = vld [vmem:[#allocation8 + $0x84] sm:$0xf0]  ;;  %v6108_v53 = vor.u32 %v7874_v45, %v6105_v46 }
 0x10b   :  { %1803 = vmatpush.bf16.msra.mxu2 %v5800_v26  ;;  %1791 = vmatmul.bf16.vlgmr.msrb.gmra.mxu3 %v8902_v60  ;;  %v1520_v60 = vadd.f32 %v8946_v42, %v1507_v31  ;;  %v6152_v42 = vor.u32 %v7887_v0, %v6151_v63  ;;  %v7894_v26 = vld [vmem:[#allocation8 + $0xf4] sm:$0xf]  ;;  %v6128_v32 = vor.u32 %v7881_v25, %v6127_v24  ;;  %v6089_v0 = vld [vmem:[#allocation8 + $0x38] sm:$0xf0] }
 0x10c   :  { %2233 = vmatpush.bf16.msra.mxu3 %v6120_v22  ;;  %v6136_v22 = vor.u32 %v7883_v16, %v6135_v15  ;;  %v7890_v31 = vld [vmem:[#allocation8 + $0xd4] sm:$0xf]  ;;  %v6137_v24 = vld [vmem:[#allocation8 + $0x98] sm:$0xf0] }
 0x10d   :  { %1816 = vmatpush.bf16.msrb.mxu0 %v5928_v47  ;;  %v1533_v61 = vadd.f32 %v1532_v56, %v1520_v60  ;;  %v1534_v12 = vpop.f32.mrf.mxu0  ;;  %v6180_v47 = vor.u32 %v7892_v38, %v6177_v40  ;;  %v7888_v60 = vld [vmem:[#allocation8 + $0xc4] sm:$0xf]  ;;  %v6247_v56 = vld [vmem:[#allocation8 + $0x170] sm:$0xf]  ;;  %v7870_v63 = vld [vmem:[#allocation8 + $0x34] sm:$0xf] }
 0x10e   :  { %1804 = vmatmul.bf16.vlgmr.msra.gmra.mxu2 %v8914_v34  ;;  %2247 = vmatpush.bf16.msra.mxu1 %v6176_v43  ;;  %v1560_v34 = vpop.f32.mrf.mxu2  ;;  %v1571_v13 = vpop.f32.mrf.mxu3  ;;  %v6156_v12 = vor.u32 %v7886_v3, %v6153_v4  ;;  %v6241_v3 = vld [vmem:[#allocation8 + $0x168] sm:$0xf0] }
 0x10f   :  { %1829 = vmatpush.bf16.msrb.mxu2 %v6056_v29  ;;  %v1546_v1 = vadd.f32 %v1545_v62, %v1533_v61  ;;  %v1547_v14 = vpop.f32.mrf.mxu1  ;;  %v6124_v29 = vor.u32 %v7878_v21, %v6121_v23  ;;  %v1572_v50 = vadd.f32 %v1571_v13, %v456_v41  ;;  %v6248_v61 = vor.u32 %v7911_v59, %v6247_v56  ;;  %v6239_v62 = vld [vmem:[#allocation8 + $0x160] sm:$0xf]  ;;  %v7909_v34 = vld [vmem:[#allocation8 + $0x164] sm:$0xf0]  ;;  %v7882_v23 = vld [vmem:[#allocation8 + $0x94] sm:$0xf] }
 0x110   :  { %2234 = vmatpush.bf16.msra.mxu3 %v6112_v36  ;;  %1817 = vmatmul.bf16.vlgmr.msrb.gmra.mxu0 %v8916_v39  ;;  %v6144_v39 = vor.u32 %v7885_v7, %v6143_v5  ;;  %v6188_v36 = vor.u32 %v7894_v26, %v6185_v27  ;;  %v6231_v7 = vld [vmem:[#allocation8 + $0x150] sm:$0xf]  ;;  %v6145_v14 = vld [vmem:[#allocation8 + $0xa8] sm:$0xf0]  ;;  %v6076_v27 = vor.u32 %v7866_v19, %v6073_v20  ;;  %v7903_v41 = vld [vmem:[#allocation8 + $0x134] sm:$0xf0] }
 0x111   :  { %v1559_v8 = vadd.f32 %v1558_v44, %v1546_v1  ;;  %v6311_v19 = vld [vmem:[#allocation8 + $0x1f0] sm:$0xf]  ;;  %v7927_v20 = vld [vmem:[#allocation8 + $0x1f4] sm:$0xf0] }
 0x112   :  { %2248 = vmatpush.bf16.msra.mxu1 %v6168_v51  ;;  %v7872_v51 = vld [vmem:[#allocation8 + $0x44] sm:$0xf] }
 0x113   :  { %8290 = vtanh.f32 %v1559_v8  ;;  %2259 = vmatpush.bf16.msra.mxu2 %v6248_v61  ;;  %v7907_v8 = vld [vmem:[#allocation8 + $0x154] sm:$0xf0]  ;;  %v7897_v61 = vld [vmem:[#allocation8 + $0x104] sm:$0xf0] }
 0x114   :  { %2235 = vmatpush.bf16.msra.mxu3 %v6104_v49  ;;  %v6169_v49 = vld [vmem:[#allocation8 + $0xd8] sm:$0xf0]  ;;  %v6232_v15 = vor.u32 %v7907_v8, %v6231_v7 }
 0x115   :  { %v6172_v54 = vor.u32 %v7890_v31, %v6169_v49  ;;  %v6207_v49 = vld [vmem:[#allocation8 + $0x120] sm:$0xf]  ;;  %v6233_v7 = vld [vmem:[#allocation8 + $0x158] sm:$0xf0] }
 0x116   :  { %2249 = vmatpush.bf16.msra.mxu1 %v6160_v6  ;;  %v1584_v57 = vpop.f32.mrf.mxu2  ;;  %v1573_v30 = vpop.f32.mrf.mxu3  ;;  %v6100_v6 = vor.u32 %v7872_v51, %v6097_v52 }
 0x117   :  { %v1585_v58 = vadd.f32 %v1584_v57, %v1572_v50  ;;  %v6084_v57 = vor.u32 %v7868_v10, %v6081_v11  ;;  %v6140_v30 = vor.u32 %v7882_v23, %v6137_v24  ;;  %v7901_v50 = vld [vmem:[#allocation8 + $0x124] sm:$0xf0]  ;;  %v7900_v23 = vld [vmem:[#allocation8 + $0x124] sm:$0xf]  ;;  %v6209_v24 = vld [vmem:[#allocation8 + $0x128] sm:$0xf0] }
 0x118   :  { %2236 = vmatpush.bf16.msra.mxu3 %v6096_v55  ;;  %v6161_v55 = vld [vmem:[#allocation8 + $0xc8] sm:$0xf0]  ;;  %v6208_v52 = vor.u32 %v7901_v50, %v6207_v49 }
 0x119   :  { %v8291_v33 = vpop.eup %8290  ;;  %v6164_v1 = vor.u32 %v7888_v60, %v6161_v55  ;;  %v6199_v60 = vld [vmem:[#allocation8 + $0x110] sm:$0xf]  ;;  %v7899_v55 = vld [vmem:[#allocation8 + $0x114] sm:$0xf0] }
 0x11a   :  { %2250 = vmatpush.bf16.msra.mxu1 %v6152_v42  ;;  %v8960_v43 = vpack.c.bf16 %v8291_v33, %v8291_v33  ;;  %v6240_v42 = vor.u32 %v7909_v34, %v6239_v62  ;;  %v6129_v33 = vld [vmem:[#allocation8 + $0x88] sm:$0xf0]  ;;  %v7910_v62 = vld [vmem:[#allocation8 + $0x174] sm:$0xf] }
 0x11c   :  { %2237 = vmatpush.bf16.msra.mxu3 %v6088_v2  ;;  %2260 = vmatpush.bf16.msra.mxu2 %v6240_v42 }
 0x11e   :  { %6060 = vmatmul.msk.bf16.vlgmr.msrb.gmra.mxu2 %vm1467_vm0, %v8910_v48  ;;  %2251 = vmatpush.bf16.msra.mxu1 %v6144_v39  ;;  %v6113_v48 = vld [vmem:[#allocation8 + $0x68] sm:$0xf0]  ;;  %v1586_v18 = vpop.f32.mrf.mxu2  ;;  %v7884_v39 = vld [vmem:[#allocation8 + $0xa4] sm:$0xf] }
 0x11f   :  { %v6116_v44 = vor.u32 %v7876_v35, %v6113_v48  ;;  %v6148_v21 = vor.u32 %v7884_v39, %v6145_v14  ;;  %v6223_v48 = vld [vmem:[#allocation8 + $0x140] sm:$0xf]  ;;  %v6215_v18 = vld [vmem:[#allocation8 + $0x130] sm:$0xf]  ;;  %v7902_v14 = vld [vmem:[#allocation8 + $0x134] sm:$0xf] }
 0x120   :  { %2238 = vmatpush.bf16.msra.mxu3 %v6080_v9  ;;  %v6092_v9 = vor.u32 %v7870_v63, %v6089_v0  ;;  %2261 = vmatpush.bf16.msra.mxu2 %v6232_v15  ;;  %v6249_v63 = vld [vmem:[#allocation8 + $0x178] sm:$0xf0] }
 0x121   :  { %v6217_v15 = vld [vmem:[#allocation8 + $0x138] sm:$0xf0] }
 0x122   :  { %2252 = vmatpush.bf16.msra.mxu1 %v6136_v22 }
 0x124   :  { %2239 = vmatpush.bf16.msra.mxu3 %v6072_v17 }
 0x125   :  { %v1597_v2 = vpop.f32.mrf.mxu0 }
 0x126   :  { %2253 = vmatpush.bf16.msra.mxu1 %v6128_v32  ;;  %v1598_v5 = vadd.f32 %v1597_v2, %v1585_v58  ;;  %v1610_v13 = vpop.f32.mrf.mxu1  ;;  %v7880_v32 = vld [vmem:[#allocation8 + $0x84] sm:$0xf]  ;;  %v6200_v58 = vor.u32 %v7899_v55, %v6199_v60 }
 0x127   :  { %v6132_v46 = vor.u32 %v7880_v32, %v6129_v33  ;;  %v7898_v32 = vld [vmem:[#allocation8 + $0x114] sm:$0xf]  ;;  %v6201_v33 = vld [vmem:[#allocation8 + $0x118] sm:$0xf0] }
 0x128   :  { %2240 = vmatpush.bf16.msra.mxu3 %v6064_v28  ;;  %v1611_v16 = vadd.f32 %v1610_v13, %v1598_v5  ;;  %v7864_v28 = vld [vmem:[#allocation8 + $0x4] sm:$0xf]  ;;  %v7906_v5 = vld [vmem:[#allocation8 + $0x154] sm:$0xf]  ;;  %v6225_v13 = vld [vmem:[#allocation8 + $0x148] sm:$0xf0] }
 0x12a   :  { %2298 = vmatpush.bf16.msrb.mxu1 %v6188_v36  ;;  %v7905_v36 = vld [vmem:[#allocation8 + $0x144] sm:$0xf0] }
 0x12b   :  { %2241 = vmatmul.bf16.vlgmr.msra.gmra.mxu3 %v8960_v43  ;;  %v6224_v40 = vor.u32 %v7905_v36, %v6223_v48  ;;  %v6204_v48 = vor.u32 %v7898_v32, %v6201_v33  ;;  %v6295_v36 = vld [vmem:[#allocation8 + $0x1d0] sm:$0xf] }
 0x12c   :  { %2285 = vmatpush.bf16.msrb.mxu3 %v6124_v29  ;;  %v6065_v29 = vld [vmem:[#allocation8 + $0x8] sm:$0xf0] }
 0x12d   :  { %v1599_v22 = vpop.f32.mrf.mxu0  ;;  %2262 = vmatpush.bf16.msra.mxu2 %v6224_v40  ;;  %v7896_v40 = vld [vmem:[#allocation8 + $0x104] sm:$0xf] }
 0x12e   :  { %2299 = vmatpush.bf16.msrb.mxu1 %v6180_v47  ;;  %v1623_v17 = vpop.f32.mrf.mxu3  ;;  %v1612_v35 = vpop.f32.mrf.mxu1  ;;  %v6216_v47 = vor.u32 %v7903_v41, %v6215_v18  ;;  %v6312_v22 = vor.u32 %v7927_v20, %v6311_v19  ;;  %v7923_v18 = vld [vmem:[#allocation8 + $0x1d4] sm:$0xf0]  ;;  %v6193_v41 = vld [vmem:[#allocation8 + $0x108] sm:$0xf0]  ;;  %v7920_v19 = vld [vmem:[#allocation8 + $0x1c4] sm:$0xf] }
 0x12f   :  { %v1624_v25 = vadd.f32 %v1623_v17, %v1611_v16  ;;  %v457_v16 = vperm.slane %v8942_v37, 2  ;;  %v6220_v17 = vor.u32 %v7902_v14, %v6217_v15  ;;  %v7922_v15 = vld [vmem:[#allocation8 + $0x1d4] sm:$0xf]  ;;  %v6289_v20 = vld [vmem:[#allocation8 + $0x1c8] sm:$0xf0] }
 0x130   :  { %2286 = vmatpush.bf16.msrb.mxu3 %v6116_v44  ;;  %v6068_v44 = vor.u32 %v7864_v28, %v6065_v29  ;;  %2272 = vmatpush.bf16.msra.mxu0 %v6312_v22  ;;  %v458_v22 = vperm.slane %v8942_v37, 3  ;;  %v6257_v37 = vld [vmem:[#allocation8 + $0x188] sm:$0xf0] }
 0x131   :  { %v1636_v26 = vpop.f32.mrf.mxu2  ;;  %2263 = vmatpush.bf16.msra.mxu2 %v6216_v47  ;;  %v7921_v47 = vld [vmem:[#allocation8 + $0x1c4] sm:$0xf0] }
 0x132   :  { %2300 = vmatpush.bf16.msrb.mxu1 %v6172_v54  ;;  %v1637_v38 = vadd.f32 %v1636_v26, %v1624_v25  ;;  %v6303_v25 = vld [vmem:[#allocation8 + $0x1e0] sm:$0xf]  ;;  %v6212_v26 = vor.u32 %v7900_v23, %v6209_v24  ;;  %v7918_v23 = vld [vmem:[#allocation8 + $0x1b4] sm:$0xf]  ;;  %v6281_v24 = vld [vmem:[#allocation8 + $0x1b8] sm:$0xf0] }
 0x134   :  { %2287 = vmatpush.bf16.msrb.mxu3 %v6108_v53 }
 0x135   :  { %v1649_v31 = vpop.f32.mrf.mxu0  ;;  %2264 = vmatpush.bf16.msra.mxu2 %v6208_v52  ;;  %v7919_v52 = vld [vmem:[#allocation8 + $0x1b4] sm:$0xf0] }
 0x136   :  { %2301 = vmatpush.bf16.msrb.mxu1 %v6164_v1  ;;  %v1625_v45 = vpop.f32.mrf.mxu3  ;;  %v1650_v53 = vadd.f32 %v1649_v31, %v1637_v38  ;;  %v6252_v1 = vor.u32 %v7910_v62, %v6249_v63  ;;  %v6296_v38 = vor.u32 %v7923_v18, %v6295_v36  ;;  %v7914_v36 = vld [vmem:[#allocation8 + $0x194] sm:$0xf]  ;;  %v6265_v18 = vld [vmem:[#allocation8 + $0x198] sm:$0xf0] }
 0x138   :  { %2288 = vmatpush.bf16.msrb.mxu3 %v6100_v6  ;;  %8292 = vtanh.f32 %v1650_v53  ;;  %v6191_v6 = vld [vmem:[#allocation8 + $0x100] sm:$0xf] }
 0x139   :  { %v1638_v51 = vpop.f32.mrf.mxu2  ;;  %2265 = vmatpush.bf16.msra.mxu2 %v6200_v58  ;;  %v6192_v34 = vor.u32 %v7897_v61, %v6191_v6  ;;  %v7917_v6 = vld [vmem:[#allocation8 + $0x1a4] sm:$0xf0] }
 0x13a   :  { %2302 = vmatpush.bf16.msrb.mxu1 %v6156_v12  ;;  %v7904_v12 = vld [vmem:[#allocation8 + $0x144] sm:$0xf]  ;;  %v6279_v51 = vld [vmem:[#allocation8 + $0x1b0] sm:$0xf] }
 0x13b   :  { %v6228_v39 = vor.u32 %v7904_v12, %v6225_v13  ;;  %v7924_v13 = vld [vmem:[#allocation8 + $0x1e4] sm:$0xf] }
 0x13c   :  { %2289 = vmatpush.bf16.msrb.mxu3 %v6092_v9  ;;  %v6236_v9 = vor.u32 %v7906_v5, %v6233_v7  ;;  %v6313_v7 = vld [vmem:[#allocation8 + $0x1f8] sm:$0xf0] }
 0x13d   :  { %v1651_v54 = vpop.f32.mrf.mxu0  ;;  %2266 = vmatpush.bf16.msra.mxu2 %v6192_v34 }
 0x13e   :  { %2303 = vmatpush.bf16.msrb.mxu1 %v6148_v21  ;;  %v8293_v56 = vpop.eup %8292  ;;  %v6280_v54 = vor.u32 %v7919_v52, %v6279_v51 }
 0x13f   :  { %v1840_v59 = vpack.c.bf16 %v8293_v56, %v8293_v56 }
 0x140   :  { %2290 = vmatpush.bf16.msrb.mxu3 %v6084_v57 }
 0x141   :  { %2254 = vmatmul.bf16.vlgmr.msra.gmra.mxu1 %v1840_v59  ;;  %2311 = vmatpush.bf16.msrb.mxu2 %v6252_v1  ;;  %v7915_v1 = vld [vmem:[#allocation8 + $0x194] sm:$0xf0] }
 0x142   :  { %2304 = vmatpush.bf16.msrb.mxu1 %v6140_v30 }
 0x144   :  { %2291 = vmatpush.bf16.msrb.mxu3 %v6076_v27  ;;  %v7925_v27 = vld [vmem:[#allocation8 + $0x1e4] sm:$0xf0] }
 0x145   :  { %v6304_v29 = vor.u32 %v7925_v27, %v6303_v25  ;;  %v6284_v25 = vor.u32 %v7918_v23, %v6281_v24  ;;  %v6273_v27 = vld [vmem:[#allocation8 + $0x1a8] sm:$0xf0]  ;;  %v7936_v23 = vld [vmem:[#allocation10 + $0x40] sm:$0xff]  ;;  %v7951_v24 = vld [vmem:[#allocation11 + $0x38] sm:$0xff] }
 0x146   :  { %2305 = vmatpush.bf16.msrb.mxu1 %v6132_v46  ;;  %v1662_v0 = vpop.f32.mrf.mxu1  ;;  %v6196_v46 = vor.u32 %v7896_v40, %v6193_v41  ;;  %v6268_v40 = vor.u32 %v7914_v36, %v6265_v18 }
 0x147   :  { %v1663_v30 = vadd.f32 %v1662_v0, %v457_v16  ;;  %2273 = vmatpush.bf16.msra.mxu0 %v6304_v29  ;;  %v6263_v0 = vld [vmem:[#allocation8 + $0x190] sm:$0xf]  ;;  %v6297_v16 = vld [vmem:[#allocation8 + $0x1d8] sm:$0xf0] }
 0x148   :  { %2292 = vmatpush.bf16.msrb.mxu3 %v6068_v44  ;;  %v6287_v44 = vld [vmem:[#allocation8 + $0x1c0] sm:$0xf] }
 0x149   :  { %v1688_v2 = vpop.f32.mrf.mxu0  ;;  %v6288_v50 = vor.u32 %v7921_v47, %v6287_v44 }
 0x14b   :  { %2293 = vmatmul.bf16.vlgmr.msrb.gmra.mxu3 %v8960_v43  ;;  %v7908_v43 = vld [vmem:[#allocation8 + $0x164] sm:$0xf]  ;;  %2274 = vmatpush.bf16.msra.mxu0 %v6296_v38 }
 0x14c   :  { %v6244_v4 = vor.u32 %v7908_v43, %v6241_v3  ;;  %v6255_v43 = vld [vmem:[#allocation8 + $0x180] sm:$0xf]  ;;  %v7913_v3 = vld [vmem:[#allocation8 + $0x184] sm:$0xf0]  ;;  %v7912_v38 = vld [vmem:[#allocation8 + $0x184] sm:$0xf] }
 0x14d   :  { %v6256_v5 = vor.u32 %v7913_v3, %v6255_v43 }
 0x14e   :  { %2312 = vmatpush.bf16.msrb.mxu2 %v6244_v4  ;;  %v1664_v42 = vpop.f32.mrf.mxu1  ;;  %v1675_v10 = vpop.f32.mrf.mxu3  ;;  %v7926_v4 = vld [vmem:[#allocation8 + $0x1f4] sm:$0xf] }
 0x14f   :  { %v1676_v35 = vadd.f32 %v1675_v10, %v1663_v30  ;;  %2275 = vmatpush.bf16.msra.mxu0 %v6288_v50 }
 0x151   :  { %v1701_v8 = vpop.f32.mrf.mxu2  ;;  %v1690_v11 = vpop.f32.mrf.mxu0  ;;  %2306 = vmatmul.bf16.vlgmr.msrb.gmra.mxu1 %v1840_v59  ;;  %v1689_v31 = vadd.f32 %v1688_v2, %v1676_v35  ;;  %v6271_v59 = vld [vmem:[#allocation8 + $0x1a0] sm:$0xf]  ;;  %v6264_v2 = vor.u32 %v7915_v1, %v6263_v0 }
 0x152   :  { %2313 = vmatpush.bf16.msrb.mxu2 %v6236_v9  ;;  %v6272_v34 = vor.u32 %v7917_v6, %v6271_v59 }
 0x153   :  { %v1702_v53 = vadd.f32 %v1701_v8, %v1689_v31  ;;  %2276 = vmatpush.bf16.msra.mxu0 %v6280_v54  ;;  %v6316_v8 = vor.u32 %v7926_v4, %v6313_v7  ;;  %v7933_v7 = vld [vmem:[#allocation10 + $0x28] sm:$0xff] }
 0x156   :  { %2314 = vmatpush.bf16.msrb.mxu2 %v6228_v39  ;;  %v1677_v21 = vpop.f32.mrf.mxu3  ;;  %v6305_v39 = vld [vmem:[#allocation8 + $0x1e8] sm:$0xf0] }
 0x157   :  { %2277 = vmatpush.bf16.msra.mxu0 %v6272_v34  ;;  %v6308_v14 = vor.u32 %v7924_v13, %v6305_v39  ;;  %v6292_v21 = vor.u32 %v7920_v19, %v6289_v20  ;;  %v7942_v13 = vld [vmem:[#allocation10 + $0x70] sm:$0xff]  ;;  %v7939_v19 = vld [vmem:[#allocation10 + $0x58] sm:$0xff] }
 0x158   :  { %v7938_v20 = vld [vmem:[#allocation10 + $0x50] sm:$0xff] }
 0x159   :  { %v1703_v57 = vpop.f32.mrf.mxu2  ;;  %v1740_v28 = vpop.f32.mrf.mxu0 }
 0x15a   :  { %2315 = vmatpush.bf16.msrb.mxu2 %v6220_v17  ;;  %v6300_v57 = vor.u32 %v7922_v15, %v6297_v16  ;;  %v7941_v15 = vld [vmem:[#allocation10 + $0x68] sm:$0xff]  ;;  %v7928_v16 = vld [vmem:[#allocation10] sm:$0xff] }
 0x15b   :  { %2278 = vmatpush.bf16.msra.mxu0 %v6264_v2 }
 0x15e   :  { %2316 = vmatpush.bf16.msrb.mxu2 %v6212_v26  ;;  %v7916_v26 = vld [vmem:[#allocation8 + $0x1a4] sm:$0xf] }
 0x15f   :  { %2279 = vmatpush.bf16.msra.mxu0 %v6256_v5  ;;  %v6276_v29 = vor.u32 %v7916_v26, %v6273_v27  ;;  %v7934_v5 = vld [vmem:[#allocation10 + $0x30] sm:$0xff] }
 0x161   :  { %v1742_v45 = vpop.f32.mrf.mxu0 }
 0x162   :  { %2317 = vmatpush.bf16.msrb.mxu2 %v6204_v48  ;;  %v6260_v45 = vor.u32 %v7912_v38, %v6257_v37  ;;  %v7948_v37 = vld [vmem:[#allocation11 + $0x20] sm:$0xff] }
 0x163   :  { %2324 = vmatpush.bf16.msrb.mxu0 %v6316_v8  ;;  %v7943_v8 = vld [vmem:[#allocation10 + $0x78] sm:$0xff] }
 0x164   :  { %2486 = vmatpush.bf16.msra.mxu1 %v7943_v8 }
 0x166   :  { %v1714_v49 = vpop.f32.mrf.mxu1  ;;  %2318 = vmatpush.bf16.msrb.mxu2 %v6196_v46 }
 0x167   :  { %v1715_v60 = vadd.f32 %v1714_v49, %v1702_v53  ;;  %2325 = vmatpush.bf16.msrb.mxu0 %v6308_v14  ;;  %v7929_v14 = vld [vmem:[#allocation10 + $0x8] sm:$0xff] }
 0x168   :  { %2487 = vmatpush.bf16.msra.mxu1 %v7942_v13  ;;  %v6489_v13 = vld [vmem:[#allocation17 + $0x58] sm:$0xf0] }
 0x16b   :  { %2326 = vmatpush.bf16.msrb.mxu0 %v6300_v57  ;;  %v7940_v57 = vld [vmem:[#allocation10 + $0x60] sm:$0xff] }
 0x16c   :  { %2488 = vmatpush.bf16.msra.mxu1 %v7941_v15  ;;  %v6479_v15 = vld [vmem:[#allocation17 + $0x40] sm:$0xf] }
 0x16d   :  { %v1766_v62 = vpop.f32.mrf.mxu0 }
 0x16e   :  { %v1727_v55 = vpop.f32.mrf.mxu3  ;;  %v1716_v58 = vpop.f32.mrf.mxu1 }
 0x16f   :  { %v1728_v56 = vadd.f32 %v1727_v55, %v1715_v60  ;;  %2327 = vmatpush.bf16.msrb.mxu0 %v6292_v21  ;;  %v1907_v58 = vld [vmem:[%s9045_s4] sm:$0x3] }
 0x170   :  { %v1909_v59 = vperm.slane %v1907_v58, 0  ;;  %v1910_v1 = vperm.slane %v1907_v58, 1  ;;  %2489 = vmatpush.bf16.msra.mxu1 %v7940_v57  ;;  %v7968_v57 = vld [vmem:[#allocation17 + $0x44] sm:$0xf] }
 0x171   :  { %v1753_v61 = vpop.f32.mrf.mxu2  ;;  %v1741_v63 = vadd.f32 %v1740_v28, %v1728_v56 }
 0x172   :  { %v1754_v30 = vadd.f32 %v1753_v61, %v458_v22  ;;  %v7937_v22 = vld [vmem:[#allocation10 + $0x48] sm:$0xff] }
 0x173   :  { %8294 = vtanh.f32 %v1741_v63  ;;  %2328 = vmatpush.bf16.msrb.mxu0 %v6284_v25  ;;  %v7950_v25 = vld [vmem:[#allocation11 + $0x30] sm:$0xff] }
 0x174   :  { %v1767_v48 = vadd.f32 %v1766_v62, %v1754_v30  ;;  %2490 = vmatpush.bf16.msra.mxu1 %v7939_v19 }
 0x175   :  { %v1768_v10 = vpop.f32.mrf.mxu0 }
 0x176   :  { %v1729_v42 = vpop.f32.mrf.mxu3 }
 0x177   :  { %2329 = vmatpush.bf16.msrb.mxu0 %v6276_v29  ;;  %v7935_v42 = vld [vmem:[#allocation10 + $0x38] sm:$0xff]  ;;  %v7949_v29 = vld [vmem:[#allocation11 + $0x28] sm:$0xff] }
 0x178   :  { %2473 = vmatpush.bf16.msra.mxu3 %v7935_v42  ;;  %2491 = vmatpush.bf16.msra.mxu1 %v7938_v20 }
 0x179   :  { %v1755_v9 = vpop.f32.mrf.mxu2  ;;  %v8295_v11 = vpop.eup %8294 }
 0x17a   :  { %v1841_v12 = vpack.c.bf16 %v8295_v11, %v8295_v11  ;;  %v7932_v9 = vld [vmem:[#allocation10 + $0x20] sm:$0xff]  ;;  %v7931_v11 = vld [vmem:[#allocation10 + $0x18] sm:$0xff] }
 0x17b   :  { %2330 = vmatpush.bf16.msrb.mxu0 %v6268_v40 }
 0x17c   :  { %2267 = vmatmul.bf16.vlgmr.msra.gmra.mxu2 %v1841_v12  ;;  %2474 = vmatpush.bf16.msra.mxu3 %v7934_v5  ;;  %v7972_v5 = vld [vmem:[#allocation17 + $0x64] sm:$0xf] }
 0x17d   :  { %2492 = vmatpush.bf16.msra.mxu1 %v7937_v22  ;;  %2569 = vmatpush.bf16.msra.mxu2 %v7951_v24  ;;  %v7967_v22 = vld [vmem:[#allocation17 + $0x34] sm:$0xf0]  ;;  %v6473_v24 = vld [vmem:[#allocation17 + $0x38] sm:$0xf0] }
 0x17f   :  { %2331 = vmatpush.bf16.msrb.mxu0 %v6260_v45  ;;  %v7945_v45 = vld [vmem:[#allocation11 + $0x8] sm:$0xff] }
 0x180   :  { %2475 = vmatpush.bf16.msra.mxu3 %v7933_v7  ;;  %v6497_v7 = vld [vmem:[#allocation17 + $0x68] sm:$0xf0] }
 0x181   :  { %2493 = vmatpush.bf16.msra.mxu1 %v7936_v23  ;;  %2570 = vmatpush.bf16.msra.mxu2 %v7950_v25  ;;  %v7966_v23 = vld [vmem:[#allocation17 + $0x34] sm:$0xf] }
 0x184   :  { %2476 = vmatpush.bf16.msra.mxu3 %v7932_v9  ;;  %v6500_v9 = vor.u32 %v7972_v5, %v6497_v7  ;;  %v6719_v5 = vld [vmem:[#allocation20 + $0x1a0] sm:$0xf]  ;;  %v8030_v7 = vld [vmem:[#allocation20 + $0x1ac] sm:$0xf0] }
 0x185   :  { %2571 = vmatpush.bf16.msra.mxu2 %v7949_v29 }
 0x186   :  { %v1779_v17 = vpop.f32.mrf.mxu1 }
 0x187   :  { %v1780_v41 = vadd.f32 %v1779_v17, %v1767_v48 }
 0x188   :  { %2477 = vmatpush.bf16.msra.mxu3 %v7931_v11  ;;  %v7971_v11 = vld [vmem:[#allocation17 + $0x54] sm:$0xf0] }
 0x189   :  { %2572 = vmatpush.bf16.msra.mxu2 %v7948_v37  ;;  %v6455_v37 = vld [vmem:[#allocation17 + $0x10] sm:$0xf] }
 0x18c   :  { %2319 = vmatmul.bf16.vlgmr.msrb.gmra.mxu2 %v1841_v12  ;;  %v7930_v12 = vld [vmem:[#allocation10 + $0x10] sm:$0xff] }
 0x18d   :  { %v1818_v35 = vpop.f32.mrf.mxu0  ;;  %2478 = vmatpush.bf16.msra.mxu3 %v7930_v12  ;;  %v7970_v12 = vld [vmem:[#allocation17 + $0x54] sm:$0xf] }
 0x18e   :  { %v1792_v28 = vpop.f32.mrf.mxu3  ;;  %v1781_v32 = vpop.f32.mrf.mxu1 }
 0x18f   :  { %v1793_v46 = vadd.f32 %v1792_v28, %v1780_v41  ;;  %v7947_v41 = vld [vmem:[#allocation11 + $0x18] sm:$0xff] }
 0x190   :  { %2573 = vmatpush.bf16.msra.mxu2 %v7947_v41  ;;  %v7963_v41 = vld [vmem:[#allocation17 + $0x14] sm:$0xf0] }
 0x191   :  { %v1805_v33 = vpop.f32.mrf.mxu2  ;;  %2479 = vmatpush.bf16.msra.mxu3 %v7929_v14  ;;  %v6492_v14 = vor.u32 %v7970_v12, %v6489_v13  ;;  %v8000_v13 = vld [vmem:[#allocation20 + $0xc4] sm:$0xf] }
 0x192   :  { %v1806_v49 = vadd.f32 %v1805_v33, %v1793_v46  ;;  %v7944_v46 = vld [vmem:[#allocation11] sm:$0xff] }
 0x194   :  { %v1819_v50 = vadd.f32 %v1818_v35, %v1806_v49  ;;  %v7957_v49 = vld [vmem:[#allocation14 + $0x28] sm:$0xff] }
 0x195   :  { %v1820_v31 = vpop.f32.mrf.mxu0  ;;  %2480 = vmatpush.bf16.msra.mxu3 %v7928_v16  ;;  %v7969_v16 = vld [vmem:[#allocation17 + $0x44] sm:$0xf0] }
 0x196   :  { %v1794_v44 = vpop.f32.mrf.mxu3  ;;  %v7958_v31 = vld [vmem:[#allocation14 + $0x30] sm:$0xff]  ;;  %v6480_v19 = vor.u32 %v7969_v16, %v6479_v15  ;;  %v6703_v16 = vld [vmem:[#allocation20 + $0x180] sm:$0xf] }
 0x197   :  { %v7946_v44 = vld [vmem:[#allocation11 + $0x10] sm:$0xff] }
 0x198   :  { %2574 = vmatpush.bf16.msra.mxu2 %v7946_v44  ;;  %v7962_v44 = vld [vmem:[#allocation17 + $0x14] sm:$0xf] }
 0x199   :  { %v1807_v47 = vpop.f32.mrf.mxu2 }
 0x19a   :  { %v7959_v47 = vld [vmem:[#allocation14 + $0x38] sm:$0xff] }
 0x19c   :  { %2575 = vmatpush.bf16.msra.mxu2 %v7945_v45  ;;  %v6456_v45 = vor.u32 %v7963_v41, %v6455_v37  ;;  %v6559_v37 = vld [vmem:[#allocation20 + $0x60] sm:$0xf] }
 0x1a0   :  { %2576 = vmatpush.bf16.msra.mxu2 %v7944_v46  ;;  %v6457_v46 = vld [vmem:[#allocation17 + $0x18] sm:$0xf0] }
 0x1a1   :  { %v1831_v53 = vpop.f32.mrf.mxu2 }
 0x1a2   :  { %v1832_v51 = vadd.f32 %v1831_v53, %v1819_v50  ;;  %v7956_v53 = vld [vmem:[#allocation14 + $0x20] sm:$0xff] }
 0x1a4   :  { %8296 = vtanh.f32 %v1832_v51  ;;  %v7955_v51 = vld [vmem:[#allocation14 + $0x18] sm:$0xff] }
 0x1a9   :  { %v1833_v52 = vpop.f32.mrf.mxu2 }
 0x1aa   :  { %v8297_v54 = vpop.eup %8296  ;;  %v8287_v52 = vld [vmem:[%s9047_s6] ss:$0 sm:$0xff] }
 0x1ab   :  { %v1842_v60 = vpack.c.bf16 %v8297_v54, %v8297_v54 }
 0x1ad   :  { %2280 = vmatmul.bf16.vlgmr.msra.gmra.mxu0 %v1842_v60 }
 0x1ae   :  { %v2242_v55 = vpop.f32.mrf.mxu3  ;;  %2653 = vmatpush.bf16.msra.mxu0 %v7959_v47  ;;  %v6460_v47 = vor.u32 %v7962_v44, %v6457_v46  ;;  %v7990_v44 = vld [vmem:[#allocation20 + $0x6c] sm:$0xf0]  ;;  %v6561_v46 = vld [vmem:[#allocation20 + $0x70] sm:$0xf0] }
 0x1af   :  { %v2243_v6 = vadd.f32 %v2242_v55, %v1909_v59 }
 0x1b2   :  { %2654 = vmatpush.bf16.msra.mxu0 %v7958_v31  ;;  %v6447_v31 = vld [vmem:[#allocation17] sm:$0xf] }
 0x1b6   :  { %v2244_v56 = vpop.f32.mrf.mxu3  ;;  %2655 = vmatpush.bf16.msra.mxu0 %v7957_v49  ;;  %v7961_v49 = vld [vmem:[#allocation17 + $0x4] sm:$0xf0] }
 0x1ba   :  { %2656 = vmatpush.bf16.msra.mxu0 %v7956_v53  ;;  %v6448_v53 = vor.u32 %v7961_v49, %v6447_v31  ;;  %v6671_v31 = vld [vmem:[#allocation20 + $0x140] sm:$0xf]  ;;  %v8018_v49 = vld [vmem:[#allocation20 + $0x14c] sm:$0xf0] }
 0x1bd   :  { %2332 = vmatmul.bf16.vlgmr.msrb.gmra.mxu0 %v1842_v60 }
 0x1be   :  { %v2255_v62 = vpop.f32.mrf.mxu1  ;;  %2657 = vmatpush.bf16.msra.mxu0 %v7955_v51  ;;  %v6449_v51 = vld [vmem:[#allocation17 + $0x8] sm:$0xf0] }
 0x1bf   :  { %v2256_v34 = vadd.f32 %v2255_v62, %v2243_v6  ;;  %v7953_v62 = vld [vmem:[#allocation14 + $0x8] sm:$0xff] }
 0x1c6   :  { %v2257_v0 = vpop.f32.mrf.mxu1 }
 0x1c7   :  { %v7975_v0 = vld [vmem:[#allocation17 + $0x74] sm:$0xf0] }
 0x1ce   :  { %v2294_v61 = vpop.f32.mrf.mxu3  ;;  %v2307_v43 = vpop.f32.mrf.mxu1 }
 0x1cf   :  { %v2295_v2 = vadd.f32 %v2294_v61, %v1910_v1  ;;  %v7954_v61 = vld [vmem:[#allocation14 + $0x10] sm:$0xff] }
 0x1d0   :  { %2658 = vmatpush.bf16.msra.mxu0 %v7954_v61  ;;  %v7974_v1 = vld [vmem:[#allocation17 + $0x74] sm:$0xf] }
 0x1d1   :  { %v2308_v3 = vadd.f32 %v2307_v43, %v2295_v2  ;;  %v6505_v43 = vld [vmem:[#allocation17 + $0x78] sm:$0xf0] }
 0x1d2   :  { %v6508_v42 = vor.u32 %v7974_v1, %v6505_v43  ;;  %v8006_v1 = vld [vmem:[#allocation20 + $0xec] sm:$0xf0]  ;;  %v6625_v43 = vld [vmem:[#allocation20 + $0xf0] sm:$0xf0] }
 0x1d4   :  { %2659 = vmatpush.bf16.msra.mxu0 %v7953_v62  ;;  %2783 = vmatpush.bf16.msrb.mxu1 %v6508_v42  ;;  %v8032_v62 = vld [vmem:[#allocation20 + $0x1c4] sm:$0xf] }
 0x1d6   :  { %v2296_v63 = vpop.f32.mrf.mxu3  ;;  %v2309_v4 = vpop.f32.mrf.mxu1 }
 0x1d7   :  { %v6503_v63 = vld [vmem:[#allocation17 + $0x70] sm:$0xf]  ;;  %v7973_v4 = vld [vmem:[#allocation17 + $0x64] sm:$0xf0] }
 0x1d8   :  { %v6504_v2 = vor.u32 %v7975_v0, %v6503_v63  ;;  %2784 = vmatpush.bf16.msrb.mxu1 %v6500_v9  ;;  %v6623_v63 = vld [vmem:[#allocation20 + $0xe0] sm:$0xf]  ;;  %v6721_v9 = vld [vmem:[#allocation20 + $0x1b0] sm:$0xf0] }
 0x1da   :  { %2770 = vmatpush.bf16.msrb.mxu3 %v6504_v2  ;;  %v8004_v2 = vld [vmem:[#allocation20 + $0xe4] sm:$0xf] }
 0x1db   :  { %v6628_v42 = vor.u32 %v8004_v2, %v6625_v43 }
 0x1dc   :  { %2785 = vmatpush.bf16.msrb.mxu1 %v6492_v14  ;;  %v6720_v14 = vor.u32 %v8030_v7, %v6719_v5  ;;  %v7980_v5 = vld [vmem:[#allocation20 + $0x24] sm:$0xf]  ;;  %v6529_v7 = vld [vmem:[#allocation20 + $0x30] sm:$0xf0] }
 0x1ff   :  { %v2268_v10 = vpop.f32.mrf.mxu2 }
 0x200   :  { %v2269_v26 = vadd.f32 %v2268_v10, %v2256_v34  ;;  %v7952_v34 = vld [vmem:[#allocation14] sm:$0xff]  ;;  %v6487_v10 = vld [vmem:[#allocation17 + $0x50] sm:$0xf] }
 0x201   :  { %2660 = vmatpush.bf16.msra.mxu0 %v7952_v34  ;;  %v6737_v34 = vld [vmem:[#allocation20 + $0x1d0] sm:$0xf0] }
 0x207   :  { %v2270_v39 = vpop.f32.mrf.mxu2 }
 0x208   :  { %v6488_v39 = vor.u32 %v7971_v11, %v6487_v10  ;;  %v6607_v10 = vld [vmem:[#allocation20 + $0xc0] sm:$0xf]  ;;  %v8002_v11 = vld [vmem:[#allocation20 + $0xcc] sm:$0xf0] }
 0x209   :  { %v6608_v12 = vor.u32 %v8002_v11, %v6607_v10  ;;  %v8010_v10 = vld [vmem:[#allocation20 + $0x10c] sm:$0xf0]  ;;  %v8008_v11 = vld [vmem:[#allocation20 + $0x104] sm:$0xf] }
 0x20f   :  { %v2320_v17 = vpop.f32.mrf.mxu2 }
 0x210   :  { %v2321_v35 = vadd.f32 %v2320_v17, %v2308_v3  ;;  %v6495_v3 = vld [vmem:[#allocation17 + $0x60] sm:$0xf]  ;;  %v6481_v17 = vld [vmem:[#allocation17 + $0x48] sm:$0xf0] }
 0x211   :  { %v6496_v8 = vor.u32 %v7973_v4, %v6495_v3  ;;  %v6484_v20 = vor.u32 %v7968_v57, %v6481_v17  ;;  %v6740_v3 = vor.u32 %v8032_v62, %v6737_v34  ;;  %v6624_v4 = vor.u32 %v8006_v1, %v6623_v63  ;;  %v8026_v57 = vld [vmem:[#allocation20 + $0x18c] sm:$0xf0]  ;;  %v6655_v62 = vld [vmem:[#allocation20 + $0x120] sm:$0xf]  ;;  %v6657_v1 = vld [vmem:[#allocation20 + $0x130] sm:$0xf0] }
 0x212   :  { %v8014_v34 = vld [vmem:[#allocation20 + $0x12c] sm:$0xf0] }
 0x213   :  { %2771 = vmatpush.bf16.msrb.mxu3 %v6496_v8  ;;  %2786 = vmatpush.bf16.msrb.mxu1 %v6484_v20  ;;  %v8028_v8 = vld [vmem:[#allocation20 + $0x1a4] sm:$0xf]  ;;  %v7998_v20 = vld [vmem:[#allocation20 + $0xac] sm:$0xf0] }
 0x214   :  { %3194 = vmatpush.bf16.msrb.mxu2 %v6624_v4  ;;  %v6724_v17 = vor.u32 %v8028_v8, %v6721_v9  ;;  %v6656_v4 = vor.u32 %v8014_v34, %v6655_v62  ;;  %v6639_v9 = vld [vmem:[#allocation20 + $0x100] sm:$0xf]  ;;  %v6713_v62 = vld [vmem:[#allocation20 + $0x198] sm:$0xf0] }
 0x217   :  { %v2322_v21 = vpop.f32.mrf.mxu2  ;;  %2772 = vmatpush.bf16.msrb.mxu3 %v6488_v39  ;;  %v6609_v39 = vld [vmem:[#allocation20 + $0xd0] sm:$0xf0] }
 0x218   :  { %v6471_v21 = vld [vmem:[#allocation17 + $0x30] sm:$0xf]  ;;  %v6612_v15 = vor.u32 %v8000_v13, %v6609_v39  ;;  %3195 = vmatpush.bf16.msrb.mxu2 %v6608_v12  ;;  %v6641_v12 = vld [vmem:[#allocation20 + $0x110] sm:$0xf0]  ;;  %v6759_v13 = vld [vmem:[#allocation20 + $0x1e8] sm:$0xf] }
 0x219   :  { %v6472_v25 = vor.u32 %v7967_v22, %v6471_v21  ;;  %v7996_v21 = vld [vmem:[#allocation20 + $0xa4] sm:$0xf]  ;;  %v8039_v39 = vld [vmem:[#allocation20 + $0x1f4] sm:$0xf0] }
 0x21a   :  { %v8024_v22 = vld [vmem:[#allocation20 + $0x184] sm:$0xf] }
 0x21b   :  { %2773 = vmatpush.bf16.msrb.mxu3 %v6480_v19  ;;  %v6591_v19 = vld [vmem:[#allocation20 + $0xa0] sm:$0xf] }
 0x21f   :  { %2774 = vmatpush.bf16.msrb.mxu3 %v6472_v25  ;;  %v6592_v25 = vor.u32 %v7998_v20, %v6591_v19 }
 0x221   :  { %3196 = vmatpush.bf16.msrb.mxu2 %v6592_v25  ;;  %v6743_v25 = vld [vmem:[#allocation20 + $0x1c8] sm:$0xf] }
 0x22a   :  { %v2281_v27 = vpop.f32.mrf.mxu0 }
 0x22b   :  { %v2282_v28 = vadd.f32 %v2281_v27, %v2269_v26  ;;  %v6476_v26 = vor.u32 %v7966_v23, %v6473_v24  ;;  %v8288_v27 = vld [vmem:[#allocation13] ss:$0 sm:$0xff]  ;;  %v6705_v23 = vld [vmem:[#allocation20 + $0x190] sm:$0xf0] }
 0x22c   :  { %v6593_v24 = vld [vmem:[#allocation20 + $0xb0] sm:$0xf0] }
 0x22d   :  { %8298 = vtanh.f32 %v2282_v28  ;;  %2787 = vmatpush.bf16.msrb.mxu1 %v6476_v26  ;;  %v6596_v26 = vor.u32 %v7996_v21, %v6593_v24  ;;  %v6644_v21 = vor.u32 %v8008_v11, %v6641_v12  ;;  %v7995_v11 = vld [vmem:[#allocation20 + $0x94] sm:$0xf0]  ;;  %v7993_v12 = vld [vmem:[#allocation20 + $0x8c] sm:$0xf] }
 0x232   :  { %v2283_v30 = vpop.f32.mrf.mxu0 }
 0x233   :  { %v8299_v32 = vpop.eup %8298 }
 0x234   :  { %v2339_v33 = vpack.c.bf16 %v8299_v32, %v8299_v32 }
 0x236   :  { %2481 = vmatmul.bf16.vlgmr.msra.gmra.mxu3 %v2339_v33 }
 0x23a   :  { %v2333_v48 = vpop.f32.mrf.mxu0 }
 0x23b   :  { %v2334_v36 = vadd.f32 %v2333_v48, %v2321_v35  ;;  %v6463_v35 = vld [vmem:[#allocation17 + $0x20] sm:$0xf]  ;;  %v7965_v48 = vld [vmem:[#allocation17 + $0x24] sm:$0xf0] }
 0x23d   :  { %8300 = vtanh.f32 %v2334_v36  ;;  %v7964_v36 = vld [vmem:[#allocation17 + $0x24] sm:$0xf] }
 0x242   :  { %v2335_v18 = vpop.f32.mrf.mxu0 }
 0x243   :  { %v8301_v38 = vpop.eup %8300  ;;  %v6464_v18 = vor.u32 %v7965_v48, %v6463_v35  ;;  %v6687_v35 = vld [vmem:[#allocation20 + $0x160] sm:$0xf]  ;;  %v8022_v48 = vld [vmem:[#allocation20 + $0x16c] sm:$0xf0] }
 0x244   :  { %v2340_v40 = vpack.c.bf16 %v8301_v38, %v8301_v38  ;;  %v6465_v38 = vld [vmem:[#allocation17 + $0x28] sm:$0xf0]  ;;  %v6688_v41 = vor.u32 %v8022_v48, %v6687_v35  ;;  %v7976_v48 = vld [vmem:[#allocation20 + $0x4] sm:$0xf] }
 0x245   :  { %2775 = vmatpush.bf16.msrb.mxu3 %v6464_v18  ;;  %v6689_v18 = vld [vmem:[#allocation20 + $0x170] sm:$0xf0] }
 0x246   :  { %2494 = vmatmul.bf16.vlgmr.msra.gmra.mxu1 %v2340_v40  ;;  %v6468_v40 = vor.u32 %v7964_v36, %v6465_v38  ;;  %v8020_v36 = vld [vmem:[#allocation20 + $0x164] sm:$0xf] }
 0x248   :  { %2788 = vmatpush.bf16.msrb.mxu1 %v6468_v40 }
 0x249   :  { %2776 = vmatpush.bf16.msrb.mxu3 %v6456_v45  ;;  %v7988_v45 = vld [vmem:[#allocation20 + $0x64] sm:$0xf] }
 0x24c   :  { %2789 = vmatpush.bf16.msrb.mxu1 %v6460_v47  ;;  %v6692_v47 = vor.u32 %v8020_v36, %v6689_v18  ;;  %v6513_v36 = vld [vmem:[#allocation20 + $0x10] sm:$0xf0]  ;;  %v6631_v18 = vld [vmem:[#allocation20 + $0xe8] sm:$0xf] }
 0x24d   :  { %2777 = vmatpush.bf16.msrb.mxu3 %v6448_v53  ;;  %v8016_v53 = vld [vmem:[#allocation20 + $0x144] sm:$0xf] }
 0x251   :  { %3220 = vmatpush.bf16.msra.mxu3 %v6628_v42  ;;  %v7982_v42 = vld [vmem:[#allocation20 + $0x2c] sm:$0xf0] }
 0x255   :  { %3221 = vmatpush.bf16.msra.mxu3 %v6612_v15  ;;  %v6532_v15 = vor.u32 %v7980_v5, %v6529_v7  ;;  %v8021_v5 = vld [vmem:[#allocation20 + $0x16c] sm:$0xf] }
 0x259   :  { %3222 = vmatpush.bf16.msra.mxu3 %v6596_v26  ;;  %v8035_v26 = vld [vmem:[#allocation20 + $0x1d4] sm:$0xf0] }
 0x2b9   :  { %v2482_v50 = vpop.f32.mrf.mxu3 }
 0x2ba   :  { %v2483_v60 = vadd.f32 %v8287_v52, %v2482_v50  ;;  %v7960_v50 = vld [vmem:[#allocation17 + $0x4] sm:$0xf] }
 0x2bb   :  { %v6452_v52 = vor.u32 %v7960_v50, %v6449_v51  ;;  %v8289_v50 = vld [vmem:[#allocation16] ss:$0 sm:$0xff]  ;;  %v6673_v51 = vld [vmem:[#allocation20 + $0x150] sm:$0xf0] }
 0x2bd   :  { %2790 = vmatpush.bf16.msrb.mxu1 %v6452_v52  ;;  %v6560_v52 = vor.u32 %v7990_v44, %v6559_v37  ;;  %v8005_v37 = vld [vmem:[#allocation20 + $0xec] sm:$0xf] }
 0x2c1   :  { %v2484_v54 = vpop.f32.mrf.mxu3 }
 0x2c2   :  { %v6751_v54 = vld [vmem:[#allocation20 + $0x1e0] sm:$0xf] }
 0x2c3   :  { %v2495_v55 = vpop.f32.mrf.mxu1 }
 0x2c4   :  { %v2496_v56 = vadd.f32 %v2495_v55, %v2483_v60  ;;  %v8038_v60 = vld [vmem:[#allocation20 + $0x1ec] sm:$0xf0]  ;;  %v8036_v55 = vld [vmem:[#allocation20 + $0x1e4] sm:$0xf] }
 0x2c6   :  { %8302 = vtanh.f32 %v2496_v56  ;;  %v6752_v56 = vor.u32 %v8038_v60, %v6751_v54  ;;  %v6564_v54 = vor.u32 %v7988_v45, %v6561_v46  ;;  %v6543_v60 = vld [vmem:[#allocation20 + $0x40] sm:$0xf]  ;;  %v6727_v46 = vld [vmem:[#allocation20 + $0x1a8] sm:$0xf] }
 0x2c8   :  { %3207 = vmatpush.bf16.msrb.mxu0 %v6752_v56  ;;  %v7986_v56 = vld [vmem:[#allocation20 + $0x4c] sm:$0xf0] }
 0x2c9   :  { %v6544_v2 = vor.u32 %v7986_v56, %v6543_v60 }
 0x2cb   :  { %v2497_v58 = vpop.f32.mrf.mxu1 }
 0x2cc   :  { %v8303_v59 = vpop.eup %8302  ;;  %v6753_v58 = vld [vmem:[#allocation20 + $0x1f0] sm:$0xf0] }
 0x2cd   :  { %v2500_v6 = vpack.c.bf16 %v8303_v59, %v8303_v59  ;;  %v6735_v59 = vld [vmem:[#allocation20 + $0x1c0] sm:$0xf]  ;;  %v6756_v61 = vor.u32 %v8036_v55, %v6753_v58  ;;  %v6672_v55 = vor.u32 %v8018_v49, %v6671_v31  ;;  %v7984_v58 = vld [vmem:[#allocation20 + $0x44] sm:$0xf]  ;;  %v8029_v31 = vld [vmem:[#allocation20 + $0x1ac] sm:$0xf] }
 0x2cf   :  { %2577 = vmatmul.bf16.vlgmr.msra.gmra.mxu2 %v2500_v6  ;;  %v8034_v6 = vld [vmem:[#allocation20 + $0x1cc] sm:$0xf0]  ;;  %3233 = vmatpush.bf16.msra.mxu1 %v6756_v61  ;;  %v6676_v61 = vor.u32 %v8016_v53, %v6673_v51  ;;  %v6615_v51 = vld [vmem:[#allocation20 + $0xc8] sm:$0xf] }
 0x2d0   :  { %v6736_v0 = vor.u32 %v8034_v6, %v6735_v59  ;;  %v6545_v59 = vld [vmem:[#allocation20 + $0x50] sm:$0xf0] }
 0x2d1   :  { %v6548_v43 = vor.u32 %v7984_v58, %v6545_v59  ;;  %v6711_v58 = vld [vmem:[#allocation20 + $0x188] sm:$0xf]  ;;  %v8027_v59 = vld [vmem:[#allocation20 + $0x194] sm:$0xf0] }
 0x2d2   :  { %3208 = vmatpush.bf16.msrb.mxu0 %v6736_v0  ;;  %v8012_v0 = vld [vmem:[#allocation20 + $0x124] sm:$0xf] }
 0x2d3   :  { %3234 = vmatpush.bf16.msra.mxu1 %v6740_v3  ;;  %v6527_v3 = vld [vmem:[#allocation20 + $0x20] sm:$0xf]  ;;  %v6660_v8 = vor.u32 %v8012_v0, %v6657_v1  ;;  %v7999_v0 = vld [vmem:[#allocation20 + $0xb4] sm:$0xf0]  ;;  %v7997_v1 = vld [vmem:[#allocation20 + $0xac] sm:$0xf] }
 0x2d6   :  { %3209 = vmatpush.bf16.msrb.mxu0 %v6720_v14  ;;  %v6528_v14 = vor.u32 %v7982_v42, %v6527_v3  ;;  %v8023_v42 = vld [vmem:[#allocation20 + $0x174] sm:$0xf0] }
 0x2d7   :  { %3235 = vmatpush.bf16.msra.mxu1 %v6724_v17  ;;  %v6761_v17 = vld [vmem:[#allocation20 + $0x1f8] sm:$0xf0] }
 0x352   :  { %v2578_v28 = vpop.f32.mrf.mxu2 }
 0x353   :  { %v2579_v29 = vadd.f32 %v8288_v27, %v2578_v28  ;;  %v6575_v27 = vld [vmem:[#allocation20 + $0x80] sm:$0xf]  ;;  %v6704_v28 = vor.u32 %v8026_v57, %v6703_v16  ;;  %v6640_v16 = vor.u32 %v8010_v10, %v6639_v9  ;;  %v8037_v57 = vld [vmem:[#allocation20 + $0x1ec] sm:$0xf]  ;;  %v6583_v10 = vld [vmem:[#allocation20 + $0x88] sm:$0xf] }
 0x354   :  { %v6764_v24 = vor.u32 %v8037_v57, %v6761_v17  ;;  %v8017_v57 = vld [vmem:[#allocation20 + $0x14c] sm:$0xf] }
 0x355   :  { %8304 = vtanh.f32 %v2579_v29  ;;  %v7994_v29 = vld [vmem:[#allocation20 + $0x8c] sm:$0xf0]  ;;  %3210 = vmatpush.bf16.msrb.mxu0 %v6704_v28  ;;  %v6744_v28 = vor.u32 %v8035_v26, %v6743_v25  ;;  %v6569_v25 = vld [vmem:[#allocation20 + $0x78] sm:$0xf0]  ;;  %v6663_v26 = vld [vmem:[#allocation20 + $0x128] sm:$0xf] }
 0x356   :  { %v6576_v38 = vor.u32 %v7994_v29, %v6575_v27  ;;  %v8033_v27 = vld [vmem:[#allocation20 + $0x1cc] sm:$0xf]  ;;  %v6745_v29 = vld [vmem:[#allocation20 + $0x1d8] sm:$0xf0] }
 0x358   :  { %3197 = vmatpush.bf16.msrb.mxu2 %v6576_v38  ;;  %v6516_v38 = vor.u32 %v7976_v48, %v6513_v36  ;;  %v7987_v48 = vld [vmem:[#allocation20 + $0x54] sm:$0xf0]  ;;  %v7985_v36 = vld [vmem:[#allocation20 + $0x4c] sm:$0xf] }
 0x359   :  { %3211 = vmatpush.bf16.msrb.mxu0 %v6688_v41  ;;  %v6633_v41 = vld [vmem:[#allocation20 + $0xf8] sm:$0xf0] }
 0x35a   :  { %v2580_v30 = vpop.f32.mrf.mxu2  ;;  %v6636_v45 = vor.u32 %v8005_v37, %v6633_v41  ;;  %v6647_v37 = vld [vmem:[#allocation20 + $0x108] sm:$0xf]  ;;  %v8011_v41 = vld [vmem:[#allocation20 + $0x114] sm:$0xf0] }
 0x35b   :  { %v8305_v32 = vpop.eup %8304  ;;  %v7992_v30 = vld [vmem:[#allocation20 + $0x84] sm:$0xf] }
 0x35c   :  { %2583 = vst [vmem:[#allocation23] sm:$0xff] %v8305_v32  ;;  %v2584_v33 = vpack.c.bf16 %v8305_v32, %v8305_v32  ;;  %v6577_v32 = vld [vmem:[#allocation20 + $0x90] sm:$0xf0]  ;;  %3198 = vmatpush.bf16.msrb.mxu2 %v6560_v52  ;;  %v8003_v52 = vld [vmem:[#allocation20 + $0xd4] sm:$0xf0] }
 0x35d   :  { %v6580_v40 = vor.u32 %v7992_v30, %v6577_v32  ;;  %3212 = vmatpush.bf16.msrb.mxu0 %v6672_v55  ;;  %v6511_v30 = vld [vmem:[#allocation20] sm:$0xf]  ;;  %v7978_v32 = vld [vmem:[#allocation20 + $0xc] sm:$0xf0]  ;;  %v6616_v60 = vor.u32 %v8003_v52, %v6615_v51  ;;  %v6617_v55 = vld [vmem:[#allocation20 + $0xd8] sm:$0xf0] }
 0x35e   :  { %2661 = vmatmul.bf16.vlgmr.msra.gmra.mxu0 %v2584_v33  ;;  %v6708_v33 = vor.u32 %v8024_v22, %v6705_v23  ;;  %v6760_v22 = vor.u32 %v8039_v39, %v6759_v13  ;;  %v6512_v35 = vor.u32 %v7978_v32, %v6511_v30  ;;  %v6584_v13 = vor.u32 %v7995_v11, %v6583_v10  ;;  %v6585_v39 = vld [vmem:[#allocation20 + $0x98] sm:$0xf0]  ;;  %v8013_v30 = vld [vmem:[#allocation20 + $0x12c] sm:$0xf] }
 0x35f   :  { %3223 = vmatpush.bf16.msra.mxu3 %v6580_v40  ;;  %v8007_v40 = vld [vmem:[#allocation20 + $0xf4] sm:$0xf0]  ;;  %v6665_v32 = vld [vmem:[#allocation20 + $0x138] sm:$0xf0]  ;;  %v8141_v10 = vld [vmem:[#allocation22 + $0x328] sm:$0xf0] }
 0x360   :  { %3236 = vmatpush.bf16.msra.mxu1 %v6708_v33  ;;  %3199 = vmatpush.bf16.msrb.mxu2 %v6544_v2  ;;  %v6748_v33 = vor.u32 %v8033_v27, %v6745_v29  ;;  %v6632_v44 = vor.u32 %v8007_v40, %v6631_v18  ;;  %v8015_v27 = vld [vmem:[#allocation20 + $0x134] sm:$0xf0]  ;;  %v6553_v18 = vld [vmem:[#allocation20 + $0x58] sm:$0xf0] }
 0x361   :  { %3213 = vmatpush.bf16.msrb.mxu0 %v6656_v4  ;;  %v6695_v4 = vld [vmem:[#allocation20 + $0x168] sm:$0xf]  ;;  %v6664_v29 = vor.u32 %v8015_v27, %v6663_v26  ;;  %v6556_v40 = vor.u32 %v7985_v36, %v6553_v18  ;;  %v8246_v27 = vld [vmem:[#allocation22 + $0x670] sm:$0xf0]  ;;  %v8127_v36 = vld [vmem:[#allocation22 + $0x2b8] sm:$0xf0] }
 0x362   :  { %v6696_v7 = vor.u32 %v8023_v42, %v6695_v4  ;;  %v7551_v18 = vld [vmem:[#allocation22 + $0x620] sm:$0xf] }
 0x363   :  { %3224 = vmatpush.bf16.msra.mxu3 %v6564_v54  ;;  %v8001_v54 = vld [vmem:[#allocation20 + $0xcc] sm:$0xf] }
 0x364   :  { %3237 = vmatpush.bf16.msra.mxu1 %v6692_v47  ;;  %3200 = vmatpush.bf16.msrb.mxu2 %v6528_v14  ;;  %v8031_v47 = vld [vmem:[#allocation20 + $0x1b4] sm:$0xf0]  ;;  %v6620_v56 = vor.u32 %v8001_v54, %v6617_v55  ;;  %v6588_v14 = vor.u32 %v7993_v12, %v6585_v39  ;;  %v2684_v54 = vld [vmem:[#allocation19] sm:$0x3]  ;;  %v6963_v12 = vld [vmem:[#allocation22 + $0x188] sm:$0xf] }
 0x365   :  { %3214 = vmatpush.bf16.msrb.mxu0 %v6640_v16  ;;  %v6728_v49 = vor.u32 %v8031_v47, %v6727_v46  ;;  %v8019_v16 = vld [vmem:[#allocation20 + $0x154] sm:$0xf0]  ;;  %v6649_v46 = vld [vmem:[#allocation20 + $0x118] sm:$0xf0]  ;;  %v6535_v47 = vld [vmem:[#allocation20 + $0x28] sm:$0xf] }
 0x366   :  { %v7979_v55 = vld [vmem:[#allocation20 + $0x14] sm:$0xf0]  ;;  %v7411_v39 = vld [vmem:[#allocation22 + $0x508] sm:$0xf] }
 0x367   :  { %3225 = vmatpush.bf16.msra.mxu3 %v6548_v43  ;;  %v6601_v43 = vld [vmem:[#allocation20 + $0xb8] sm:$0xf0] }
 0x368   :  { %3238 = vmatpush.bf16.msra.mxu1 %v6676_v61  ;;  %3201 = vmatpush.bf16.msrb.mxu2 %v6512_v35  ;;  %v6712_v61 = vor.u32 %v8027_v59, %v6711_v58  ;;  %v6604_v3 = vor.u32 %v7997_v1, %v6601_v43  ;;  %v6668_v35 = vor.u32 %v8013_v30, %v6665_v32  ;;  %v2687_v58 = vperm.slane %v2684_v54, 1  ;;  %v7187_v1 = vld [vmem:[#allocation22 + $0x348] sm:$0xf]  ;;  %v7383_v30 = vld [vmem:[#allocation22 + $0x4d0] sm:$0xf] }
 0x369   :  { %3259 = vmatpush.bf16.msra.mxu0 %v6760_v22  ;;  %v7991_v22 = vld [vmem:[#allocation20 + $0x74] sm:$0xf0]  ;;  %v8197_v32 = vld [vmem:[#allocation22 + $0x4e8] sm:$0xf0] }
 0x36b   :  { %3226 = vmatpush.bf16.msra.mxu3 %v6532_v15  ;;  %v6679_v15 = vld [vmem:[#allocation20 + $0x148] sm:$0xf] }
 0x36c   :  { %3239 = vmatpush.bf16.msra.mxu1 %v6660_v8  ;;  %3246 = vmatpush.bf16.msra.mxu2 %v6632_v44  ;;  %v6697_v8 = vld [vmem:[#allocation20 + $0x178] sm:$0xf0]  ;;  %v6680_v17 = vor.u32 %v8019_v16, %v6679_v15  ;;  %v8009_v44 = vld [vmem:[#allocation20 + $0x10c] sm:$0xf]  ;;  %v7607_v15 = vld [vmem:[#allocation22 + $0x690] sm:$0xf] }
 0x36d   :  { %3260 = vmatpush.bf16.msra.mxu0 %v6744_v28  ;;  %v6700_v9 = vor.u32 %v8021_v5, %v6697_v8  ;;  %v7635_v5 = vld [vmem:[#allocation22 + $0x6c8] sm:$0xf]  ;;  %v8253_v16 = vld [vmem:[#allocation22 + $0x6a8] sm:$0xf0] }
 0x36f   :  { %3227 = vmatpush.bf16.msra.mxu3 %v6516_v38 }
 0x370   :  { %3240 = vmatpush.bf16.msra.mxu1 %v6644_v21  ;;  %3247 = vmatpush.bf16.msra.mxu2 %v6616_v60  ;;  %v6567_v21 = vld [vmem:[#allocation20 + $0x68] sm:$0xf] }
 0x371   :  { %3261 = vmatpush.bf16.msra.mxu0 %v6728_v49  ;;  %v6652_v49 = vor.u32 %v8009_v44, %v6649_v46  ;;  %v6519_v60 = vld [vmem:[#allocation20 + $0x8] sm:$0xf]  ;;  %v8078_v44 = vld [vmem:[#allocation22 + $0x130] sm:$0xf0] }
 0x372   :  { %v6520_v59 = vor.u32 %v7979_v55, %v6519_v60  ;;  %v8190_v46 = vld [vmem:[#allocation22 + $0x4b0] sm:$0xf0]  ;;  %v7327_v60 = vld [vmem:[#allocation22 + $0x460] sm:$0xf]  ;;  %v8183_v55 = vld [vmem:[#allocation22 + $0x478] sm:$0xf0] }
 0x375   :  { %3262 = vmatpush.bf16.msra.mxu0 %v6712_v61 }
 0x379   :  { %3263 = vmatpush.bf16.msra.mxu0 %v6696_v7  ;;  %v8260_v7 = vld [vmem:[#allocation22 + $0x6e0] sm:$0xf0] }
 0x37a   :  { %v7636_v11 = vor.u32 %v8260_v7, %v7635_v5  ;;  %v8099_v5 = vld [vmem:[#allocation22 + $0x1d8] sm:$0xf0] }
 0x37d   :  { %3264 = vmatpush.bf16.msra.mxu0 %v6680_v17  ;;  %v7608_v17 = vor.u32 %v8253_v16, %v7607_v15  ;;  %v8043_v15 = vld [vmem:[#allocation22 + $0x18] sm:$0xf0]  ;;  %v8089_v16 = vld [vmem:[#allocation22 + $0x18c] sm:$0xf] }
 0x381   :  { %3265 = vmatpush.bf16.msra.mxu0 %v6664_v29  ;;  %v8085_v29 = vld [vmem:[#allocation22 + $0x168] sm:$0xf0] }
 0x3db   :  { %v2662_v6 = vpop.f32.mrf.mxu0 }
 0x3dc   :  { %v2663_v63 = vadd.f32 %v8289_v50, %v2662_v6  ;;  %v6729_v50 = vld [vmem:[#allocation20 + $0x1b8] sm:$0xf0]  ;;  %v8025_v6 = vld [vmem:[#allocation20 + $0x18c] sm:$0xf] }
 0x3dd   :  { %v6732_v53 = vor.u32 %v8029_v31, %v6729_v50  ;;  %v6716_v34 = vor.u32 %v8025_v6, %v6713_v62  ;;  %v7983_v31 = vld [vmem:[#allocation20 + $0x34] sm:$0xf0]  ;;  %v7981_v50 = vld [vmem:[#allocation20 + $0x2c] sm:$0xf]  ;;  %v6521_v6 = vld [vmem:[#allocation20 + $0x18] sm:$0xf0] }
 0x3de   :  { %8306 = vtanh.f32 %v2663_v63  ;;  %v6599_v63 = vld [vmem:[#allocation20 + $0xa8] sm:$0xf]  ;;  %v6536_v51 = vor.u32 %v7983_v31, %v6535_v47 }
 0x3df   :  { %v6600_v2 = vor.u32 %v7999_v0, %v6599_v63  ;;  %v2686_v63 = vperm.slane %v2684_v54, 0  ;;  %v8071_v54 = vld [vmem:[#allocation22 + $0xf8] sm:$0xf0] }
 0x3e1   :  { %3248 = vmatpush.bf16.msra.mxu2 %v6600_v2  ;;  %v8148_v2 = vld [vmem:[#allocation22 + $0x360] sm:$0xf0] }
 0x3e2   :  { %v7188_v42 = vor.u32 %v8148_v2, %v7187_v1  ;;  %v8106_v1 = vld [vmem:[#allocation22 + $0x210] sm:$0xf0] }
 0x3e3   :  { %v2664_v19 = vpop.f32.mrf.mxu0 }
 0x3e4   :  { %v8307_v20 = vpop.eup %8306  ;;  %v6681_v19 = vld [vmem:[#allocation20 + $0x158] sm:$0xf0] }
 0x3e5   :  { %v2667_v23 = vpack.c.bf16 %v8307_v20, %v8307_v20  ;;  %3249 = vmatpush.bf16.msra.mxu2 %v6584_v13  ;;  %v6684_v20 = vor.u32 %v8017_v57, %v6681_v19  ;;  %v8092_v13 = vld [vmem:[#allocation22 + $0x1a0] sm:$0xf0] }
 0x3e7   :  { %2778 = vmatmul.bf16.vlgmr.msrb.gmra.mxu3 %v2667_v23  ;;  %2791 = vmatmul.bf16.vlgmr.msrb.gmra.mxu1 %v2667_v23  ;;  %v7989_v23 = vld [vmem:[#allocation20 + $0x6c] sm:$0xf] }
 0x3e8   :  { %3285 = vmatpush.bf16.msrb.mxu1 %v6764_v24  ;;  %3272 = vmatpush.bf16.msrb.mxu3 %v6636_v45  ;;  %v6568_v24 = vor.u32 %v7991_v22, %v6567_v21  ;;  %v6572_v28 = vor.u32 %v7989_v23, %v6569_v25  ;;  %v6648_v45 = vor.u32 %v8011_v41, %v6647_v37  ;;  %v8134_v21 = vld [vmem:[#allocation22 + $0x2f0] sm:$0xf0]  ;;  %v7579_v22 = vld [vmem:[#allocation22 + $0x658] sm:$0xf]  ;;  %v6935_v25 = vld [vmem:[#allocation22 + $0x150] sm:$0xf] }
 0x3e9   :  { %v6907_v37 = vld [vmem:[#allocation22 + $0x118] sm:$0xf]  ;;  %v7384_v41 = vor.u32 %v8197_v32, %v7383_v30  ;;  %v7161_v30 = vld [vmem:[#allocation22 + $0x32c] sm:$0xf0] }
 0x3ea   :  { %3250 = vmatpush.bf16.msra.mxu2 %v6568_v24  ;;  %3266 = vmatpush.bf16.msra.mxu0 %v6648_v45  ;;  %v6964_v24 = vor.u32 %v8092_v13, %v6963_v12  ;;  %v7355_v45 = vld [vmem:[#allocation22 + $0x498] sm:$0xf]  ;;  %v7271_v32 = vld [vmem:[#allocation22 + $0x3f0] sm:$0xf] }
 0x3ec   :  { %3286 = vmatpush.bf16.msrb.mxu1 %v6748_v33  ;;  %3273 = vmatpush.bf16.msrb.mxu3 %v6620_v56  ;;  %v6551_v33 = vld [vmem:[#allocation20 + $0x48] sm:$0xf]  ;;  %v7977_v56 = vld [vmem:[#allocation20 + $0xc] sm:$0xf] }
 0x3ed   :  { %v6552_v38 = vor.u32 %v7987_v48, %v6551_v33  ;;  %v6524_v61 = vor.u32 %v7977_v56, %v6521_v6  ;;  %v7580_v48 = vor.u32 %v8246_v27, %v7579_v22  ;;  %v7523_v22 = vld [vmem:[#allocation22 + $0x5e8] sm:$0xf] }
 0x3ef   :  { %3251 = vmatpush.bf16.msra.mxu2 %v6552_v38  ;;  %v8239_v38 = vld [vmem:[#allocation22 + $0x638] sm:$0xf0] }
 0x3f0   :  { %3287 = vmatpush.bf16.msrb.mxu1 %v6732_v53  ;;  %3274 = vmatpush.bf16.msrb.mxu3 %v6604_v3  ;;  %v6537_v53 = vld [vmem:[#allocation20 + $0x38] sm:$0xf0]  ;;  %v7552_v31 = vor.u32 %v8239_v38, %v7551_v18 }
 0x3f1   :  { %v6540_v52 = vor.u32 %v7981_v50, %v6537_v53  ;;  %v8120_v50 = vld [vmem:[#allocation22 + $0x280] sm:$0xf0]  ;;  %v6908_v53 = vor.u32 %v8078_v44, %v6907_v37  ;;  %v6909_v37 = vld [vmem:[#allocation22 + $0x134] sm:$0xf0] }
 0x3f3   :  { %3252 = vmatpush.bf16.msra.mxu2 %v6536_v51  ;;  %v6879_v51 = vld [vmem:[#allocation22 + $0xe0] sm:$0xf] }
 0x3f4   :  { %3288 = vmatpush.bf16.msrb.mxu1 %v6716_v34  ;;  %3275 = vmatpush.bf16.msrb.mxu3 %v6588_v14  ;;  %v8204_v14 = vld [vmem:[#allocation22 + $0x520] sm:$0xf0]  ;;  %v6880_v6 = vor.u32 %v8071_v54, %v6879_v51 }
 0x3f5   :  { %v7412_v26 = vor.u32 %v8204_v14, %v7411_v39  ;;  %v6767_v14 = vld [vmem:[#allocation22] sm:$0xf]  ;;  %v8068_v51 = vld [vmem:[#allocation22 + $0xe4] sm:$0xf] }
 0x3f7   :  { %3253 = vmatpush.bf16.msra.mxu2 %v6520_v59  ;;  %v8113_v59 = vld [vmem:[#allocation22 + $0x248] sm:$0xf0] }
 0x3f8   :  { %3289 = vmatpush.bf16.msrb.mxu1 %v6700_v9  ;;  %3276 = vmatpush.bf16.msrb.mxu3 %v6572_v28  ;;  %v7159_v9 = vld [vmem:[#allocation22 + $0x310] sm:$0xf] }
 0x3f9   :  { %v7160_v57 = vor.u32 %v8141_v10, %v7159_v9  ;;  %v7189_v9 = vld [vmem:[#allocation22 + $0x364] sm:$0xf0]  ;;  %v6795_v10 = vld [vmem:[#allocation22 + $0x38] sm:$0xf] }
 0x3fc   :  { %3290 = vmatpush.bf16.msrb.mxu1 %v6684_v20  ;;  %3277 = vmatpush.bf16.msrb.mxu3 %v6556_v40  ;;  %v7131_v20 = vld [vmem:[#allocation22 + $0x2d8] sm:$0xf]  ;;  %v6936_v40 = vor.u32 %v8085_v29, %v6935_v25  ;;  %v8082_v25 = vld [vmem:[#allocation22 + $0x154] sm:$0xf] }
 0x3fd   :  { %v7132_v33 = vor.u32 %v8134_v21, %v7131_v20  ;;  %v7299_v20 = vld [vmem:[#allocation22 + $0x428] sm:$0xf]  ;;  %v8176_v21 = vld [vmem:[#allocation22 + $0x440] sm:$0xf0]  ;;  %v8138_v29 = vld [vmem:[#allocation22 + $0x314] sm:$0xf] }
 0x400   :  { %3291 = vmatpush.bf16.msrb.mxu1 %v6668_v35  ;;  %3278 = vmatpush.bf16.msrb.mxu3 %v6540_v52  ;;  %v7103_v35 = vld [vmem:[#allocation22 + $0x2a0] sm:$0xf]  ;;  %v7356_v52 = vor.u32 %v8190_v46, %v7355_v45  ;;  %v7133_v45 = vld [vmem:[#allocation22 + $0x2f4] sm:$0xf0] }
 0x401   :  { %v7104_v47 = vor.u32 %v8127_v36, %v7103_v35  ;;  %v8169_v35 = vld [vmem:[#allocation22 + $0x408] sm:$0xf0] }
 0x402   :  { %v8225_v36 = vld [vmem:[#allocation22 + $0x5c8] sm:$0xf0]  ;;  %v7272_v18 = vor.u32 %v8169_v35, %v7271_v32  ;;  %v8243_v32 = vld [vmem:[#allocation22 + $0x65c] sm:$0xf] }
 0x404   :  { %3292 = vmatpush.bf16.msrb.mxu1 %v6652_v49  ;;  %3279 = vmatpush.bf16.msrb.mxu3 %v6524_v61  ;;  %v7075_v49 = vld [vmem:[#allocation22 + $0x268] sm:$0xf]  ;;  %v7328_v61 = vor.u32 %v8183_v55, %v7327_v60  ;;  %v8124_v55 = vld [vmem:[#allocation22 + $0x2a4] sm:$0xf] }
 0x405   :  { %v7076_v56 = vor.u32 %v8120_v50, %v7075_v49  ;;  %v7467_v49 = vld [vmem:[#allocation22 + $0x578] sm:$0xf] }
 0x464   :  { %v2792_v62 = vpop.f32.mrf.mxu1 }
 0x465   :  { %v2793_v34 = vadd.f32 %v2792_v62, %v2687_v58  ;;  %v7047_v58 = vld [vmem:[#allocation22 + $0x230] sm:$0xf]  ;;  %v6851_v62 = vld [vmem:[#allocation22 + $0xa8] sm:$0xf] }
 0x467   :  { %8308 = vtanh.f32 %v2793_v34  ;;  %v8064_v34 = vld [vmem:[#allocation22 + $0xc0] sm:$0xf0] }
 0x468   :  { %v6852_v2 = vor.u32 %v8064_v34, %v6851_v62  ;;  %v8211_v34 = vld [vmem:[#allocation22 + $0x558] sm:$0xf0] }
 0x46a   :  { %v2779_v0 = vpop.f32.mrf.mxu3 }
 0x46b   :  { %v2780_v43 = vadd.f32 %v2779_v0, %v2686_v63  ;;  %v7048_v63 = vor.u32 %v8113_v59, %v7047_v58  ;;  %v7019_v0 = vld [vmem:[#allocation22 + $0x1f8] sm:$0xf]  ;;  %v7215_v59 = vld [vmem:[#allocation22 + $0x380] sm:$0xf] }
 0x46c   :  { %v2794_v3 = vpop.f32.mrf.mxu1 }
 0x46d   :  { %v8309_v4 = vpop.eup %8308  ;;  %8310 = vtanh.f32 %v2780_v43  ;;  %v6823_v43 = vld [vmem:[#allocation22 + $0x70] sm:$0xf]  ;;  %v8057_v3 = vld [vmem:[#allocation22 + $0x88] sm:$0xf0] }
 0x46e   :  { %v8972_v8 = vpack.c.bf16 %v8309_v4, %v8309_v4  ;;  %v7020_v4 = vor.u32 %v8106_v1, %v7019_v0  ;;  %v6824_v7 = vor.u32 %v8057_v3, %v6823_v43  ;;  %v6853_v0 = vld [vmem:[#allocation22 + $0xc4] sm:$0xf0]  ;;  %v8117_v43 = vld [vmem:[#allocation22 + $0x26c] sm:$0xf] }
 0x46f   :  { %v7077_v3 = vld [vmem:[#allocation22 + $0x284] sm:$0xf0] }
 0x470   :  { %3215 = vmatmul.bf16.vlgmr.msrb.gmra.mxu0 %v8972_v8  ;;  %3241 = vmatmul.bf16.vlgmr.msra.gmra.mxu1 %v8972_v8 }
 0x471   :  { %4743 = vmatpush.bf16.msrb.mxu0 %v7188_v42  ;;  %4769 = vmatpush.bf16.msra.mxu1 %v7636_v11  ;;  %v6991_v42 = vld [vmem:[#allocation22 + $0x1c0] sm:$0xf]  ;;  %v8050_v11 = vld [vmem:[#allocation22 + $0x50] sm:$0xf0] }
 0x472   :  { %v2781_v19 = vpop.f32.mrf.mxu3  ;;  %v6992_v12 = vor.u32 %v8099_v5, %v6991_v42  ;;  %v6796_v39 = vor.u32 %v8050_v11, %v6795_v10  ;;  %v8201_v42 = vld [vmem:[#allocation22 + $0x50c] sm:$0xf]  ;;  %v7413_v5 = vld [vmem:[#allocation22 + $0x524] sm:$0xf0]  ;;  %v8054_v11 = vld [vmem:[#allocation22 + $0x74] sm:$0xf] }
 0x473   :  { %v8311_v23 = vpop.eup %8310 }
 0x474   :  { %v2798_v28 = vpack.c.bf16 %v8311_v23, %v8311_v23  ;;  %v7300_v23 = vor.u32 %v8176_v21, %v7299_v20  ;;  %v7609_v20 = vld [vmem:[#allocation22 + $0x6ac] sm:$0xf0] }
 0x475   :  { %4744 = vmatpush.bf16.msrb.mxu0 %v7160_v57  ;;  %4770 = vmatpush.bf16.msra.mxu1 %v7608_v17  ;;  %v6965_v57 = vld [vmem:[#allocation22 + $0x1a4] sm:$0xf0]  ;;  %v6768_v17 = vor.u32 %v8043_v15, %v6767_v14  ;;  %v7049_v14 = vld [vmem:[#allocation22 + $0x24c] sm:$0xf0]  ;;  %v8194_v15 = vld [vmem:[#allocation22 + $0x4d4] sm:$0xf] }
 0x476   :  { %3202 = vmatmul.bf16.vlgmr.msrb.gmra.mxu2 %v2798_v28  ;;  %3228 = vmatmul.bf16.vlgmr.msra.gmra.mxu3 %v2798_v28  ;;  %v6968_v19 = vor.u32 %v8089_v16, %v6965_v57  ;;  %v7385_v16 = vld [vmem:[#allocation22 + $0x4ec] sm:$0xf0] }
 0x477   :  { %4730 = vmatpush.bf16.msrb.mxu2 %v6964_v24  ;;  %4756 = vmatpush.bf16.msra.mxu3 %v7412_v26  ;;  %v8232_v24 = vld [vmem:[#allocation22 + $0x600] sm:$0xf0]  ;;  %v6937_v26 = vld [vmem:[#allocation22 + $0x16c] sm:$0xf0] }
 0x478   :  { %v7524_v27 = vor.u32 %v8232_v24, %v7523_v22  ;;  %v8047_v22 = vld [vmem:[#allocation22 + $0x3c] sm:$0xf] }
 0x479   :  { %4745 = vmatpush.bf16.msrb.mxu0 %v7132_v33  ;;  %4771 = vmatpush.bf16.msra.mxu1 %v7580_v48  ;;  %v7164_v33 = vor.u32 %v8138_v29, %v7161_v30  ;;  %v7495_v48 = vld [vmem:[#allocation22 + $0x5b0] sm:$0xf]  ;;  %v8103_v24 = vld [vmem:[#allocation22 + $0x1fc] sm:$0xf] }
 0x47a   :  { %v7496_v38 = vor.u32 %v8225_v36, %v7495_v48  ;;  %v8040_v48 = vld [vmem:[#allocation22 + $0x4] sm:$0xf]  ;;  %v6769_v36 = vld [vmem:[#allocation22 + $0x1c] sm:$0xf0] }
 0x47b   :  { %4731 = vmatpush.bf16.msrb.mxu2 %v6936_v40  ;;  %4757 = vmatpush.bf16.msra.mxu3 %v7384_v41  ;;  %v8075_v40 = vld [vmem:[#allocation22 + $0x11c] sm:$0xf] }
 0x47c   :  { %v8131_v41 = vld [vmem:[#allocation22 + $0x2dc] sm:$0xf]  ;;  %v6912_v44 = vor.u32 %v8075_v40, %v6909_v37  ;;  %v6993_v40 = vld [vmem:[#allocation22 + $0x1dc] sm:$0xf0]  ;;  %v8180_v37 = vld [vmem:[#allocation22 + $0x464] sm:$0xf] }
 0x47d   :  { %4746 = vmatpush.bf16.msrb.mxu0 %v7104_v47  ;;  %4772 = vmatpush.bf16.msra.mxu1 %v7552_v31  ;;  %v7136_v46 = vor.u32 %v8131_v41, %v7133_v45  ;;  %v7243_v47 = vld [vmem:[#allocation22 + $0x3b8] sm:$0xf]  ;;  %v8162_v31 = vld [vmem:[#allocation22 + $0x3d0] sm:$0xf0]  ;;  %v7329_v41 = vld [vmem:[#allocation22 + $0x47c] sm:$0xf0] }
 0x47e   :  { %v7244_v50 = vor.u32 %v8162_v31, %v7243_v47  ;;  %v7332_v45 = vor.u32 %v8180_v37, %v7329_v41  ;;  %v7553_v47 = vld [vmem:[#allocation22 + $0x63c] sm:$0xf0]  ;;  %v7167_v37 = vld [vmem:[#allocation22 + $0x318] sm:$0xf]  ;;  %v8142_v41 = vld [vmem:[#allocation22 + $0x330] sm:$0xf0] }
 0x47f   :  { %4732 = vmatpush.bf16.msrb.mxu2 %v6908_v53  ;;  %4758 = vmatpush.bf16.msra.mxu3 %v7356_v52  ;;  %v8218_v53 = vld [vmem:[#allocation22 + $0x590] sm:$0xf0]  ;;  %v6881_v52 = vld [vmem:[#allocation22 + $0xfc] sm:$0xf0] }
 0x480   :  { %3267 = vmatmul.bf16.vlgmr.msra.gmra.mxu0 %v8972_v8  ;;  %3293 = vmatmul.bf16.vlgmr.msrb.gmra.mxu1 %v8972_v8  ;;  %v8145_v8 = vld [vmem:[#allocation22 + $0x34c] sm:$0xf]  ;;  %v7468_v54 = vor.u32 %v8218_v53, %v7467_v49  ;;  %v6884_v60 = vor.u32 %v8068_v51, %v6881_v52  ;;  %v7525_v52 = vld [vmem:[#allocation22 + $0x604] sm:$0xf0] }
 0x481   :  { %4747 = vmatpush.bf16.msrb.mxu0 %v7076_v56  ;;  %v7192_v13 = vor.u32 %v8145_v8, %v7189_v9  ;;  %4773 = vmatpush.bf16.msra.mxu1 %v7524_v27  ;;  %v7105_v56 = vld [vmem:[#allocation22 + $0x2bc] sm:$0xf0]  ;;  %v7416_v8 = vor.u32 %v8201_v42, %v7413_v5  ;;  %v7637_v9 = vld [vmem:[#allocation22 + $0x6e4] sm:$0xf0]  ;;  %v8187_v27 = vld [vmem:[#allocation22 + $0x49c] sm:$0xf] }
 0x482   :  { %v7108_v58 = vor.u32 %v8124_v55, %v7105_v56  ;;  %v8173_v49 = vld [vmem:[#allocation22 + $0x42c] sm:$0xf]  ;;  %v8166_v56 = vld [vmem:[#allocation22 + $0x3f4] sm:$0xf]  ;;  %v8152_v5 = vld [vmem:[#allocation22 + $0x384] sm:$0xf] }
 0x483   :  { %4733 = vmatpush.bf16.msrb.mxu2 %v6880_v6  ;;  %4759 = vmatpush.bf16.msra.mxu3 %v7328_v61  ;;  %v8155_v6 = vld [vmem:[#allocation22 + $0x398] sm:$0xf0]  ;;  %v7439_v61 = vld [vmem:[#allocation22 + $0x540] sm:$0xf]  ;;  %v8229_v51 = vld [vmem:[#allocation22 + $0x5ec] sm:$0xf] }
 0x484   :  { %v7216_v62 = vor.u32 %v8155_v6, %v7215_v59  ;;  %v7440_v1 = vor.u32 %v8211_v34, %v7439_v61  ;;  %v8222_v59 = vld [vmem:[#allocation22 + $0x5b4] sm:$0xf]  ;;  %v7497_v61 = vld [vmem:[#allocation22 + $0x5cc] sm:$0xf0]  ;;  %v8159_v34 = vld [vmem:[#allocation22 + $0x3bc] sm:$0xf] }
 0x485   :  { %4748 = vmatpush.bf16.msrb.mxu0 %v7048_v63  ;;  %4774 = vmatpush.bf16.msra.mxu1 %v7496_v38  ;;  %v8061_v63 = vld [vmem:[#allocation22 + $0xac] sm:$0xf]  ;;  %v6772_v38 = vor.u32 %v8040_v48, %v6769_v36  ;;  %v6943_v48 = vld [vmem:[#allocation22 + $0x158] sm:$0xf]  ;;  %v8086_v36 = vld [vmem:[#allocation22 + $0x170] sm:$0xf0] }
 0x486   :  { %3254 = vmatmul.bf16.vlgmr.msra.gmra.mxu2 %v2798_v28  ;;  %3280 = vmatmul.bf16.vlgmr.msrb.gmra.mxu3 %v2798_v28  ;;  %v6940_v28 = vor.u32 %v8082_v25, %v6937_v26  ;;  %v7021_v26 = vld [vmem:[#allocation22 + $0x214] sm:$0xf0] }
 0x487   :  { %4734 = vmatpush.bf16.msrb.mxu2 %v6852_v2  ;;  %4760 = vmatpush.bf16.msra.mxu3 %v7300_v23  ;;  %v6856_v2 = vor.u32 %v8061_v63, %v6853_v0  ;;  %v6797_v23 = vld [vmem:[#allocation22 + $0x54] sm:$0xf0]  ;;  %v7024_v29 = vor.u32 %v8103_v24, %v7021_v26  ;;  %v8215_v0 = vld [vmem:[#allocation22 + $0x57c] sm:$0xf]  ;;  %v8093_v24 = vld [vmem:[#allocation22 + $0x1a8] sm:$0xf0] }
 0x488   :  { %v6800_v25 = vor.u32 %v8047_v22, %v6797_v23  ;;  %v7245_v63 = vld [vmem:[#allocation22 + $0x3d4] sm:$0xf0]  ;;  %v6971_v23 = vld [vmem:[#allocation22 + $0x190] sm:$0xf]  ;;  %v8149_v26 = vld [vmem:[#allocation22 + $0x368] sm:$0xf0] }
 0x489   :  { %4749 = vmatpush.bf16.msrb.mxu0 %v7020_v4  ;;  %4775 = vmatpush.bf16.msra.mxu1 %v7468_v54  ;;  %v7080_v4 = vor.u32 %v8117_v43, %v7077_v3  ;;  %v7528_v54 = vor.u32 %v8229_v51, %v7525_v52  ;;  %v2864_v43 = vld [vmem:[%s9055_s14] sm:$0xf]  ;;  %v7139_v51 = vld [vmem:[#allocation22 + $0x2e0] sm:$0xf] }
 0x48a   :  { %v8135_v52 = vld [vmem:[#allocation22 + $0x2f8] sm:$0xf0] }
 0x48b   :  { %4735 = vmatpush.bf16.msrb.mxu2 %v6824_v7  ;;  %4761 = vmatpush.bf16.msra.mxu3 %v7272_v18  ;;  %v8257_v7 = vld [vmem:[#allocation22 + $0x6cc] sm:$0xf]  ;;  %v8096_v18 = vld [vmem:[#allocation22 + $0x1c4] sm:$0xf] }
 0x48c   :  { %v7640_v10 = vor.u32 %v8257_v7, %v7637_v9  ;;  %v7217_v7 = vld [vmem:[#allocation22 + $0x39c] sm:$0xf0]  ;;  %v2866_v9 = vperm.slane %v2864_v43, 0 }
 0x48d   :  { %4750 = vmatpush.bf16.msrb.mxu0 %v6992_v12  ;;  %4776 = vmatpush.bf16.msra.mxu1 %v7440_v1  ;;  %v6825_v12 = vld [vmem:[#allocation22 + $0x8c] sm:$0xf0]  ;;  %v7248_v1 = vor.u32 %v8159_v34, %v7245_v63 }
 0x48f   :  { %4736 = vmatpush.bf16.msrb.mxu2 %v6796_v39  ;;  %4762 = vmatpush.bf16.msra.mxu3 %v7244_v50  ;;  %v6828_v39 = vor.u32 %v8054_v11, %v6825_v12  ;;  %v7301_v50 = vld [vmem:[#allocation22 + $0x444] sm:$0xf0]  ;;  %v7220_v11 = vor.u32 %v8152_v5, %v7217_v7  ;;  %v7441_v12 = vld [vmem:[#allocation22 + $0x55c] sm:$0xf0]  ;;  %v7643_v5 = vld [vmem:[#allocation22 + $0x6d0] sm:$0xf] }
 0x490   :  { %v7304_v53 = vor.u32 %v8173_v49, %v7301_v50  ;;  %v8079_v49 = vld [vmem:[#allocation22 + $0x138] sm:$0xf0]  ;;  %v8261_v7 = vld [vmem:[#allocation22 + $0x6e8] sm:$0xf0] }
 0x491   :  { %4795 = vmatpush.bf16.msra.mxu0 %v7192_v13  ;;  %v8110_v13 = vld [vmem:[#allocation22 + $0x234] sm:$0xf]  ;;  %4821 = vmatpush.bf16.msrb.mxu1 %v7640_v10  ;;  %v2867_v10 = vperm.slane %v2864_v43, 1 }
 0x492   :  { %v7052_v57 = vor.u32 %v8110_v13, %v7049_v14 }
 0x493   :  { %4737 = vmatpush.bf16.msrb.mxu2 %v6768_v17  ;;  %4763 = vmatpush.bf16.msra.mxu3 %v7216_v62  ;;  %v7388_v17 = vor.u32 %v8194_v15, %v7385_v16  ;;  %v7500_v62 = vor.u32 %v8222_v59, %v7497_v61  ;;  %v8072_v59 = vld [vmem:[#allocation22 + $0x100] sm:$0xf0] }
 0x494   :  { %v8128_v61 = vld [vmem:[#allocation22 + $0x2c0] sm:$0xf0] }
 0x495   :  { %4796 = vmatpush.bf16.msra.mxu0 %v7164_v33  ;;  %v7581_v33 = vld [vmem:[#allocation22 + $0x674] sm:$0xf0] }
 0x496   :  { %v7584_v35 = vor.u32 %v8243_v32, %v7581_v33 }
 0x497   :  { %4782 = vmatpush.bf16.msra.mxu2 %v6968_v19  ;;  %4808 = vmatpush.bf16.msrb.mxu3 %v7416_v8  ;;  %v8250_v19 = vld [vmem:[#allocation22 + $0x694] sm:$0xf]  ;;  %v8208_v8 = vld [vmem:[#allocation22 + $0x544] sm:$0xf] }
 0x498   :  { %v7612_v21 = vor.u32 %v8250_v19, %v7609_v20  ;;  %v7444_v13 = vor.u32 %v8208_v8, %v7441_v12 }
 0x499   :  { %4797 = vmatpush.bf16.msra.mxu0 %v7136_v46  ;;  %v8236_v46 = vld [vmem:[#allocation22 + $0x624] sm:$0xf] }
 0x49a   :  { %4822 = vmatpush.bf16.msrb.mxu1 %v7612_v21  ;;  %v7556_v31 = vor.u32 %v8236_v46, %v7553_v47  ;;  %v7168_v47 = vor.u32 %v8142_v41, %v7167_v37  ;;  %v6775_v37 = vld [vmem:[#allocation22 + $0x8] sm:$0xf]  ;;  %v8044_v41 = vld [vmem:[#allocation22 + $0x20] sm:$0xf0] }
 0x49b   :  { %4783 = vmatpush.bf16.msra.mxu2 %v6940_v28  ;;  %4809 = vmatpush.bf16.msrb.mxu3 %v7388_v17  ;;  %v7357_v28 = vld [vmem:[#allocation22 + $0x4b4] sm:$0xf0] }
 0x49c   :  { %v7360_v30 = vor.u32 %v8187_v27, %v7357_v28  ;;  %v6972_v28 = vor.u32 %v8093_v24, %v6971_v23 }
 0x49d   :  { %4798 = vmatpush.bf16.msra.mxu0 %v7108_v58  ;;  %v7273_v58 = vld [vmem:[#allocation22 + $0x40c] sm:$0xf0] }
 0x49e   :  { %4823 = vmatpush.bf16.msrb.mxu1 %v7584_v35  ;;  %v7276_v6 = vor.u32 %v8166_v56, %v7273_v58  ;;  %v7140_v56 = vor.u32 %v8135_v52, %v7139_v51  ;;  %v6887_v58 = vld [vmem:[#allocation22 + $0xe8] sm:$0xf]  ;;  %v8090_v51 = vld [vmem:[#allocation22 + $0x194] sm:$0xf]  ;;  %v6973_v52 = vld [vmem:[#allocation22 + $0x1ac] sm:$0xf0] }
 0x49f   :  { %4784 = vmatpush.bf16.msra.mxu2 %v6912_v44  ;;  %4810 = vmatpush.bf16.msrb.mxu3 %v7360_v30  ;;  %v6996_v44 = vor.u32 %v8096_v18, %v6993_v40  ;;  %v2869_v40 = vperm.slane %v2864_v43, 3 }
 0x4a1   :  { %4799 = vmatpush.bf16.msra.mxu0 %v7080_v4 }
 0x4a2   :  { %4824 = vmatpush.bf16.msrb.mxu1 %v7556_v31  ;;  %v6915_v31 = vld [vmem:[#allocation22 + $0x120] sm:$0xf] }
 0x4a3   :  { %4785 = vmatpush.bf16.msra.mxu2 %v6884_v60  ;;  %4811 = vmatpush.bf16.msrb.mxu3 %v7332_v45 }
 0x4a5   :  { %4800 = vmatpush.bf16.msra.mxu0 %v7052_v57 }
 0x4a6   :  { %4825 = vmatpush.bf16.msrb.mxu1 %v7528_v54 }
 0x4a7   :  { %4786 = vmatpush.bf16.msra.mxu2 %v6856_v2  ;;  %4812 = vmatpush.bf16.msrb.mxu3 %v7304_v53  ;;  %v7469_v2 = vld [vmem:[#allocation22 + $0x594] sm:$0xf0] }
 0x4a8   :  { %v7472_v3 = vor.u32 %v8215_v0, %v7469_v2  ;;  %v8065_v2 = vld [vmem:[#allocation22 + $0xc8] sm:$0xf0] }
 0x4a9   :  { %4801 = vmatpush.bf16.msra.mxu0 %v7024_v29 }
 0x4aa   :  { %4826 = vmatpush.bf16.msrb.mxu1 %v7500_v62  ;;  %v6888_v62 = vor.u32 %v8072_v59, %v6887_v58 }
 0x4ab   :  { %4787 = vmatpush.bf16.msra.mxu2 %v6828_v39  ;;  %4813 = vmatpush.bf16.msrb.mxu3 %v7276_v6  ;;  %v7111_v6 = vld [vmem:[#allocation22 + $0x2a8] sm:$0xf] }
 0x4ac   :  { %v7112_v0 = vor.u32 %v8128_v61, %v7111_v6  ;;  %v7307_v6 = vld [vmem:[#allocation22 + $0x430] sm:$0xf]  ;;  %v8177_v61 = vld [vmem:[#allocation22 + $0x448] sm:$0xf0] }
 0x4ad   :  { %4802 = vmatpush.bf16.msra.mxu0 %v6996_v44  ;;  %v6944_v44 = vor.u32 %v8086_v36, %v6943_v48  ;;  %v7587_v48 = vld [vmem:[#allocation22 + $0x660] sm:$0xf]  ;;  %v8247_v36 = vld [vmem:[#allocation22 + $0x678] sm:$0xf0] }
 0x4ae   :  { %4827 = vmatpush.bf16.msrb.mxu1 %v7472_v3  ;;  %v8121_v3 = vld [vmem:[#allocation22 + $0x288] sm:$0xf0] }
 0x4af   :  { %4788 = vmatpush.bf16.msra.mxu2 %v6800_v25  ;;  %4814 = vmatpush.bf16.msrb.mxu3 %v7248_v1  ;;  %v7195_v25 = vld [vmem:[#allocation22 + $0x350] sm:$0xf] }
 0x4b0   :  { %v7196_v35 = vor.u32 %v8149_v26, %v7195_v25  ;;  %v6859_v1 = vld [vmem:[#allocation22 + $0xb0] sm:$0xf]  ;;  %v6803_v25 = vld [vmem:[#allocation22 + $0x40] sm:$0xf]  ;;  %v8051_v26 = vld [vmem:[#allocation22 + $0x58] sm:$0xf0] }
 0x4b2   :  { %4828 = vmatpush.bf16.msrb.mxu1 %v7444_v13  ;;  %v6831_v13 = vld [vmem:[#allocation22 + $0x78] sm:$0xf] }
 0x4b3   :  { %4789 = vmatpush.bf16.msra.mxu2 %v6772_v38  ;;  %4815 = vmatpush.bf16.msrb.mxu3 %v7220_v11  ;;  %v2868_v38 = vperm.slane %v2864_v43, 2  ;;  %v7083_v43 = vld [vmem:[#allocation22 + $0x270] sm:$0xf]  ;;  %v6860_v11 = vor.u32 %v8065_v2, %v6859_v1  ;;  %v8083_v1 = vld [vmem:[#allocation22 + $0x15c] sm:$0xf] }
 0x4b4   :  { %v7084_v12 = vor.u32 %v8121_v3, %v7083_v43  ;;  %v6945_v2 = vld [vmem:[#allocation22 + $0x174] sm:$0xf0]  ;;  %v8139_v43 = vld [vmem:[#allocation22 + $0x31c] sm:$0xf] }
 0x4b5   :  { %v7169_v3 = vld [vmem:[#allocation22 + $0x334] sm:$0xf0] }
 0x4ed   :  { %v3216_v60 = vpop.f32.mrf.mxu0  ;;  %v3242_v55 = vpop.f32.mrf.mxu1 }
 0x4f5   :  { %v3218_v4 = vpop.f32.mrf.mxu0  ;;  %v3244_v42 = vpop.f32.mrf.mxu1 }
 0x4f6   :  { %v7419_v4 = vld [vmem:[#allocation22 + $0x510] sm:$0xf]  ;;  %v8205_v42 = vld [vmem:[#allocation22 + $0x528] sm:$0xf0] }
 0x4f9   :  { %v3203_v39 = vpop.f32.mrf.mxu2  ;;  %v3229_v14 = vpop.f32.mrf.mxu3 }
 0x4fa   :  { %v3204_v15 = vadd.f32 %v3203_v39, %v2866_v9  ;;  %v3230_v16 = vadd.f32 %v3229_v14, %v2867_v10  ;;  %v8058_v39 = vld [vmem:[#allocation22 + $0x90] sm:$0xf0] }
 0x4fb   :  { %v6832_v23 = vor.u32 %v8058_v39, %v6831_v13  ;;  %v8076_v13 = vld [vmem:[#allocation22 + $0x124] sm:$0xf]  ;;  %v6917_v39 = vld [vmem:[#allocation22 + $0x13c] sm:$0xf0] }
 0x4fc   :  { %v3217_v57 = vadd.f32 %v3216_v60, %v3204_v15  ;;  %v3243_v17 = vadd.f32 %v3242_v55, %v3230_v16  ;;  %v6916_v55 = vor.u32 %v8079_v49, %v6915_v31  ;;  %v7420_v15 = vor.u32 %v8205_v42, %v7419_v4  ;;  %v7335_v31 = vld [vmem:[#allocation22 + $0x468] sm:$0xf]  ;;  %v8184_v49 = vld [vmem:[#allocation22 + $0x480] sm:$0xf0] }
 0x4fd   :  { %v3268_v19 = vpop.f32.mrf.mxu0  ;;  %v3294_v20 = vpop.f32.mrf.mxu1  ;;  %v7644_v16 = vor.u32 %v8261_v7, %v7643_v5  ;;  %v7336_v58 = vor.u32 %v8184_v49, %v7335_v31  ;;  %v7308_v4 = vor.u32 %v8177_v61, %v7307_v6  ;;  %v7279_v5 = vld [vmem:[#allocation22 + $0x3f8] sm:$0xf]  ;;  %v8170_v7 = vld [vmem:[#allocation22 + $0x410] sm:$0xf0]  ;;  %v7645_v49 = vld [vmem:[#allocation22 + $0x6ec] sm:$0xf0] }
 0x4fe   :  { %8312 = vtanh.f32 %v3217_v57  ;;  %v7055_v57 = vld [vmem:[#allocation22 + $0x238] sm:$0xf]  ;;  %v8258_v31 = vld [vmem:[#allocation22 + $0x6d4] sm:$0xf]  ;;  %v8195_v6 = vld [vmem:[#allocation22 + $0x4dc] sm:$0xf] }
 0x4ff   :  { %8314 = vtanh.f32 %v3243_v17  ;;  %v8114_v17 = vld [vmem:[#allocation22 + $0x250] sm:$0xf0]  ;;  %v7393_v61 = vld [vmem:[#allocation22 + $0x4f4] sm:$0xf0] }
 0x500   :  { %v7056_v24 = vor.u32 %v8114_v17, %v7055_v57  ;;  %v7280_v57 = vor.u32 %v8170_v7, %v7279_v5  ;;  %v8188_v5 = vld [vmem:[#allocation22 + $0x4a4] sm:$0xf]  ;;  %v7365_v7 = vld [vmem:[#allocation22 + $0x4bc] sm:$0xf0] }
 0x501   :  { %v3205_v21 = vpop.f32.mrf.mxu2  ;;  %v3231_v22 = vpop.f32.mrf.mxu3 }
 0x502   :  { %v7615_v21 = vld [vmem:[#allocation22 + $0x698] sm:$0xf]  ;;  %v8254_v22 = vld [vmem:[#allocation22 + $0x6b0] sm:$0xf0] }
 0x504   :  { %v8313_v27 = vpop.eup %8312 }
 0x505   :  { %v8315_v29 = vpop.eup %8314  ;;  %v8981_v30 = vpack.c.bf16 %v8313_v27, %v8313_v27  ;;  %v3270_v32 = vpop.f32.mrf.mxu0 }
 0x506   :  { %v3296_v33 = vpop.f32.mrf.mxu1  ;;  %v8983_v18 = vpack.c.bf16 %v8315_v29, %v8315_v29  ;;  %v7027_v29 = vld [vmem:[#allocation22 + $0x200] sm:$0xf]  ;;  %v8107_v32 = vld [vmem:[#allocation22 + $0x218] sm:$0xf0] }
 0x507   :  { %4738 = vmatmul.bf16.vlgmr.msrb.gmra.mxu2 %v8981_v30  ;;  %v7363_v33 = vld [vmem:[#allocation22 + $0x4a0] sm:$0xf] }
 0x508   :  { %4751 = vmatmul.bf16.vlgmr.msrb.gmra.mxu0 %v8983_v18  ;;  %4834 = vmatpush.bf16.msrb.mxu2 %v6972_v28  ;;  %v7616_v28 = vor.u32 %v8254_v22, %v7615_v21  ;;  %v6920_v21 = vor.u32 %v8076_v13, %v6917_v39  ;;  %v8041_v13 = vld [vmem:[#allocation22 + $0xc] sm:$0xf]  ;;  %v6777_v39 = vld [vmem:[#allocation22 + $0x24] sm:$0xf0] }
 0x509   :  { %4847 = vmatpush.bf16.msrb.mxu0 %v7196_v35  ;;  %v3255_v45 = vpop.f32.mrf.mxu2  ;;  %v3281_v46 = vpop.f32.mrf.mxu3  ;;  %v8191_v35 = vld [vmem:[#allocation22 + $0x4b8] sm:$0xf0] }
 0x50a   :  { %v3256_v50 = vadd.f32 %v3255_v45, %v2868_v38  ;;  %v3282_v53 = vadd.f32 %v3281_v46, %v2869_v40  ;;  %v6804_v38 = vor.u32 %v8051_v26, %v6803_v25  ;;  %v7028_v40 = vor.u32 %v8107_v32, %v7027_v29  ;;  %v8069_v25 = vld [vmem:[#allocation22 + $0xec] sm:$0xf]  ;;  %v6889_v26 = vld [vmem:[#allocation22 + $0x104] sm:$0xf0] }
 0x50b   :  { %v7364_v45 = vor.u32 %v8191_v35, %v7363_v33  ;;  %v7588_v46 = vor.u32 %v8247_v36, %v7587_v48  ;;  %v7223_v33 = vld [vmem:[#allocation22 + $0x388] sm:$0xf]  ;;  %v8156_v35 = vld [vmem:[#allocation22 + $0x3a0] sm:$0xf0]  ;;  %v6892_v36 = vor.u32 %v8069_v25, %v6889_v26  ;;  %v7203_v25 = vld [vmem:[#allocation22 + $0x358] sm:$0xf] }
 0x50c   :  { %v3269_v54 = vadd.f32 %v3268_v19, %v3256_v50  ;;  %v3295_v60 = vadd.f32 %v3294_v20, %v3282_v53  ;;  %4835 = vmatpush.bf16.msrb.mxu2 %v6944_v44  ;;  %v7391_v19 = vld [vmem:[#allocation22 + $0x4d8] sm:$0xf]  ;;  %v8198_v20 = vld [vmem:[#allocation22 + $0x4f0] sm:$0xf0]  ;;  %v6999_v44 = vld [vmem:[#allocation22 + $0x1c8] sm:$0xf] }
 0x50d   :  { %4848 = vmatpush.bf16.msrb.mxu0 %v7168_v47  ;;  %v7392_v27 = vor.u32 %v8198_v20, %v7391_v19  ;;  %v8100_v47 = vld [vmem:[#allocation22 + $0x1e0] sm:$0xf0]  ;;  %v7559_v50 = vld [vmem:[#allocation22 + $0x628] sm:$0xf]  ;;  %v7251_v19 = vld [vmem:[#allocation22 + $0x3c0] sm:$0xf] }
 0x50e   :  { %8316 = vtanh.f32 %v3269_v54  ;;  %v8240_v53 = vld [vmem:[#allocation22 + $0x640] sm:$0xf0]  ;;  %v8146_v54 = vld [vmem:[#allocation22 + $0x354] sm:$0xf]  ;;  %v8163_v20 = vld [vmem:[#allocation22 + $0x3d8] sm:$0xf0] }
 0x50f   :  { %8318 = vtanh.f32 %v3295_v60  ;;  %v7197_v60 = vld [vmem:[#allocation22 + $0x36c] sm:$0xf0]  ;;  %v7560_v59 = vor.u32 %v8240_v53, %v7559_v50  ;;  %v7252_v29 = vor.u32 %v8163_v20, %v7251_v19  ;;  %v7447_v48 = vld [vmem:[#allocation22 + $0x548] sm:$0xf]  ;;  %v7224_v50 = vor.u32 %v8156_v35, %v7223_v33  ;;  %v8181_v19 = vld [vmem:[#allocation22 + $0x46c] sm:$0xf] }
 0x510   :  { %4836 = vmatpush.bf16.msrb.mxu2 %v6916_v55  ;;  %v6776_v55 = vor.u32 %v8044_v41, %v6775_v37  ;;  %v8062_v37 = vld [vmem:[#allocation22 + $0xb4] sm:$0xf]  ;;  %v6861_v41 = vld [vmem:[#allocation22 + $0xcc] sm:$0xf0]  ;;  %v7337_v20 = vld [vmem:[#allocation22 + $0x484] sm:$0xf0] }
 0x511   :  { %4849 = vmatpush.bf16.msrb.mxu0 %v7140_v56  ;;  %v3257_v34 = vpop.f32.mrf.mxu2  ;;  %v3283_v63 = vpop.f32.mrf.mxu3  ;;  %v7000_v56 = vor.u32 %v8100_v47, %v6999_v44  ;;  %v8118_v44 = vld [vmem:[#allocation22 + $0x274] sm:$0xf]  ;;  %v7421_v47 = vld [vmem:[#allocation22 + $0x52c] sm:$0xf0] }
 0x512   :  { %v7200_v34 = vor.u32 %v8146_v54, %v7197_v60  ;;  %v7531_v63 = vld [vmem:[#allocation22 + $0x5f0] sm:$0xf]  ;;  %v8055_v54 = vld [vmem:[#allocation22 + $0x7c] sm:$0xf]  ;;  %v6833_v60 = vld [vmem:[#allocation22 + $0x94] sm:$0xf0] }
 0x513   :  { %v8150_v26 = vld [vmem:[#allocation22 + $0x370] sm:$0xf0]  ;;  %v7309_v35 = vld [vmem:[#allocation22 + $0x44c] sm:$0xf0] }
 0x514   :  { %v8317_v8 = vpop.eup %8316  ;;  %4837 = vmatpush.bf16.msrb.mxu2 %v6888_v62  ;;  %v6976_v62 = vor.u32 %v8090_v51, %v6973_v52  ;;  %v6864_v51 = vor.u32 %v8062_v37, %v6861_v41  ;;  %v8174_v33 = vld [vmem:[#allocation22 + $0x434] sm:$0xf]  ;;  %v6951_v37 = vld [vmem:[#allocation22 + $0x160] sm:$0xf]  ;;  %v8087_v41 = vld [vmem:[#allocation22 + $0x178] sm:$0xf0] }
 0x515   :  { %v8319_v9 = vpop.eup %8318  ;;  %v8987_v10 = vpack.c.bf16 %v8317_v8, %v8317_v8  ;;  %4850 = vmatpush.bf16.msrb.mxu0 %v7112_v0  ;;  %v8233_v0 = vld [vmem:[#allocation22 + $0x608] sm:$0xf0]  ;;  %v6948_v8 = vor.u32 %v8083_v1, %v6945_v2  ;;  %v8048_v1 = vld [vmem:[#allocation22 + $0x44] sm:$0xf]  ;;  %v6805_v2 = vld [vmem:[#allocation22 + $0x5c] sm:$0xf0] }
 0x516   :  { %v8989_v14 = vpack.c.bf16 %v8319_v9, %v8319_v9  ;;  %v7532_v42 = vor.u32 %v8233_v0, %v7531_v63  ;;  %v7172_v9 = vor.u32 %v8139_v43, %v7169_v3  ;;  %v6836_v63 = vor.u32 %v8055_v54, %v6833_v60  ;;  %v6923_v54 = vld [vmem:[#allocation22 + $0x128] sm:$0xf]  ;;  %v8080_v60 = vld [vmem:[#allocation22 + $0x140] sm:$0xf0] }
 0x517   :  { %4764 = vmatmul.bf16.vlgmr.msra.gmra.mxu3 %v8987_v10  ;;  %4790 = vmatmul.bf16.vlgmr.msra.gmra.mxu2 %v8981_v30  ;;  %v7396_v43 = vor.u32 %v8195_v6, %v7393_v61  ;;  %v8160_v6 = vld [vmem:[#allocation22 + $0x3c4] sm:$0xf]  ;;  %v7253_v61 = vld [vmem:[#allocation22 + $0x3dc] sm:$0xf0] }
 0x518   :  { %4777 = vmatmul.bf16.vlgmr.msra.gmra.mxu1 %v8989_v14  ;;  %4803 = vmatmul.bf16.vlgmr.msra.gmra.mxu0 %v8983_v18 }
 0x519   :  { %4838 = vmatpush.bf16.msrb.mxu2 %v6860_v11  ;;  %4851 = vmatpush.bf16.msrb.mxu0 %v7084_v12  ;;  %v7503_v11 = vld [vmem:[#allocation22 + $0x5b8] sm:$0xf]  ;;  %v8226_v12 = vld [vmem:[#allocation22 + $0x5d0] sm:$0xf0] }
 0x51a   :  { %4860 = vmatpush.bf16.msra.mxu3 %v7420_v15  ;;  %4873 = vmatpush.bf16.msra.mxu1 %v7644_v16  ;;  %v8132_v15 = vld [vmem:[#allocation22 + $0x2e4] sm:$0xf]  ;;  %v7141_v16 = vld [vmem:[#allocation22 + $0x2fc] sm:$0xf0]  ;;  %v7504_v17 = vor.u32 %v8226_v12, %v7503_v11  ;;  %v6808_v11 = vor.u32 %v8048_v1, %v6805_v2  ;;  %v6895_v1 = vld [vmem:[#allocation22 + $0xf0] sm:$0xf] }
 0x51b   :  { %v7144_v22 = vor.u32 %v8132_v15, %v7141_v16  ;;  %v8097_v15 = vld [vmem:[#allocation22 + $0x1cc] sm:$0xf]  ;;  %v7368_v16 = vor.u32 %v8188_v5, %v7365_v7  ;;  %v7225_v7 = vld [vmem:[#allocation22 + $0x3a4] sm:$0xf0] }
 0x51c   :  { %v8073_v2 = vld [vmem:[#allocation22 + $0x108] sm:$0xf0] }
 0x51d   :  { %4839 = vmatpush.bf16.msrb.mxu2 %v6832_v23  ;;  %4852 = vmatpush.bf16.msrb.mxu0 %v7056_v24  ;;  %v7475_v23 = vld [vmem:[#allocation22 + $0x580] sm:$0xf]  ;;  %v8219_v24 = vld [vmem:[#allocation22 + $0x598] sm:$0xf0]  ;;  %v8153_v5 = vld [vmem:[#allocation22 + $0x38c] sm:$0xf] }
 0x51e   :  { %4861 = vmatpush.bf16.msra.mxu3 %v7392_v27  ;;  %4874 = vmatpush.bf16.msra.mxu1 %v7616_v28  ;;  %v8125_v27 = vld [vmem:[#allocation22 + $0x2ac] sm:$0xf]  ;;  %v7113_v28 = vld [vmem:[#allocation22 + $0x2c4] sm:$0xf0]  ;;  %v7476_v32 = vor.u32 %v8219_v24, %v7475_v23  ;;  %v6979_v23 = vld [vmem:[#allocation22 + $0x198] sm:$0xf] }
 0x51f   :  { %v8094_v24 = vld [vmem:[#allocation22 + $0x1b0] sm:$0xf0] }
 0x521   :  { %4840 = vmatpush.bf16.msrb.mxu2 %v6804_v38  ;;  %4853 = vmatpush.bf16.msrb.mxu0 %v7028_v40  ;;  %v7116_v38 = vor.u32 %v8125_v27, %v7113_v28  ;;  %v8212_v40 = vld [vmem:[#allocation22 + $0x560] sm:$0xf0]  ;;  %v6780_v27 = vor.u32 %v8041_v13, %v6777_v39  ;;  %v6867_v13 = vld [vmem:[#allocation22 + $0xb8] sm:$0xf]  ;;  %v8066_v39 = vld [vmem:[#allocation22 + $0xd0] sm:$0xf0] }
 0x522   :  { %4862 = vmatpush.bf16.msra.mxu3 %v7364_v45  ;;  %4875 = vmatpush.bf16.msra.mxu1 %v7588_v46  ;;  %v7085_v45 = vld [vmem:[#allocation22 + $0x28c] sm:$0xf0]  ;;  %v8202_v46 = vld [vmem:[#allocation22 + $0x514] sm:$0xf]  ;;  %v7448_v53 = vor.u32 %v8212_v40, %v7447_v48  ;;  %v6980_v48 = vor.u32 %v8094_v24, %v6979_v23  ;;  %v6868_v23 = vor.u32 %v8066_v39, %v6867_v13  ;;  %v8084_v13 = vld [vmem:[#allocation22 + $0x164] sm:$0xf] }
 0x523   :  { %v7088_v52 = vor.u32 %v8118_v44, %v7085_v45  ;;  %v7533_v40 = vld [vmem:[#allocation22 + $0x60c] sm:$0xf0]  ;;  %v7175_v44 = vld [vmem:[#allocation22 + $0x320] sm:$0xf]  ;;  %v8143_v45 = vld [vmem:[#allocation22 + $0x338] sm:$0xf0] }
 0x524   :  { %v6953_v39 = vld [vmem:[#allocation22 + $0x17c] sm:$0xf0] }
 0x525   :  { %4841 = vmatpush.bf16.msrb.mxu2 %v6776_v55  ;;  %4854 = vmatpush.bf16.msrb.mxu0 %v7000_v56  ;;  %v7424_v55 = vor.u32 %v8202_v46, %v7421_v47  ;;  %v7648_v56 = vor.u32 %v8258_v31, %v7645_v49  ;;  %v7312_v46 = vor.u32 %v8174_v33, %v7309_v35  ;;  %v8167_v31 = vld [vmem:[#allocation22 + $0x3fc] sm:$0xf]  ;;  %v7281_v49 = vld [vmem:[#allocation22 + $0x414] sm:$0xf0]  ;;  %v7399_v33 = vld [vmem:[#allocation22 + $0x4e0] sm:$0xf] }
 0x526   :  { %4863 = vmatpush.bf16.msra.mxu3 %v7336_v58  ;;  %4876 = vmatpush.bf16.msra.mxu1 %v7560_v59  ;;  %v8111_v58 = vld [vmem:[#allocation22 + $0x23c] sm:$0xf]  ;;  %v7057_v59 = vld [vmem:[#allocation22 + $0x254] sm:$0xf0] }
 0x527   :  { %4816 = vmatmul.bf16.vlgmr.msrb.gmra.mxu3 %v8987_v10  ;;  %v7060_v0 = vor.u32 %v8111_v58, %v7057_v59  ;;  %v7284_v58 = vor.u32 %v8167_v31, %v7281_v49  ;;  %v8199_v35 = vld [vmem:[#allocation22 + $0x4f8] sm:$0xf0]  ;;  %v7371_v31 = vld [vmem:[#allocation22 + $0x4a8] sm:$0xf]  ;;  %v8192_v49 = vld [vmem:[#allocation22 + $0x4c0] sm:$0xf0] }
 0x528   :  { %4829 = vmatmul.bf16.vlgmr.msrb.gmra.mxu1 %v8989_v14  ;;  %4842 = vmatmul.bf16.vlgmr.msrb.gmra.mxu2 %v8981_v30 }
 0x529   :  { %4886 = vmatpush.bf16.msra.mxu2 %v6976_v62  ;;  %4899 = vmatpush.bf16.msra.mxu0 %v7200_v34  ;;  %v8251_v62 = vld [vmem:[#allocation22 + $0x69c] sm:$0xf]  ;;  %v7617_v34 = vld [vmem:[#allocation22 + $0x6b4] sm:$0xf0] }
 0x52a   :  { %4855 = vmatmul.bf16.vlgmr.msrb.gmra.mxu0 %v8983_v18  ;;  %4864 = vmatpush.bf16.msra.mxu3 %v7308_v4  ;;  %v7620_v3 = vor.u32 %v8251_v62, %v7617_v34  ;;  %v8104_v4 = vld [vmem:[#allocation22 + $0x204] sm:$0xf]  ;;  %v6924_v62 = vor.u32 %v8080_v60, %v6923_v54  ;;  %v6783_v54 = vld [vmem:[#allocation22 + $0x10] sm:$0xf]  ;;  %v8045_v60 = vld [vmem:[#allocation22 + $0x28] sm:$0xf0] }
 0x52b   :  { %4877 = vmatpush.bf16.msra.mxu1 %v7532_v42  ;;  %v7029_v42 = vld [vmem:[#allocation22 + $0x21c] sm:$0xf0] }
 0x52c   :  { %v7032_v12 = vor.u32 %v8104_v4, %v7029_v42  ;;  %v7256_v4 = vor.u32 %v8160_v6, %v7253_v61  ;;  %v7343_v6 = vld [vmem:[#allocation22 + $0x470] sm:$0xf]  ;;  %v8185_v61 = vld [vmem:[#allocation22 + $0x488] sm:$0xf0] }
 0x52d   :  { %4887 = vmatpush.bf16.msra.mxu2 %v6948_v8  ;;  %4900 = vmatpush.bf16.msra.mxu0 %v7172_v9  ;;  %v8244_v8 = vld [vmem:[#allocation22 + $0x664] sm:$0xf]  ;;  %v7589_v9 = vld [vmem:[#allocation22 + $0x67c] sm:$0xf0] }
 0x52e   :  { %4865 = vmatpush.bf16.msra.mxu3 %v7280_v57  ;;  %v7592_v57 = vor.u32 %v8244_v8, %v7589_v9  ;;  %v8209_v8 = vld [vmem:[#allocation22 + $0x54c] sm:$0xf]  ;;  %v6896_v9 = vor.u32 %v8073_v2, %v6895_v1  ;;  %v8147_v1 = vld [vmem:[#allocation22 + $0x35c] sm:$0xf]  ;;  %v7205_v2 = vld [vmem:[#allocation22 + $0x374] sm:$0xf0] }
 0x52f   :  { %4878 = vmatpush.bf16.msra.mxu1 %v7504_v17  ;;  %v7001_v17 = vld [vmem:[#allocation22 + $0x1e4] sm:$0xf0] }
 0x530   :  { %v7004_v28 = vor.u32 %v8097_v15, %v7001_v17  ;;  %v7091_v15 = vld [vmem:[#allocation22 + $0x278] sm:$0xf]  ;;  %v8206_v17 = vld [vmem:[#allocation22 + $0x530] sm:$0xf0] }
 0x531   :  { %4888 = vmatpush.bf16.msra.mxu2 %v6920_v21  ;;  %4901 = vmatpush.bf16.msra.mxu0 %v7144_v22  ;;  %v8237_v21 = vld [vmem:[#allocation22 + $0x62c] sm:$0xf]  ;;  %v7561_v22 = vld [vmem:[#allocation22 + $0x644] sm:$0xf0] }
 0x532   :  { %4866 = vmatpush.bf16.msra.mxu3 %v7252_v29  ;;  %v7340_v29 = vor.u32 %v8181_v19, %v7337_v20  ;;  %v7651_v19 = vld [vmem:[#allocation22 + $0x6d8] sm:$0xf]  ;;  %v8262_v20 = vld [vmem:[#allocation22 + $0x6f0] sm:$0xf0] }
 0x533   :  { %4879 = vmatpush.bf16.msra.mxu1 %v7476_v32  ;;  %v7564_v32 = vor.u32 %v8237_v21, %v7561_v22  ;;  %v7228_v21 = vor.u32 %v8153_v5, %v7225_v7  ;;  %v7315_v5 = vld [vmem:[#allocation22 + $0x438] sm:$0xf]  ;;  %v8178_v7 = vld [vmem:[#allocation22 + $0x450] sm:$0xf0] }
 0x535   :  { %4889 = vmatpush.bf16.msra.mxu2 %v6892_v36  ;;  %4902 = vmatpush.bf16.msra.mxu0 %v7116_v38  ;;  %v7204_v36 = vor.u32 %v8150_v26, %v7203_v25  ;;  %v8230_v38 = vld [vmem:[#allocation22 + $0x5f4] sm:$0xf]  ;;  %v6839_v25 = vld [vmem:[#allocation22 + $0x80] sm:$0xf]  ;;  %v8059_v26 = vld [vmem:[#allocation22 + $0x98] sm:$0xf0] }
 0x536   :  { %4867 = vmatpush.bf16.msra.mxu3 %v7224_v50  ;;  %v7536_v47 = vor.u32 %v8230_v38, %v7533_v40  ;;  %v6952_v50 = vor.u32 %v8087_v41, %v6951_v37  ;;  %v6840_v38 = vor.u32 %v8059_v26, %v6839_v25  ;;  %v6811_v37 = vld [vmem:[#allocation22 + $0x48] sm:$0xf]  ;;  %v8052_v41 = vld [vmem:[#allocation22 + $0x60] sm:$0xf0]  ;;  %v8077_v25 = vld [vmem:[#allocation22 + $0x12c] sm:$0xf] }
 0x537   :  { %4880 = vmatpush.bf16.msra.mxu1 %v7448_v53  ;;  %v7176_v53 = vor.u32 %v8143_v45, %v7175_v44  ;;  %v7400_v44 = vor.u32 %v8199_v35, %v7399_v33  ;;  %v6925_v26 = vld [vmem:[#allocation22 + $0x144] sm:$0xf0]  ;;  %v8164_v35 = vld [vmem:[#allocation22 + $0x3e0] sm:$0xf0] }
 0x538   :  { %v7259_v33 = vld [vmem:[#allocation22 + $0x3c8] sm:$0xf] }
 0x539   :  { %4890 = vmatpush.bf16.msra.mxu2 %v6864_v51  ;;  %4903 = vmatpush.bf16.msra.mxu0 %v7088_v52  ;;  %v8223_v51 = vld [vmem:[#allocation22 + $0x5bc] sm:$0xf]  ;;  %v7505_v52 = vld [vmem:[#allocation22 + $0x5d4] sm:$0xf0] }
 0x53a   :  { %4912 = vmatpush.bf16.msrb.mxu3 %v7424_v55  ;;  %4881 = vmatmul.bf16.vlgmr.msra.gmra.mxu1 %v8989_v14  ;;  %v7147_v55 = vld [vmem:[#allocation22 + $0x2e8] sm:$0xf]  ;;  %v7508_v59 = vor.u32 %v8223_v51, %v7505_v52  ;;  %v6812_v51 = vor.u32 %v8052_v41, %v6811_v37  ;;  %v8070_v37 = vld [vmem:[#allocation22 + $0xf4] sm:$0xf]  ;;  %v6897_v41 = vld [vmem:[#allocation22 + $0x10c] sm:$0xf0] }
 0x53b   :  { %4925 = vmatpush.bf16.msrb.mxu1 %v7648_v56  ;;  %4868 = vmatmul.bf16.vlgmr.msra.gmra.mxu3 %v8987_v10  ;;  %v8136_v56 = vld [vmem:[#allocation22 + $0x300] sm:$0xf0] }
 0x53c   :  { %v7148_v34 = vor.u32 %v8136_v56, %v7147_v55  ;;  %v7007_v55 = vld [vmem:[#allocation22 + $0x1d0] sm:$0xf]  ;;  %v7372_v56 = vor.u32 %v8192_v49, %v7371_v31  ;;  %v8157_v49 = vld [vmem:[#allocation22 + $0x3a8] sm:$0xf0] }
 0x53d   :  { %4891 = vmatpush.bf16.msra.mxu2 %v6836_v63  ;;  %4904 = vmatpush.bf16.msra.mxu0 %v7060_v0  ;;  %v8216_v63 = vld [vmem:[#allocation22 + $0x584] sm:$0xf]  ;;  %v7477_v0 = vld [vmem:[#allocation22 + $0x59c] sm:$0xf0]  ;;  %v7231_v31 = vld [vmem:[#allocation22 + $0x390] sm:$0xf] }
 0x53e   :  { %4913 = vmatpush.bf16.msrb.mxu3 %v7396_v43  ;;  %v7119_v43 = vld [vmem:[#allocation22 + $0x2b0] sm:$0xf]  ;;  %v7480_v42 = vor.u32 %v8216_v63, %v7477_v0  ;;  %v8091_v63 = vld [vmem:[#allocation22 + $0x19c] sm:$0xf]  ;;  %v6981_v0 = vld [vmem:[#allocation22 + $0x1b4] sm:$0xf0] }
 0x53f   :  { %4926 = vmatpush.bf16.msrb.mxu1 %v7620_v3  ;;  %v8129_v3 = vld [vmem:[#allocation22 + $0x2c8] sm:$0xf0] }
 0x541   :  { %4892 = vmatpush.bf16.msra.mxu2 %v6808_v11  ;;  %4905 = vmatpush.bf16.msra.mxu0 %v7032_v12  ;;  %v7120_v11 = vor.u32 %v8129_v3, %v7119_v43  ;;  %v7449_v12 = vld [vmem:[#allocation22 + $0x564] sm:$0xf0]  ;;  %v6784_v43 = vor.u32 %v8045_v60, %v6783_v54  ;;  %v8063_v54 = vld [vmem:[#allocation22 + $0xbc] sm:$0xf]  ;;  %v6869_v60 = vld [vmem:[#allocation22 + $0xd4] sm:$0xf0] }
 0x542   :  { %4914 = vmatpush.bf16.msrb.mxu3 %v7368_v16  ;;  %v8122_v16 = vld [vmem:[#allocation22 + $0x290] sm:$0xf0]  ;;  %v7452_v22 = vor.u32 %v8209_v8, %v7449_v12  ;;  %v6984_v8 = vor.u32 %v8091_v63, %v6981_v0  ;;  %v6872_v63 = vor.u32 %v8063_v54, %v6869_v60  ;;  %v6959_v54 = vld [vmem:[#allocation22 + $0x168] sm:$0xf]  ;;  %v8088_v60 = vld [vmem:[#allocation22 + $0x180] sm:$0xf0] }
 0x543   :  { %4927 = vmatpush.bf16.msrb.mxu1 %v7592_v57  ;;  %v7427_v57 = vld [vmem:[#allocation22 + $0x518] sm:$0xf]  ;;  %v7092_v24 = vor.u32 %v8122_v16, %v7091_v15  ;;  %v8234_v12 = vld [vmem:[#allocation22 + $0x610] sm:$0xf0]  ;;  %v8140_v15 = vld [vmem:[#allocation22 + $0x324] sm:$0xf] }
 0x544   :  { %v7177_v16 = vld [vmem:[#allocation22 + $0x33c] sm:$0xf0] }
 0x545   :  { %4893 = vmatpush.bf16.msra.mxu2 %v6780_v27  ;;  %4906 = vmatpush.bf16.msra.mxu0 %v7004_v28  ;;  %v7428_v27 = vor.u32 %v8206_v17, %v7427_v57  ;;  %v7652_v28 = vor.u32 %v8262_v20, %v7651_v19  ;;  %v7316_v57 = vor.u32 %v8178_v7, %v7315_v5  ;;  %v7287_v19 = vld [vmem:[#allocation22 + $0x400] sm:$0xf]  ;;  %v8171_v20 = vld [vmem:[#allocation22 + $0x418] sm:$0xf0]  ;;  %v8196_v5 = vld [vmem:[#allocation22 + $0x4e4] sm:$0xf] }
 0x546   :  { %4915 = vmatpush.bf16.msrb.mxu3 %v7340_v29  ;;  %v7063_v29 = vld [vmem:[#allocation22 + $0x240] sm:$0xf] }
 0x547   :  { %4928 = vmatpush.bf16.msrb.mxu1 %v7564_v32  ;;  %v8115_v32 = vld [vmem:[#allocation22 + $0x258] sm:$0xf0]  ;;  %v7401_v7 = vld [vmem:[#allocation22 + $0x4fc] sm:$0xf0] }
 0x548   :  { %4894 = vmatmul.bf16.vlgmr.msra.gmra.mxu2 %v8981_v30  ;;  %4907 = vmatmul.bf16.vlgmr.msra.gmra.mxu0 %v8983_v18  ;;  %v7064_v40 = vor.u32 %v8115_v32, %v7063_v29  ;;  %v7288_v29 = vor.u32 %v8171_v20, %v7287_v19  ;;  %v8189_v19 = vld [vmem:[#allocation22 + $0x4ac] sm:$0xf]  ;;  %v7373_v20 = vld [vmem:[#allocation22 + $0x4c4] sm:$0xf0] }
 0x549   :  { %4938 = vmatpush.bf16.msrb.mxu2 %v6980_v48  ;;  %4951 = vmatpush.bf16.msrb.mxu0 %v7204_v36  ;;  %v7623_v48 = vld [vmem:[#allocation22 + $0x6a0] sm:$0xf]  ;;  %v8255_v36 = vld [vmem:[#allocation22 + $0x6b8] sm:$0xf0] }
 0x54a   :  { %4916 = vmatpush.bf16.msrb.mxu3 %v7312_v46  ;;  %v7624_v45 = vor.u32 %v8255_v36, %v7623_v48  ;;  %v7035_v46 = vld [vmem:[#allocation22 + $0x208] sm:$0xf]  ;;  %v6928_v48 = vor.u32 %v8077_v25, %v6925_v26  ;;  %v8042_v25 = vld [vmem:[#allocation22 + $0x14] sm:$0xf]  ;;  %v6785_v26 = vld [vmem:[#allocation22 + $0x2c] sm:$0xf0] }
 0x54b   :  { %4929 = vmatpush.bf16.msrb.mxu1 %v7536_v47  ;;  %v8108_v47 = vld [vmem:[#allocation22 + $0x220] sm:$0xf0] }
 0x54c   :  { %v7036_v52 = vor.u32 %v8108_v47, %v7035_v46  ;;  %v7260_v46 = vor.u32 %v8164_v35, %v7259_v33  ;;  %v8182_v33 = vld [vmem:[#allocation22 + $0x474] sm:$0xf]  ;;  %v7345_v35 = vld [vmem:[#allocation22 + $0x48c] sm:$0xf0] }
 0x54d   :  { %4939 = vmatpush.bf16.msrb.mxu2 %v6952_v50  ;;  %4952 = vmatpush.bf16.msrb.mxu0 %v7176_v53  ;;  %v7595_v50 = vld [vmem:[#allocation22 + $0x668] sm:$0xf]  ;;  %v8248_v53 = vld [vmem:[#allocation22 + $0x680] sm:$0xf0] }
 0x54e   :  { %4917 = vmatpush.bf16.msrb.mxu3 %v7284_v58  ;;  %v7596_v58 = vor.u32 %v8248_v53, %v7595_v50  ;;  %v7455_v50 = vld [vmem:[#allocation22 + $0x550] sm:$0xf]  ;;  %v6900_v53 = vor.u32 %v8070_v37, %v6897_v41  ;;  %v7211_v37 = vld [vmem:[#allocation22 + $0x360] sm:$0xf]  ;;  %v8151_v41 = vld [vmem:[#allocation22 + $0x378] sm:$0xf0] }
 0x54f   :  { %4930 = vmatpush.bf16.msrb.mxu1 %v7508_v59  ;;  %v8101_v59 = vld [vmem:[#allocation22 + $0x1e8] sm:$0xf0] }
 0x550   :  { %v7008_v3 = vor.u32 %v8101_v59, %v7007_v55  ;;  %v8119_v55 = vld [vmem:[#allocation22 + $0x27c] sm:$0xf]  ;;  %v7429_v59 = vld [vmem:[#allocation22 + $0x534] sm:$0xf0] }
 0x551   :  { %4940 = vmatpush.bf16.msrb.mxu2 %v6924_v62  ;;  %4953 = vmatpush.bf16.msrb.mxu0 %v7148_v34  ;;  %v7567_v62 = vld [vmem:[#allocation22 + $0x630] sm:$0xf]  ;;  %v8241_v34 = vld [vmem:[#allocation22 + $0x648] sm:$0xf0] }
 0x552   :  { %4918 = vmatpush.bf16.msrb.mxu3 %v7256_v4  ;;  %v7344_v4 = vor.u32 %v8185_v61, %v7343_v6  ;;  %v8259_v6 = vld [vmem:[#allocation22 + $0x6dc] sm:$0xf]  ;;  %v7653_v61 = vld [vmem:[#allocation22 + $0x6f4] sm:$0xf0] }
 0x553   :  { %4931 = vmatpush.bf16.msrb.mxu1 %v7480_v42  ;;  %v7568_v42 = vor.u32 %v8241_v34, %v7567_v62  ;;  %v7232_v62 = vor.u32 %v8157_v49, %v7231_v31  ;;  %v8175_v31 = vld [vmem:[#allocation22 + $0x43c] sm:$0xf]  ;;  %v7317_v49 = vld [vmem:[#allocation22 + $0x454] sm:$0xf0] }
 0x555   :  { %4941 = vmatpush.bf16.msrb.mxu2 %v6896_v9  ;;  %4954 = vmatpush.bf16.msrb.mxu0 %v7120_v11  ;;  %v7208_v9 = vor.u32 %v8147_v1, %v7205_v2  ;;  %v7539_v11 = vld [vmem:[#allocation22 + $0x5f8] sm:$0xf]  ;;  %v8056_v1 = vld [vmem:[#allocation22 + $0x84] sm:$0xf]  ;;  %v6841_v2 = vld [vmem:[#allocation22 + $0x9c] sm:$0xf0] }
 0x556   :  { %4919 = vmatpush.bf16.msrb.mxu3 %v7228_v21  ;;  %v7540_v17 = vor.u32 %v8234_v12, %v7539_v11  ;;  %v6956_v21 = vor.u32 %v8084_v13, %v6953_v39  ;;  %v6844_v11 = vor.u32 %v8056_v1, %v6841_v2  ;;  %v8049_v13 = vld [vmem:[#allocation22 + $0x4c] sm:$0xf]  ;;  %v6813_v39 = vld [vmem:[#allocation22 + $0x64] sm:$0xf0]  ;;  %v6931_v1 = vld [vmem:[#allocation22 + $0x130] sm:$0xf] }
 0x557   :  { %4932 = vmatpush.bf16.msrb.mxu1 %v7452_v22  ;;  %v7180_v22 = vor.u32 %v8140_v15, %v7177_v16  ;;  %v7404_v15 = vor.u32 %v8196_v5, %v7401_v7  ;;  %v8081_v2 = vld [vmem:[#allocation22 + $0x148] sm:$0xf0]  ;;  %v7261_v7 = vld [vmem:[#allocation22 + $0x3e4] sm:$0xf0] }
 0x558   :  { %v8161_v5 = vld [vmem:[#allocation22 + $0x3cc] sm:$0xf] }
 0x559   :  { %4942 = vmatpush.bf16.msrb.mxu2 %v6868_v23  ;;  %4955 = vmatpush.bf16.msrb.mxu0 %v7092_v24  ;;  %v7511_v23 = vld [vmem:[#allocation22 + $0x5c0] sm:$0xf]  ;;  %v8227_v24 = vld [vmem:[#allocation22 + $0x5d8] sm:$0xf0] }
 0x55a   :  { %4964 = vmatpush.bf16.msra.mxu3 %v7428_v27  ;;  %4933 = vmatmul.bf16.vlgmr.msrb.gmra.mxu1 %v8989_v14  ;;  %v8133_v27 = vld [vmem:[#allocation22 + $0x2ec] sm:$0xf]  ;;  %v7512_v32 = vor.u32 %v8227_v24, %v7511_v23  ;;  %v6816_v23 = vor.u32 %v8049_v13, %v6813_v39  ;;  %v7485_v13 = vld [vmem:[#allocation22 + $0x5a4] sm:$0xf0]  ;;  %v6903_v39 = vld [vmem:[#allocation22 + $0xf8] sm:$0xf] }
 0x55b   :  { %4977 = vmatpush.bf16.msra.mxu1 %v7652_v28  ;;  %4920 = vmatmul.bf16.vlgmr.msrb.gmra.mxu3 %v8987_v10  ;;  %v7149_v28 = vld [vmem:[#allocation22 + $0x304] sm:$0xf0] }
 0x55c   :  { %v7152_v36 = vor.u32 %v8133_v27, %v7149_v28  ;;  %v8098_v27 = vld [vmem:[#allocation22 + $0x1d4] sm:$0xf]  ;;  %v7376_v28 = vor.u32 %v8189_v19, %v7373_v20 }
 0x55d   :  { %4943 = vmatpush.bf16.msrb.mxu2 %v6840_v38  ;;  %4956 = vmatpush.bf16.msrb.mxu0 %v7064_v40  ;;  %v7483_v38 = vld [vmem:[#allocation22 + $0x588] sm:$0xf]  ;;  %v8220_v40 = vld [vmem:[#allocation22 + $0x5a0] sm:$0xf0]  ;;  %v8154_v20 = vld [vmem:[#allocation22 + $0x394] sm:$0xf] }
 0x55e   :  { %4965 = vmatpush.bf16.msra.mxu3 %v7400_v44  ;;  %v8126_v44 = vld [vmem:[#allocation22 + $0x2b4] sm:$0xf]  ;;  %v7484_v47 = vor.u32 %v8220_v40, %v7483_v38  ;;  %v6987_v38 = vld [vmem:[#allocation22 + $0x1a0] sm:$0xf]  ;;  %v8095_v40 = vld [vmem:[#allocation22 + $0x1b8] sm:$0xf0] }
 0x55f   :  { %4978 = vmatpush.bf16.msra.mxu1 %v7624_v45  ;;  %v7121_v45 = vld [vmem:[#allocation22 + $0x2cc] sm:$0xf0] }
 0x561   :  { %4944 = vmatpush.bf16.msrb.mxu2 %v6812_v51  ;;  %4957 = vmatpush.bf16.msrb.mxu0 %v7036_v52  ;;  %v7124_v51 = vor.u32 %v8126_v44, %v7121_v45  ;;  %v8213_v52 = vld [vmem:[#allocation22 + $0x568] sm:$0xf0]  ;;  %v6788_v44 = vor.u32 %v8042_v25, %v6785_v26  ;;  %v7457_v25 = vld [vmem:[#allocation22 + $0x56c] sm:$0xf0]  ;;  %v6875_v26 = vld [vmem:[#allocation22 + $0xc0] sm:$0xf] }
 0x562   :  { %4966 = vmatpush.bf16.msra.mxu3 %v7372_v56  ;;  %v7093_v56 = vld [vmem:[#allocation22 + $0x294] sm:$0xf0]  ;;  %v7456_v34 = vor.u32 %v8213_v52, %v7455_v50  ;;  %v6988_v50 = vor.u32 %v8095_v40, %v6987_v38 }
 0x563   :  { %4979 = vmatpush.bf16.msra.mxu1 %v7596_v58  ;;  %v8203_v58 = vld [vmem:[#allocation22 + $0x51c] sm:$0xf]  ;;  %v7096_v0 = vor.u32 %v8119_v55, %v7093_v56  ;;  %v7541_v52 = vld [vmem:[#allocation22 + $0x614] sm:$0xf0]  ;;  %v7183_v55 = vld [vmem:[#allocation22 + $0x328] sm:$0xf] }
 0x564   :  { %v8144_v56 = vld [vmem:[#allocation22 + $0x340] sm:$0xf0] }
 0x565   :  { %4945 = vmatpush.bf16.msrb.mxu2 %v6784_v43  ;;  %4958 = vmatpush.bf16.msrb.mxu0 %v7008_v3  ;;  %v7432_v43 = vor.u32 %v8203_v58, %v7429_v59  ;;  %v7656_v3 = vor.u32 %v8259_v6, %v7653_v61  ;;  %v7320_v58 = vor.u32 %v8175_v31, %v7317_v49  ;;  %v8168_v6 = vld [vmem:[#allocation22 + $0x404] sm:$0xf]  ;;  %v7289_v61 = vld [vmem:[#allocation22 + $0x41c] sm:$0xf0] }
 0x566   :  { %4967 = vmatpush.bf16.msra.mxu3 %v7344_v4  ;;  %v8112_v4 = vld [vmem:[#allocation22 + $0x244] sm:$0xf] }
 0x567   :  { %4980 = vmatpush.bf16.msra.mxu1 %v7568_v42  ;;  %v7065_v42 = vld [vmem:[#allocation22 + $0x25c] sm:$0xf0] }
 0x568   :  { %4946 = vmatmul.bf16.vlgmr.msrb.gmra.mxu2 %v8981_v30  ;;  %4959 = vmatmul.bf16.vlgmr.msrb.gmra.mxu0 %v8983_v18  ;;  %v7068_v12 = vor.u32 %v8112_v4, %v7065_v42  ;;  %v7292_v4 = vor.u32 %v8168_v6, %v7289_v61  ;;  %v8053_v6 = vld [vmem:[#allocation22 + $0x68] sm:$0xf0] }
 0x569   :  { %4990 = vmatpush.bf16.msra.mxu2 %v6984_v8  ;;  %5003 = vmatpush.bf16.msra.mxu0 %v7208_v9  ;;  %v8252_v8 = vld [vmem:[#allocation22 + $0x6a4] sm:$0xf]  ;;  %v7625_v9 = vld [vmem:[#allocation22 + $0x6bc] sm:$0xf0] }
 0x56a   :  { %4968 = vmatpush.bf16.msra.mxu3 %v7316_v57  ;;  %v7628_v16 = vor.u32 %v8252_v8, %v7625_v9  ;;  %v8105_v57 = vld [vmem:[#allocation22 + $0x20c] sm:$0xf]  ;;  %v6932_v8 = vor.u32 %v8081_v2, %v6931_v1  ;;  %v7379_v1 = vld [vmem:[#allocation22 + $0x4b0] sm:$0xf] }
 0x56b   :  { %4981 = vmatpush.bf16.msra.mxu1 %v7540_v17  ;;  %v7037_v17 = vld [vmem:[#allocation22 + $0x224] sm:$0xf0]  ;;  %v8193_v2 = vld [vmem:[#allocation22 + $0x4c8] sm:$0xf0] }
 0x56c   :  { %v7040_v24 = vor.u32 %v8105_v57, %v7037_v17  ;;  %v8130_v57 = vld [vmem:[#allocation22 + $0x2d0] sm:$0xf0]  ;;  %v7264_v17 = vor.u32 %v8161_v5, %v7261_v7 }
 0x56d   :  { %4991 = vmatpush.bf16.msra.mxu2 %v6956_v21  ;;  %5004 = vmatpush.bf16.msra.mxu0 %v7180_v22  ;;  %v8245_v21 = vld [vmem:[#allocation22 + $0x66c] sm:$0xf]  ;;  %v7597_v22 = vld [vmem:[#allocation22 + $0x684] sm:$0xf0] }
 0x56e   :  { %4969 = vmatpush.bf16.msra.mxu3 %v7288_v29  ;;  %v7600_v29 = vor.u32 %v8245_v21, %v7597_v22  ;;  %v7233_v21 = vld [vmem:[#allocation22 + $0x3ac] sm:$0xf0]  ;;  %v8210_v22 = vld [vmem:[#allocation22 + $0x554] sm:$0xf] }
 0x56f   :  { %4982 = vmatpush.bf16.msra.mxu1 %v7512_v32  ;;  %v7009_v32 = vld [vmem:[#allocation22 + $0x1ec] sm:$0xf0]  ;;  %v7236_v38 = vor.u32 %v8154_v20, %v7233_v21  ;;  %v7460_v40 = vor.u32 %v8210_v22, %v7457_v25  ;;  %v8242_v20 = vld [vmem:[#allocation22 + $0x650] sm:$0xf0] }
 0x570   :  { %v7012_v45 = vor.u32 %v8098_v27, %v7009_v32  ;;  %v8067_v27 = vld [vmem:[#allocation22 + $0xd8] sm:$0xf0] }
 0x571   :  { %4992 = vmatpush.bf16.msra.mxu2 %v6928_v48  ;;  %5005 = vmatpush.bf16.msra.mxu0 %v7152_v36  ;;  %v8238_v48 = vld [vmem:[#allocation22 + $0x634] sm:$0xf]  ;;  %v7569_v36 = vld [vmem:[#allocation22 + $0x64c] sm:$0xf0]  ;;  %v8123_v32 = vld [vmem:[#allocation22 + $0x298] sm:$0xf0] }
 0x572   :  { %4970 = vmatpush.bf16.msra.mxu3 %v7260_v46  ;;  %v7348_v46 = vor.u32 %v8182_v33, %v7345_v35  ;;  %v7435_v33 = vld [vmem:[#allocation22 + $0x520] sm:$0xf]  ;;  %v8207_v35 = vld [vmem:[#allocation22 + $0x538] sm:$0xf0] }
 0x573   :  { %4983 = vmatpush.bf16.msra.mxu1 %v7484_v47  ;;  %v7572_v47 = vor.u32 %v8238_v48, %v7569_v36  ;;  %v7659_v48 = vld [vmem:[#allocation22 + $0x6e0] sm:$0xf]  ;;  %v8263_v36 = vld [vmem:[#allocation22 + $0x6f8] sm:$0xf0]  ;;  %v7436_v31 = vor.u32 %v8207_v35, %v7435_v33 }
 0x574   :  { %v7660_v49 = vor.u32 %v8263_v36, %v7659_v48  ;;  %v7547_v33 = vld [vmem:[#allocation22 + $0x600] sm:$0xf]  ;;  %v8235_v35 = vld [vmem:[#allocation22 + $0x618] sm:$0xf0] }
 0x575   :  { %4993 = vmatpush.bf16.msra.mxu2 %v6900_v53  ;;  %5006 = vmatpush.bf16.msra.mxu0 %v7124_v51  ;;  %v7212_v53 = vor.u32 %v8151_v41, %v7211_v37  ;;  %v8231_v51 = vld [vmem:[#allocation22 + $0x5fc] sm:$0xf]  ;;  %v6876_v41 = vor.u32 %v8067_v27, %v6875_v26 }
 0x576   :  { %4971 = vmatpush.bf16.msra.mxu3 %v7232_v62  ;;  %v7544_v59 = vor.u32 %v8231_v51, %v7541_v52  ;;  %v6960_v62 = vor.u32 %v8088_v60, %v6959_v54  ;;  %v9016_v37 = vld [vmem:[%s9057_s16] sm:$0xff]  ;;  %v7407_v51 = vld [vmem:[#allocation22 + $0x4e8] sm:$0xf]  ;;  %v8200_v52 = vld [vmem:[#allocation22 + $0x500] sm:$0xf0]  ;;  %s8747_s16 = smov [#allocation23]  }
 0x577   :  { %4984 = vmatpush.bf16.msra.mxu1 %v7456_v34  ;;  %v7184_v34 = vor.u32 %v8144_v56, %v7183_v55  ;;  %v7631_v54 = vld [vmem:[#allocation22 + $0x6a8] sm:$0xf]  ;;  %v8256_v60 = vld [vmem:[#allocation22 + $0x6c0] sm:$0xf0]  ;;  %v3564_v55 = vperm.slane %v9016_v37, 0  ;;  %v7408_v61 = vor.u32 %v8200_v52, %v7407_v51  ;;  %s5239_s0 = sshll.u32 %s8747_s16, 4  ;;  %s5240_s0 = int_to_ptr.vmem [resolvable:$true] %s5239_s0 }
 0x578   :  { %v7267_v52 = vld [vmem:[#allocation22 + $0x3d0] sm:$0xf]  ;;  %5244 = dma.vmem_to_hbm [thread:$0]  %s5240_s0, 128, %s5242_s11, [#allocation4]  }
 0x579   :  { %4994 = vmatpush.bf16.msra.mxu2 %v6872_v63  ;;  %5007 = vmatpush.bf16.msra.mxu0 %v7096_v0  ;;  %v8224_v63 = vld [vmem:[#allocation22 + $0x5c4] sm:$0xf]  ;;  %v7513_v0 = vld [vmem:[#allocation22 + $0x5dc] sm:$0xf0] }
 0x57a   :  { %5016 = vmatpush.bf16.msrb.mxu3 %v7432_v43  ;;  %4985 = vmatmul.bf16.vlgmr.msra.gmra.mxu1 %v8989_v14  ;;  %v7155_v43 = vld [vmem:[#allocation22 + $0x2f0] sm:$0xf]  ;;  %v7516_v42 = vor.u32 %v8224_v63, %v7513_v0  ;;  %v8109_v0 = vld [vmem:[#allocation22 + $0x228] sm:$0xf0] }
 0x57b   :  { %5029 = vmatpush.bf16.msrb.mxu1 %v7656_v3  ;;  %4972 = vmatmul.bf16.vlgmr.msra.gmra.mxu3 %v8987_v10  ;;  %v8137_v3 = vld [vmem:[#allocation22 + $0x308] sm:$0xf0]  ;;  %v7043_v63 = vld [vmem:[#allocation22 + $0x210] sm:$0xf] }
 0x57c   :  { %v7156_v9 = vor.u32 %v8137_v3, %v7155_v43  ;;  %v7603_v43 = vld [vmem:[#allocation22 + $0x670] sm:$0xf]  ;;  %v8249_v3 = vld [vmem:[#allocation22 + $0x688] sm:$0xf0]  ;;  %v7044_v5 = vor.u32 %v8109_v0, %v7043_v63  ;;  %v8214_v63 = vld [vmem:[#allocation22 + $0x570] sm:$0xf0] }
 0x57d   :  { %4995 = vmatpush.bf16.msra.mxu2 %v6844_v11  ;;  %5008 = vmatpush.bf16.msra.mxu0 %v7068_v12  ;;  %v8217_v12 = vld [vmem:[#allocation22 + $0x58c] sm:$0xf] }
 0x57e   :  { %5017 = vmatpush.bf16.msrb.mxu3 %v7404_v15  ;;  %v8074_v15 = vld [vmem:[#allocation22 + $0x110] sm:$0xf0]  ;;  %v7488_v19 = vor.u32 %v8217_v12, %v7485_v13  ;;  %v7380_v13 = vor.u32 %v8193_v2, %v7379_v1 }
 0x57f   :  { %5030 = vmatpush.bf16.msrb.mxu1 %v7628_v16  ;;  %v7127_v16 = vld [vmem:[#allocation22 + $0x2b8] sm:$0xf]  ;;  %v8046_v12 = vld [vmem:[#allocation22 + $0x30] sm:$0xf0] }
 0x581   :  { %4996 = vmatpush.bf16.msra.mxu2 %v6816_v23  ;;  %5009 = vmatpush.bf16.msra.mxu0 %v7040_v24  ;;  %v6904_v23 = vor.u32 %v8074_v15, %v6903_v39  ;;  %v7128_v24 = vor.u32 %v8130_v57, %v7127_v16  ;;  %v7604_v39 = vor.u32 %v8249_v3, %v7603_v43  ;;  %v7015_v15 = vld [vmem:[#allocation22 + $0x1d8] sm:$0xf]  ;;  %v8102_v16 = vld [vmem:[#allocation22 + $0x1f0] sm:$0xf0] }
 0x582   :  { %5018 = vmatpush.bf16.msrb.mxu3 %v7376_v28  ;;  %v7351_v57 = vld [vmem:[#allocation22 + $0x478] sm:$0xf]  ;;  %v7016_v22 = vor.u32 %v8102_v16, %v7015_v15  ;;  %v3566_v16 = vperm.slane %v9016_v37, 2 }
 0x583   :  { %5031 = vmatpush.bf16.msrb.mxu1 %v7600_v29  ;;  %v7099_v29 = vld [vmem:[#allocation22 + $0x280] sm:$0xf] }
 0x585   :  { %4997 = vmatpush.bf16.msra.mxu2 %v6788_v44  ;;  %5010 = vmatpush.bf16.msra.mxu0 %v7012_v45  ;;  %v9011_v11 = vpop.f32.mrf.mxu0  ;;  %v7100_v44 = vor.u32 %v8123_v32, %v7099_v29  ;;  %v8179_v32 = vld [vmem:[#allocation22 + $0x458] sm:$0xf0] }
 0x586   :  { %5019 = vmatpush.bf16.msrb.mxu3 %v7348_v46  ;;  %v6847_v46 = vld [vmem:[#allocation22 + $0x88] sm:$0xf] }
 0x587   :  { %5032 = vmatpush.bf16.msrb.mxu1 %v7572_v47  ;;  %v8060_v47 = vld [vmem:[#allocation22 + $0xa0] sm:$0xf0] }
 0x588   :  { %4998 = vmatmul.bf16.vlgmr.msra.gmra.mxu2 %v8981_v30  ;;  %5011 = vmatmul.bf16.vlgmr.msra.gmra.mxu0 %v8983_v18  ;;  %v6848_v56 = vor.u32 %v8060_v47, %v6847_v46  ;;  %v7519_v46 = vld [vmem:[#allocation22 + $0x5c8] sm:$0xf]  ;;  %v8228_v47 = vld [vmem:[#allocation22 + $0x5e0] sm:$0xf0] }
 0x589   :  { %5042 = vmatpush.bf16.msrb.mxu2 %v6988_v50  ;;  %5055 = vmatpush.bf16.msrb.mxu0 %v7212_v53  ;;  %v7071_v50 = vld [vmem:[#allocation22 + $0x248] sm:$0xf]  ;;  %v8116_v53 = vld [vmem:[#allocation22 + $0x260] sm:$0xf0] }
 0x58a   :  { %5020 = vmatpush.bf16.msrb.mxu3 %v7320_v58  ;;  %v4739_v28 = vpop.f32.mrf.mxu2  ;;  %v7072_v58 = vor.u32 %v8116_v53, %v7071_v50  ;;  %v7520_v50 = vor.u32 %v8228_v47, %v7519_v46 }
 0x58b   :  { %5033 = vmatpush.bf16.msrb.mxu1 %v7544_v59  ;;  %v6819_v59 = vld [vmem:[#allocation22 + $0x50] sm:$0xf] }
 0x58d   :  { %5043 = vmatpush.bf16.msrb.mxu2 %v6960_v62  ;;  %5056 = vmatpush.bf16.msrb.mxu0 %v7184_v34  ;;  %v4754_v45 = vpop.f32.mrf.mxu0  ;;  %v7632_v62 = vor.u32 %v8256_v60, %v7631_v54  ;;  %v8165_v54 = vld [vmem:[#allocation22 + $0x3e8] sm:$0xf0]  ;;  %v7491_v60 = vld [vmem:[#allocation22 + $0x590] sm:$0xf] }
 0x58e   :  { %5021 = vmatpush.bf16.msrb.mxu3 %v7292_v4  ;;  %v4740_v4 = vadd.f32 %v4739_v28, %v3564_v55  ;;  %v7323_v28 = vld [vmem:[#allocation22 + $0x440] sm:$0xf]  ;;  %v8221_v55 = vld [vmem:[#allocation22 + $0x5a8] sm:$0xf0] }
 0x58f   :  { %5034 = vmatpush.bf16.msrb.mxu1 %v7516_v42  ;;  %v6820_v42 = vor.u32 %v8053_v6, %v6819_v59  ;;  %v7492_v59 = vor.u32 %v8221_v55, %v7491_v60  ;;  %v7239_v6 = vld [vmem:[#allocation22 + $0x398] sm:$0xf] }
 0x591   :  { %5044 = vmatpush.bf16.msrb.mxu2 %v6932_v8  ;;  %5057 = vmatpush.bf16.msrb.mxu0 %v7156_v9  ;;  %v6791_v9 = vld [vmem:[#allocation22 + $0x18] sm:$0xf] }
 0x592   :  { %5022 = vmatpush.bf16.msrb.mxu3 %v7264_v17  ;;  %v4741_v34 = vpop.f32.mrf.mxu2  ;;  %v8186_v17 = vld [vmem:[#allocation22 + $0x490] sm:$0xf0]  ;;  %v6792_v21 = vor.u32 %v8046_v12, %v6791_v9 }
 0x593   :  { %5035 = vmatpush.bf16.msrb.mxu1 %v7488_v19  ;;  %v7575_v19 = vld [vmem:[#allocation22 + $0x638] sm:$0xf] }
 0x594   :  { %v7576_v25 = vor.u32 %v8242_v20, %v7575_v19  ;;  %v7463_v34 = vld [vmem:[#allocation22 + $0x558] sm:$0xf] }
 0x595   :  { %5045 = vmatpush.bf16.msrb.mxu2 %v6904_v23  ;;  %5058 = vmatpush.bf16.msrb.mxu0 %v7128_v24  ;;  %v4778_v7 = vpop.f32.mrf.mxu1  ;;  %v9021_v8 = vpop.f32.mrf.mxu0  ;;  %v4753_v23 = vadd.f32 %v9011_v11, %v4740_v4  ;;  %v7352_v24 = vor.u32 %v8186_v17, %v7351_v57  ;;  %v7548_v11 = vor.u32 %v8235_v35, %v7547_v33 }
 0x596   :  { %5023 = vmatpush.bf16.msrb.mxu3 %v7236_v38  ;;  %v7464_v2 = vor.u32 %v8214_v63, %v7463_v34 }
 0x597   :  { %5036 = vmatpush.bf16.msrb.mxu1 %v7460_v40  ;;  %v7324_v40 = vor.u32 %v8179_v32, %v7323_v28 }
 0x599   :  { %5046 = vmatpush.bf16.msrb.mxu2 %v6876_v41  ;;  %5059 = vmatpush.bf16.msrb.mxu0 %v7100_v44  ;;  %v7295_v41 = vld [vmem:[#allocation22 + $0x408] sm:$0xf]  ;;  %v8172_v44 = vld [vmem:[#allocation22 + $0x420] sm:$0xf0] }
 0x59a   :  { %5068 = vmatpush.bf16.msra.mxu3 %v7436_v31  ;;  %5037 = vmatmul.bf16.vlgmr.msrb.gmra.mxu1 %v8989_v14  ;;  %v4765_v26 = vpop.f32.mrf.mxu3  ;;  %v4791_v27 = vpop.f32.mrf.mxu2  ;;  %v3565_v31 = vperm.slane %v9016_v37, 1 }
 0x59b   :  { %5081 = vmatpush.bf16.msra.mxu1 %v7660_v49  ;;  %5024 = vmatmul.bf16.vlgmr.msrb.gmra.mxu3 %v8987_v10  ;;  %v4766_v29 = vadd.f32 %v4765_v26, %v4753_v23  ;;  %v7296_v49 = vor.u32 %v8172_v44, %v7295_v41 }
 0x59d   :  { %5047 = vmatpush.bf16.msrb.mxu2 %v6848_v56  ;;  %5060 = vmatpush.bf16.msrb.mxu0 %v7072_v58  ;;  %v4779_v48 = vadd.f32 %v4778_v7, %v4766_v29  ;;  %v4780_v36 = vpop.f32.mrf.mxu1  ;;  %v4806_v38 = vpop.f32.mrf.mxu0  ;;  %v4792_v58 = vadd.f32 %v4791_v27, %v3565_v31 }
 0x59e   :  { %5069 = vmatpush.bf16.msra.mxu3 %v7408_v61 }
 0x59f   :  { %5082 = vmatpush.bf16.msra.mxu1 %v7632_v62  ;;  %v7661_v45 = vmul.f32 -1.442695, %v4779_v48  ;;  %v8158_v62 = vld [vmem:[#allocation22 + $0x3b0] sm:$0xf0]  ;;  %v4805_v43 = vadd.f32 %v9021_v8, %v4792_v58 }
 0x5a0   :  { %v7240_v1 = vor.u32 %v8158_v62, %v7239_v6 }
 0x5a1   :  { %5048 = vmatpush.bf16.msrb.mxu2 %v6820_v42  ;;  %5061 = vmatpush.bf16.msrb.mxu0 %v7044_v5  ;;  %8320 = vpow2.f32 %v7661_v45 }
 0x5a2   :  { %5070 = vmatpush.bf16.msra.mxu3 %v7380_v13  ;;  %v4767_v53 = vpop.f32.mrf.mxu3  ;;  %v4793_v51 = vpop.f32.mrf.mxu2 }
 0x5a3   :  { %5083 = vmatpush.bf16.msra.mxu1 %v7604_v39 }
 0x5a5   :  { %5049 = vmatpush.bf16.msrb.mxu2 %v6792_v21  ;;  %5062 = vmatpush.bf16.msrb.mxu0 %v7016_v22  ;;  %v4830_v56 = vpop.f32.mrf.mxu1 }
 0x5a6   :  { %5071 = vmatpush.bf16.msra.mxu3 %v7352_v24 }
 0x5a7   :  { %5084 = vmatpush.bf16.msra.mxu1 %v7576_v25  ;;  %v8321_v61 = vpop.eup %8320 }
 0x5a8   :  { %5050 = vmatmul.bf16.vlgmr.msrb.gmra.mxu2 %v8981_v30  ;;  %5063 = vmatmul.bf16.vlgmr.msrb.gmra.mxu0 %v8983_v18  ;;  %v7268_v30 = vor.u32 %v8165_v54, %v7267_v52  ;;  %v4856_v18 = vpop.f32.mrf.mxu0  ;;  %v5115_v0 = vadd.f32 1.0, %v8321_v61  ;;  %v3567_v54 = vperm.slane %v9016_v37, 3 }
 0x5aa   :  { %5072 = vmatpush.bf16.msra.mxu3 %v7324_v40  ;;  %8322 = vrcp.f32 %v5115_v0  ;;  %v4817_v3 = vpop.f32.mrf.mxu3  ;;  %v5133_v57 = vand.u32 2147483648, %v5115_v0  ;;  %v5131_v20 = vand.u32 2147483647, %v5115_v0  ;;  %vm5127_vm2 = vweird.f32 %v5115_v0 }
 0x5ab   :  { %5085 = vmatpush.bf16.msra.mxu1 %v7548_v11  ;;  %v4818_v4 = vadd.f32 %v4817_v3, %v4805_v43  ;;  %v4843_v42 = vpop.f32.mrf.mxu2 }
 0x5ac   :  { %v4844_v23 = vadd.f32 %v4843_v42, %v3566_v16  ;;  %v5134_v25 = vor.u32 1.1754944e-38, %v5133_v57  ;;  %vm5132_vm4 = vcmp.eq.f32.partialorder %v5131_v20, 8.507059e+37 }
 0x5ad   :  { %v4832_v5 = vpop.f32.mrf.mxu1  ;;  %v4831_v7 = vadd.f32 %v4830_v56, %v4818_v4 }
 0x5ae   :  { %5073 = vmatpush.bf16.msra.mxu3 %v7296_v49  ;;  %v4857_v27 = vadd.f32 %v4856_v18, %v4844_v23 }
 0x5af   :  { %5086 = vmatpush.bf16.msra.mxu1 %v7520_v50  ;;  %v7662_v13 = vmul.f32 -1.442695, %v4831_v7 }
 0x5b0   :  { %v4858_v9 = vpop.f32.mrf.mxu0  ;;  %v8323_v12 = vpop.eup %8322 }
 0x5b1   :  { %v5123_v39 = vmul.f32 %v8323_v12, %v5115_v0  ;;  %8324 = vpow2.f32 %v7662_v13  ;;  %vm5128_vm1 = vweird.f32 %v8323_v12 }
 0x5b2   :  { %5074 = vmatpush.bf16.msra.mxu3 %v7268_v30  ;;  %v4819_v8 = vpop.f32.mrf.mxu3  ;;  %vm5129_vm3 = vmor %vm5127_vm2, %vm5128_vm1 }
 0x5b3   :  { %5087 = vmatpush.bf16.msra.mxu1 %v7492_v59  ;;  %v5124_v15 = vsub.f32 1.0, %v5123_v39  ;;  %v4845_v17 = vpop.f32.mrf.mxu2 }
 0x5b5   :  { %v5125_v19 = vmul.f32 %v8323_v12, %v5124_v15  ;;  %v3568_v15 = vperm.slane %v9016_v37, 4 }
 0x5b6   :  { %5075 = vmatpush.bf16.msra.mxu3 %v7240_v1 }
 0x5b7   :  { %5088 = vmatpush.bf16.msra.mxu1 %v7464_v2  ;;  %v4882_v21 = vpop.f32.mrf.mxu1  ;;  %v5126_v22 = vadd.f32 %v8323_v12, %v5125_v19  ;;  %v8325_v24 = vpop.eup %8324 }
 0x5b9   :  { %5076 = vmatmul.bf16.vlgmr.msra.gmra.mxu3 %v8987_v10  ;;  %v5130_v10 = vsel %vm5129_vm3, %v8323_v12, %v5126_v22 }
 0x5ba   :  { %5089 = vmatmul.bf16.vlgmr.msra.gmra.mxu1 %v8989_v14  ;;  %v5116_v14 = vadd.f32 1.0, %v8325_v24  ;;  %v5135_v26 = vsel %vm5132_vm4, %v5134_v25, %v5130_v10 }
 0x5bb   :  { %5227 = vst [vmem:[#allocation24] sm:$0xff] %v5135_v26 }
 0x5bc   :  { %8326 = vrcp.f32 %v5116_v14  ;;  %v5148_v41 = vand.u32 2147483648, %v5116_v14  ;;  %v5146_v45 = vand.u32 2147483647, %v5116_v14  ;;  %vm5142_vm6 = vweird.f32 %v5116_v14 }
 0x5be   :  { %v4869_v28 = vpop.f32.mrf.mxu3  ;;  %v5149_v31 = vor.u32 1.1754944e-38, %v5148_v41  ;;  %vm5147_vm8 = vcmp.eq.f32.partialorder %v5146_v45, 8.507059e+37  ;;  %v3569_v41 = vperm.slane %v9016_v37, 5 }
 0x5bf   :  { %v4870_v29 = vadd.f32 %v4869_v28, %v4857_v27  ;;  %v4884_v32 = vpop.f32.mrf.mxu1 }
 0x5c1   :  { %v4883_v33 = vadd.f32 %v4882_v21, %v4870_v29 }
 0x5c2   :  { %v8327_v35 = vpop.eup %8326 }
 0x5c3   :  { %v7663_v48 = vmul.f32 -1.442695, %v4883_v33  ;;  %v5138_v36 = vmul.f32 %v8327_v35, %v5116_v14  ;;  %vm5143_vm5 = vweird.f32 %v8327_v35 }
 0x5c4   :  { %vm5144_vm7 = vmor %vm5142_vm6, %vm5143_vm5 }
 0x5c5   :  { %8328 = vpow2.f32 %v7663_v48  ;;  %v4908_v38 = vpop.f32.mrf.mxu0  ;;  %v5139_v40 = vsub.f32 1.0, %v5138_v36 }
 0x5c6   :  { %v4871_v11 = vpop.f32.mrf.mxu3 }
 0x5c7   :  { %v5140_v44 = vmul.f32 %v8327_v35, %v5139_v40 }
 0x5c9   :  { %v5141_v46 = vadd.f32 %v8327_v35, %v5140_v44 }
 0x5cb   :  { %v8329_v47 = vpop.eup %8328  ;;  %v4895_v49 = vpop.f32.mrf.mxu2  ;;  %v5145_v50 = vsel %vm5144_vm7, %v8327_v35, %v5141_v46 }
 0x5cc   :  { %v5117_v53 = vadd.f32 1.0, %v8329_v47  ;;  %v5150_v51 = vsel %vm5147_vm8, %v5149_v31, %v5145_v50  ;;  %v4896_v59 = vadd.f32 %v4895_v49, %v3567_v54 }
 0x5cd   :  { %v4910_v52 = vpop.f32.mrf.mxu0  ;;  %5228 = vst [vmem:[#allocation24 + $0x8] sm:$0xff] %v5150_v51 }
 0x5ce   :  { %8330 = vrcp.f32 %v5117_v53  ;;  %v5163_v18 = vand.u32 2147483648, %v5117_v53  ;;  %v5161_v61 = vand.u32 2147483647, %v5117_v53  ;;  %vm5157_vm10 = vweird.f32 %v5117_v53 }
 0x5cf   :  { %v4909_v34 = vadd.f32 %v4908_v38, %v4896_v59 }
 0x5d0   :  { %v5164_v63 = vor.u32 1.1754944e-38, %v5163_v18  ;;  %vm5162_vm12 = vcmp.eq.f32.partialorder %v5161_v61, 8.507059e+37 }
 0x5d3   :  { %v4897_v60 = vpop.f32.mrf.mxu2 }
 0x5d4   :  { %v8331_v55 = vpop.eup %8330 }
 0x5d5   :  { %v5153_v56 = vmul.f32 %v8331_v55, %v5117_v53  ;;  %vm5158_vm9 = vweird.f32 %v8331_v55 }
 0x5d6   :  { %vm5159_vm11 = vmor %vm5157_vm10, %vm5158_vm9 }
 0x5d7   :  { %v4934_v58 = vpop.f32.mrf.mxu1  ;;  %v5154_v30 = vsub.f32 1.0, %v5153_v56 }
 0x5d9   :  { %v5155_v6 = vmul.f32 %v8331_v55, %v5154_v30 }
 0x5db   :  { %v5156_v62 = vadd.f32 %v8331_v55, %v5155_v6 }
 0x5dd   :  { %v5160_v1 = vsel %vm5159_vm11, %v8331_v55, %v5156_v62 }
 0x5de   :  { %v4921_v0 = vpop.f32.mrf.mxu3  ;;  %v5165_v43 = vsel %vm5162_vm12, %v5164_v63, %v5160_v1 }
 0x5df   :  { %v4922_v2 = vadd.f32 %v4921_v0, %v4909_v34  ;;  %v4936_v3 = vpop.f32.mrf.mxu1  ;;  %5229 = vst [vmem:[#allocation24 + $0x10] sm:$0xff] %v5165_v43 }
 0x5e1   :  { %v4935_v4 = vadd.f32 %v4934_v58, %v4922_v2  ;;  %v3570_v2 = vperm.slane %v9016_v37, 6 }
 0x5e3   :  { %v7664_v42 = vmul.f32 -1.442695, %v4935_v4 }
 0x5e5   :  { %8332 = vpow2.f32 %v7664_v42  ;;  %v4960_v5 = vpop.f32.mrf.mxu0 }
 0x5e6   :  { %v4923_v7 = vpop.f32.mrf.mxu3 }
 0x5eb   :  { %v8333_v9 = vpop.eup %8332  ;;  %v4947_v12 = vpop.f32.mrf.mxu2 }
 0x5ec   :  { %v5118_v13 = vadd.f32 1.0, %v8333_v9  ;;  %v4948_v20 = vadd.f32 %v4947_v12, %v3568_v15 }
 0x5ed   :  { %v4962_v39 = vpop.f32.mrf.mxu0 }
 0x5ee   :  { %8334 = vrcp.f32 %v5118_v13  ;;  %v5178_v21 = vand.u32 2147483648, %v5118_v13  ;;  %v5176_v23 = vand.u32 2147483647, %v5118_v13  ;;  %vm5172_vm14 = vweird.f32 %v5118_v13 }
 0x5ef   :  { %v4961_v25 = vadd.f32 %v4960_v5, %v4948_v20 }
 0x5f0   :  { %v5179_v10 = vor.u32 1.1754944e-38, %v5178_v21  ;;  %vm5177_vm0 = vcmp.eq.f32.partialorder %v5176_v23, 8.507059e+37 }
 0x5f3   :  { %v4949_v16 = vpop.f32.mrf.mxu2 }
 0x5f4   :  { %v8335_v8 = vpop.eup %8334 }
 0x5f5   :  { %v5168_v57 = vmul.f32 %v8335_v8, %v5118_v13  ;;  %vm5173_vm13 = vweird.f32 %v8335_v8 }
 0x5f6   :  { %vm5174_vm15 = vmor %vm5172_vm14, %vm5173_vm13 }
 0x5f7   :  { %v4986_v17 = vpop.f32.mrf.mxu1  ;;  %v5169_v19 = vsub.f32 1.0, %v5168_v57 }
 0x5f9   :  { %v5170_v22 = vmul.f32 %v8335_v8, %v5169_v19 }
 0x5fb   :  { %v5171_v24 = vadd.f32 %v8335_v8, %v5170_v22 }
 0x5fd   :  { %v5175_v26 = vsel %vm5174_vm15, %v8335_v8, %v5171_v24 }
 0x5fe   :  { %v4973_v14 = vpop.f32.mrf.mxu3  ;;  %v5180_v28 = vsel %vm5177_vm0, %v5179_v10, %v5175_v26 }
 0x5ff   :  { %v4974_v27 = vadd.f32 %v4973_v14, %v4961_v25  ;;  %v4988_v29 = vpop.f32.mrf.mxu1  ;;  %5230 = vst [vmem:[#allocation24 + $0x18] sm:$0xff] %v5180_v28 }
 0x601   :  { %v4987_v32 = vadd.f32 %v4986_v17, %v4974_v27 }
 0x603   :  { %v7665_v33 = vmul.f32 -1.442695, %v4987_v32 }
 0x605   :  { %8336 = vpow2.f32 %v7665_v33  ;;  %v5012_v35 = vpop.f32.mrf.mxu0 }
 0x606   :  { %v4975_v48 = vpop.f32.mrf.mxu3 }
 0x60b   :  { %v8337_v36 = vpop.eup %8336  ;;  %v4999_v38 = vpop.f32.mrf.mxu2 }
 0x60c   :  { %v5119_v40 = vadd.f32 1.0, %v8337_v36  ;;  %v5000_v49 = vadd.f32 %v4999_v38, %v3569_v41 }
 0x60d   :  { %v5014_v11 = vpop.f32.mrf.mxu0 }
 0x60e   :  { %8338 = vrcp.f32 %v5119_v40  ;;  %v5193_v50 = vand.u32 2147483648, %v5119_v40  ;;  %v5191_v51 = vand.u32 2147483647, %v5119_v40  ;;  %vm5187_vm2 = vweird.f32 %v5119_v40 }
 0x60f   :  { %v5013_v54 = vadd.f32 %v5012_v35, %v5000_v49 }
 0x610   :  { %v5194_v60 = vor.u32 1.1754944e-38, %v5193_v50  ;;  %vm5192_vm4 = vcmp.eq.f32.partialorder %v5191_v51, 8.507059e+37 }
 0x613   :  { %v5001_v44 = vpop.f32.mrf.mxu2 }
 0x614   :  { %v8339_v45 = vpop.eup %8338 }
 0x615   :  { %v5183_v46 = vmul.f32 %v8339_v45, %v5119_v40  ;;  %vm5188_vm1 = vweird.f32 %v8339_v45 }
 0x616   :  { %vm5189_vm3 = vmor %vm5187_vm2, %vm5188_vm1 }
 0x617   :  { %v5038_v47 = vpop.f32.mrf.mxu1  ;;  %v5184_v31 = vsub.f32 1.0, %v5183_v46 }
 0x619   :  { %v5185_v53 = vmul.f32 %v8339_v45, %v5184_v31 }
 0x61b   :  { %v5186_v52 = vadd.f32 %v8339_v45, %v5185_v53 }
 0x61d   :  { %v5190_v56 = vsel %vm5189_vm3, %v8339_v45, %v5186_v52 }
 0x61e   :  { %v5025_v55 = vpop.f32.mrf.mxu3  ;;  %v5195_v30 = vsel %vm5192_vm4, %v5194_v60, %v5190_v56 }
 0x61f   :  { %v5026_v58 = vadd.f32 %v5025_v55, %v5013_v54  ;;  %v5040_v59 = vpop.f32.mrf.mxu1  ;;  %5231 = vst [vmem:[#allocation24 + $0x20] sm:$0xff] %v5195_v30 }
 0x621   :  { %v5039_v18 = vadd.f32 %v5038_v47, %v5026_v58 }
 0x623   :  { %v7666_v6 = vmul.f32 -1.442695, %v5039_v18 }
 0x625   :  { %8340 = vpow2.f32 %v7666_v6  ;;  %v5064_v61 = vpop.f32.mrf.mxu0 }
 0x626   :  { %v5027_v62 = vpop.f32.mrf.mxu3 }
 0x62b   :  { %v8341_v34 = vpop.eup %8340  ;;  %v5051_v63 = vpop.f32.mrf.mxu2 }
 0x62c   :  { %v5120_v0 = vadd.f32 1.0, %v8341_v34  ;;  %v5052_v7 = vadd.f32 %v5051_v63, %v3570_v2 }
 0x62d   :  { %v5066_v1 = vpop.f32.mrf.mxu0 }
 0x62e   :  { %8342 = vrcp.f32 %v5120_v0  ;;  %v5208_v9 = vand.u32 2147483648, %v5120_v0  ;;  %v5206_v13 = vand.u32 2147483647, %v5120_v0  ;;  %vm5202_vm6 = vweird.f32 %v5120_v0 }
 0x62f   :  { %v5065_v15 = vadd.f32 %v5064_v61, %v5052_v7 }
 0x630   :  { %v5209_v16 = vor.u32 1.1754944e-38, %v5208_v9  ;;  %vm5207_vm8 = vcmp.eq.f32.partialorder %v5206_v13, 8.507059e+37 }
 0x633   :  { %v5053_v43 = vpop.f32.mrf.mxu2 }
 0x634   :  { %v8343_v3 = vpop.eup %8342 }
 0x635   :  { %v5198_v4 = vmul.f32 %v8343_v3, %v5120_v0  ;;  %vm5203_vm5 = vweird.f32 %v8343_v3 }
 0x636   :  { %vm5204_vm7 = vmor %vm5202_vm6, %vm5203_vm5 }
 0x637   :  { %v5090_v42 = vpop.f32.mrf.mxu1  ;;  %v5199_v5 = vsub.f32 1.0, %v5198_v4 }
 0x639   :  { %v5200_v12 = vmul.f32 %v8343_v3, %v5199_v5 }
 0x63b   :  { %v5201_v39 = vadd.f32 %v8343_v3, %v5200_v12 }
 0x63c   :  { %v5077_v8 = vpop.f32.mrf.mxu3 }
 0x63d   :  { %v5205_v57 = vsel %vm5204_vm7, %v8343_v3, %v5201_v39  ;;  %v5078_v17 = vadd.f32 %v5077_v8, %v5065_v15 }
 0x63e   :  { %v5210_v37 = vsel %vm5207_vm8, %v5209_v16, %v5205_v57 }
 0x63f   :  { %v5092_v19 = vpop.f32.mrf.mxu1  ;;  %5232 = vst [vmem:[#allocation24 + $0x28] sm:$0xff] %v5210_v37  ;;  %v5091_v20 = vadd.f32 %v5090_v42, %v5078_v17 }
 0x641   :  { %v7667_v21 = vmul.f32 -1.442695, %v5091_v20 }
 0x643   :  { %8344 = vpow2.f32 %v7667_v21 }
 0x644   :  { %v5079_v22 = vpop.f32.mrf.mxu3 }
 0x649   :  { %v8345_v23 = vpop.eup %8344 }
 0x64a   :  { %v5121_v24 = vadd.f32 1.0, %v8345_v23 }
 0x64c   :  { %8346 = vrcp.f32 %v5121_v24  ;;  %v5223_v26 = vand.u32 2147483648, %v5121_v24  ;;  %v5221_v28 = vand.u32 2147483647, %v5121_v24  ;;  %vm5217_vm10 = vweird.f32 %v5121_v24 }
 0x64e   :  { %v5224_v32 = vor.u32 1.1754944e-38, %v5223_v26  ;;  %vm5222_vm12 = vcmp.eq.f32.partialorder %v5221_v28, 8.507059e+37 }
 0x652   :  { %v8347_v25 = vpop.eup %8346 }
 0x653   :  { %v5213_v10 = vmul.f32 %v8347_v25, %v5121_v24  ;;  %vm5218_vm9 = vweird.f32 %v8347_v25 }
 0x654   :  { %vm5219_vm11 = vmor %vm5217_vm10, %vm5218_vm9 }
 0x655   :  { %v5214_v14 = vsub.f32 1.0, %v5213_v10 }
 0x657   :  { %v5215_v27 = vmul.f32 %v8347_v25, %v5214_v14 }
 0x659   :  { %v5216_v29 = vadd.f32 %v8347_v25, %v5215_v27 }
 0x65b   :  { %v5220_v33 = vsel %vm5219_vm11, %v8347_v25, %v5216_v29 }
 0x65c   :  { %v5225_v35 = vsel %vm5222_vm12, %v5224_v32, %v5220_v33 }
 0x65d   :  { %5233 = vst [vmem:[#allocation24 + $0x30] sm:$0xff] %v5225_v35 }
 0x65e   :  { %5255 = dma.vmem_to_hbm [thread:$0]  %s5251_s27, 896, %s5253_s13, [#allocation25]  }
 0x65f   :  { %8722 = dma.done.wait [#allocation4], 128  }
 0x660   :  { %8723 = vsyncadd [#allocation4], 4294967168 }
 0x661   :  { %8724 = dma.done.wait [#allocation25], 896  }
 0x662   :  { %8725 = vsyncadd [#allocation25], 4294966400 }
 0x663   :  { %5264 = vsyncpa [#allocation3], 1 }
 0x664   :  { %5265 = vsyncpa [#allocation6], 1 }
 0x665   :  { %5266 = vsyncpa [#allocation9], 1 }
 0x666   :  { %5267 = vsyncpa [#allocation12], 1 }
 0x667   :  { %5268 = vsyncpa [#allocation15], 1 }
 0x668   :  { %5269 = vsyncpa [#allocation18], 1 }
 0x669   :  { %5270 = vsyncpa [#allocation21], 1 }
 0x66a   :  { %5271 = vsyncpa [#allocation4], 1 }
 0x66b   :  { %5272 = vsyncpa [#allocation25], 1 }

</bundles_post_ra>
